<compile_context>
chip_gen: v7x
topology: tpu7x:2x2x1
jax: 0.10.0
libtpu: 0.0.40
codegen_flags: <defaults>
</compile_context>

<pallas_src>
import functools
import math

import jax
import jax.numpy as jnp
from jax.experimental import pallas as pl
from jax.experimental.pallas import tpu as pltpu

_EPS = 1e-5  # nn.InstanceNorm2d default eps


# ----------------------------------------------------------------------------
# exact (erf-based) GELU, matching PyTorch F.gelu default
# ----------------------------------------------------------------------------
def _erf(x):
    # Abramowitz & Stegun 7.1.26 polynomial (max abs err ~1.5e-7 for the poly);
    # the divide is routed to the EUP via pl.reciprocal (approx) per review.
    a1, a2, a3, a4, a5 = 0.254829592, -0.284496736, 1.421413741, -1.453152027, 1.061405429
    p = 0.3275911
    s = jnp.where(x >= 0.0, 1.0, -1.0)
    ax = jnp.abs(x)
    t = pl.reciprocal(1.0 + p * ax, approx=True)
    poly = ((((a5 * t + a4) * t + a3) * t + a2) * t + a1) * t
    return s * (1.0 - poly * jnp.exp(-ax * ax))


def _gelu(x):
    return 0.5 * x * (1.0 + _erf(x * (1.0 / math.sqrt(2.0))))


def _lane_tile(n):
    # Big lane tiles (>=85% HBM roofline at >=512) while keeping >=2 grid steps
    # so the 'parallel' axis can shard across v7x's two TensorCores.
    for t in (512, 256, 128):
        if n % t == 0 and n // t >= 2:
            return t
    return n  # toy-scale fallback: single full block


# ----------------------------------------------------------------------------
# Pallas kernel: lift  (nn.Linear 10 -> width), channels-major / lane-dense
# ----------------------------------------------------------------------------
def _lift_kernel(x_ref, w_ref, b_ref, o_ref):
    y = jnp.dot(w_ref[...], x_ref[...], preferred_element_type=jnp.float32)
    o_ref[...] = (y + b_ref[...]).astype(o_ref.dtype)


def lift(x_cm, wt, b):
    """x_cm: (Cin, N); wt: (Cout, Cin); b: (Cout, 1) -> (Cout, N)."""
    Cin, N = x_cm.shape
    Cout = wt.shape[0]
    tn = _lane_tile(N)
    return pl.pallas_call(
        _lift_kernel,
        out_shape=jax.ShapeDtypeStruct((Cout, N), jnp.float32),
        grid=(N // tn,),
        in_specs=[
            pl.BlockSpec((Cin, tn), lambda i: (0, i)),
            pl.BlockSpec((Cout, Cin), lambda i: (0, 0)),
            pl.BlockSpec((Cout, 1), lambda i: (0, 0)),
        ],
        out_specs=pl.BlockSpec((Cout, tn), lambda i: (0, i)),
        compiler_params=pltpu.CompilerParams(dimension_semantics=("parallel",)),
    )(x_cm, wt, b)


# ----------------------------------------------------------------------------
# Pallas kernel: fused Fourier-layer pointwise chain
#   out = [gelu]( W2 @ gelu(W1 @ xn + b1) + b2  +  Ww @ x + bw )
# ----------------------------------------------------------------------------
def _layer_kernel(xn_ref, x_ref, w1_ref, b1_ref, w2_ref, b2_ref, ww_ref, bw_ref,
                  o_ref, *, final_gelu):
    # the (width, tile) intermediate h never leaves VMEM/vregs
    h = _gelu(jnp.dot(w1_ref[...], xn_ref[...],
                      preferred_element_type=jnp.float32) + b1_ref[...])
    x1 = jnp.dot(w2_ref[...], h, preferred_element_type=jnp.float32) + b2_ref[...]
    x2 = jnp.dot(ww_ref[...], x_ref[...],
                 preferred_element_type=jnp.float32) + bw_ref[...]
    y = x1 + x2
    if final_gelu:
        y = _gelu(y)
    o_ref[...] = y.astype(o_ref.dtype)


def fused_layer(xn, x, w1t, b1, w2t, b2, wwt, bw, final_gelu):
    C, N = x.shape
    tn = _lane_tile(N)
    act_spec = pl.BlockSpec((C, tn), lambda i: (0, i))
    w_spec = pl.BlockSpec((C, C), lambda i: (0, 0))
    b_spec = pl.BlockSpec((C, 1), lambda i: (0, 0))
    return pl.pallas_call(
        functools.partial(_layer_kernel, final_gelu=final_gelu),
        out_shape=jax.ShapeDtypeStruct((C, N), jnp.float32),
        grid=(N // tn,),
        in_specs=[act_spec, act_spec, w_spec, b_spec, w_spec, b_spec, w_spec, b_spec],
        out_specs=act_spec,
        compiler_params=pltpu.CompilerParams(dimension_semantics=("parallel",)),
    )(xn, x, w1t, b1, w2t, b2, wwt, bw)


# ----------------------------------------------------------------------------
# Pallas kernel: fused projection q  (width -> 4*width -> 1), lane-dense (1, N)
# ----------------------------------------------------------------------------
def _q_kernel(x_ref, w1_ref, b1_ref, w2_ref, b2_ref, o_ref):
    h = _gelu(jnp.dot(w1_ref[...], x_ref[...],
                      preferred_element_type=jnp.float32) + b1_ref[...])
    o_ref[...] = (jnp.dot(w2_ref[...], h, preferred_element_type=jnp.float32)
                  + b2_ref[...]).astype(o_ref.dtype)


def q_proj(x, w1t, b1, w2t, b2):
    C, N = x.shape
    Cm = w1t.shape[0]
    Cout = w2t.shape[0]
    tn = _lane_tile(N)
    return pl.pallas_call(
        _q_kernel,
        out_shape=jax.ShapeDtypeStruct((Cout, N), jnp.float32),
        grid=(N // tn,),
        in_specs=[
            pl.BlockSpec((C, tn), lambda i: (0, i)),
            pl.BlockSpec((Cm, C), lambda i: (0, 0)),
            pl.BlockSpec((Cm, 1), lambda i: (0, 0)),
            pl.BlockSpec((Cout, Cm), lambda i: (0, 0)),
            pl.BlockSpec((Cout, 1), lambda i: (0, 0)),
        ],
        out_specs=pl.BlockSpec((Cout, tn), lambda i: (0, i)),
        compiler_params=pltpu.CompilerParams(dimension_semantics=("parallel",)),
    )(x, w1t, b1, w2t, b2)


# ----------------------------------------------------------------------------
# Pallas kernel: InstanceNorm2d (affine=False, biased variance), lane reduce
# ----------------------------------------------------------------------------
def _inorm_kernel(x_ref, o_ref):
    x = x_ref[...]                                  # (Cb, B, H*W)
    mean = jnp.mean(x, axis=-1, keepdims=True)      # cross-lane (XLU) reduce
    d = x - mean
    var = jnp.mean(d * d, axis=-1, keepdims=True)
    o_ref[...] = (d * jax.lax.rsqrt(var + _EPS)).astype(o_ref.dtype)


def instance_norm(a, B, H, W):
    """a: (C, N) channels-major, N = B*H*W -> same shape, per-(b, c) norm."""
    C, N = a.shape
    HW = H * W
    x3 = a.reshape(C, B, HW)                        # free row-major reshape
    # Block over channels: pipelined, >=2 grid steps, each block small so the
    # whole tensor is never pulled into (v7x's smaller) VMEM at once.
    row_bytes = B * HW * 4
    cb = C
    for d in range(C - 1, 0, -1):
        if C % d == 0 and d * row_bytes <= (2 << 20):
            cb = d
            break
    y = pl.pallas_call(
        _inorm_kernel,
        out_shape=jax.ShapeDtypeStruct((C, B, HW), jnp.float32),
        grid=(C // cb,),
        in_specs=[pl.BlockSpec((cb, B, HW), lambda i: (i, 0, 0))],
        out_specs=pl.BlockSpec((cb, B, HW), lambda i: (i, 0, 0)),
        compiler_params=pltpu.CompilerParams(dimension_semantics=("parallel",)),
    )(x3)
    return y.reshape(C, N)


# ----------------------------------------------------------------------------
# Pallas kernel: per-mode complex channel mixing ('bixy,ioxy->boxy')
# ----------------------------------------------------------------------------
def _cmul_kernel(xr_ref, xi_ref, wr_ref, wi_ref, or_ref, oi_ref):
    # All modes of this block handled in one grid step (static unroll) using
    # the 3-matmul complex trick: re = t1 - t2, im = t3 - t1 - t2.
    for j in range(xr_ref.shape[0]):
        xr, xi = xr_ref[j], xi_ref[j]               # (B, Cin)
        wr, wi = wr_ref[j], wi_ref[j]               # (Cin, Cout)
        t1 = jnp.dot(xr, wr, preferred_element_type=jnp.float32)
        t2 = jnp.dot(xi, wi, preferred_element_type=jnp.float32)
        t3 = jnp.dot(xr + xi, wr + wi, preferred_element_type=jnp.float32)
        or_ref[j] = t1 - t2
        oi_ref[j] = t3 - (t1 + t2)


def compl_mul2d(modes, wr, wi):
    """modes: (Cin, B, KY, KX) c64; wr/wi: (KY*KX, Cin, Cout) f32 (pre-split).

    Returns (Cout, B, KY, KX) complex64.
    """
    Cin, B, KY, KX = modes.shape
    M, _, Cout = wr.shape
    xm = jnp.transpose(modes, (2, 3, 1, 0)).reshape(M, B, Cin)
    xr = jnp.real(xm).astype(jnp.float32)
    xi = jnp.imag(xm).astype(jnp.float32)
    mb = M // 2 if M % 2 == 0 else M                # 2 grid steps when possible
    x_spec = pl.BlockSpec((mb, B, Cin), lambda m: (m, 0, 0))
    w_spec = pl.BlockSpec((mb, Cin, Cout), lambda m: (m, 0, 0))
    o_spec = pl.BlockSpec((mb, B, Cout), lambda m: (m, 0, 0))
    out_r, out_i = pl.pallas_call(
        _cmul_kernel,
        out_shape=(jax.ShapeDtypeStruct((M, B, Cout), jnp.float32),
                   jax.ShapeDtypeStruct((M, B, Cout), jnp.float32)),
        grid=(M // mb,),
        in_specs=[x_spec, x_spec, w_spec, w_spec],
        out_specs=(o_spec, o_spec),
        compiler_params=pltpu.CompilerParams(dimension_semantics=("parallel",)),
    )(xr, xi, wr, wi)
    out = (out_r + 1j * out_i).astype(jnp.complex64)
    return jnp.transpose(out.reshape(KY, KX, B, Cout), (3, 2, 0, 1))


# ----------------------------------------------------------------------------
# Spectral layers (FFT glue in plain JAX, channel mixing in Pallas)
# ----------------------------------------------------------------------------
def _fft_modes(a, B, H, W, m1, m2):
    C = a.shape[0]
    x4 = a.reshape(C, B, H, W)
    x_ft = jnp.fft.fftshift(jnp.fft.rfft2(x4, axes=(-2, -1)), axes=-2)
    f0 = H // 2  # zero-frequency row after fftshift; assumes even H (as in ref)
    return x_ft[:, :, f0 - m1 + 1: f0 + m1, :m2], f0


def _ifft_from_modes(modes, B, H, W, m1, m2, f0):
    Cout = modes.shape[0]
    Wr = W // 2 + 1
    out_ft = jnp.zeros((Cout, B, H, Wr), jnp.complex64)
    out_ft = out_ft.at[:, :, f0 - m1 + 1: f0 + m1, :m2].set(modes)
    out_ft = jnp.fft.ifftshift(out_ft, axes=-2)
    y = jnp.fft.irfft2(out_ft, s=(H, W), axes=(-2, -1))
    return y.reshape(Cout, B * H * W).astype(jnp.float32)


def spectral_conv2d(a, wr, wi, m1, m2, B, H, W):
    modes, f0 = _fft_modes(a, B, H, W, m1, m2)
    out_modes = compl_mul2d(modes, wr, wi)
    return _ifft_from_modes(out_modes, B, H, W, m1, m2, f0)


def spectral_int2d(a, wr, wi, w1r, w1i, sp1, sp2, m1, m2, B, H, W):
    modes, f0 = _fft_modes(a, B, H, W, m1, m2)
    x_ft = compl_mul2d(modes, wr, wi)               # (C, B, KY, KX)
    # tiny complex spatial-mixing einsums kept in plain JAX (glue);
    # torch 'bcix,cio->bcox' / 'bcyi,cio->bcyo' in the (C, B, ...) layout.
    x_ft1 = jnp.einsum('cbix,cio->cbox', x_ft, sp1)
    x_ft1 = jnp.einsum('cbyi,cio->cbyo', x_ft1, sp2)
    x_ft1 = compl_mul2d(x_ft1, w1r, w1i)
    x_ft = x_ft * x_ft1 + x_ft
    return _ifft_from_modes(x_ft, B, H, W, m1, m2, f0)


# ----------------------------------------------------------------------------
# Parameters (deterministic synthetic init); weights pre-transposed / pre-split
# for the channels-major kernels so no per-call reshuffling is needed.
# ----------------------------------------------------------------------------
def init_params(key, width, m1, m2):
    keys = iter(jax.random.split(key, 64))

    def nk():
        return next(keys)

    def dense_t(cin, cout):
        bound = 1.0 / math.sqrt(cin)
        w = jax.random.uniform(nk(), (cin, cout), jnp.float32, -bound, bound)
        b = jax.random.uniform(nk(), (cout,), jnp.float32, -bound, bound)
        return w.T, b.reshape(cout, 1)

    KY, KX = 2 * m1 - 1, m2

    def spec_w(cin, cout):
        scale = 1.0 / math.sqrt(cin)
        ks = jax.random.split(nk(), 5)
        u = lambda k, s: jax.random.uniform(k, s, jnp.float32, -scale, scale)
        y0 = u(ks[0], (cin, cout, m1 - 1, 1)) + 1j * u(ks[1], (cin, cout, m1 - 1, 1))
        zz = u(ks[2], (cin, cout, 1, 1)).astype(jnp.complex64)
        yp = u(ks[3], (cin, cout, KY, KX - 1)) + 1j * u(ks[4], (cin, cout, KY, KX - 1))
        wy = jnp.concatenate([y0, zz, jnp.conj(jnp.flip(y0, axis=-2))], axis=-2)
        w = jnp.concatenate([wy, yp.astype(jnp.complex64)], axis=-1).astype(jnp.complex64)
        # precompute the (M, Cin, Cout) real/imag split once (per perf review)
        wm = jnp.transpose(w, (2, 3, 0, 1)).reshape(KY * KX, cin, cout)
        return jnp.real(wm).astype(jnp.float32), jnp.imag(wm).astype(jnp.float32)

    p = {}
    p['p_wt'], p['p_b'] = dense_t(10, width)
    for i in range(3):
        p[f'conv{i}_wr'], p[f'conv{i}_wi'] = spec_w(width, width)
    p['conv3_wr'], p['conv3_wi'] = spec_w(width, width)
    p['conv3_w1r'], p['conv3_w1i'] = spec_w(width, width)
    k1, k2 = jax.random.split(nk())
    p['conv3_sp1'] = ((1.0 / m1) * (jax.random.uniform(k1, (width, KY, KY))
                                    + 1j * jax.random.uniform(k2, (width, KY, KY)))).astype(jnp.complex64)
    k1, k2 = jax.random.split(nk())
    p['conv3_sp2'] = ((1.0 / m2) * (jax.random.uniform(k1, (width, KX, KX))
                                    + 1j * jax.random.uniform(k2, (width, KX, KX)))).astype(jnp.complex64)
    for i in range(4):
        p[f'mlp{i}_w1t'], p[f'mlp{i}_b1'] = dense_t(width, width)
        p[f'mlp{i}_w2t'], p[f'mlp{i}_b2'] = dense_t(width, width)
        p[f'w{i}_wt'], p[f'w{i}_b'] = dense_t(width, width)
    p['q_w1t'], p['q_b1'] = dense_t(width, 4 * width)
    p['q_w2t'], p['q_b2'] = dense_t(4 * width, 1)
    return p


# ----------------------------------------------------------------------------
# FNO2d forward
# ----------------------------------------------------------------------------
def fno2d_forward(params, x, modes1, modes2):
    B, H, W, Cin0 = x.shape
    N = B * H * W

    # channels-major activation (C, N), N = (B, H, W) order on the lane axis
    a = lift(x.reshape(N, Cin0).T, params['p_wt'], params['p_b'])

    # Fourier layers 0..2: x = gelu( mlp(norm(conv(norm(x)))) + w(x) )
    for i in range(3):
        s = spectral_conv2d(instance_norm(a, B, H, W),
                            params[f'conv{i}_wr'], params[f'conv{i}_wi'],
                            modes1, modes2, B, H, W)
        a = fused_layer(instance_norm(s, B, H, W), a,
                        params[f'mlp{i}_w1t'], params[f'mlp{i}_b1'],
                        params[f'mlp{i}_w2t'], params[f'mlp{i}_b2'],
                        params[f'w{i}_wt'], params[f'w{i}_b'], final_gelu=True)

    # Fourier layer 3 (SpectralInt2d), no GELU after the residual add
    s = spectral_int2d(instance_norm(a, B, H, W),
                       params['conv3_wr'], params['conv3_wi'],
                       params['conv3_w1r'], params['conv3_w1i'],
                       params['conv3_sp1'], params['conv3_sp2'],
                       modes1, modes2, B, H, W)
    a = fused_layer(instance_norm(s, B, H, W), a,
                    params['mlp3_w1t'], params['mlp3_b1'],
                    params['mlp3_w2t'], params['mlp3_b2'],
                    params['w3_wt'], params['w3_b'], final_gelu=False)

    # projection q: MLP(width, 1, 4*width), fused, lane-dense (1, N) output
    out = q_proj(a, params['q_w1t'], params['q_b1'], params['q_w2t'], params['q_b2'])
    return out.T.reshape(B, H, W, 1)


if __name__ == "__main__":
    B, H, W, C_IN = 2, 16, 16, 10
    MODES1 = MODES2 = 4
    WIDTH = 20

    root = jax.random.PRNGKey(0)
    k_params, k_x = jax.random.split(root)
    params = init_params(k_params, WIDTH, MODES1, MODES2)
    x = jax.random.normal(k_x, (B, H, W, C_IN), jnp.float32)

    fwd = jax.jit(functools.partial(fno2d_forward, modes1=MODES1, modes2=MODES2))
    y = fwd(params, x)
    jax.block_until_ready(y)
    assert y.shape == (B, H, W, 1), y.shape
    assert y.dtype == jnp.float32
    print("KERNEL_OK")
</pallas_src>

<mosaic_0001>
module attributes {stable_mosaic.version = 11 : i64} {
  func.func @_lift_kernel(%arg0: i32, %arg1: memref<10x256xf32, #tpu.memory_space<vmem>>, %arg2: memref<20x10xf32, #tpu.memory_space<vmem>>, %arg3: memref<20x1xf32, #tpu.memory_space<vmem>>, %arg4: memref<20x256xf32, #tpu.memory_space<vmem>>) attributes {dimension_semantics = [#tpu.dimension_semantics<parallel>], iteration_bounds = array<i64: 2>, scalar_prefetch = 0 : i64, scratch_operands = 0 : i64, tpu.core_type = #tpu.core_type<tc>, window_params = [{transform_indices = @transform_0, window_bounds = array<i64: 10, 256>}, {pipeline_mode = #tpu.pipeline_mode<synchronous>, transform_indices = @transform_1, window_bounds = array<i64: 20, 10>}, {pipeline_mode = #tpu.pipeline_mode<synchronous>, transform_indices = @transform_2, window_bounds = array<i64: 20, 1>}, {transform_indices = @transform_3, window_bounds = array<i64: 20, 256>}]} {
    %c0 = arith.constant 0 : index
    %c0_0 = arith.constant 0 : index
    %0 = vector.load %arg2[%c0, %c0_0] : memref<20x10xf32, #tpu.memory_space<vmem>>, vector<20x10xf32>
    %c0_1 = arith.constant 0 : index
    %c0_2 = arith.constant 0 : index
    %1 = vector.load %arg1[%c0_1, %c0_2] : memref<10x256xf32, #tpu.memory_space<vmem>>, vector<10x256xf32>
    %cst = arith.constant dense<0.000000e+00> : vector<20x256xf32>
    %2 = tpu.matmul %0, %1, %cst {dimension_numbers = #tpu.dot_dimension_numbers<[1], [0], [0], [1], [0, 0, 1, 1], [], []>} : vector<20x10xf32>, vector<10x256xf32>, vector<20x256xf32> -> vector<20x256xf32>
    %c0_3 = arith.constant 0 : index
    %c0_4 = arith.constant 0 : index
    %3 = vector.load %arg3[%c0_3, %c0_4] : memref<20x1xf32, #tpu.memory_space<vmem>>, vector<20x1xf32>
    %4 = vector.broadcast %3 : vector<20x1xf32> to vector<20x256xf32>
    %5 = arith.addf %2, %4 : vector<20x256xf32>
    %c0_5 = arith.constant 0 : index
    %c0_6 = arith.constant 0 : index
    %6 = vector.load %arg4[%c0_5, %c0_6] : memref<20x256xf32, #tpu.memory_space<vmem>>, vector<20x256xf32>
    tpu.vector_store %arg4[%c0_5, %c0_6], %5 {strides = array<i32>} : memref<20x256xf32, #tpu.memory_space<vmem>>, vector<20x256xf32>,
    return
  }
  func.func @transform_0(%arg0: i32) -> (i32, i32) {
    %c0_i32 = arith.constant 0 : i32
    %c0_i32_0 = arith.constant 0 : i32
    return %c0_i32, %arg0 : i32, i32
  }
  func.func @transform_1(%arg0: i32) -> (i32, i32) {
    %c0_i32 = arith.constant 0 : i32
    %c0_i32_0 = arith.constant 0 : i32
    %c0_i32_1 = arith.constant 0 : i32
    return %c0_i32, %c0_i32_0 : i32, i32
  }
  func.func @transform_2(%arg0: i32) -> (i32, i32) {
    %c0_i32 = arith.constant 0 : i32
    %c0_i32_0 = arith.constant 0 : i32
    %c0_i32_1 = arith.constant 0 : i32
    return %c0_i32, %c0_i32_0 : i32, i32
  }
  func.func @transform_3(%arg0: i32) -> (i32, i32) {
    %c0_i32 = arith.constant 0 : i32
    %c0_i32_0 = arith.constant 0 : i32
    return %c0_i32, %arg0 : i32, i32
  }
}

module attributes {stable_mosaic.version = 11 : i64} {
  func.func @_inorm_kernel(%arg0: i32, %arg1: memref<10x2x256xf32, #tpu.memory_space<vmem>>, %arg2: memref<10x2x256xf32, #tpu.memory_space<vmem>>) attributes {dimension_semantics = [#tpu.dimension_semantics<parallel>], iteration_bounds = array<i64: 2>, scalar_prefetch = 0 : i64, scratch_operands = 0 : i64, tpu.core_type = #tpu.core_type<tc>, window_params = [{transform_indices = @transform_0, window_bounds = array<i64: 10, 2, 256>}, {transform_indices = @transform_1, window_bounds = array<i64: 10, 2, 256>}]} {
    %c0 = arith.constant 0 : index
    %c0_0 = arith.constant 0 : index
    %c0_1 = arith.constant 0 : index
    %0 = vector.load %arg1[%c0, %c0_0, %c0_1] : memref<10x2x256xf32, #tpu.memory_space<vmem>>, vector<10x2x256xf32>
    %cst = arith.constant dense<0.000000e+00> : vector<10x2xf32>
    %1 = vector.multi_reduction <add>, %0, %cst [2] : vector<10x2x256xf32> to vector<10x2xf32>
    %2 = vector.shape_cast %1 : vector<10x2xf32> to vector<10x2x1xf32>
    %cst_2 = arith.constant 2.560000e+02 : f32
    %3 = vector.broadcast %cst_2 : f32 to vector<10x2x1xf32>
    %4 = arith.divf %2, %3 : vector<10x2x1xf32>
    %5 = vector.broadcast %4 : vector<10x2x1xf32> to vector<10x2x256xf32>
    %6 = arith.subf %0, %5 : vector<10x2x256xf32>
    %7 = arith.mulf %6, %6 : vector<10x2x256xf32>
    %cst_3 = arith.constant dense<0.000000e+00> : vector<10x2xf32>
    %8 = vector.multi_reduction <add>, %7, %cst_3 [2] : vector<10x2x256xf32> to vector<10x2xf32>
    %9 = vector.shape_cast %8 : vector<10x2xf32> to vector<10x2x1xf32>
    %cst_4 = arith.constant 2.560000e+02 : f32
    %10 = vector.broadcast %cst_4 : f32 to vector<10x2x1xf32>
    %11 = arith.divf %9, %10 : vector<10x2x1xf32>
    %cst_5 = arith.constant 9.99999974E-6 : f32
    %12 = vector.broadcast %cst_5 : f32 to vector<10x2x1xf32>
    %13 = arith.addf %11, %12 : vector<10x2x1xf32>
    %14 = math.rsqrt %13 : vector<10x2x1xf32>
    %15 = vector.broadcast %14 : vector<10x2x1xf32> to vector<10x2x256xf32>
    %16 = arith.mulf %6, %15 : vector<10x2x256xf32>
    %c0_6 = arith.constant 0 : index
    %c0_7 = arith.constant 0 : index
    %c0_8 = arith.constant 0 : index
    %17 = vector.load %arg2[%c0_6, %c0_7, %c0_8] : memref<10x2x256xf32, #tpu.memory_space<vmem>>, vector<10x2x256xf32>
    tpu.vector_store %arg2[%c0_6, %c0_7, %c0_8], %16 {strides = array<i32>} : memref<10x2x256xf32, #tpu.memory_space<vmem>>, vector<10x2x256xf32>,
    return
  }
  func.func @transform_0(%arg0: i32) -> (i32, i32, i32) {
    %c0_i32 = arith.constant 0 : i32
    %c0_i32_0 = arith.constant 0 : i32
    %c0_i32_1 = arith.constant 0 : i32
    return %arg0, %c0_i32, %c0_i32_0 : i32, i32, i32
  }
  func.func @transform_1(%arg0: i32) -> (i32, i32, i32) {
    %c0_i32 = arith.constant 0 : i32
    %c0_i32_0 = arith.constant 0 : i32
    %c0_i32_1 = arith.constant 0 : i32
    return %arg0, %c0_i32, %c0_i32_0 : i32, i32, i32
  }
}

module attributes {stable_mosaic.version = 11 : i64} {
  func.func @_cmul_kernel(%arg0: i32, %arg1: memref<14x2x20xf32, #tpu.memory_space<vmem>>, %arg2: memref<14x2x20xf32, #tpu.memory_space<vmem>>, %arg3: memref<14x20x20xf32, #tpu.memory_space<vmem>>, %arg4: memref<14x20x20xf32, #tpu.memory_space<vmem>>, %arg5: memref<14x2x20xf32, #tpu.memory_space<vmem>>, %arg6: memref<14x2x20xf32, #tpu.memory_space<vmem>>) attributes {dimension_semantics = [#tpu.dimension_semantics<parallel>], iteration_bounds = array<i64: 2>, scalar_prefetch = 0 : i64, scratch_operands = 0 : i64, tpu.core_type = #tpu.core_type<tc>, window_params = [{transform_indices = @transform_0, window_bounds = array<i64: 14, 2, 20>}, {transform_indices = @transform_1, window_bounds = array<i64: 14, 2, 20>}, {transform_indices = @transform_2, window_bounds = array<i64: 14, 20, 20>}, {transform_indices = @transform_3, window_bounds = array<i64: 14, 20, 20>}, {transform_indices = @transform_4, window_bounds = array<i64: 14, 2, 20>}, {transform_indices = @transform_5, window_bounds = array<i64: 14, 2, 20>}]} {
    %c0 = arith.constant 0 : index
    %c0_0 = arith.constant 0 : index
    %c0_1 = arith.constant 0 : index
    %0 = vector.load %arg1[%c0, %c0_0, %c0_1] : memref<14x2x20xf32, #tpu.memory_space<vmem>>, vector<1x2x20xf32>
    %1 = vector.shape_cast %0 : vector<1x2x20xf32> to vector<2x20xf32>
    %c0_2 = arith.constant 0 : index
    %c0_3 = arith.constant 0 : index
    %c0_4 = arith.constant 0 : index
    %2 = vector.load %arg2[%c0_2, %c0_3, %c0_4] : memref<14x2x20xf32, #tpu.memory_space<vmem>>, vector<1x2x20xf32>
    %3 = vector.shape_cast %2 : vector<1x2x20xf32> to vector<2x20xf32>
    %c0_5 = arith.constant 0 : index
    %c0_6 = arith.constant 0 : index
    %c0_7 = arith.constant 0 : index
    %4 = vector.load %arg3[%c0_5, %c0_6, %c0_7] : memref<14x20x20xf32, #tpu.memory_space<vmem>>, vector<1x20x20xf32>
    %5 = vector.shape_cast %4 : vector<1x20x20xf32> to vector<20x20xf32>
    %c0_8 = arith.constant 0 : index
    %c0_9 = arith.constant 0 : index
    %c0_10 = arith.constant 0 : index
    %6 = vector.load %arg4[%c0_8, %c0_9, %c0_10] : memref<14x20x20xf32, #tpu.memory_space<vmem>>, vector<1x20x20xf32>
    %7 = vector.shape_cast %6 : vector<1x20x20xf32> to vector<20x20xf32>
    %cst = arith.constant dense<0.000000e+00> : vector<2x20xf32>
    %8 = tpu.matmul %1, %5, %cst {dimension_numbers = #tpu.dot_dimension_numbers<[1], [0], [0], [1], [0, 0, 1, 1], [], []>} : vector<2x20xf32>, vector<20x20xf32>, vector<2x20xf32> -> vector<2x20xf32>
    %cst_11 = arith.constant dense<0.000000e+00> : vector<2x20xf32>
    %9 = tpu.matmul %3, %7, %cst_11 {dimension_numbers = #tpu.dot_dimension_numbers<[1], [0], [0], [1], [0, 0, 1, 1], [], []>} : vector<2x20xf32>, vector<20x20xf32>, vector<2x20xf32> -> vector<2x20xf32>
    %10 = arith.addf %1, %3 : vector<2x20xf32>
    %11 = arith.addf %5, %7 : vector<20x20xf32>
    %cst_12 = arith.constant dense<0.000000e+00> : vector<2x20xf32>
    %12 = tpu.matmul %10, %11, %cst_12 {dimension_numbers = #tpu.dot_dimension_numbers<[1], [0], [0], [1], [0, 0, 1, 1], [], []>} : vector<2x20xf32>, vector<20x20xf32>, vector<2x20xf32> -> vector<2x20xf32>
    %13 = arith.subf %8, %9 : vector<2x20xf32>
    %c0_13 = arith.constant 0 : index
    %c0_14 = arith.constant 0 : index
    %c0_15 = arith.constant 0 : index
    %14 = vector.load %arg5[%c0_13, %c0_14, %c0_15] : memref<14x2x20xf32, #tpu.memory_space<vmem>>, vector<1x2x20xf32>
    %15 = vector.shape_cast %14 : vector<1x2x20xf32> to vector<2x20xf32>
    %16 = vector.shape_cast %13 : vector<2x20xf32> to vector<1x2x20xf32>
    tpu.vector_store %arg5[%c0_13, %c0_14, %c0_15], %16 {strides = array<i32>} : memref<14x2x20xf32, #tpu.memory_space<vmem>>, vector<1x2x20xf32>,
    %17 = arith.addf %8, %9 : vector<2x20xf32>
    %18 = arith.subf %12, %17 : vector<2x20xf32>
    %c0_16 = arith.constant 0 : index
    %c0_17 = arith.constant 0 : index
    %c0_18 = arith.constant 0 : index
    %19 = vector.load %arg6[%c0_16, %c0_17, %c0_18] : memref<14x2x20xf32, #tpu.memory_space<vmem>>, vector<1x2x20xf32>
    %20 = vector.shape_cast %19 : vector<1x2x20xf32> to vector<2x20xf32>
    %21 = vector.shape_cast %18 : vector<2x20xf32> to vector<1x2x20xf32>
    tpu.vector_store %arg6[%c0_16, %c0_17, %c0_18], %21 {strides = array<i32>} : memref<14x2x20xf32, #tpu.memory_space<vmem>>, vector<1x2x20xf32>,
    %c1 = arith.constant 1 : index
    %c0_19 = arith.constant 0 : index
    %c0_20 = arith.constant 0 : index
    %22 = vector.load %arg1[%c1, %c0_19, %c0_20] : memref<14x2x20xf32, #tpu.memory_space<vmem>>, vector<1x2x20xf32>
    %23 = vector.shape_cast %22 : vector<1x2x20xf32> to vector<2x20xf32>
    %c1_21 = arith.constant 1 : index
    %c0_22 = arith.constant 0 : index
    %c0_23 = arith.constant 0 : index
    %24 = vector.load %arg2[%c1_21, %c0_22, %c0_23] : memref<14x2x20xf32, #tpu.memory_space<vmem>>, vector<1x2x20xf32>
    %25 = vector.shape_cast %24 : vector<1x2x20xf32> to vector<2x20xf32>
    %c1_24 = arith.constant 1 : index
    %c0_25 = arith.constant 0 : index
    %c0_26 = arith.constant 0 : index
    %26 = vector.load %arg3[%c1_24, %c0_25, %c0_26] : memref<14x20x20xf32, #tpu.memory_space<vmem>>, vector<1x20x20xf32>
    %27 = vector.shape_cast %26 : vector<1x20x20xf32> to vector<20x20xf32>
    %c1_27 = arith.constant 1 : index
    %c0_28 = arith.constant 0 : index
    %c0_29 = arith.constant 0 : index
    %28 = vector.load %arg4[%c1_27, %c0_28, %c0_29] : memref<14x20x20xf32, #tpu.memory_space<vmem>>, vector<1x20x20xf32>
    %29 = vector.shape_cast %28 : vector<1x20x20xf32> to vector<20x20xf32>
    %cst_30 = arith.constant dense<0.000000e+00> : vector<2x20xf32>
    %30 = tpu.matmul %23, %27, %cst_30 {dimension_numbers = #tpu.dot_dimension_numbers<[1], [0], [0], [1], [0, 0, 1, 1], [], []>} : vector<2x20xf32>, vector<20x20xf32>, vector<2x20xf32> -> vector<2x20xf32>
    %cst_31 = arith.constant dense<0.000000e+00> : vector<2x20xf32>
    %31 = tpu.matmul %25, %29, %cst_31 {dimension_numbers = #tpu.dot_dimension_numbers<[1], [0], [0], [1], [0, 0, 1, 1], [], []>} : vector<2x20xf32>, vector<20x20xf32>, vector<2x20xf32> -> vector<2x20xf32>
    %32 = arith.addf %23, %25 : vector<2x20xf32>
    %33 = arith.addf %27, %29 : vector<20x20xf32>
    %cst_32 = arith.constant dense<0.000000e+00> : vector<2x20xf32>
    %34 = tpu.matmul %32, %33, %cst_32 {dimension_numbers = #tpu.dot_dimension_numbers<[1], [0], [0], [1], [0, 0, 1, 1], [], []>} : vector<2x20xf32>, vector<20x20xf32>, vector<2x20xf32> -> vector<2x20xf32>
    %35 = arith.subf %30, %31 : vector<2x20xf32>
    %c1_33 = arith.constant 1 : index
    %c0_34 = arith.constant 0 : index
    %c0_35 = arith.constant 0 : index
    %36 = vector.load %arg5[%c1_33, %c0_34, %c0_35] : memref<14x2x20xf32, #tpu.memory_space<vmem>>, vector<1x2x20xf32>
    %37 = vector.shape_cast %36 : vector<1x2x20xf32> to vector<2x20xf32>
    %38 = vector.shape_cast %35 : vector<2x20xf32> to vector<1x2x20xf32>
    tpu.vector_store %arg5[%c1_33, %c0_34, %c0_35], %38 {strides = array<i32>} : memref<14x2x20xf32, #tpu.memory_space<vmem>>, vector<1x2x20xf32>,
    %39 = arith.addf %30, %31 : vector<2x20xf32>
    %40 = arith.subf %34, %39 : vector<2x20xf32>
    %c1_36 = arith.constant 1 : index
    %c0_37 = arith.constant 0 : index
    %c0_38 = arith.constant 0 : index
    %41 = vector.load %arg6[%c1_36, %c0_37, %c0_38] : memref<14x2x20xf32, #tpu.memory_space<vmem>>, vector<1x2x20xf32>
    %42 = vector.shape_cast %41 : vector<1x2x20xf32> to vector<2x20xf32>
    %43 = vector.shape_cast %40 : vector<2x20xf32> to vector<1x2x20xf32>
    tpu.vector_store %arg6[%c1_36, %c0_37, %c0_38], %43 {strides = array<i32>} : memref<14x2x20xf32, #tpu.memory_space<vmem>>, vector<1x2x20xf32>,
    %c2 = arith.constant 2 : index
    %c0_39 = arith.constant 0 : index
    %c0_40 = arith.constant 0 : index
    %44 = vector.load %arg1[%c2, %c0_39, %c0_40] : memref<14x2x20xf32, #tpu.memory_space<vmem>>, vector<1x2x20xf32>
    %45 = vector.shape_cast %44 : vector<1x2x20xf32> to vector<2x20xf32>
    %c2_41 = arith.constant 2 : index
    %c0_42 = arith.constant 0 : index
    %c0_43 = arith.constant 0 : index
    %46 = vector.load %arg2[%c2_41, %c0_42, %c0_43] : memref<14x2x20xf32, #tpu.memory_space<vmem>>, vector<1x2x20xf32>
    %47 = vector.shape_cast %46 : vector<1x2x20xf32> to vector<2x20xf32>
    %c2_44 = arith.constant 2 : index
    %c0_45 = arith.constant 0 : index
    %c0_46 = arith.constant 0 : index
    %48 = vector.load %arg3[%c2_44, %c0_45, %c0_46] : memref<14x20x20xf32, #tpu.memory_space<vmem>>, vector<1x20x20xf32>
    %49 = vector.shape_cast %48 : vector<1x20x20xf32> to vector<20x20xf32>
    %c2_47 = arith.constant 2 : index
    %c0_48 = arith.constant 0 : index
    %c0_49 = arith.constant 0 : index
    %50 = vector.load %arg4[%c2_47, %c0_48, %c0_49] : memref<14x20x20xf32, #tpu.memory_space<vmem>>, vector<1x20x20xf32>
    %51 = vector.shape_cast %50 : vector<1x20x20xf32> to vector<20x20xf32>
    %cst_50 = arith.constant dense<0.000000e+00> : vector<2x20xf32>
    %52 = tpu.matmul %45, %49, %cst_50 {dimension_numbers = #tpu.dot_dimension_numbers<[1], [0], [0], [1], [0, 0, 1, 1], [], []>} : vector<2x20xf32>, vector<20x20xf32>, vector<2x20xf32> -> vector<2x20xf32>
    %cst_51 = arith.constant dense<0.000000e+00> : vector<2x20xf32>
    %53 = tpu.matmul %47, %51, %cst_51 {dimension_numbers = #tpu.dot_dimension_numbers<[1], [0], [0], [1], [0, 0, 1, 1], [], []>} : vector<2x20xf32>, vector<20x20xf32>, vector<2x20xf32> -> vector<2x20xf32>
    %54 = arith.addf %45, %47 : vector<2x20xf32>
    %55 = arith.addf %49, %51 : vector<20x20xf32>
    %cst_52 = arith.constant dense<0.000000e+00> : vector<2x20xf32>
    %56 = tpu.matmul %54, %55, %cst_52 {dimension_numbers = #tpu.dot_dimension_numbers<[1], [0], [0], [1], [0, 0, 1, 1], [], []>} : vector<2x20xf32>, vector<20x20xf32>, vector<2x20xf32> -> vector<2x20xf32>
    %57 = arith.subf %52, %53 : vector<2x20xf32>
    %c2_53 = arith.constant 2 : index
    %c0_54 = arith.constant 0 : index
    %c0_55 = arith.constant 0 : index
    %58 = vector.load %arg5[%c2_53, %c0_54, %c0_55] : memref<14x2x20xf32, #tpu.memory_space<vmem>>, vector<1x2x20xf32>
    %59 = vector.shape_cast %58 : vector<1x2x20xf32> to vector<2x20xf32>
    %60 = vector.shape_cast %57 : vector<2x20xf32> to vector<1x2x20xf32>
    tpu.vector_store %arg5[%c2_53, %c0_54, %c0_55], %60 {strides = array<i32>} : memref<14x2x20xf32, #tpu.memory_space<vmem>>, vector<1x2x20xf32>,
    %61 = arith.addf %52, %53 : vector<2x20xf32>
    %62 = arith.subf %56, %61 : vector<2x20xf32>
    %c2_56 = arith.constant 2 : index
    %c0_57 = arith.constant 0 : index
    %c0_58 = arith.constant 0 : index
    %63 = vector.load %arg6[%c2_56, %c0_57, %c0_58] : memref<14x2x20xf32, #tpu.memory_space<vmem>>, vector<1x2x20xf32>
    %64 = vector.shape_cast %63 : vector<1x2x20xf32> to vector<2x20xf32>
    %65 = vector.shape_cast %62 : vector<2x20xf32> to vector<1x2x20xf32>
    tpu.vector_store %arg6[%c2_56, %c0_57, %c0_58], %65 {strides = array<i32>} : memref<14x2x20xf32, #tpu.memory_space<vmem>>, vector<1x2x20xf32>,
    %c3 = arith.constant 3 : index
    %c0_59 = arith.constant 0 : index
    %c0_60 = arith.constant 0 : index
    %66 = vector.load %arg1[%c3, %c0_59, %c0_60] : memref<14x2x20xf32, #tpu.memory_space<vmem>>, vector<1x2x20xf32>
    %67 = vector.shape_cast %66 : vector<1x2x20xf32> to vector<2x20xf32>
    %c3_61 = arith.constant 3 : index
    %c0_62 = arith.constant 0 : index
    %c0_63 = arith.constant 0 : index
    %68 = vector.load %arg2[%c3_61, %c0_62, %c0_63] : memref<14x2x20xf32, #tpu.memory_space<vmem>>, vector<1x2x20xf32>
    %69 = vector.shape_cast %68 : vector<1x2x20xf32> to vector<2x20xf32>
    %c3_64 = arith.constant 3 : index
    %c0_65 = arith.constant 0 : index
    %c0_66 = arith.constant 0 : index
    %70 = vector.load %arg3[%c3_64, %c0_65, %c0_66] : memref<14x20x20xf32, #tpu.memory_space<vmem>>, vector<1x20x20xf32>
    %71 = vector.shape_cast %70 : vector<1x20x20xf32> to vector<20x20xf32>
    %c3_67 = arith.constant 3 : index
    %c0_68 = arith.constant 0 : index
    %c0_69 = arith.constant 0 : index
    %72 = vector.load %arg4[%c3_67, %c0_68, %c0_69] : memref<14x20x20xf32, #tpu.memory_space<vmem>>, vector<1x20x20xf32>
    %73 = vector.shape_cast %72 : vector<1x20x20xf32> to vector<20x20xf32>
    %cst_70 = arith.constant dense<0.000000e+00> : vector<2x20xf32>
    %74 = tpu.matmul %67, %71, %cst_70 {dimension_numbers = #tpu.dot_dimension_numbers<[1], [0], [0], [1], [0, 0, 1, 1], [], []>} : vector<2x20xf32>, vector<20x20xf32>, vector<2x20xf32> -> vector<2x20xf32>
    %cst_71 = arith.constant dense<0.000000e+00> : vector<2x20xf32>
    %75 = tpu.matmul %69, %73, %cst_71 {dimension_numbers = #tpu.dot_dimension_numbers<[1], [0], [0], [1], [0, 0, 1, 1], [], []>} : vector<2x20xf32>, vector<20x20xf32>, vector<2x20xf32> -> vector<2x20xf32>
    %76 = arith.addf %67, %69 : vector<2x20xf32>
    %77 = arith.addf %71, %73 : vector<20x20xf32>
    %cst_72 = arith.constant dense<0.000000e+00> : vector<2x20xf32>
    %78 = tpu.matmul %76, %77, %cst_72 {dimension_numbers = #tpu.dot_dimension_numbers<[1], [0], [0], [1], [0, 0, 1, 1], [], []>} : vector<2x20xf32>, vector<20x20xf32>, vector<2x20xf32> -> vector<2x20xf32>
    %79 = arith.subf %74, %75 : vector<2x20xf32>
    %c3_73 = arith.constant 3 : index
    %c0_74 = arith.constant 0 : index
    %c0_75 = arith.constant 0 : index
    %80 = vector.load %arg5[%c3_73, %c0_74, %c0_75] : memref<14x2x20xf32, #tpu.memory_space<vmem>>, vector<1x2x20xf32>
    %81 = vector.shape_cast %80 : vector<1x2x20xf32> to vector<2x20xf32>
    %82 = vector.shape_cast %79 : vector<2x20xf32> to vector<1x2x20xf32>
    tpu.vector_store %arg5[%c3_73, %c0_74, %c0_75], %82 {strides = array<i32>} : memref<14x2x20xf32, #tpu.memory_space<vmem>>, vector<1x2x20xf32>,
    %83 = arith.addf %74, %75 : vector<2x20xf32>
    %84 = arith.subf %78, %83 : vector<2x20xf32>
    %c3_76 = arith.constant 3 : index
    %c0_77 = arith.constant 0 : index
    %c0_78 = arith.constant 0 : index
    %85 = vector.load %arg6[%c3_76, %c0_77, %c0_78] : memref<14x2x20xf32, #tpu.memory_space<vmem>>, vector<1x2x20xf32>
    %86 = vector.shape_cast %85 : vector<1x2x20xf32> to vector<2x20xf32>
    %87 = vector.shape_cast %84 : vector<2x20xf32> to vector<1x2x20xf32>
    tpu.vector_store %arg6[%c3_76, %c0_77, %c0_78], %87 {strides = array<i32>} : memref<14x2x20xf32, #tpu.memory_space<vmem>>, vector<1x2x20xf32>,
    %c4 = arith.constant 4 : index
    %c0_79 = arith.constant 0 : index
    %c0_80 = arith.constant 0 : index
    %88 = vector.load %arg1[%c4, %c0_79, %c0_80] : memref<14x2x20xf32, #tpu.memory_space<vmem>>, vector<1x2x20xf32>
    %89 = vector.shape_cast %88 : vector<1x2x20xf32> to vector<2x20xf32>
    %c4_81 = arith.constant 4 : index
    %c0_82 = arith.constant 0 : index
    %c0_83 = arith.constant 0 : index
    %90 = vector.load %arg2[%c4_81, %c0_82, %c0_83] : memref<14x2x20xf32, #tpu.memory_space<vmem>>, vector<1x2x20xf32>
    %91 = vector.shape_cast %90 : vector<1x2x20xf32> to vector<2x20xf32>
    %c4_84 = arith.constant 4 : index
    %c0_85 = arith.constant 0 : index
    %c0_86 = arith.constant 0 : index
    %92 = vector.load %arg3[%c4_84, %c0_85, %c0_86] : memref<14x20x20xf32, #tpu.memory_space<vmem>>, vector<1x20x20xf32>
    %93 = vector.shape_cast %92 : vector<1x20x20xf32> to vector<20x20xf32>
    %c4_87 = arith.constant 4 : index
    %c0_88 = arith.constant 0 : index
    %c0_89 = arith.constant 0 : index
    %94 = vector.load %arg4[%c4_87, %c0_88, %c0_89] : memref<14x20x20xf32, #tpu.memory_space<vmem>>, vector<1x20x20xf32>
    %95 = vector.shape_cast %94 : vector<1x20x20xf32> to vector<20x20xf32>
    %cst_90 = arith.constant dense<0.000000e+00> : vector<2x20xf32>
    %96 = tpu.matmul %89, %93, %cst_90 {dimension_numbers = #tpu.dot_dimension_numbers<[1], [0], [0], [1], [0, 0, 1, 1], [], []>} : vector<2x20xf32>, vector<20x20xf32>, vector<2x20xf32> -> vector<2x20xf32>
    %cst_91 = arith.constant dense<0.000000e+00> : vector<2x20xf32>
    %97 = tpu.matmul %91, %95, %cst_91 {dimension_numbers = #tpu.dot_dimension_numbers<[1], [0], [0], [1], [0, 0, 1, 1], [], []>} : vector<2x20xf32>, vector<20x20xf32>, vector<2x20xf32> -> vector<2x20xf32>
    %98 = arith.addf %89, %91 : vector<2x20xf32>
    %99 = arith.addf %93, %95 : vector<20x20xf32>
    %cst_92 = arith.constant dense<0.000000e+00> : vector<2x20xf32>
    %100 = tpu.matmul %98, %99, %cst_92 {dimension_numbers = #tpu.dot_dimension_numbers<[1], [0], [0], [1], [0, 0, 1, 1], [], []>} : vector<2x20xf32>, vector<20x20xf32>, vector<2x20xf32> -> vector<2x20xf32>
    %101 = arith.subf %96, %97 : vector<2x20xf32>
    %c4_93 = arith.constant 4 : index
    %c0_94 = arith.constant 0 : index
    %c0_95 = arith.constant 0 : index
    %102 = vector.load %arg5[%c4_93, %c0_94, %c0_95] : memref<14x2x20xf32, #tpu.memory_space<vmem>>, vector<1x2x20xf32>
    %103 = vector.shape_cast %102 : vector<1x2x20xf32> to vector<2x20xf32>
    %104 = vector.shape_cast %101 : vector<2x20xf32> to vector<1x2x20xf32>
    tpu.vector_store %arg5[%c4_93, %c0_94, %c0_95], %104 {strides = array<i32>} : memref<14x2x20xf32, #tpu.memory_space<vmem>>, vector<1x2x20xf32>,
    %105 = arith.addf %96, %97 : vector<2x20xf32>
    %106 = arith.subf %100, %105 : vector<2x20xf32>
    %c4_96 = arith.constant 4 : index
    %c0_97 = arith.constant 0 : index
    %c0_98 = arith.constant 0 : index
    %107 = vector.load %arg6[%c4_96, %c0_97, %c0_98] : memref<14x2x20xf32, #tpu.memory_space<vmem>>, vector<1x2x20xf32>
    %108 = vector.shape_cast %107 : vector<1x2x20xf32> to vector<2x20xf32>
    %109 = vector.shape_cast %106 : vector<2x20xf32> to vector<1x2x20xf32>
    tpu.vector_store %arg6[%c4_96, %c0_97, %c0_98], %109 {strides = array<i32>} : memref<14x2x20xf32, #tpu.memory_space<vmem>>, vector<1x2x20xf32>,
    %c5 = arith.constant 5 : index
    %c0_99 = arith.constant 0 : index
    %c0_100 = arith.constant 0 : index
    %110 = vector.load %arg1[%c5, %c0_99, %c0_100] : memref<14x2x20xf32, #tpu.memory_space<vmem>>, vector<1x2x20xf32>
    %111 = vector.shape_cast %110 : vector<1x2x20xf32> to vector<2x20xf32>
    %c5_101 = arith.constant 5 : index
    %c0_102 = arith.constant 0 : index
    %c0_103 = arith.constant 0 : index
    %112 = vector.load %arg2[%c5_101, %c0_102, %c0_103] : memref<14x2x20xf32, #tpu.memory_space<vmem>>, vector<1x2x20xf32>
    %113 = vector.shape_cast %112 : vector<1x2x20xf32> to vector<2x20xf32>
    %c5_104 = arith.constant 5 : index
    %c0_105 = arith.constant 0 : index
    %c0_106 = arith.constant 0 : index
    %114 = vector.load %arg3[%c5_104, %c0_105, %c0_106] : memref<14x20x20xf32, #tpu.memory_space<vmem>>, vector<1x20x20xf32>
    %115 = vector.shape_cast %114 : vector<1x20x20xf32> to vector<20x20xf32>
    %c5_107 = arith.constant 5 : index
    %c0_108 = arith.constant 0 : index
    %c0_109 = arith.constant 0 : index
    %116 = vector.load %arg4[%c5_107, %c0_108, %c0_109] : memref<14x20x20xf32, #tpu.memory_space<vmem>>, vector<1x20x20xf32>
    %117 = vector.shape_cast %116 : vector<1x20x20xf32> to vector<20x20xf32>
    %cst_110 = arith.constant dense<0.000000e+00> : vector<2x20xf32>
    %118 = tpu.matmul %111, %115, %cst_110 {dimension_numbers = #tpu.dot_dimension_numbers<[1], [0], [0], [1], [0, 0, 1, 1], [], []>} : vector<2x20xf32>, vector<20x20xf32>, vector<2x20xf32> -> vector<2x20xf32>
    %cst_111 = arith.constant dense<0.000000e+00> : vector<2x20xf32>
    %119 = tpu.matmul %113, %117, %cst_111 {dimension_numbers = #tpu.dot_dimension_numbers<[1], [0], [0], [1], [0, 0, 1, 1], [], []>} : vector<2x20xf32>, vector<20x20xf32>, vector<2x20xf32> -> vector<2x20xf32>
    %120 = arith.addf %111, %113 : vector<2x20xf32>
    %121 = arith.addf %115, %117 : vector<20x20xf32>
    %cst_112 = arith.constant dense<0.000000e+00> : vector<2x20xf32>
    %122 = tpu.matmul %120, %121, %cst_112 {dimension_numbers = #tpu.dot_dimension_numbers<[1], [0], [0], [1], [0, 0, 1, 1], [], []>} : vector<2x20xf32>, vector<20x20xf32>, vector<2x20xf32> -> vector<2x20xf32>
    %123 = arith.subf %118, %119 : vector<2x20xf32>
    %c5_113 = arith.constant 5 : index
    %c0_114 = arith.constant 0 : index
    %c0_115 = arith.constant 0 : index
    %124 = vector.load %arg5[%c5_113, %c0_114, %c0_115] : memref<14x2x20xf32, #tpu.memory_space<vmem>>, vector<1x2x20xf32>
    %125 = vector.shape_cast %124 : vector<1x2x20xf32> to vector<2x20xf32>
    %126 = vector.shape_cast %123 : vector<2x20xf32> to vector<1x2x20xf32>
    tpu.vector_store %arg5[%c5_113, %c0_114, %c0_115], %126 {strides = array<i32>} : memref<14x2x20xf32, #tpu.memory_space<vmem>>, vector<1x2x20xf32>,
    %127 = arith.addf %118, %119 : vector<2x20xf32>
    %128 = arith.subf %122, %127 : vector<2x20xf32>
    %c5_116 = arith.constant 5 : index
    %c0_117 = arith.constant 0 : index
    %c0_118 = arith.constant 0 : index
    %129 = vector.load %arg6[%c5_116, %c0_117, %c0_118] : memref<14x2x20xf32, #tpu.memory_space<vmem>>, vector<1x2x20xf32>
    %130 = vector.shape_cast %129 : vector<1x2x20xf32> to vector<2x20xf32>
    %131 = vector.shape_cast %128 : vector<2x20xf32> to vector<1x2x20xf32>
    tpu.vector_store %arg6[%c5_116, %c0_117, %c0_118], %131 {strides = array<i32>} : memref<14x2x20xf32, #tpu.memory_space<vmem>>, vector<1x2x20xf32>,
    %c6 = arith.constant 6 : index
    %c0_119 = arith.constant 0 : index
    %c0_120 = arith.constant 0 : index
    %132 = vector.load %arg1[%c6, %c0_119, %c0_120] : memref<14x2x20xf32, #tpu.memory_space<vmem>>, vector<1x2x20xf32>
    %133 = vector.shape_cast %132 : vector<1x2x20xf32> to vector<2x20xf32>
    %c6_121 = arith.constant 6 : index
    %c0_122 = arith.constant 0 : index
    %c0_123 = arith.constant 0 : index
    %134 = vector.load %arg2[%c6_121, %c0_122, %c0_123] : memref<14x2x20xf32, #tpu.memory_space<vmem>>, vector<1x2x20xf32>
    %135 = vector.shape_cast %134 : vector<1x2x20xf32> to vector<2x20xf32>
    %c6_124 = arith.constant 6 : index
    %c0_125 = arith.constant 0 : index
    %c0_126 = arith.constant 0 : index
    %136 = vector.load %arg3[%c6_124, %c0_125, %c0_126] : memref<14x20x20xf32, #tpu.memory_space<vmem>>, vector<1x20x20xf32>
    %137 = vector.shape_cast %136 : vector<1x20x20xf32> to vector<20x20xf32>
    %c6_127 = arith.constant 6 : index
    %c0_128 = arith.constant 0 : index
    %c0_129 = arith.constant 0 : index
    %138 = vector.load %arg4[%c6_127, %c0_128, %c0_129] : memref<14x20x20xf32, #tpu.memory_space<vmem>>, vector<1x20x20xf32>
    %139 = vector.shape_cast %138 : vector<1x20x20xf32> to vector<20x20xf32>
    %cst_130 = arith.constant dense<0.000000e+00> : vector<2x20xf32>
    %140 = tpu.matmul %133, %137, %cst_130 {dimension_numbers = #tpu.dot_dimension_numbers<[1], [0], [0], [1], [0, 0, 1, 1], [], []>} : vector<2x20xf32>, vector<20x20xf32>, vector<2x20xf32> -> vector<2x20xf32>
    %cst_131 = arith.constant dense<0.000000e+00> : vector<2x20xf32>
    %141 = tpu.matmul %135, %139, %cst_131 {dimension_numbers = #tpu.dot_dimension_numbers<[1], [0], [0], [1], [0, 0, 1, 1], [], []>} : vector<2x20xf32>, vector<20x20xf32>, vector<2x20xf32> -> vector<2x20xf32>
    %142 = arith.addf %133, %135 : vector<2x20xf32>
    %143 = arith.addf %137, %139 : vector<20x20xf32>
    %cst_132 = arith.constant dense<0.000000e+00> : vector<2x20xf32>
    %144 = tpu.matmul %142, %143, %cst_132 {dimension_numbers = #tpu.dot_dimension_numbers<[1], [0], [0], [1], [0, 0, 1, 1], [], []>} : vector<2x20xf32>, vector<20x20xf32>, vector<2x20xf32> -> vector<2x20xf32>
    %145 = arith.subf %140, %141 : vector<2x20xf32>
    %c6_133 = arith.constant 6 : index
    %c0_134 = arith.constant 0 : index
    %c0_135 = arith.constant 0 : index
    %146 = vector.load %arg5[%c6_133, %c0_134, %c0_135] : memref<14x2x20xf32, #tpu.memory_space<vmem>>, vector<1x2x20xf32>
    %147 = vector.shape_cast %146 : vector<1x2x20xf32> to vector<2x20xf32>
    %148 = vector.shape_cast %145 : vector<2x20xf32> to vector<1x2x20xf32>
    tpu.vector_store %arg5[%c6_133, %c0_134, %c0_135], %148 {strides = array<i32>} : memref<14x2x20xf32, #tpu.memory_space<vmem>>, vector<1x2x20xf32>,
    %149 = arith.addf %140, %141 : vector<2x20xf32>
    %150 = arith.subf %144, %149 : vector<2x20xf32>
    %c6_136 = arith.constant 6 : index
    %c0_137 = arith.constant 0 : index
    %c0_138 = arith.constant 0 : index
    %151 = vector.load %arg6[%c6_136, %c0_137, %c0_138] : memref<14x2x20xf32, #tpu.memory_space<vmem>>, vector<1x2x20xf32>
    %152 = vector.shape_cast %151 : vector<1x2x20xf32> to vector<2x20xf32>
    %153 = vector.shape_cast %150 : vector<2x20xf32> to vector<1x2x20xf32>
    tpu.vector_store %arg6[%c6_136, %c0_137, %c0_138], %153 {strides = array<i32>} : memref<14x2x20xf32, #tpu.memory_space<vmem>>, vector<1x2x20xf32>,
    %c7 = arith.constant 7 : index
    %c0_139 = arith.constant 0 : index
    %c0_140 = arith.constant 0 : index
    %154 = vector.load %arg1[%c7, %c0_139, %c0_140] : memref<14x2x20xf32, #tpu.memory_space<vmem>>, vector<1x2x20xf32>
    %155 = vector.shape_cast %154 : vector<1x2x20xf32> to vector<2x20xf32>
    %c7_141 = arith.constant 7 : index
    %c0_142 = arith.constant 0 : index
    %c0_143 = arith.constant 0 : index
    %156 = vector.load %arg2[%c7_141, %c0_142, %c0_143] : memref<14x2x20xf32, #tpu.memory_space<vmem>>, vector<1x2x20xf32>
    %157 = vector.shape_cast %156 : vector<1x2x20xf32> to vector<2x20xf32>
    %c7_144 = arith.constant 7 : index
    %c0_145 = arith.constant 0 : index
    %c0_146 = arith.constant 0 : index
    %158 = vector.load %arg3[%c7_144, %c0_145, %c0_146] : memref<14x20x20xf32, #tpu.memory_space<vmem>>, vector<1x20x20xf32>
    %159 = vector.shape_cast %158 : vector<1x20x20xf32> to vector<20x20xf32>
    %c7_147 = arith.constant 7 : index
    %c0_148 = arith.constant 0 : index
    %c0_149 = arith.constant 0 : index
    %160 = vector.load %arg4[%c7_147, %c0_148, %c0_149] : memref<14x20x20xf32, #tpu.memory_space<vmem>>, vector<1x20x20xf32>
    %161 = vector.shape_cast %160 : vector<1x20x20xf32> to vector<20x20xf32>
    %cst_150 = arith.constant dense<0.000000e+00> : vector<2x20xf32>
    %162 = tpu.matmul %155, %159, %cst_150 {dimension_numbers = #tpu.dot_dimension_numbers<[1], [0], [0], [1], [0, 0, 1, 1], [], []>} : vector<2x20xf32>, vector<20x20xf32>, vector<2x20xf32> -> vector<2x20xf32>
    %cst_151 = arith.constant dense<0.000000e+00> : vector<2x20xf32>
    %163 = tpu.matmul %157, %161, %cst_151 {dimension_numbers = #tpu.dot_dimension_numbers<[1], [0], [0], [1], [0, 0, 1, 1], [], []>} : vector<2x20xf32>, vector<20x20xf32>, vector<2x20xf32> -> vector<2x20xf32>
    %164 = arith.addf %155, %157 : vector<2x20xf32>
    %165 = arith.addf %159, %161 : vector<20x20xf32>
    %cst_152 = arith.constant dense<0.000000e+00> : vector<2x20xf32>
    %166 = tpu.matmul %164, %165, %cst_152 {dimension_numbers = #tpu.dot_dimension_numbers<[1], [0], [0], [1], [0, 0, 1, 1], [], []>} : vector<2x20xf32>, vector<20x20xf32>, vector<2x20xf32> -> vector<2x20xf32>
    %167 = arith.subf %162, %163 : vector<2x20xf32>
    %c7_153 = arith.constant 7 : index
    %c0_154 = arith.constant 0 : index
    %c0_155 = arith.constant 0 : index
    %168 = vector.load %arg5[%c7_153, %c0_154, %c0_155] : memref<14x2x20xf32, #tpu.memory_space<vmem>>, vector<1x2x20xf32>
    %169 = vector.shape_cast %168 : vector<1x2x20xf32> to vector<2x20xf32>
    %170 = vector.shape_cast %167 : vector<2x20xf32> to vector<1x2x20xf32>
    tpu.vector_store %arg5[%c7_153, %c0_154, %c0_155], %170 {strides = array<i32>} : memref<14x2x20xf32, #tpu.memory_space<vmem>>, vector<1x2x20xf32>,
    %171 = arith.addf %162, %163 : vector<2x20xf32>
    %172 = arith.subf %166, %171 : vector<2x20xf32>
    %c7_156 = arith.constant 7 : index
    %c0_157 = arith.constant 0 : index
    %c0_158 = arith.constant 0 : index
    %173 = vector.load %arg6[%c7_156, %c0_157, %c0_158] : memref<14x2x20xf32, #tpu.memory_space<vmem>>, vector<1x2x20xf32>
    %174 = vector.shape_cast %173 : vector<1x2x20xf32> to vector<2x20xf32>
    %175 = vector.shape_cast %172 : vector<2x20xf32> to vector<1x2x20xf32>
    tpu.vector_store %arg6[%c7_156, %c0_157, %c0_158], %175 {strides = array<i32>} : memref<14x2x20xf32, #tpu.memory_space<vmem>>, vector<1x2x20xf32>,
    %c8 = arith.constant 8 : index
    %c0_159 = arith.constant 0 : index
    %c0_160 = arith.constant 0 : index
    %176 = vector.load %arg1[%c8, %c0_159, %c0_160] : memref<14x2x20xf32, #tpu.memory_space<vmem>>, vector<1x2x20xf32>
    %177 = vector.shape_cast %176 : vector<1x2x20xf32> to vector<2x20xf32>
    %c8_161 = arith.constant 8 : index
    %c0_162 = arith.constant 0 : index
    %c0_163 = arith.constant 0 : index
    %178 = vector.load %arg2[%c8_161, %c0_162, %c0_163] : memref<14x2x20xf32, #tpu.memory_space<vmem>>, vector<1x2x20xf32>
    %179 = vector.shape_cast %178 : vector<1x2x20xf32> to vector<2x20xf32>
    %c8_164 = arith.constant 8 : index
    %c0_165 = arith.constant 0 : index
    %c0_166 = arith.constant 0 : index
    %180 = vector.load %arg3[%c8_164, %c0_165, %c0_166] : memref<14x20x20xf32, #tpu.memory_space<vmem>>, vector<1x20x20xf32>
    %181 = vector.shape_cast %180 : vector<1x20x20xf32> to vector<20x20xf32>
    %c8_167 = arith.constant 8 : index
    %c0_168 = arith.constant 0 : index
    %c0_169 = arith.constant 0 : index
    %182 = vector.load %arg4[%c8_167, %c0_168, %c0_169] : memref<14x20x20xf32, #tpu.memory_space<vmem>>, vector<1x20x20xf32>
    %183 = vector.shape_cast %182 : vector<1x20x20xf32> to vector<20x20xf32>
    %cst_170 = arith.constant dense<0.000000e+00> : vector<2x20xf32>
    %184 = tpu.matmul %177, %181, %cst_170 {dimension_numbers = #tpu.dot_dimension_numbers<[1], [0], [0], [1], [0, 0, 1, 1], [], []>} : vector<2x20xf32>, vector<20x20xf32>, vector<2x20xf32> -> vector<2x20xf32>
    %cst_171 = arith.constant dense<0.000000e+00> : vector<2x20xf32>
    %185 = tpu.matmul %179, %183, %cst_171 {dimension_numbers = #tpu.dot_dimension_numbers<[1], [0], [0], [1], [0, 0, 1, 1], [], []>} : vector<2x20xf32>, vector<20x20xf32>, vector<2x20xf32> -> vector<2x20xf32>
    %186 = arith.addf %177, %179 : vector<2x20xf32>
    %187 = arith.addf %181, %183 : vector<20x20xf32>
    %cst_172 = arith.constant dense<0.000000e+00> : vector<2x20xf32>
    %188 = tpu.matmul %186, %187, %cst_172 {dimension_numbers = #tpu.dot_dimension_numbers<[1], [0], [0], [1], [0, 0, 1, 1], [], []>} : vector<2x20xf32>, vector<20x20xf32>, vector<2x20xf32> -> vector<2x20xf32>
    %189 = arith.subf %184, %185 : vector<2x20xf32>
    %c8_173 = arith.constant 8 : index
    %c0_174 = arith.constant 0 : index
    %c0_175 = arith.constant 0 : index
    %190 = vector.load %arg5[%c8_173, %c0_174, %c0_175] : memref<14x2x20xf32, #tpu.memory_space<vmem>>, vector<1x2x20xf32>
    %191 = vector.shape_cast %190 : vector<1x2x20xf32> to vector<2x20xf32>
    %192 = vector.shape_cast %189 : vector<2x20xf32> to vector<1x2x20xf32>
    tpu.vector_store %arg5[%c8_173, %c0_174, %c0_175], %192 {strides = array<i32>} : memref<14x2x20xf32, #tpu.memory_space<vmem>>, vector<1x2x20xf32>,
    %193 = arith.addf %184, %185 : vector<2x20xf32>
    %194 = arith.subf %188, %193 : vector<2x20xf32>
    %c8_176 = arith.constant 8 : index
    %c0_177 = arith.constant 0 : index
    %c0_178 = arith.constant 0 : index
    %195 = vector.load %arg6[%c8_176, %c0_177, %c0_178] : memref<14x2x20xf32, #tpu.memory_space<vmem>>, vector<1x2x20xf32>
    %196 = vector.shape_cast %195 : vector<1x2x20xf32> to vector<2x20xf32>
    %197 = vector.shape_cast %194 : vector<2x20xf32> to vector<1x2x20xf32>
    tpu.vector_store %arg6[%c8_176, %c0_177, %c0_178], %197 {strides = array<i32>} : memref<14x2x20xf32, #tpu.memory_space<vmem>>, vector<1x2x20xf32>,
    %c9 = arith.constant 9 : index
    %c0_179 = arith.constant 0 : index
    %c0_180 = arith.constant 0 : index
    %198 = vector.load %arg1[%c9, %c0_179, %c0_180] : memref<14x2x20xf32, #tpu.memory_space<vmem>>, vector<1x2x20xf32>
    %199 = vector.shape_cast %198 : vector<1x2x20xf32> to vector<2x20xf32>
    %c9_181 = arith.constant 9 : index
    %c0_182 = arith.constant 0 : index
    %c0_183 = arith.constant 0 : index
    %200 = vector.load %arg2[%c9_181, %c0_182, %c0_183] : memref<14x2x20xf32, #tpu.memory_space<vmem>>, vector<1x2x20xf32>
    %201 = vector.shape_cast %200 : vector<1x2x20xf32> to vector<2x20xf32>
    %c9_184 = arith.constant 9 : index
    %c0_185 = arith.constant 0 : index
    %c0_186 = arith.constant 0 : index
    %202 = vector.load %arg3[%c9_184, %c0_185, %c0_186] : memref<14x20x20xf32, #tpu.memory_space<vmem>>, vector<1x20x20xf32>
    %203 = vector.shape_cast %202 : vector<1x20x20xf32> to vector<20x20xf32>
    %c9_187 = arith.constant 9 : index
    %c0_188 = arith.constant 0 : index
    %c0_189 = arith.constant 0 : index
    %204 = vector.load %arg4[%c9_187, %c0_188, %c0_189] : memref<14x20x20xf32, #tpu.memory_space<vmem>>, vector<1x20x20xf32>
    %205 = vector.shape_cast %204 : vector<1x20x20xf32> to vector<20x20xf32>
    %cst_190 = arith.constant dense<0.000000e+00> : vector<2x20xf32>
    %206 = tpu.matmul %199, %203, %cst_190 {dimension_numbers = #tpu.dot_dimension_numbers<[1], [0], [0], [1], [0, 0, 1, 1], [], []>} : vector<2x20xf32>, vector<20x20xf32>, vector<2x20xf32> -> vector<2x20xf32>
    %cst_191 = arith.constant dense<0.000000e+00> : vector<2x20xf32>
    %207 = tpu.matmul %201, %205, %cst_191 {dimension_numbers = #tpu.dot_dimension_numbers<[1], [0], [0], [1], [0, 0, 1, 1], [], []>} : vector<2x20xf32>, vector<20x20xf32>, vector<2x20xf32> -> vector<2x20xf32>
    %208 = arith.addf %199, %201 : vector<2x20xf32>
    %209 = arith.addf %203, %205 : vector<20x20xf32>
    %cst_192 = arith.constant dense<0.000000e+00> : vector<2x20xf32>
    %210 = tpu.matmul %208, %209, %cst_192 {dimension_numbers = #tpu.dot_dimension_numbers<[1], [0], [0], [1], [0, 0, 1, 1], [], []>} : vector<2x20xf32>, vector<20x20xf32>, vector<2x20xf32> -> vector<2x20xf32>
    %211 = arith.subf %206, %207 : vector<2x20xf32>
    %c9_193 = arith.constant 9 : index
    %c0_194 = arith.constant 0 : index
    %c0_195 = arith.constant 0 : index
    %212 = vector.load %arg5[%c9_193, %c0_194, %c0_195] : memref<14x2x20xf32, #tpu.memory_space<vmem>>, vector<1x2x20xf32>
    %213 = vector.shape_cast %212 : vector<1x2x20xf32> to vector<2x20xf32>
    %214 = vector.shape_cast %211 : vector<2x20xf32> to vector<1x2x20xf32>
    tpu.vector_store %arg5[%c9_193, %c0_194, %c0_195], %214 {strides = array<i32>} : memref<14x2x20xf32, #tpu.memory_space<vmem>>, vector<1x2x20xf32>,
    %215 = arith.addf %206, %207 : vector<2x20xf32>
    %216 = arith.subf %210, %215 : vector<2x20xf32>
    %c9_196 = arith.constant 9 : index
    %c0_197 = arith.constant 0 : index
    %c0_198 = arith.constant 0 : index
    %217 = vector.load %arg6[%c9_196, %c0_197, %c0_198] : memref<14x2x20xf32, #tpu.memory_space<vmem>>, vector<1x2x20xf32>
    %218 = vector.shape_cast %217 : vector<1x2x20xf32> to vector<2x20xf32>
    %219 = vector.shape_cast %216 : vector<2x20xf32> to vector<1x2x20xf32>
    tpu.vector_store %arg6[%c9_196, %c0_197, %c0_198], %219 {strides = array<i32>} : memref<14x2x20xf32, #tpu.memory_space<vmem>>, vector<1x2x20xf32>,
    %c10 = arith.constant 10 : index
    %c0_199 = arith.constant 0 : index
    %c0_200 = arith.constant 0 : index
    %220 = vector.load %arg1[%c10, %c0_199, %c0_200] : memref<14x2x20xf32, #tpu.memory_space<vmem>>, vector<1x2x20xf32>
    %221 = vector.shape_cast %220 : vector<1x2x20xf32> to vector<2x20xf32>
    %c10_201 = arith.constant 10 : index
    %c0_202 = arith.constant 0 : index
    %c0_203 = arith.constant 0 : index
    %222 = vector.load %arg2[%c10_201, %c0_202, %c0_203] : memref<14x2x20xf32, #tpu.memory_space<vmem>>, vector<1x2x20xf32>
    %223 = vector.shape_cast %222 : vector<1x2x20xf32> to vector<2x20xf32>
    %c10_204 = arith.constant 10 : index
    %c0_205 = arith.constant 0 : index
    %c0_206 = arith.constant 0 : index
    %224 = vector.load %arg3[%c10_204, %c0_205, %c0_206] : memref<14x20x20xf32, #tpu.memory_space<vmem>>, vector<1x20x20xf32>
    %225 = vector.shape_cast %224 : vector<1x20x20xf32> to vector<20x20xf32>
    %c10_207 = arith.constant 10 : index
    %c0_208 = arith.constant 0 : index
    %c0_209 = arith.constant 0 : index
    %226 = vector.load %arg4[%c10_207, %c0_208, %c0_209] : memref<14x20x20xf32, #tpu.memory_space<vmem>>, vector<1x20x20xf32>
    %227 = vector.shape_cast %226 : vector<1x20x20xf32> to vector<20x20xf32>
    %cst_210 = arith.constant dense<0.000000e+00> : vector<2x20xf32>
    %228 = tpu.matmul %221, %225, %cst_210 {dimension_numbers = #tpu.dot_dimension_numbers<[1], [0], [0], [1], [0, 0, 1, 1], [], []>} : vector<2x20xf32>, vector<20x20xf32>, vector<2x20xf32> -> vector<2x20xf32>
    %cst_211 = arith.constant dense<0.000000e+00> : vector<2x20xf32>
    %229 = tpu.matmul %223, %227, %cst_211 {dimension_numbers = #tpu.dot_dimension_numbers<[1], [0], [0], [1], [0, 0, 1, 1], [], []>} : vector<2x20xf32>, vector<20x20xf32>, vector<2x20xf32> -> vector<2x20xf32>
    %230 = arith.addf %221, %223 : vector<2x20xf32>
    %231 = arith.addf %225, %227 : vector<20x20xf32>
    %cst_212 = arith.constant dense<0.000000e+00> : vector<2x20xf32>
    %232 = tpu.matmul %230, %231, %cst_212 {dimension_numbers = #tpu.dot_dimension_numbers<[1], [0], [0], [1], [0, 0, 1, 1], [], []>} : vector<2x20xf32>, vector<20x20xf32>, vector<2x20xf32> -> vector<2x20xf32>
    %233 = arith.subf %228, %229 : vector<2x20xf32>
    %c10_213 = arith.constant 10 : index
    %c0_214 = arith.constant 0 : index
    %c0_215 = arith.constant 0 : index
    %234 = vector.load %arg5[%c10_213, %c0_214, %c0_215] : memref<14x2x20xf32, #tpu.memory_space<vmem>>, vector<1x2x20xf32>
    %235 = vector.shape_cast %234 : vector<1x2x20xf32> to vector<2x20xf32>
    %236 = vector.shape_cast %233 : vector<2x20xf32> to vector<1x2x20xf32>
    tpu.vector_store %arg5[%c10_213, %c0_214, %c0_215], %236 {strides = array<i32>} : memref<14x2x20xf32, #tpu.memory_space<vmem>>, vector<1x2x20xf32>,
    %237 = arith.addf %228, %229 : vector<2x20xf32>
    %238 = arith.subf %232, %237 : vector<2x20xf32>
    %c10_216 = arith.constant 10 : index
    %c0_217 = arith.constant 0 : index
    %c0_218 = arith.constant 0 : index
    %239 = vector.load %arg6[%c10_216, %c0_217, %c0_218] : memref<14x2x20xf32, #tpu.memory_space<vmem>>, vector<1x2x20xf32>
    %240 = vector.shape_cast %239 : vector<1x2x20xf32> to vector<2x20xf32>
    %241 = vector.shape_cast %238 : vector<2x20xf32> to vector<1x2x20xf32>
    tpu.vector_store %arg6[%c10_216, %c0_217, %c0_218], %241 {strides = array<i32>} : memref<14x2x20xf32, #tpu.memory_space<vmem>>, vector<1x2x20xf32>,
    %c11 = arith.constant 11 : index
    %c0_219 = arith.constant 0 : index
    %c0_220 = arith.constant 0 : index
    %242 = vector.load %arg1[%c11, %c0_219, %c0_220] : memref<14x2x20xf32, #tpu.memory_space<vmem>>, vector<1x2x20xf32>
    %243 = vector.shape_cast %242 : vector<1x2x20xf32> to vector<2x20xf32>
    %c11_221 = arith.constant 11 : index
    %c0_222 = arith.constant 0 : index
    %c0_223 = arith.constant 0 : index
    %244 = vector.load %arg2[%c11_221, %c0_222, %c0_223] : memref<14x2x20xf32, #tpu.memory_space<vmem>>, vector<1x2x20xf32>
    %245 = vector.shape_cast %244 : vector<1x2x20xf32> to vector<2x20xf32>
    %c11_224 = arith.constant 11 : index
    %c0_225 = arith.constant 0 : index
    %c0_226 = arith.constant 0 : index
    %246 = vector.load %arg3[%c11_224, %c0_225, %c0_226] : memref<14x20x20xf32, #tpu.memory_space<vmem>>, vector<1x20x20xf32>
    %247 = vector.shape_cast %246 : vector<1x20x20xf32> to vector<20x20xf32>
    %c11_227 = arith.constant 11 : index
    %c0_228 = arith.constant 0 : index
    %c0_229 = arith.constant 0 : index
    %248 = vector.load %arg4[%c11_227, %c0_228, %c0_229] : memref<14x20x20xf32, #tpu.memory_space<vmem>>, vector<1x20x20xf32>
    %249 = vector.shape_cast %248 : vector<1x20x20xf32> to vector<20x20xf32>
    %cst_230 = arith.constant dense<0.000000e+00> : vector<2x20xf32>
    %250 = tpu.matmul %243, %247, %cst_230 {dimension_numbers = #tpu.dot_dimension_numbers<[1], [0], [0], [1], [0, 0, 1, 1], [], []>} : vector<2x20xf32>, vector<20x20xf32>, vector<2x20xf32> -> vector<2x20xf32>
    %cst_231 = arith.constant dense<0.000000e+00> : vector<2x20xf32>
    %251 = tpu.matmul %245, %249, %cst_231 {dimension_numbers = #tpu.dot_dimension_numbers<[1], [0], [0], [1], [0, 0, 1, 1], [], []>} : vector<2x20xf32>, vector<20x20xf32>, vector<2x20xf32> -> vector<2x20xf32>
    %252 = arith.addf %243, %245 : vector<2x20xf32>
    %253 = arith.addf %247, %249 : vector<20x20xf32>
    %cst_232 = arith.constant dense<0.000000e+00> : vector<2x20xf32>
    %254 = tpu.matmul %252, %253, %cst_232 {dimension_numbers = #tpu.dot_dimension_numbers<[1], [0], [0], [1], [0, 0, 1, 1], [], []>} : vector<2x20xf32>, vector<20x20xf32>, vector<2x20xf32> -> vector<2x20xf32>
    %255 = arith.subf %250, %251 : vector<2x20xf32>
    %c11_233 = arith.constant 11 : index
    %c0_234 = arith.constant 0 : index
    %c0_235 = arith.constant 0 : index
    %256 = vector.load %arg5[%c11_233, %c0_234, %c0_235] : memref<14x2x20xf32, #tpu.memory_space<vmem>>, vector<1x2x20xf32>
    %257 = vector.shape_cast %256 : vector<1x2x20xf32> to vector<2x20xf32>
    %258 = vector.shape_cast %255 : vector<2x20xf32> to vector<1x2x20xf32>
    tpu.vector_store %arg5[%c11_233, %c0_234, %c0_235], %258 {strides = array<i32>} : memref<14x2x20xf32, #tpu.memory_space<vmem>>, vector<1x2x20xf32>,
    %259 = arith.addf %250, %251 : vector<2x20xf32>
    %260 = arith.subf %254, %259 : vector<2x20xf32>
    %c11_236 = arith.constant 11 : index
    %c0_237 = arith.constant 0 : index
    %c0_238 = arith.constant 0 : index
    %261 = vector.load %arg6[%c11_236, %c0_237, %c0_238] : memref<14x2x20xf32, #tpu.memory_space<vmem>>, vector<1x2x20xf32>
    %262 = vector.shape_cast %261 : vector<1x2x20xf32> to vector<2x20xf32>
    %263 = vector.shape_cast %260 : vector<2x20xf32> to vector<1x2x20xf32>
    tpu.vector_store %arg6[%c11_236, %c0_237, %c0_238], %263 {strides = array<i32>} : memref<14x2x20xf32, #tpu.memory_space<vmem>>, vector<1x2x20xf32>,
    %c12 = arith.constant 12 : index
    %c0_239 = arith.constant 0 : index
    %c0_240 = arith.constant 0 : index
    %264 = vector.load %arg1[%c12, %c0_239, %c0_240] : memref<14x2x20xf32, #tpu.memory_space<vmem>>, vector<1x2x20xf32>
    %265 = vector.shape_cast %264 : vector<1x2x20xf32> to vector<2x20xf32>
    %c12_241 = arith.constant 12 : index
    %c0_242 = arith.constant 0 : index
    %c0_243 = arith.constant 0 : index
    %266 = vector.load %arg2[%c12_241, %c0_242, %c0_243] : memref<14x2x20xf32, #tpu.memory_space<vmem>>, vector<1x2x20xf32>
    %267 = vector.shape_cast %266 : vector<1x2x20xf32> to vector<2x20xf32>
    %c12_244 = arith.constant 12 : index
    %c0_245 = arith.constant 0 : index
    %c0_246 = arith.constant 0 : index
    %268 = vector.load %arg3[%c12_244, %c0_245, %c0_246] : memref<14x20x20xf32, #tpu.memory_space<vmem>>, vector<1x20x20xf32>
    %269 = vector.shape_cast %268 : vector<1x20x20xf32> to vector<20x20xf32>
    %c12_247 = arith.constant 12 : index
    %c0_248 = arith.constant 0 : index
    %c0_249 = arith.constant 0 : index
    %270 = vector.load %arg4[%c12_247, %c0_248, %c0_249] : memref<14x20x20xf32, #tpu.memory_space<vmem>>, vector<1x20x20xf32>
    %271 = vector.shape_cast %270 : vector<1x20x20xf32> to vector<20x20xf32>
    %cst_250 = arith.constant dense<0.000000e+00> : vector<2x20xf32>
    %272 = tpu.matmul %265, %269, %cst_250 {dimension_numbers = #tpu.dot_dimension_numbers<[1], [0], [0], [1], [0, 0, 1, 1], [], []>} : vector<2x20xf32>, vector<20x20xf32>, vector<2x20xf32> -> vector<2x20xf32>
    %cst_251 = arith.constant dense<0.000000e+00> : vector<2x20xf32>
    %273 = tpu.matmul %267, %271, %cst_251 {dimension_numbers = #tpu.dot_dimension_numbers<[1], [0], [0], [1], [0, 0, 1, 1], [], []>} : vector<2x20xf32>, vector<20x20xf32>, vector<2x20xf32> -> vector<2x20xf32>
    %274 = arith.addf %265, %267 : vector<2x20xf32>
    %275 = arith.addf %269, %271 : vector<20x20xf32>
    %cst_252 = arith.constant dense<0.000000e+00> : vector<2x20xf32>
    %276 = tpu.matmul %274, %275, %cst_252 {dimension_numbers = #tpu.dot_dimension_numbers<[1], [0], [0], [1], [0, 0, 1, 1], [], []>} : vector<2x20xf32>, vector<20x20xf32>, vector<2x20xf32> -> vector<2x20xf32>
    %277 = arith.subf %272, %273 : vector<2x20xf32>
    %c12_253 = arith.constant 12 : index
    %c0_254 = arith.constant 0 : index
    %c0_255 = arith.constant 0 : index
    %278 = vector.load %arg5[%c12_253, %c0_254, %c0_255] : memref<14x2x20xf32, #tpu.memory_space<vmem>>, vector<1x2x20xf32>
    %279 = vector.shape_cast %278 : vector<1x2x20xf32> to vector<2x20xf32>
    %280 = vector.shape_cast %277 : vector<2x20xf32> to vector<1x2x20xf32>
    tpu.vector_store %arg5[%c12_253, %c0_254, %c0_255], %280 {strides = array<i32>} : memref<14x2x20xf32, #tpu.memory_space<vmem>>, vector<1x2x20xf32>,
    %281 = arith.addf %272, %273 : vector<2x20xf32>
    %282 = arith.subf %276, %281 : vector<2x20xf32>
    %c12_256 = arith.constant 12 : index
    %c0_257 = arith.constant 0 : index
    %c0_258 = arith.constant 0 : index
    %283 = vector.load %arg6[%c12_256, %c0_257, %c0_258] : memref<14x2x20xf32, #tpu.memory_space<vmem>>, vector<1x2x20xf32>
    %284 = vector.shape_cast %283 : vector<1x2x20xf32> to vector<2x20xf32>
    %285 = vector.shape_cast %282 : vector<2x20xf32> to vector<1x2x20xf32>
    tpu.vector_store %arg6[%c12_256, %c0_257, %c0_258], %285 {strides = array<i32>} : memref<14x2x20xf32, #tpu.memory_space<vmem>>, vector<1x2x20xf32>,
    %c13 = arith.constant 13 : index
    %c0_259 = arith.constant 0 : index
    %c0_260 = arith.constant 0 : index
    %286 = vector.load %arg1[%c13, %c0_259, %c0_260] : memref<14x2x20xf32, #tpu.memory_space<vmem>>, vector<1x2x20xf32>
    %287 = vector.shape_cast %286 : vector<1x2x20xf32> to vector<2x20xf32>
    %c13_261 = arith.constant 13 : index
    %c0_262 = arith.constant 0 : index
    %c0_263 = arith.constant 0 : index
    %288 = vector.load %arg2[%c13_261, %c0_262, %c0_263] : memref<14x2x20xf32, #tpu.memory_space<vmem>>, vector<1x2x20xf32>
    %289 = vector.shape_cast %288 : vector<1x2x20xf32> to vector<2x20xf32>
    %c13_264 = arith.constant 13 : index
    %c0_265 = arith.constant 0 : index
    %c0_266 = arith.constant 0 : index
    %290 = vector.load %arg3[%c13_264, %c0_265, %c0_266] : memref<14x20x20xf32, #tpu.memory_space<vmem>>, vector<1x20x20xf32>
    %291 = vector.shape_cast %290 : vector<1x20x20xf32> to vector<20x20xf32>
    %c13_267 = arith.constant 13 : index
    %c0_268 = arith.constant 0 : index
    %c0_269 = arith.constant 0 : index
    %292 = vector.load %arg4[%c13_267, %c0_268, %c0_269] : memref<14x20x20xf32, #tpu.memory_space<vmem>>, vector<1x20x20xf32>
    %293 = vector.shape_cast %292 : vector<1x20x20xf32> to vector<20x20xf32>
    %cst_270 = arith.constant dense<0.000000e+00> : vector<2x20xf32>
    %294 = tpu.matmul %287, %291, %cst_270 {dimension_numbers = #tpu.dot_dimension_numbers<[1], [0], [0], [1], [0, 0, 1, 1], [], []>} : vector<2x20xf32>, vector<20x20xf32>, vector<2x20xf32> -> vector<2x20xf32>
    %cst_271 = arith.constant dense<0.000000e+00> : vector<2x20xf32>
    %295 = tpu.matmul %289, %293, %cst_271 {dimension_numbers = #tpu.dot_dimension_numbers<[1], [0], [0], [1], [0, 0, 1, 1], [], []>} : vector<2x20xf32>, vector<20x20xf32>, vector<2x20xf32> -> vector<2x20xf32>
    %296 = arith.addf %287, %289 : vector<2x20xf32>
    %297 = arith.addf %291, %293 : vector<20x20xf32>
    %cst_272 = arith.constant dense<0.000000e+00> : vector<2x20xf32>
    %298 = tpu.matmul %296, %297, %cst_272 {dimension_numbers = #tpu.dot_dimension_numbers<[1], [0], [0], [1], [0, 0, 1, 1], [], []>} : vector<2x20xf32>, vector<20x20xf32>, vector<2x20xf32> -> vector<2x20xf32>
    %299 = arith.subf %294, %295 : vector<2x20xf32>
    %c13_273 = arith.constant 13 : index
    %c0_274 = arith.constant 0 : index
    %c0_275 = arith.constant 0 : index
    %300 = vector.load %arg5[%c13_273, %c0_274, %c0_275] : memref<14x2x20xf32, #tpu.memory_space<vmem>>, vector<1x2x20xf32>
    %301 = vector.shape_cast %300 : vector<1x2x20xf32> to vector<2x20xf32>
    %302 = vector.shape_cast %299 : vector<2x20xf32> to vector<1x2x20xf32>
    tpu.vector_store %arg5[%c13_273, %c0_274, %c0_275], %302 {strides = array<i32>} : memref<14x2x20xf32, #tpu.memory_space<vmem>>, vector<1x2x20xf32>,
    %303 = arith.addf %294, %295 : vector<2x20xf32>
    %304 = arith.subf %298, %303 : vector<2x20xf32>
    %c13_276 = arith.constant 13 : index
    %c0_277 = arith.constant 0 : index
    %c0_278 = arith.constant 0 : index
    %305 = vector.load %arg6[%c13_276, %c0_277, %c0_278] : memref<14x2x20xf32, #tpu.memory_space<vmem>>, vector<1x2x20xf32>
    %306 = vector.shape_cast %305 : vector<1x2x20xf32> to vector<2x20xf32>
    %307 = vector.shape_cast %304 : vector<2x20xf32> to vector<1x2x20xf32>
    tpu.vector_store %arg6[%c13_276, %c0_277, %c0_278], %307 {strides = array<i32>} : memref<14x2x20xf32, #tpu.memory_space<vmem>>, vector<1x2x20xf32>,
    return
  }
  func.func @transform_0(%arg0: i32) -> (i32, i32, i32) {
    %c0_i32 = arith.constant 0 : i32
    %c0_i32_0 = arith.constant 0 : i32
    %c0_i32_1 = arith.constant 0 : i32
    return %arg0, %c0_i32, %c0_i32_0 : i32, i32, i32
  }
  func.func @transform_1(%arg0: i32) -> (i32, i32, i32) {
    %c0_i32 = arith.constant 0 : i32
    %c0_i32_0 = arith.constant 0 : i32
    %c0_i32_1 = arith.constant 0 : i32
    return %arg0, %c0_i32, %c0_i32_0 : i32, i32, i32
  }
  func.func @transform_2(%arg0: i32) -> (i32, i32, i32) {
    %c0_i32 = arith.constant 0 : i32
    %c0_i32_0 = arith.constant 0 : i32
    %c0_i32_1 = arith.constant 0 : i32
    return %arg0, %c0_i32, %c0_i32_0 : i32, i32, i32
  }
  func.func @transform_3(%arg0: i32) -> (i32, i32, i32) {
    %c0_i32 = arith.constant 0 : i32
    %c0_i32_0 = arith.constant 0 : i32
    %c0_i32_1 = arith.constant 0 : i32
    return %arg0, %c0_i32, %c0_i32_0 : i32, i32, i32
  }
  func.func @transform_4(%arg0: i32) -> (i32, i32, i32) {
    %c0_i32 = arith.constant 0 : i32
    %c0_i32_0 = arith.constant 0 : i32
    %c0_i32_1 = arith.constant 0 : i32
    return %arg0, %c0_i32, %c0_i32_0 : i32, i32, i32
  }
  func.func @transform_5(%arg0: i32) -> (i32, i32, i32) {
    %c0_i32 = arith.constant 0 : i32
    %c0_i32_0 = arith.constant 0 : i32
    %c0_i32_1 = arith.constant 0 : i32
    return %arg0, %c0_i32, %c0_i32_0 : i32, i32, i32
  }
}

module attributes {stable_mosaic.version = 11 : i64} {
  func.func @_layer_kernel(%arg0: i32, %arg1: memref<20x256xf32, #tpu.memory_space<vmem>>, %arg2: memref<20x256xf32, #tpu.memory_space<vmem>>, %arg3: memref<20x20xf32, #tpu.memory_space<vmem>>, %arg4: memref<20x1xf32, #tpu.memory_space<vmem>>, %arg5: memref<20x20xf32, #tpu.memory_space<vmem>>, %arg6: memref<20x1xf32, #tpu.memory_space<vmem>>, %arg7: memref<20x20xf32, #tpu.memory_space<vmem>>, %arg8: memref<20x1xf32, #tpu.memory_space<vmem>>, %arg9: memref<20x256xf32, #tpu.memory_space<vmem>>) attributes {dimension_semantics = [#tpu.dimension_semantics<parallel>], iteration_bounds = array<i64: 2>, scalar_prefetch = 0 : i64, scratch_operands = 0 : i64, tpu.core_type = #tpu.core_type<tc>, window_params = [{transform_indices = @transform_0, window_bounds = array<i64: 20, 256>}, {transform_indices = @transform_1, window_bounds = array<i64: 20, 256>}, {pipeline_mode = #tpu.pipeline_mode<synchronous>, transform_indices = @transform_2, window_bounds = array<i64: 20, 20>}, {pipeline_mode = #tpu.pipeline_mode<synchronous>, transform_indices = @transform_3, window_bounds = array<i64: 20, 1>}, {pipeline_mode = #tpu.pipeline_mode<synchronous>, transform_indices = @transform_4, window_bounds = array<i64: 20, 20>}, {pipeline_mode = #tpu.pipeline_mode<synchronous>, transform_indices = @transform_5, window_bounds = array<i64: 20, 1>}, {pipeline_mode = #tpu.pipeline_mode<synchronous>, transform_indices = @transform_6, window_bounds = array<i64: 20, 20>}, {pipeline_mode = #tpu.pipeline_mode<synchronous>, transform_indices = @transform_7, window_bounds = array<i64: 20, 1>}, {transform_indices = @transform_8, window_bounds = array<i64: 20, 256>}]} {
    %c0 = arith.constant 0 : index
    %c0_0 = arith.constant 0 : index
    %0 = vector.load %arg3[%c0, %c0_0] : memref<20x20xf32, #tpu.memory_space<vmem>>, vector<20x20xf32>
    %c0_1 = arith.constant 0 : index
    %c0_2 = arith.constant 0 : index
    %1 = vector.load %arg1[%c0_1, %c0_2] : memref<20x256xf32, #tpu.memory_space<vmem>>, vector<20x256xf32>
    %cst = arith.constant dense<0.000000e+00> : vector<20x256xf32>
    %2 = tpu.matmul %0, %1, %cst {dimension_numbers = #tpu.dot_dimension_numbers<[1], [0], [0], [1], [0, 0, 1, 1], [], []>} : vector<20x20xf32>, vector<20x256xf32>, vector<20x256xf32> -> vector<20x256xf32>
    %c0_3 = arith.constant 0 : index
    %c0_4 = arith.constant 0 : index
    %3 = vector.load %arg4[%c0_3, %c0_4] : memref<20x1xf32, #tpu.memory_space<vmem>>, vector<20x1xf32>
    %4 = vector.broadcast %3 : vector<20x1xf32> to vector<20x256xf32>
    %5 = arith.addf %2, %4 : vector<20x256xf32>
    %cst_5 = arith.constant 5.000000e-01 : f32
    %6 = vector.broadcast %cst_5 : f32 to vector<20x256xf32>
    %7 = arith.mulf %6, %5 : vector<20x256xf32>
    %cst_6 = arith.constant 0.707106769 : f32
    %8 = vector.broadcast %cst_6 : f32 to vector<20x256xf32>
    %9 = arith.mulf %5, %8 : vector<20x256xf32>
    %cst_7 = arith.constant 0.000000e+00 : f32
    %10 = vector.broadcast %cst_7 : f32 to vector<20x256xf32>
    %11 = arith.cmpf oge, %9, %10 : vector<20x256xf32>
    %cst_8 = arith.constant 1.000000e+00 : f32
    %cst_9 = arith.constant -1.000000e+00 : f32
    %12 = vector.broadcast %cst_8 : f32 to vector<20x256xf32>
    %13 = vector.broadcast %cst_9 : f32 to vector<20x256xf32>
    %14 = arith.select %11, %12, %13 : vector<20x256xi1>, vector<20x256xf32>
    %15 = math.absf %9 : vector<20x256xf32>
    %cst_10 = arith.constant 0.327591091 : f32
    %16 = vector.broadcast %cst_10 : f32 to vector<20x256xf32>
    %17 = arith.mulf %16, %15 : vector<20x256xf32>
    %cst_11 = arith.constant 1.000000e+00 : f32
    %18 = vector.broadcast %cst_11 : f32 to vector<20x256xf32>
    %19 = arith.addf %18, %17 : vector<20x256xf32>
    %20 = tpu.reciprocal %19 {approx = true} : vector<20x256xf32> -> vector<20x256xf32>
    %cst_12 = arith.constant 1.06140542 : f32
    %21 = vector.broadcast %cst_12 : f32 to vector<20x256xf32>
    %22 = arith.mulf %21, %20 : vector<20x256xf32>
    %cst_13 = arith.constant -1.45315206 : f32
    %23 = vector.broadcast %cst_13 : f32 to vector<20x256xf32>
    %24 = arith.addf %22, %23 : vector<20x256xf32>
    %25 = arith.mulf %24, %20 : vector<20x256xf32>
    %cst_14 = arith.constant 1.42141378 : f32
    %26 = vector.broadcast %cst_14 : f32 to vector<20x256xf32>
    %27 = arith.addf %25, %26 : vector<20x256xf32>
    %28 = arith.mulf %27, %20 : vector<20x256xf32>
    %cst_15 = arith.constant -0.284496725 : f32
    %29 = vector.broadcast %cst_15 : f32 to vector<20x256xf32>
    %30 = arith.addf %28, %29 : vector<20x256xf32>
    %31 = arith.mulf %30, %20 : vector<20x256xf32>
    %cst_16 = arith.constant 0.254829586 : f32
    %32 = vector.broadcast %cst_16 : f32 to vector<20x256xf32>
    %33 = arith.addf %31, %32 : vector<20x256xf32>
    %34 = arith.mulf %33, %20 : vector<20x256xf32>
    %cst_17 = arith.constant 0.000000e+00 : f32
    %35 = vector.broadcast %cst_17 : f32 to vector<20x256xf32>
    %36 = arith.subf %35, %15 : vector<20x256xf32>
    %37 = arith.mulf %36, %15 : vector<20x256xf32>
    %38 = math.exp %37 : vector<20x256xf32>
    %39 = arith.mulf %34, %38 : vector<20x256xf32>
    %cst_18 = arith.constant 1.000000e+00 : f32
    %40 = vector.broadcast %cst_18 : f32 to vector<20x256xf32>
    %41 = arith.subf %40, %39 : vector<20x256xf32>
    %42 = arith.mulf %14, %41 : vector<20x256xf32>
    %cst_19 = arith.constant 1.000000e+00 : f32
    %43 = vector.broadcast %cst_19 : f32 to vector<20x256xf32>
    %44 = arith.addf %43, %42 : vector<20x256xf32>
    %45 = arith.mulf %7, %44 : vector<20x256xf32>
    %c0_20 = arith.constant 0 : index
    %c0_21 = arith.constant 0 : index
    %46 = vector.load %arg5[%c0_20, %c0_21] : memref<20x20xf32, #tpu.memory_space<vmem>>, vector<20x20xf32>
    %cst_22 = arith.constant dense<0.000000e+00> : vector<20x256xf32>
    %47 = tpu.matmul %46, %45, %cst_22 {dimension_numbers = #tpu.dot_dimension_numbers<[1], [0], [0], [1], [0, 0, 1, 1], [], []>} : vector<20x20xf32>, vector<20x256xf32>, vector<20x256xf32> -> vector<20x256xf32>
    %c0_23 = arith.constant 0 : index
    %c0_24 = arith.constant 0 : index
    %48 = vector.load %arg6[%c0_23, %c0_24] : memref<20x1xf32, #tpu.memory_space<vmem>>, vector<20x1xf32>
    %49 = vector.broadcast %48 : vector<20x1xf32> to vector<20x256xf32>
    %50 = arith.addf %47, %49 : vector<20x256xf32>
    %c0_25 = arith.constant 0 : index
    %c0_26 = arith.constant 0 : index
    %51 = vector.load %arg7[%c0_25, %c0_26] : memref<20x20xf32, #tpu.memory_space<vmem>>, vector<20x20xf32>
    %c0_27 = arith.constant 0 : index
    %c0_28 = arith.constant 0 : index
    %52 = vector.load %arg2[%c0_27, %c0_28] : memref<20x256xf32, #tpu.memory_space<vmem>>, vector<20x256xf32>
    %cst_29 = arith.constant dense<0.000000e+00> : vector<20x256xf32>
    %53 = tpu.matmul %51, %52, %cst_29 {dimension_numbers = #tpu.dot_dimension_numbers<[1], [0], [0], [1], [0, 0, 1, 1], [], []>} : vector<20x20xf32>, vector<20x256xf32>, vector<20x256xf32> -> vector<20x256xf32>
    %c0_30 = arith.constant 0 : index
    %c0_31 = arith.constant 0 : index
    %54 = vector.load %arg8[%c0_30, %c0_31] : memref<20x1xf32, #tpu.memory_space<vmem>>, vector<20x1xf32>
    %55 = vector.broadcast %54 : vector<20x1xf32> to vector<20x256xf32>
    %56 = arith.addf %53, %55 : vector<20x256xf32>
    %57 = arith.addf %50, %56 : vector<20x256xf32>
    %cst_32 = arith.constant 5.000000e-01 : f32
    %58 = vector.broadcast %cst_32 : f32 to vector<20x256xf32>
    %59 = arith.mulf %58, %57 : vector<20x256xf32>
    %cst_33 = arith.constant 0.707106769 : f32
    %60 = vector.broadcast %cst_33 : f32 to vector<20x256xf32>
    %61 = arith.mulf %57, %60 : vector<20x256xf32>
    %cst_34 = arith.constant 0.000000e+00 : f32
    %62 = vector.broadcast %cst_34 : f32 to vector<20x256xf32>
    %63 = arith.cmpf oge, %61, %62 : vector<20x256xf32>
    %cst_35 = arith.constant 1.000000e+00 : f32
    %cst_36 = arith.constant -1.000000e+00 : f32
    %64 = vector.broadcast %cst_35 : f32 to vector<20x256xf32>
    %65 = vector.broadcast %cst_36 : f32 to vector<20x256xf32>
    %66 = arith.select %63, %64, %65 : vector<20x256xi1>, vector<20x256xf32>
    %67 = math.absf %61 : vector<20x256xf32>
    %cst_37 = arith.constant 0.327591091 : f32
    %68 = vector.broadcast %cst_37 : f32 to vector<20x256xf32>
    %69 = arith.mulf %68, %67 : vector<20x256xf32>
    %cst_38 = arith.constant 1.000000e+00 : f32
    %70 = vector.broadcast %cst_38 : f32 to vector<20x256xf32>
    %71 = arith.addf %70, %69 : vector<20x256xf32>
    %72 = tpu.reciprocal %71 {approx = true} : vector<20x256xf32> -> vector<20x256xf32>
    %cst_39 = arith.constant 1.06140542 : f32
    %73 = vector.broadcast %cst_39 : f32 to vector<20x256xf32>
    %74 = arith.mulf %73, %72 : vector<20x256xf32>
    %cst_40 = arith.constant -1.45315206 : f32
    %75 = vector.broadcast %cst_40 : f32 to vector<20x256xf32>
    %76 = arith.addf %74, %75 : vector<20x256xf32>
    %77 = arith.mulf %76, %72 : vector<20x256xf32>
    %cst_41 = arith.constant 1.42141378 : f32
    %78 = vector.broadcast %cst_41 : f32 to vector<20x256xf32>
    %79 = arith.addf %77, %78 : vector<20x256xf32>
    %80 = arith.mulf %79, %72 : vector<20x256xf32>
    %cst_42 = arith.constant -0.284496725 : f32
    %81 = vector.broadcast %cst_42 : f32 to vector<20x256xf32>
    %82 = arith.addf %80, %81 : vector<20x256xf32>
    %83 = arith.mulf %82, %72 : vector<20x256xf32>
    %cst_43 = arith.constant 0.254829586 : f32
    %84 = vector.broadcast %cst_43 : f32 to vector<20x256xf32>
    %85 = arith.addf %83, %84 : vector<20x256xf32>
    %86 = arith.mulf %85, %72 : vector<20x256xf32>
    %cst_44 = arith.constant 0.000000e+00 : f32
    %87 = vector.broadcast %cst_44 : f32 to vector<20x256xf32>
    %88 = arith.subf %87, %67 : vector<20x256xf32>
    %89 = arith.mulf %88, %67 : vector<20x256xf32>
    %90 = math.exp %89 : vector<20x256xf32>
    %91 = arith.mulf %86, %90 : vector<20x256xf32>
    %cst_45 = arith.constant 1.000000e+00 : f32
    %92 = vector.broadcast %cst_45 : f32 to vector<20x256xf32>
    %93 = arith.subf %92, %91 : vector<20x256xf32>
    %94 = arith.mulf %66, %93 : vector<20x256xf32>
    %cst_46 = arith.constant 1.000000e+00 : f32
    %95 = vector.broadcast %cst_46 : f32 to vector<20x256xf32>
    %96 = arith.addf %95, %94 : vector<20x256xf32>
    %97 = arith.mulf %59, %96 : vector<20x256xf32>
    %c0_47 = arith.constant 0 : index
    %c0_48 = arith.constant 0 : index
    %98 = vector.load %arg9[%c0_47, %c0_48] : memref<20x256xf32, #tpu.memory_space<vmem>>, vector<20x256xf32>
    tpu.vector_store %arg9[%c0_47, %c0_48], %97 {strides = array<i32>} : memref<20x256xf32, #tpu.memory_space<vmem>>, vector<20x256xf32>,
    return
  }
  func.func @transform_0(%arg0: i32) -> (i32, i32) {
    %c0_i32 = arith.constant 0 : i32
    %c0_i32_0 = arith.constant 0 : i32
    return %c0_i32, %arg0 : i32, i32
  }
  func.func @transform_1(%arg0: i32) -> (i32, i32) {
    %c0_i32 = arith.constant 0 : i32
    %c0_i32_0 = arith.constant 0 : i32
    return %c0_i32, %arg0 : i32, i32
  }
  func.func @transform_2(%arg0: i32) -> (i32, i32) {
    %c0_i32 = arith.constant 0 : i32
    %c0_i32_0 = arith.constant 0 : i32
    %c0_i32_1 = arith.constant 0 : i32
    return %c0_i32, %c0_i32_0 : i32, i32
  }
  func.func @transform_3(%arg0: i32) -> (i32, i32) {
    %c0_i32 = arith.constant 0 : i32
    %c0_i32_0 = arith.constant 0 : i32
    %c0_i32_1 = arith.constant 0 : i32
    return %c0_i32, %c0_i32_0 : i32, i32
  }
  func.func @transform_4(%arg0: i32) -> (i32, i32) {
    %c0_i32 = arith.constant 0 : i32
    %c0_i32_0 = arith.constant 0 : i32
    %c0_i32_1 = arith.constant 0 : i32
    return %c0_i32, %c0_i32_0 : i32, i32
  }
  func.func @transform_5(%arg0: i32) -> (i32, i32) {
    %c0_i32 = arith.constant 0 : i32
    %c0_i32_0 = arith.constant 0 : i32
    %c0_i32_1 = arith.constant 0 : i32
    return %c0_i32, %c0_i32_0 : i32, i32
  }
  func.func @transform_6(%arg0: i32) -> (i32, i32) {
    %c0_i32 = arith.constant 0 : i32
    %c0_i32_0 = arith.constant 0 : i32
    %c0_i32_1 = arith.constant 0 : i32
    return %c0_i32, %c0_i32_0 : i32, i32
  }
  func.func @transform_7(%arg0: i32) -> (i32, i32) {
    %c0_i32 = arith.constant 0 : i32
    %c0_i32_0 = arith.constant 0 : i32
    %c0_i32_1 = arith.constant 0 : i32
    return %c0_i32, %c0_i32_0 : i32, i32
  }
  func.func @transform_8(%arg0: i32) -> (i32, i32) {
    %c0_i32 = arith.constant 0 : i32
    %c0_i32_0 = arith.constant 0 : i32
    return %c0_i32, %arg0 : i32, i32
  }
}

module attributes {stable_mosaic.version = 11 : i64} {
  func.func @_q_kernel(%arg0: i32, %arg1: memref<20x256xf32, #tpu.memory_space<vmem>>, %arg2: memref<80x20xf32, #tpu.memory_space<vmem>>, %arg3: memref<80x1xf32, #tpu.memory_space<vmem>>, %arg4: memref<1x80xf32, #tpu.memory_space<vmem>>, %arg5: memref<1x1xf32, #tpu.memory_space<vmem>>, %arg6: memref<1x256xf32, #tpu.memory_space<vmem>>) attributes {dimension_semantics = [#tpu.dimension_semantics<parallel>], iteration_bounds = array<i64: 2>, scalar_prefetch = 0 : i64, scratch_operands = 0 : i64, tpu.core_type = #tpu.core_type<tc>, window_params = [{transform_indices = @transform_0, window_bounds = array<i64: 20, 256>}, {pipeline_mode = #tpu.pipeline_mode<synchronous>, transform_indices = @transform_1, window_bounds = array<i64: 80, 20>}, {pipeline_mode = #tpu.pipeline_mode<synchronous>, transform_indices = @transform_2, window_bounds = array<i64: 80, 1>}, {pipeline_mode = #tpu.pipeline_mode<synchronous>, transform_indices = @transform_3, window_bounds = array<i64: 1, 80>}, {pipeline_mode = #tpu.pipeline_mode<synchronous>, transform_indices = @transform_4, window_bounds = array<i64: 1, 1>}, {transform_indices = @transform_5, window_bounds = array<i64: 1, 256>}]} {
    %c0 = arith.constant 0 : index
    %c0_0 = arith.constant 0 : index
    %0 = vector.load %arg2[%c0, %c0_0] : memref<80x20xf32, #tpu.memory_space<vmem>>, vector<80x20xf32>
    %c0_1 = arith.constant 0 : index
    %c0_2 = arith.constant 0 : index
    %1 = vector.load %arg1[%c0_1, %c0_2] : memref<20x256xf32, #tpu.memory_space<vmem>>, vector<20x256xf32>
    %cst = arith.constant dense<0.000000e+00> : vector<80x256xf32>
    %2 = tpu.matmul %0, %1, %cst {dimension_numbers = #tpu.dot_dimension_numbers<[1], [0], [0], [1], [0, 0, 1, 1], [], []>} : vector<80x20xf32>, vector<20x256xf32>, vector<80x256xf32> -> vector<80x256xf32>
    %c0_3 = arith.constant 0 : index
    %c0_4 = arith.constant 0 : index
    %3 = vector.load %arg3[%c0_3, %c0_4] : memref<80x1xf32, #tpu.memory_space<vmem>>, vector<80x1xf32>
    %4 = vector.broadcast %3 : vector<80x1xf32> to vector<80x256xf32>
    %5 = arith.addf %2, %4 : vector<80x256xf32>
    %cst_5 = arith.constant 5.000000e-01 : f32
    %6 = vector.broadcast %cst_5 : f32 to vector<80x256xf32>
    %7 = arith.mulf %6, %5 : vector<80x256xf32>
    %cst_6 = arith.constant 0.707106769 : f32
    %8 = vector.broadcast %cst_6 : f32 to vector<80x256xf32>
    %9 = arith.mulf %5, %8 : vector<80x256xf32>
    %cst_7 = arith.constant 0.000000e+00 : f32
    %10 = vector.broadcast %cst_7 : f32 to vector<80x256xf32>
    %11 = arith.cmpf oge, %9, %10 : vector<80x256xf32>
    %cst_8 = arith.constant 1.000000e+00 : f32
    %cst_9 = arith.constant -1.000000e+00 : f32
    %12 = vector.broadcast %cst_8 : f32 to vector<80x256xf32>
    %13 = vector.broadcast %cst_9 : f32 to vector<80x256xf32>
    %14 = arith.select %11, %12, %13 : vector<80x256xi1>, vector<80x256xf32>
    %15 = math.absf %9 : vector<80x256xf32>
    %cst_10 = arith.constant 0.327591091 : f32
    %16 = vector.broadcast %cst_10 : f32 to vector<80x256xf32>
    %17 = arith.mulf %16, %15 : vector<80x256xf32>
    %cst_11 = arith.constant 1.000000e+00 : f32
    %18 = vector.broadcast %cst_11 : f32 to vector<80x256xf32>
    %19 = arith.addf %18, %17 : vector<80x256xf32>
    %20 = tpu.reciprocal %19 {approx = true} : vector<80x256xf32> -> vector<80x256xf32>
    %cst_12 = arith.constant 1.06140542 : f32
    %21 = vector.broadcast %cst_12 : f32 to vector<80x256xf32>
    %22 = arith.mulf %21, %20 : vector<80x256xf32>
    %cst_13 = arith.constant -1.45315206 : f32
    %23 = vector.broadcast %cst_13 : f32 to vector<80x256xf32>
    %24 = arith.addf %22, %23 : vector<80x256xf32>
    %25 = arith.mulf %24, %20 : vector<80x256xf32>
    %cst_14 = arith.constant 1.42141378 : f32
    %26 = vector.broadcast %cst_14 : f32 to vector<80x256xf32>
    %27 = arith.addf %25, %26 : vector<80x256xf32>
    %28 = arith.mulf %27, %20 : vector<80x256xf32>
    %cst_15 = arith.constant -0.284496725 : f32
    %29 = vector.broadcast %cst_15 : f32 to vector<80x256xf32>
    %30 = arith.addf %28, %29 : vector<80x256xf32>
    %31 = arith.mulf %30, %20 : vector<80x256xf32>
    %cst_16 = arith.constant 0.254829586 : f32
    %32 = vector.broadcast %cst_16 : f32 to vector<80x256xf32>
    %33 = arith.addf %31, %32 : vector<80x256xf32>
    %34 = arith.mulf %33, %20 : vector<80x256xf32>
    %cst_17 = arith.constant 0.000000e+00 : f32
    %35 = vector.broadcast %cst_17 : f32 to vector<80x256xf32>
    %36 = arith.subf %35, %15 : vector<80x256xf32>
    %37 = arith.mulf %36, %15 : vector<80x256xf32>
    %38 = math.exp %37 : vector<80x256xf32>
    %39 = arith.mulf %34, %38 : vector<80x256xf32>
    %cst_18 = arith.constant 1.000000e+00 : f32
    %40 = vector.broadcast %cst_18 : f32 to vector<80x256xf32>
    %41 = arith.subf %40, %39 : vector<80x256xf32>
    %42 = arith.mulf %14, %41 : vector<80x256xf32>
    %cst_19 = arith.constant 1.000000e+00 : f32
    %43 = vector.broadcast %cst_19 : f32 to vector<80x256xf32>
    %44 = arith.addf %43, %42 : vector<80x256xf32>
    %45 = arith.mulf %7, %44 : vector<80x256xf32>
    %c0_20 = arith.constant 0 : index
    %c0_21 = arith.constant 0 : index
    %46 = vector.load %arg4[%c0_20, %c0_21] : memref<1x80xf32, #tpu.memory_space<vmem>>, vector<1x80xf32>
    %cst_22 = arith.constant dense<0.000000e+00> : vector<1x256xf32>
    %47 = tpu.matmul %46, %45, %cst_22 {dimension_numbers = #tpu.dot_dimension_numbers<[1], [0], [0], [1], [0, 0, 1, 1], [], []>} : vector<1x80xf32>, vector<80x256xf32>, vector<1x256xf32> -> vector<1x256xf32>
    %c0_23 = arith.constant 0 : index
    %c0_24 = arith.constant 0 : index
    %48 = vector.load %arg5[%c0_23, %c0_24] : memref<1x1xf32, #tpu.memory_space<vmem>>, vector<1x1xf32>
    %49 = vector.broadcast %48 : vector<1x1xf32> to vector<1x256xf32>
    %50 = arith.addf %47, %49 : vector<1x256xf32>
    %c0_25 = arith.constant 0 : index
    %c0_26 = arith.constant 0 : index
    %51 = vector.load %arg6[%c0_25, %c0_26] : memref<1x256xf32, #tpu.memory_space<vmem>>, vector<1x256xf32>
    tpu.vector_store %arg6[%c0_25, %c0_26], %50 {strides = array<i32>} : memref<1x256xf32, #tpu.memory_space<vmem>>, vector<1x256xf32>,
    return
  }
  func.func @transform_0(%arg0: i32) -> (i32, i32) {
    %c0_i32 = arith.constant 0 : i32
    %c0_i32_0 = arith.constant 0 : i32
    return %c0_i32, %arg0 : i32, i32
  }
  func.func @transform_1(%arg0: i32) -> (i32, i32) {
    %c0_i32 = arith.constant 0 : i32
    %c0_i32_0 = arith.constant 0 : i32
    %c0_i32_1 = arith.constant 0 : i32
    return %c0_i32, %c0_i32_0 : i32, i32
  }
  func.func @transform_2(%arg0: i32) -> (i32, i32) {
    %c0_i32 = arith.constant 0 : i32
    %c0_i32_0 = arith.constant 0 : i32
    %c0_i32_1 = arith.constant 0 : i32
    return %c0_i32, %c0_i32_0 : i32, i32
  }
  func.func @transform_3(%arg0: i32) -> (i32, i32) {
    %c0_i32 = arith.constant 0 : i32
    %c0_i32_0 = arith.constant 0 : i32
    %c0_i32_1 = arith.constant 0 : i32
    return %c0_i32, %c0_i32_0 : i32, i32
  }
  func.func @transform_4(%arg0: i32) -> (i32, i32) {
    %c0_i32 = arith.constant 0 : i32
    %c0_i32_0 = arith.constant 0 : i32
    %c0_i32_1 = arith.constant 0 : i32
    return %c0_i32, %c0_i32_0 : i32, i32
  }
  func.func @transform_5(%arg0: i32) -> (i32, i32) {
    %c0_i32 = arith.constant 0 : i32
    %c0_i32_0 = arith.constant 0 : i32
    return %c0_i32, %arg0 : i32, i32
  }
}

module attributes {stable_mosaic.version = 11 : i64} {
  func.func @_layer_kernel(%arg0: i32, %arg1: memref<20x256xf32, #tpu.memory_space<vmem>>, %arg2: memref<20x256xf32, #tpu.memory_space<vmem>>, %arg3: memref<20x20xf32, #tpu.memory_space<vmem>>, %arg4: memref<20x1xf32, #tpu.memory_space<vmem>>, %arg5: memref<20x20xf32, #tpu.memory_space<vmem>>, %arg6: memref<20x1xf32, #tpu.memory_space<vmem>>, %arg7: memref<20x20xf32, #tpu.memory_space<vmem>>, %arg8: memref<20x1xf32, #tpu.memory_space<vmem>>, %arg9: memref<20x256xf32, #tpu.memory_space<vmem>>) attributes {dimension_semantics = [#tpu.dimension_semantics<parallel>], iteration_bounds = array<i64: 2>, scalar_prefetch = 0 : i64, scratch_operands = 0 : i64, tpu.core_type = #tpu.core_type<tc>, window_params = [{transform_indices = @transform_0, window_bounds = array<i64: 20, 256>}, {transform_indices = @transform_1, window_bounds = array<i64: 20, 256>}, {pipeline_mode = #tpu.pipeline_mode<synchronous>, transform_indices = @transform_2, window_bounds = array<i64: 20, 20>}, {pipeline_mode = #tpu.pipeline_mode<synchronous>, transform_indices = @transform_3, window_bounds = array<i64: 20, 1>}, {pipeline_mode = #tpu.pipeline_mode<synchronous>, transform_indices = @transform_4, window_bounds = array<i64: 20, 20>}, {pipeline_mode = #tpu.pipeline_mode<synchronous>, transform_indices = @transform_5, window_bounds = array<i64: 20, 1>}, {pipeline_mode = #tpu.pipeline_mode<synchronous>, transform_indices = @transform_6, window_bounds = array<i64: 20, 20>}, {pipeline_mode = #tpu.pipeline_mode<synchronous>, transform_indices = @transform_7, window_bounds = array<i64: 20, 1>}, {transform_indices = @transform_8, window_bounds = array<i64: 20, 256>}]} {
    %c0 = arith.constant 0 : index
    %c0_0 = arith.constant 0 : index
    %0 = vector.load %arg3[%c0, %c0_0] : memref<20x20xf32, #tpu.memory_space<vmem>>, vector<20x20xf32>
    %c0_1 = arith.constant 0 : index
    %c0_2 = arith.constant 0 : index
    %1 = vector.load %arg1[%c0_1, %c0_2] : memref<20x256xf32, #tpu.memory_space<vmem>>, vector<20x256xf32>
    %cst = arith.constant dense<0.000000e+00> : vector<20x256xf32>
    %2 = tpu.matmul %0, %1, %cst {dimension_numbers = #tpu.dot_dimension_numbers<[1], [0], [0], [1], [0, 0, 1, 1], [], []>} : vector<20x20xf32>, vector<20x256xf32>, vector<20x256xf32> -> vector<20x256xf32>
    %c0_3 = arith.constant 0 : index
    %c0_4 = arith.constant 0 : index
    %3 = vector.load %arg4[%c0_3, %c0_4] : memref<20x1xf32, #tpu.memory_space<vmem>>, vector<20x1xf32>
    %4 = vector.broadcast %3 : vector<20x1xf32> to vector<20x256xf32>
    %5 = arith.addf %2, %4 : vector<20x256xf32>
    %cst_5 = arith.constant 5.000000e-01 : f32
    %6 = vector.broadcast %cst_5 : f32 to vector<20x256xf32>
    %7 = arith.mulf %6, %5 : vector<20x256xf32>
    %cst_6 = arith.constant 0.707106769 : f32
    %8 = vector.broadcast %cst_6 : f32 to vector<20x256xf32>
    %9 = arith.mulf %5, %8 : vector<20x256xf32>
    %cst_7 = arith.constant 0.000000e+00 : f32
    %10 = vector.broadcast %cst_7 : f32 to vector<20x256xf32>
    %11 = arith.cmpf oge, %9, %10 : vector<20x256xf32>
    %cst_8 = arith.constant 1.000000e+00 : f32
    %cst_9 = arith.constant -1.000000e+00 : f32
    %12 = vector.broadcast %cst_8 : f32 to vector<20x256xf32>
    %13 = vector.broadcast %cst_9 : f32 to vector<20x256xf32>
    %14 = arith.select %11, %12, %13 : vector<20x256xi1>, vector<20x256xf32>
    %15 = math.absf %9 : vector<20x256xf32>
    %cst_10 = arith.constant 0.327591091 : f32
    %16 = vector.broadcast %cst_10 : f32 to vector<20x256xf32>
    %17 = arith.mulf %16, %15 : vector<20x256xf32>
    %cst_11 = arith.constant 1.000000e+00 : f32
    %18 = vector.broadcast %cst_11 : f32 to vector<20x256xf32>
    %19 = arith.addf %18, %17 : vector<20x256xf32>
    %20 = tpu.reciprocal %19 {approx = true} : vector<20x256xf32> -> vector<20x256xf32>
    %cst_12 = arith.constant 1.06140542 : f32
    %21 = vector.broadcast %cst_12 : f32 to vector<20x256xf32>
    %22 = arith.mulf %21, %20 : vector<20x256xf32>
    %cst_13 = arith.constant -1.45315206 : f32
    %23 = vector.broadcast %cst_13 : f32 to vector<20x256xf32>
    %24 = arith.addf %22, %23 : vector<20x256xf32>
    %25 = arith.mulf %24, %20 : vector<20x256xf32>
    %cst_14 = arith.constant 1.42141378 : f32
    %26 = vector.broadcast %cst_14 : f32 to vector<20x256xf32>
    %27 = arith.addf %25, %26 : vector<20x256xf32>
    %28 = arith.mulf %27, %20 : vector<20x256xf32>
    %cst_15 = arith.constant -0.284496725 : f32
    %29 = vector.broadcast %cst_15 : f32 to vector<20x256xf32>
    %30 = arith.addf %28, %29 : vector<20x256xf32>
    %31 = arith.mulf %30, %20 : vector<20x256xf32>
    %cst_16 = arith.constant 0.254829586 : f32
    %32 = vector.broadcast %cst_16 : f32 to vector<20x256xf32>
    %33 = arith.addf %31, %32 : vector<20x256xf32>
    %34 = arith.mulf %33, %20 : vector<20x256xf32>
    %cst_17 = arith.constant 0.000000e+00 : f32
    %35 = vector.broadcast %cst_17 : f32 to vector<20x256xf32>
    %36 = arith.subf %35, %15 : vector<20x256xf32>
    %37 = arith.mulf %36, %15 : vector<20x256xf32>
    %38 = math.exp %37 : vector<20x256xf32>
    %39 = arith.mulf %34, %38 : vector<20x256xf32>
    %cst_18 = arith.constant 1.000000e+00 : f32
    %40 = vector.broadcast %cst_18 : f32 to vector<20x256xf32>
    %41 = arith.subf %40, %39 : vector<20x256xf32>
    %42 = arith.mulf %14, %41 : vector<20x256xf32>
    %cst_19 = arith.constant 1.000000e+00 : f32
    %43 = vector.broadcast %cst_19 : f32 to vector<20x256xf32>
    %44 = arith.addf %43, %42 : vector<20x256xf32>
    %45 = arith.mulf %7, %44 : vector<20x256xf32>
    %c0_20 = arith.constant 0 : index
    %c0_21 = arith.constant 0 : index
    %46 = vector.load %arg5[%c0_20, %c0_21] : memref<20x20xf32, #tpu.memory_space<vmem>>, vector<20x20xf32>
    %cst_22 = arith.constant dense<0.000000e+00> : vector<20x256xf32>
    %47 = tpu.matmul %46, %45, %cst_22 {dimension_numbers = #tpu.dot_dimension_numbers<[1], [0], [0], [1], [0, 0, 1, 1], [], []>} : vector<20x20xf32>, vector<20x256xf32>, vector<20x256xf32> -> vector<20x256xf32>
    %c0_23 = arith.constant 0 : index
    %c0_24 = arith.constant 0 : index
    %48 = vector.load %arg6[%c0_23, %c0_24] : memref<20x1xf32, #tpu.memory_space<vmem>>, vector<20x1xf32>
    %49 = vector.broadcast %48 : vector<20x1xf32> to vector<20x256xf32>
    %50 = arith.addf %47, %49 : vector<20x256xf32>
    %c0_25 = arith.constant 0 : index
    %c0_26 = arith.constant 0 : index
    %51 = vector.load %arg7[%c0_25, %c0_26] : memref<20x20xf32, #tpu.memory_space<vmem>>, vector<20x20xf32>
    %c0_27 = arith.constant 0 : index
    %c0_28 = arith.constant 0 : index
    %52 = vector.load %arg2[%c0_27, %c0_28] : memref<20x256xf32, #tpu.memory_space<vmem>>, vector<20x256xf32>
    %cst_29 = arith.constant dense<0.000000e+00> : vector<20x256xf32>
    %53 = tpu.matmul %51, %52, %cst_29 {dimension_numbers = #tpu.dot_dimension_numbers<[1], [0], [0], [1], [0, 0, 1, 1], [], []>} : vector<20x20xf32>, vector<20x256xf32>, vector<20x256xf32> -> vector<20x256xf32>
    %c0_30 = arith.constant 0 : index
    %c0_31 = arith.constant 0 : index
    %54 = vector.load %arg8[%c0_30, %c0_31] : memref<20x1xf32, #tpu.memory_space<vmem>>, vector<20x1xf32>
    %55 = vector.broadcast %54 : vector<20x1xf32> to vector<20x256xf32>
    %56 = arith.addf %53, %55 : vector<20x256xf32>
    %57 = arith.addf %50, %56 : vector<20x256xf32>
    %c0_32 = arith.constant 0 : index
    %c0_33 = arith.constant 0 : index
    %58 = vector.load %arg9[%c0_32, %c0_33] : memref<20x256xf32, #tpu.memory_space<vmem>>, vector<20x256xf32>
    tpu.vector_store %arg9[%c0_32, %c0_33], %57 {strides = array<i32>} : memref<20x256xf32, #tpu.memory_space<vmem>>, vector<20x256xf32>,
    return
  }
  func.func @transform_0(%arg0: i32) -> (i32, i32) {
    %c0_i32 = arith.constant 0 : i32
    %c0_i32_0 = arith.constant 0 : i32
    return %c0_i32, %arg0 : i32, i32
  }
  func.func @transform_1(%arg0: i32) -> (i32, i32) {
    %c0_i32 = arith.constant 0 : i32
    %c0_i32_0 = arith.constant 0 : i32
    return %c0_i32, %arg0 : i32, i32
  }
  func.func @transform_2(%arg0: i32) -> (i32, i32) {
    %c0_i32 = arith.constant 0 : i32
    %c0_i32_0 = arith.constant 0 : i32
    %c0_i32_1 = arith.constant 0 : i32
    return %c0_i32, %c0_i32_0 : i32, i32
  }
  func.func @transform_3(%arg0: i32) -> (i32, i32) {
    %c0_i32 = arith.constant 0 : i32
    %c0_i32_0 = arith.constant 0 : i32
    %c0_i32_1 = arith.constant 0 : i32
    return %c0_i32, %c0_i32_0 : i32, i32
  }
  func.func @transform_4(%arg0: i32) -> (i32, i32) {
    %c0_i32 = arith.constant 0 : i32
    %c0_i32_0 = arith.constant 0 : i32
    %c0_i32_1 = arith.constant 0 : i32
    return %c0_i32, %c0_i32_0 : i32, i32
  }
  func.func @transform_5(%arg0: i32) -> (i32, i32) {
    %c0_i32 = arith.constant 0 : i32
    %c0_i32_0 = arith.constant 0 : i32
    %c0_i32_1 = arith.constant 0 : i32
    return %c0_i32, %c0_i32_0 : i32, i32
  }
  func.func @transform_6(%arg0: i32) -> (i32, i32) {
    %c0_i32 = arith.constant 0 : i32
    %c0_i32_0 = arith.constant 0 : i32
    %c0_i32_1 = arith.constant 0 : i32
    return %c0_i32, %c0_i32_0 : i32, i32
  }
  func.func @transform_7(%arg0: i32) -> (i32, i32) {
    %c0_i32 = arith.constant 0 : i32
    %c0_i32_0 = arith.constant 0 : i32
    %c0_i32_1 = arith.constant 0 : i32
    return %c0_i32, %c0_i32_0 : i32, i32
  }
  func.func @transform_8(%arg0: i32) -> (i32, i32) {
    %c0_i32 = arith.constant 0 : i32
    %c0_i32_0 = arith.constant 0 : i32
    return %c0_i32, %arg0 : i32, i32
  }
}

</mosaic_0001>

<bundles_post_ra>
// kernel: fno2d_forward.19
= control target key start
LH: loop header
LB: loop body
LE: loop exit
PB: predicated region body
PF: predicated region fallthrough
CT: control target
= control target key end

     0   :  { %s522_s12 = smov 0   ;;  %s524_s13 = smov 0   ;;  %s616_s0 = inlined_call_operand.vmem [shape: f32[10,512], index: 0, kind: input, shape index: {}]   ;;  %s617_s1 = inlined_call_operand.vmem [shape: f32[20,10], index: 1, kind: input, shape index: {}]   ;;  %s618_s2 = inlined_call_operand.vmem [shape: f32[20,1], index: 2, kind: input, shape index: {}]   ;;  %s619_s3 = inlined_call_operand.vmem [shape: f32[20,512], index: 3, kind: output, shape index: {}]  }
   0x1   :  { %s526_s14 = smov 0  }
   0x2 LB: > { %s417_s15 = sadd.s32 4294967295, %s497_s14   ;;  %s539_s16 = sadd.s32 1, %s497_s14   ;;  %s497_s14 = sphi %s526_s14, %s625_s14   ;;  %s493_s13 = sphi %s524_s13, %s624_s13   ;;  %s489_s12 = sphi %s522_s12, %s623_s12  }
   0x3   : > { %s17_s17 = ssub.s32 %s497_s14, %s539_s16  ;;  %s20_s18 = sadd.s32 1, %s493_s13 }
   0x4   : > { %p18_p0 = scmp.eq.s32.totalorder %s17_s17, 0  ;;  %p27_p1 = scmp.ne.s32.totalorder %s493_s13, %s489_s12 }
   0x5   : > { %p28_p2 = scmp.eq.s32.totalorder %s497_s14, 0  ;;  %p99_p3 = scmp.eq.s32.totalorder %s417_s15, 1 }
   0x6   : > { %s550_s19 = scalar_select %p18_p0, %s493_s13, %s20_s18  }
   0x7   : > { %p29_p4 = por %p28_p2, %p27_p1  ;;  %p552_p5 = por %p99_p3, %p27_p1 }
   0x8   : > { %p420_p6 = scmp.ge.s32.totalorder %s497_s14, 2 }
   0xa   : > { %127 = sbr.rel (%p420_p6) target bundleno = 24 (0x18), region = 24 }
  0x11   : > { %130 = sbr.rel (!%p29_p4) target bundleno = 24 (0x18), region = 28  ;;  %s132_s21 = sand.u32 (%p29_p4), 1, %s493_s13  }
  0x12   : > { %s435_s22 = sshll.u32 (%p29_p4), %s497_s14, 4  ;;  %s421_s23 = sshll.u32 (%p29_p4), %s132_s21, 5 }
  0x13   : > { %s137_s26 = scalar_lea.vmem (%p29_p4), %s616_s0, %s435_s22  ;;  %s134_s27 = scalar_lea.vmem (%p29_p4), [#allocation2], %s421_s23 }
  0x14   : > { %v150_v0 = vld [vmem:[%s137_s26] sm:$0xff] (%p29_p4)  ;;  %v152_v1 = vld [vmem:[%s137_s26 + $0x8] sm:$0xff] (%p29_p4) }
  0x15   : > { %v154_v2 = vld [vmem:[%s137_s26 + $0x20] sm:$0xff] (%p29_p4)  ;;  %151 = vst [vmem:[%s134_s27] sm:$0xff] (%p29_p4), %v150_v0  ;;  %153 = vst [vmem:[%s134_s27 + $0x8] sm:$0xff] (%p29_p4), %v152_v1  ;;  %v156_v3 = vld [vmem:[%s137_s26 + $0x28] sm:$0xff] (%p29_p4) }
  0x16   : > { %155 = vst [vmem:[%s134_s27 + $0x10] sm:$0xff] (%p29_p4), %v154_v2  ;;  %157 = vst [vmem:[%s134_s27 + $0x18] sm:$0xff] (%p29_p4), %v156_v3 }
  0x18 PF: > { %p424_p7 = scmp.ge.s32.totalorder %s497_s14, 1  ;;  %p162_p8 = scmp.lt.s32.totalorder %s497_s14, 3 }
  0x1a   : > { %p163_p9 = pnand %p424_p7, %p162_p8 }
  0x1b   : > { %s169_s28 = sand.u32 (!%p163_p9), 1, %s489_s12   ;;  %vm228_vm0 = vcmask (!%p163_p9), 1041408   ;;  %v499_v4 = vmov (!%p163_p9), 0.0   ;;  %vm500_vm1 = vmmov (!%p163_p9), 1   ;;  %v501_v6 = vmov (!%p163_p9), 0   ;;  %v200_v7 = vld [vmem:[%s618_s2] sm:$0xff] (!%p163_p9) }
  0x1c   : > { %166 = sbr.rel (%p163_p9) target bundleno = 265 (0x109), region = 51  ;;  %s425_s29 = sshll.u32 (!%p163_p9), %s169_s28, 5  ;;  %299 = vmatprep.mubr.f32.mxu0 (!%p163_p9), %v499_v4  ;;  %305 = vmatprep.mubr.f32.mxu1 (!%p163_p9), %v499_v4  ;;  %vm567_vm2 = vmpackc.low (!%p163_p9), %vm228_vm0, %vm500_vm1  ;;  %v202_v8 = vld [vmem:[%s618_s2 + $0x10] sm:$0xf] (!%p163_p9)  ;;  %v201_v15 = vld [vmem:[%s618_s2 + $0x8] sm:$0xff] (!%p163_p9)  ;;  %vm218_vm3 = vcmask (!%p163_p9), 80896  }
  0x1d   : > { %473 = vset.pattern.permute.xlu0 (!%p163_p9), %v501_v6  ;;  %474 = vset.pattern.permute.xlu1 (!%p163_p9), %v501_v6  ;;  %s171_s7 = scalar_lea.vmem (!%p163_p9), [#allocation2], %s425_s29  ;;  %v193_v16 = vld [vmem:[%s617_s1] sm:$0xff] (!%p163_p9)  ;;  %v194_v17 = vld [vmem:[%s617_s1 + $0x8] sm:$0xff] (!%p163_p9)  ;;  %v195_v18 = vld [vmem:[%s617_s1 + $0x10] sm:$0xf] (!%p163_p9)  ;;  %s445_s23 = smul.u32 (!%p163_p9), 48, %s169_s28 }
  0x1e   : > { %v197_v9 = vld [vmem:[%s171_s7 + $0x8] sm:$0xff] (!%p163_p9)  ;;  %v199_v10 = vld [vmem:[%s171_s7 + $0x18] sm:$0x3] (!%p163_p9)  ;;  %v196_v11 = vld [vmem:[%s171_s7] sm:$0xff] (!%p163_p9)  ;;  %205 = vperm.xlu0 (!%p163_p9), %473, %v200_v7   ;;  %215 = vperm.xlu1 (!%p163_p9), %474, %v202_v8  }
  0x1f   : > { %v437_v12 = vpack.c.bf16 (!%p163_p9), %v199_v10, %v197_v9  ;;  %v198_v13 = vld [vmem:[%s171_s7 + $0x10] sm:$0x3] (!%p163_p9)  ;;  %s190_s24 = scalar_lea.vmem (!%p163_p9), [#allocation3], %s445_s23 }
  0x20   : > { %v440_v14 = vpack.c.bf16 (!%p163_p9), %v198_v13, %v196_v11 }
  0x21   : > { %439 = vmatprep.subr.msk.bf16.mxu0 (!%p163_p9), %vm567_vm2, %v437_v12  ;;  %443 = vmatprep.subr.msk.bf16.mxu1 (!%p163_p9), %vm567_vm2, %v437_v12 }
  0x22   : > { %442 = vmatpush1.bf16.msk.msra.mxu0 (!%p163_p9), %vm567_vm2, %v440_v14  ;;  %444 = vmatpush1.bf16.msk.msra.mxu1 (!%p163_p9), %vm567_vm2, %v440_v14 }
  0x23   : > { %210 = vperm.xlu0 %473, %v201_v15   ;;  %s436_s12 = sshll.u32 (%p552_p5), %s417_s15, 4 }
  0x24   : > { %s333_s27 = scalar_lea.vmem (%p552_p5), %s619_s3, %s436_s12 }
  0x25   : > { %428 = vmatmul.mubr.msk.f32.vlgmr.msra.gmra.mrb[0].mxu0 %vm218_vm3, %v193_v16  ;;  %429 = vmatmul.mubr.msk.f32.vlgmr.msra.gmra.mrb[0].mxu1 %vm218_vm3, %v194_v17 }
  0x26   : > { %311 = vmatprep.mubr.f32.mxu1 %v499_v4 }
  0x29   : > { %430 = vmatmul.mubr.msk.f32.gmra.mrb[2].mxu1 %vm218_vm3, %v195_v18 }
  0x9d   : > { %v206_v19 = vpop.permute.xlu0 %205  ;;  %v216_v29 = vpop.permute.xlu1 %215 }
  0xa2   : > { %v211_v20 = vpop.permute.xlu0 %210 }
  0xf8   : > { %v301_v21 = vpop.f32.mrb[0].mxu0  ;;  %v307_v22 = vpop.f32.mrb[0].mxu1 }
  0xf9   : > { %v302_v23 = vadd.f32 %v301_v21, %v206_v19  ;;  %v308_v24 = vadd.f32 %v307_v22, %v211_v20  ;;  %v303_v25 = vpop.f32.mrb[1].mxu0  ;;  %v309_v26 = vpop.f32.mrb[1].mxu1 }
  0xfa   : > { %v304_v27 = vadd.f32 %v303_v25, %v206_v19  ;;  %v310_v28 = vadd.f32 %v309_v26, %v211_v20  ;;  %330 = sbr.rel (!%p552_p5) target bundleno = 265 (0x109), region = 59 }
  0xfb   : > { %318 = vst [vmem:[%s190_s24] sm:$0xff] %v302_v23  ;;  %320 = vst [vmem:[%s190_s24 + $0x10] sm:$0xff] %v308_v24 }
  0xfc   : > { %319 = vst [vmem:[%s190_s24 + $0x8] sm:$0xff] %v304_v27  ;;  %321 = vst [vmem:[%s190_s24 + $0x18] sm:$0xff] %v310_v28  ;;  %v313_v30 = vpop.f32.mrb[2].mxu1 }
  0xfd   : > { %v314_v31 = vadd.f32 %v313_v30, %v216_v29  ;;  %v315_v32 = vpop.f32.mrb[3].mxu1 }
  0xfe   : > { %v316_v33 = vadd.f32 %v315_v32, %v216_v29 }
  0xff   : > { %322 = vst [vmem:[%s190_s24 + $0x20] sm:$0xf] %v314_v31 }
 0x100   : > { %323 = vst [vmem:[%s190_s24 + $0x28] sm:$0xf] %v316_v33 }
 0x102   : > { %v346_v34 = vld [vmem:[%s190_s24] sm:$0xff]  ;;  %v350_v36 = vld [vmem:[%s190_s24 + $0x10] sm:$0xff] }
 0x103   : > { %v348_v35 = vld [vmem:[%s190_s24 + $0x8] sm:$0xff]  ;;  %v352_v37 = vld [vmem:[%s190_s24 + $0x18] sm:$0xff]  ;;  %347 = vst [vmem:[%s333_s27] sm:$0xff] %v346_v34  ;;  %351 = vst [vmem:[%s333_s27 + $0x20] sm:$0xff] %v350_v36 }
 0x104   : > { %349 = vst [vmem:[%s333_s27 + $0x8] sm:$0xff] %v348_v35  ;;  %353 = vst [vmem:[%s333_s27 + $0x28] sm:$0xff] %v352_v37 }
 0x106   : > { %v354_v38 = vld [vmem:[%s190_s24 + $0x20] sm:$0xff] }
 0x107   : > { %v356_v39 = vld [vmem:[%s190_s24 + $0x28] sm:$0xff]  ;;  %355 = vst [vmem:[%s333_s27 + $0x40] sm:$0xff] %v354_v38 }
 0x108   : > { %357 = vst [vmem:[%s333_s27 + $0x48] sm:$0xff] %v356_v39 }
 0x109 PF: > { %p10_p10 = scmp.ge.s32.totalorder %s539_s16, 4   ;;  %s623_s12 = smov %s493_s13 }
 0x10a   : > { %s624_s13 = smov %s550_s19  ;;  %s625_s14 = smov %s539_s16 }
 0x10b   :  { %12 = sbr.rel (!%p10_p10) target bundleno = 2 (0x2), region = 113 }

// kernel: fno2d_forward.20
= control target key start
LH: loop header
LB: loop body
LE: loop exit
PB: predicated region body
PF: predicated region fallthrough
CT: control target
= control target key end

     0   :  { %s838_s6 = smov 0   ;;  %s1064_s0 = inlined_call_operand.vmem [shape: f32[20,2,256], index: 0, kind: input, shape index: {}]   ;;  %s1065_s1 = inlined_call_operand.vmem [shape: f32[20,2,256], index: 1, kind: output, shape index: {}]  }
   0x1 LB: > { %s775_s7 = sadd.s32 4294967295, %s824_s6   ;;  %p779_p0 = scmp.ge.s32.totalorder %s824_s6, 1  ;;  %s824_s6 = sphi %s838_s6, %s11_s6  }
   0x2   : > { %p89_p1 = scmp.lt.s32.totalorder %s824_s6, 3 }
   0x4   : > { %p90_p2 = pnand %p779_p0, %p89_p1 }
   0x5   : > { %s111_s8 = smul.u32 (!%p90_p2), 10, %s775_s7  ;;  %v148_v0 = vlaneseq (!%p90_p2)  ;;  %v826_v1 = vmov (!%p90_p2), 1983009808   ;;  %vm245_vm0 = vcmask (!%p90_p2), 1041408  }
   0x6   : > { %93 = sbr.rel (%p90_p2) target bundleno = 364 (0x16c), region = 24  ;;  %v146_v2 = vunpack.c.l.s4 (!%p90_p2), %v826_v1 }
   0x7   : > { %p112_p3 = scmp.lt.s32.totalorder (!%p90_p2), %s111_s8, 19  ;;  %v846_v3 = vshrl.u32 (!%p90_p2), %v148_v0, 7 }
   0x8   : > { %v147_v4 = vunpack.c.0.s8 (!%p90_p2), %v146_v2  ;;  %v827_v2 = vmov (!%p90_p2), 269488144  }
   0xa   : > { %v851_v5 = vsub.s32 (!%p90_p2), %v147_v4, %v846_v3  ;;  %v318_v4 = vunpack.c.l.s4 (!%p90_p2), %v827_v2 }
   0xd   : > { %s1067_s8 = smov (!%p112_p3, %s111_s8), 19 }
   0xe   : > { %s786_s9 = sshll.u32 %s1067_s8, 2 }
   0xf   : > { %s859_s12 = scalar_lea.vmem %s1064_s0, %s786_s9  ;;  %s1030_s15 = scalar_lea.vmem %s1065_s1, %s786_s9 }
  0x10   : > { %v862_v6 = vld [vmem:[%s859_s12] sm:$0xf]  ;;  %v865_v7 = vld [vmem:[%s859_s12 + $0x8] sm:$0xf]  ;;  %v868_v8 = vld [vmem:[%s859_s12 + $0x4] sm:$0xf] }
  0x11   : > { %v151_v9 = vrot.slane %v862_v6, %v851_v5  ;;  %v167_v10 = vrot.slane %v865_v7, %v851_v5  ;;  %v159_v11 = vrot.slane %v868_v8, %v851_v5  ;;  %v877_v12 = vld [vmem:[%s859_s12 + $0xc] sm:$0xf]  ;;  %v880_v13 = vld [vmem:[%s859_s12 + $0x10] sm:$0xf]  ;;  %v883_v14 = vld [vmem:[%s859_s12 + $0x14] sm:$0xf] }
  0x12   : > { %v175_v15 = vrot.slane %v877_v12, %v851_v5  ;;  %v183_v16 = vrot.slane %v880_v13, %v851_v5  ;;  %v191_v17 = vrot.slane %v883_v14, %v851_v5  ;;  %v895_v25 = vld [vmem:[%s859_s12 + $0x18] sm:$0xf]  ;;  %v901_v30 = vld [vmem:[%s859_s12 + $0x1c] sm:$0xf]  ;;  %v906_v35 = vld [vmem:[%s859_s12 + $0x20] sm:$0xf] }
  0x13   : > { %v152_v18 = vcombine.high %v151_v9, %v151_v9  ;;  %v246_v19 = vsel %vm245_vm0, %v151_v9, 0.0  ;;  %v168_v20 = vcombine.high %v167_v10, %v167_v10  ;;  %v256_v21 = vsel %vm245_vm0, %v167_v10, 0.0  ;;  %v909_v36 = vld [vmem:[%s859_s12 + $0x24] sm:$0xf] }
  0x14   : > { %v160_v22 = vcombine.high %v159_v11, %v159_v11  ;;  %v251_v23 = vsel %vm245_vm0, %v159_v11, 0.0  ;;  %v176_v24 = vcombine.high %v175_v15, %v175_v15  ;;  %v261_v28 = vsel %vm245_vm0, %v175_v15, 0.0 }
  0x15   : > { %v247_v26 = vsel %vm245_vm0, %v152_v18, 0.0  ;;  %v257_v27 = vsel %vm245_vm0, %v168_v20, 0.0  ;;  %v184_v29 = vcombine.high %v183_v16, %v183_v16  ;;  %v266_v38 = vsel %vm245_vm0, %v183_v16, 0.0 }
  0x16   : > { %v248_v31 = vadd.f32 %v247_v26, %v246_v19  ;;  %v258_v32 = vadd.f32 %v257_v27, %v256_v21  ;;  %v252_v33 = vsel %vm245_vm0, %v160_v22, 0.0  ;;  %v262_v34 = vsel %vm245_vm0, %v176_v24, 0.0 }
  0x17   : > { %v253_v37 = vadd.f32 %v252_v33, %v251_v23  ;;  %v192_v39 = vcombine.high %v191_v17, %v191_v17  ;;  %v263_v40 = vadd.f32 %v262_v34, %v261_v28  ;;  %v267_v41 = vsel %vm245_vm0, %v184_v29, 0.0 }
  0x18   : > { %249 = vadd.xlane.f32.xlu0 %v248_v31  ;;  %259 = vadd.xlane.f32.xlu1 %v258_v32  ;;  %v199_v42 = vrot.slane %v895_v25, %v851_v5  ;;  %v207_v43 = vrot.slane %v901_v30, %v851_v5  ;;  %v271_v44 = vsel %vm245_vm0, %v191_v17, 0.0  ;;  %v215_v46 = vrot.slane %v906_v35, %v851_v5 }
  0x19   : > { %v272_v45 = vsel %vm245_vm0, %v192_v39, 0.0  ;;  %v223_v47 = vrot.slane %v909_v36, %v851_v5  ;;  %v268_v50 = vadd.f32 %v267_v41, %v266_v38  ;;  %v319_v9 = vunpack.c.0.s8 %v318_v4 }
  0x1a   : > { %v200_v48 = vcombine.high %v199_v42, %v199_v42  ;;  %v208_v49 = vcombine.high %v207_v43, %v207_v43  ;;  %v273_v51 = vadd.f32 %v272_v45, %v271_v44  ;;  %v276_v52 = vsel %vm245_vm0, %v199_v42, 0.0 }
  0x1b   : > { %v281_v53 = vsel %vm245_vm0, %v207_v43, 0.0  ;;  %v216_v56 = vcombine.high %v215_v46, %v215_v46  ;;  %v224_v57 = vcombine.high %v223_v47, %v223_v47  ;;  %v286_v60 = vsel %vm245_vm0, %v215_v46, 0.0 }
  0x1c   : > { %254 = vadd.xlane.f32.xlu0 %v253_v37  ;;  %264 = vadd.xlane.f32.xlu1 %v263_v40  ;;  %v277_v54 = vsel %vm245_vm0, %v200_v48, 0.0  ;;  %v282_v55 = vsel %vm245_vm0, %v208_v49, 0.0  ;;  %v291_v62 = vsel %vm245_vm0, %v223_v47, 0.0  ;;  %v932_v10 = vsub.s32 %v319_v9, %v846_v3 }
  0x1d   : > { %v278_v58 = vadd.f32 %v277_v54, %v276_v52  ;;  %v283_v59 = vadd.f32 %v282_v55, %v281_v53  ;;  %v287_v61 = vsel %vm245_vm0, %v216_v56, 0.0  ;;  %v292_v63 = vsel %vm245_vm0, %v224_v57, 0.0 }
  0x1e   : > { %v288_v0 = vadd.f32 %v287_v61, %v286_v60  ;;  %v293_v1 = vadd.f32 %v292_v63, %v291_v62 }
  0x20   : > { %269 = vadd.xlane.f32.xlu0 %v268_v50  ;;  %274 = vadd.xlane.f32.xlu1 %v273_v51 }
  0x24   : > { %279 = vadd.xlane.f32.xlu0 %v278_v58  ;;  %284 = vadd.xlane.f32.xlu1 %v283_v59 }
  0x28   : > { %289 = vadd.xlane.f32.xlu0 %v288_v0  ;;  %294 = vadd.xlane.f32.xlu1 %v293_v1 }
  0xa5   : > { %v250_v11 = vpop.xlane.xlu0 %249  ;;  %v260_v15 = vpop.xlane.xlu1 %259 }
  0xa6   : > { %v297_v16 = vmul.f32 0.00390625, %v250_v11  ;;  %v299_v17 = vmul.f32 0.00390625, %v260_v15 }
  0xa8   : > { %v323_v18 = vrot.slane %v297_v16, %v932_v10  ;;  %v337_v19 = vrot.slane %v299_v17, %v932_v10 }
  0xa9   : > { %v255_v20 = vpop.xlane.xlu0 %254  ;;  %v265_v21 = vpop.xlane.xlu1 %264 }
  0xaa   : > { %v937_v22 = vsub.f32 %v862_v6, %v323_v18  ;;  %v940_v23 = vsub.f32 %v865_v7, %v337_v19  ;;  %v298_v24 = vmul.f32 0.00390625, %v255_v20  ;;  %v300_v26 = vmul.f32 0.00390625, %v265_v21 }
  0xac   : > { %v330_v3 = vrot.slane %v298_v24, %v932_v10  ;;  %v344_v27 = vrot.slane %v300_v26, %v932_v10  ;;  %v407_v28 = vmul.f32 %v937_v22, %v937_v22  ;;  %v409_v29 = vmul.f32 %v940_v23, %v940_v23 }
  0xad   : > { %v270_v31 = vpop.xlane.xlu0 %269  ;;  %v275_v32 = vpop.xlane.xlu1 %274 }
  0xae   : > { %v949_v6 = vsub.f32 %v868_v8, %v330_v3  ;;  %v952_v7 = vsub.f32 %v877_v12, %v344_v27  ;;  %v301_v33 = vmul.f32 0.00390625, %v270_v31  ;;  %v302_v34 = vmul.f32 0.00390625, %v275_v32 }
  0xaf   : > { %v433_v37 = vrot.slane %v407_v28, %v851_v5  ;;  %v449_v38 = vrot.slane %v409_v29, %v851_v5 }
  0xb0   : > { %v351_v39 = vrot.slane %v301_v33, %v932_v10  ;;  %v358_v40 = vrot.slane %v302_v34, %v932_v10  ;;  %v408_v41 = vmul.f32 %v949_v6, %v949_v6  ;;  %v410_v8 = vmul.f32 %v952_v7, %v952_v7 }
  0xb1   : > { %v280_v42 = vpop.xlane.xlu0 %279  ;;  %v285_v43 = vpop.xlane.xlu1 %284  ;;  %v434_v12 = vcombine.high %v433_v37, %v433_v37  ;;  %v527_v44 = vsel %vm245_vm0, %v433_v37, 0.0  ;;  %v450_v45 = vcombine.high %v449_v38, %v449_v38  ;;  %v537_v46 = vsel %vm245_vm0, %v449_v38, 0.0 }
  0xb2   : > { %v965_v47 = vsub.f32 %v880_v13, %v351_v39  ;;  %v968_v48 = vsub.f32 %v883_v14, %v358_v40  ;;  %v303_v49 = vmul.f32 0.00390625, %v280_v42  ;;  %v304_v50 = vmul.f32 0.00390625, %v285_v43 }
  0xb3   : > { %v528_v51 = vsel %vm245_vm0, %v434_v12, 0.0  ;;  %v538_v52 = vsel %vm245_vm0, %v450_v45, 0.0  ;;  %v441_v53 = vrot.slane %v408_v41, %v851_v5  ;;  %v457_v54 = vrot.slane %v410_v8, %v851_v5 }
  0xb4   : > { %v365_v55 = vrot.slane %v303_v49, %v932_v10  ;;  %v372_v56 = vrot.slane %v304_v50, %v932_v10  ;;  %v529_v57 = vadd.f32 %v528_v51, %v527_v44  ;;  %v539_v59 = vadd.f32 %v538_v52, %v537_v46 }
  0xb5   : > { %v290_v13 = vpop.xlane.xlu0 %289  ;;  %v295_v58 = vpop.xlane.xlu1 %294  ;;  %v442_v14 = vcombine.high %v441_v53, %v441_v53  ;;  %v532_v60 = vsel %vm245_vm0, %v441_v53, 0.0  ;;  %v458_v61 = vcombine.high %v457_v54, %v457_v54  ;;  %v542_v4 = vsel %vm245_vm0, %v457_v54, 0.0 }
  0xb6   : > { %v978_v62 = vsub.f32 %v895_v25, %v365_v55  ;;  %v981_v63 = vsub.f32 %v901_v30, %v372_v56  ;;  %530 = vadd.xlane.f32.xlu0 %v529_v57  ;;  %v305_v0 = vmul.f32 0.00390625, %v290_v13  ;;  %v306_v1 = vmul.f32 0.00390625, %v295_v58 }
  0xb7   : > { %v533_v2 = vsel %vm245_vm0, %v442_v14, 0.0  ;;  %v411_v9 = vmul.f32 %v965_v47, %v965_v47  ;;  %v412_v11 = vmul.f32 %v968_v48, %v968_v48  ;;  %v543_v30 = vsel %vm245_vm0, %v458_v61, 0.0 }
  0xb8   : > { %v379_v15 = vrot.slane %v305_v0, %v932_v10  ;;  %v386_v25 = vrot.slane %v306_v1, %v932_v10  ;;  %v534_v16 = vadd.f32 %v533_v2, %v532_v60  ;;  %v413_v19 = vmul.f32 %v978_v62, %v978_v62 }
  0xb9   : > { %v465_v17 = vrot.slane %v411_v9, %v851_v5  ;;  %v473_v18 = vrot.slane %v412_v11, %v851_v5  ;;  %v414_v20 = vmul.f32 %v981_v63, %v981_v63  ;;  %v544_v26 = vadd.f32 %v543_v30, %v542_v4 }
  0xba   : > { %v999_v21 = vsub.f32 %v906_v35, %v379_v15  ;;  %v1002_v24 = vsub.f32 %v909_v36, %v386_v25  ;;  %540 = vadd.xlane.f32.xlu0 %v539_v59  ;;  %535 = vadd.xlane.f32.xlu1 %v534_v16  ;;  %v481_v29 = vrot.slane %v413_v19, %v851_v5 }
  0xbb   : > { %v466_v3 = vcombine.high %v465_v17, %v465_v17  ;;  %v547_v27 = vsel %vm245_vm0, %v465_v17, 0.0  ;;  %v474_v28 = vcombine.high %v473_v18, %v473_v18  ;;  %v489_v31 = vrot.slane %v414_v20, %v851_v5 }
  0xbc   : > { %v415_v32 = vmul.f32 %v999_v21, %v999_v21  ;;  %v416_v35 = vmul.f32 %v1002_v24, %v1002_v24  ;;  %v552_v33 = vsel %vm245_vm0, %v473_v18, 0.0  ;;  %v482_v38 = vcombine.high %v481_v29, %v481_v29 }
  0xbd   : > { %v548_v36 = vsel %vm245_vm0, %v466_v3, 0.0  ;;  %v553_v34 = vsel %vm245_vm0, %v474_v28, 0.0  ;;  %v557_v39 = vsel %vm245_vm0, %v481_v29, 0.0  ;;  %v490_v40 = vcombine.high %v489_v31, %v489_v31 }
  0xbe   : > { %545 = vadd.xlane.f32.xlu1 %v544_v26  ;;  %v549_v37 = vadd.f32 %v548_v36, %v547_v27  ;;  %v497_v41 = vrot.slane %v415_v32, %v851_v5  ;;  %v505_v8 = vrot.slane %v416_v35, %v851_v5  ;;  %v554_v42 = vadd.f32 %v553_v34, %v552_v33 }
  0xbf   : > { %v558_v43 = vsel %vm245_vm0, %v482_v38, 0.0  ;;  %v562_v12 = vsel %vm245_vm0, %v489_v31, 0.0  ;;  %v563_v45 = vsel %vm245_vm0, %v490_v40, 0.0 }
  0xc0   : > { %550 = vadd.xlane.f32.xlu0 %v549_v37  ;;  %v559_v44 = vadd.f32 %v558_v43, %v557_v39  ;;  %v498_v46 = vcombine.high %v497_v41, %v497_v41  ;;  %v567_v49 = vsel %vm245_vm0, %v497_v41, 0.0  ;;  %v506_v50 = vcombine.high %v505_v8, %v505_v8 }
  0xc1   : > { %v564_v52 = vadd.f32 %v563_v45, %v562_v12  ;;  %v572_v5 = vsel %vm245_vm0, %v505_v8, 0.0 }
  0xc2   : > { %555 = vadd.xlane.f32.xlu1 %v554_v42  ;;  %v568_v51 = vsel %vm245_vm0, %v498_v46, 0.0  ;;  %v573_v54 = vsel %vm245_vm0, %v506_v50, 0.0 }
  0xc3   : > { %v569_v53 = vadd.f32 %v568_v51, %v567_v49  ;;  %v574_v55 = vadd.f32 %v573_v54, %v572_v5 }
  0xc4   : > { %560 = vadd.xlane.f32.xlu0 %v559_v44 }
  0xc6   : > { %565 = vadd.xlane.f32.xlu1 %v564_v52 }
  0xc8   : > { %570 = vadd.xlane.f32.xlu0 %v569_v53 }
  0xca   : > { %575 = vadd.xlane.f32.xlu1 %v574_v55 }
 0x143   : > { %v531_v56 = vpop.xlane.xlu0 %530 }
 0x144   : > { %v577_v57 = vmul.f32 0.00390625, %v531_v56 }
 0x146   : > { %v587_v13 = vadd.f32 1e-05, %v577_v57 }
 0x147   : > { %v536_v58 = vpop.xlane.xlu1 %535  ;;  %v541_v59 = vpop.xlane.xlu0 %540 }
 0x148   : > { %798 = vrsqrt.f32 %v587_v13  ;;  %v578_v14 = vmul.f32 0.00390625, %v536_v58  ;;  %v579_v60 = vmul.f32 0.00390625, %v541_v59 }
 0x14a   : > { %v588_v61 = vadd.f32 1e-05, %v578_v14  ;;  %v589_v0 = vadd.f32 1e-05, %v579_v60 }
 0x14b   : > { %v546_v1 = vpop.xlane.xlu1 %545 }
 0x14c   : > { %800 = vrsqrt.f32 %v588_v61  ;;  %v580_v2 = vmul.f32 0.00390625, %v546_v1 }
 0x14d   : > { %802 = vrsqrt.f32 %v589_v0  ;;  %v551_v4 = vpop.xlane.xlu0 %550 }
 0x14e   : > { %v590_v9 = vadd.f32 1e-05, %v580_v2  ;;  %v581_v11 = vmul.f32 0.00390625, %v551_v4 }
 0x14f   : > { %v556_v15 = vpop.xlane.xlu1 %555 }
 0x150   : > { %804 = vrsqrt.f32 %v590_v9  ;;  %v591_v25 = vadd.f32 1e-05, %v581_v11  ;;  %v582_v16 = vmul.f32 0.00390625, %v556_v15 }
 0x151   : > { %v561_v30 = vpop.xlane.xlu0 %560 }
 0x152   : > { %v799_v17 = vpop.eup %798  ;;  %806 = vrsqrt.f32 %v591_v25  ;;  %v592_v18 = vadd.f32 1e-05, %v582_v16  ;;  %v583_v19 = vmul.f32 0.00390625, %v561_v30 }
 0x153   : > { %v623_v20 = vrot.slane %v799_v17, %v932_v10  ;;  %v566_v26 = vpop.xlane.xlu1 %565 }
 0x154   : > { %808 = vrsqrt.f32 %v592_v18  ;;  %v593_v3 = vadd.f32 1e-05, %v583_v19  ;;  %v584_v27 = vmul.f32 0.00390625, %v566_v26 }
 0x155   : > { %v697_v28 = vmul.f32 %v623_v20, %v937_v22  ;;  %v571_v29 = vpop.xlane.xlu0 %570 }
 0x156   : > { %v801_v31 = vpop.eup %800  ;;  %810 = vrsqrt.f32 %v593_v3  ;;  %v594_v32 = vadd.f32 1e-05, %v584_v27  ;;  %v585_v35 = vmul.f32 0.00390625, %v571_v29 }
 0x157   : > { %v803_v36 = vpop.eup %802  ;;  %707 = vst [vmem:[%s1030_s15] sm:$0xf] %v697_v28  ;;  %v630_v33 = vrot.slane %v801_v31, %v932_v10  ;;  %v576_v34 = vpop.xlane.xlu1 %575 }
 0x158   : > { %v637_v37 = vrot.slane %v803_v36, %v932_v10  ;;  %812 = vrsqrt.f32 %v594_v32  ;;  %v595_v38 = vadd.f32 1e-05, %v585_v35  ;;  %v586_v39 = vmul.f32 0.00390625, %v576_v34 }
 0x159   : > { %v698_v22 = vmul.f32 %v630_v33, %v949_v6 }
 0x15a   : > { %v805_v40 = vpop.eup %804  ;;  %v699_v41 = vmul.f32 %v637_v37, %v940_v23  ;;  %814 = vrsqrt.f32 %v595_v38  ;;  %v596_v8 = vadd.f32 1e-05, %v586_v39 }
 0x15b   : > { %708 = vst [vmem:[%s1030_s15 + $0x4] sm:$0xf] %v698_v22  ;;  %v644_v42 = vrot.slane %v805_v40, %v932_v10 }
 0x15c   : > { %v807_v43 = vpop.eup %806  ;;  %709 = vst [vmem:[%s1030_s15 + $0x8] sm:$0xf] %v699_v41  ;;  %816 = vrsqrt.f32 %v596_v8 }
 0x15d   : > { %v700_v12 = vmul.f32 %v644_v42, %v952_v7  ;;  %v651_v44 = vrot.slane %v807_v43, %v932_v10 }
 0x15e   : > { %v809_v45 = vpop.eup %808 }
 0x15f   : > { %710 = vst [vmem:[%s1030_s15 + $0xc] sm:$0xf] %v700_v12  ;;  %v701_v6 = vmul.f32 %v651_v44, %v965_v47  ;;  %v658_v23 = vrot.slane %v809_v45, %v932_v10 }
 0x160   : > { %v811_v46 = vpop.eup %810 }
 0x161   : > { %711 = vst [vmem:[%s1030_s15 + $0x10] sm:$0xf] %v701_v6  ;;  %v702_v49 = vmul.f32 %v658_v23, %v968_v48  ;;  %v665_v50 = vrot.slane %v811_v46, %v932_v10 }
 0x162   : > { %v813_v51 = vpop.eup %812 }
 0x163   : > { %712 = vst [vmem:[%s1030_s15 + $0x14] sm:$0xf] %v702_v49  ;;  %v703_v7 = vmul.f32 %v665_v50, %v978_v62  ;;  %v672_v52 = vrot.slane %v813_v51, %v932_v10 }
 0x164   : > { %v815_v53 = vpop.eup %814 }
 0x165   : > { %713 = vst [vmem:[%s1030_s15 + $0x18] sm:$0xf] %v703_v7  ;;  %v704_v47 = vmul.f32 %v672_v52, %v981_v63  ;;  %v679_v5 = vrot.slane %v815_v53, %v932_v10 }
 0x166   : > { %v817_v54 = vpop.eup %816 }
 0x167   : > { %714 = vst [vmem:[%s1030_s15 + $0x1c] sm:$0xf] %v704_v47  ;;  %v705_v55 = vmul.f32 %v679_v5, %v999_v21  ;;  %v686_v48 = vrot.slane %v817_v54, %v932_v10 }
 0x169   : > { %715 = vst [vmem:[%s1030_s15 + $0x20] sm:$0xf] %v705_v55  ;;  %v706_v56 = vmul.f32 %v686_v48, %v1002_v24 }
 0x16b   : > { %716 = vst [vmem:[%s1030_s15 + $0x24] sm:$0xf] %v706_v56 }
 0x16c PF: > { %s11_s6 = sadd.s32 1, %s824_s6  }
 0x16d   : > { %p8_p4 = scmp.ge.s32.totalorder %s11_s6, 4  }
 0x16f   :  { %10 = sbr.rel (!%p8_p4) target bundleno = 1 (0x1), region = 54 }

// kernel: reverse.8
= control target key start
LH: loop header
LB: loop body
LE: loop exit
PB: predicated region body
PF: predicated region fallthrough
CT: control target
= control target key end

     0   :  { %s344_s0 = inlined_call_operand.vmem [shape: f32[20,2,16,7], index: 0, kind: input, shape index: {}]   ;;  %s345_s1 = inlined_call_operand.vmem [shape: f32[20,2,16,7], index: 1, kind: output, shape index: {}]  }
   0x1   :  { %v112_v0 = vld [vmem:[%s344_s0 + $0x60] sm:$0xff]  ;;  %v113_v1 = vld [vmem:[%s344_s0 + $0xd0] sm:$0xff]  ;;  %v138_v14 = vld [vmem:[%s344_s0 + $0x68] sm:$0xff] }
   0x2   :  { %v115_v2 = vld [vmem:[%s344_s0 + $0x50] sm:$0xff]  ;;  %4 = vst [vmem:[%s345_s1] sm:$0xff] %v112_v0  ;;  %114 = vst [vmem:[%s345_s1 + $0x70] sm:$0xff] %v113_v1  ;;  %v117_v3 = vld [vmem:[%s344_s0 + $0xc0] sm:$0xff] }
   0x3   :  { %116 = vst [vmem:[%s345_s1 + $0x10] sm:$0xff] %v115_v2  ;;  %v119_v4 = vld [vmem:[%s344_s0 + $0x40] sm:$0xff]  ;;  %v121_v5 = vld [vmem:[%s344_s0 + $0xb0] sm:$0xff]  ;;  %118 = vst [vmem:[%s345_s1 + $0x80] sm:$0xff] %v117_v3 }
   0x4   :  { %120 = vst [vmem:[%s345_s1 + $0x20] sm:$0xff] %v119_v4  ;;  %122 = vst [vmem:[%s345_s1 + $0x90] sm:$0xff] %v121_v5  ;;  %v123_v6 = vld [vmem:[%s344_s0 + $0x30] sm:$0xff]  ;;  %v125_v7 = vld [vmem:[%s344_s0 + $0xa0] sm:$0xff] }
   0x5   :  { %v127_v8 = vld [vmem:[%s344_s0 + $0x20] sm:$0xff]  ;;  %124 = vst [vmem:[%s345_s1 + $0x30] sm:$0xff] %v123_v6  ;;  %126 = vst [vmem:[%s345_s1 + $0xa0] sm:$0xff] %v125_v7  ;;  %v129_v9 = vld [vmem:[%s344_s0 + $0x90] sm:$0xff] }
   0x6   :  { %128 = vst [vmem:[%s345_s1 + $0x40] sm:$0xff] %v127_v8  ;;  %v131_v10 = vld [vmem:[%s344_s0 + $0x10] sm:$0xff]  ;;  %v133_v11 = vld [vmem:[%s344_s0 + $0x80] sm:$0xff]  ;;  %130 = vst [vmem:[%s345_s1 + $0xb0] sm:$0xff] %v129_v9 }
   0x7   :  { %132 = vst [vmem:[%s345_s1 + $0x50] sm:$0xff] %v131_v10  ;;  %134 = vst [vmem:[%s345_s1 + $0xc0] sm:$0xff] %v133_v11  ;;  %v49_v12 = vld [vmem:[%s344_s0] sm:$0xff]  ;;  %v136_v13 = vld [vmem:[%s344_s0 + $0x70] sm:$0xff] }
   0x8   :  { %135 = vst [vmem:[%s345_s1 + $0x60] sm:$0xff] %v49_v12  ;;  %137 = vst [vmem:[%s345_s1 + $0xd0] sm:$0xff] %v136_v13  ;;  %v140_v15 = vld [vmem:[%s344_s0 + $0xd8] sm:$0xff]  ;;  %v144_v17 = vld [vmem:[%s344_s0 + $0xc8] sm:$0xff] }
   0x9   :  { %139 = vst [vmem:[%s345_s1 + $0x8] sm:$0xff] %v138_v14  ;;  %v142_v16 = vld [vmem:[%s344_s0 + $0x58] sm:$0xff]  ;;  %141 = vst [vmem:[%s345_s1 + $0x78] sm:$0xff] %v140_v15  ;;  %v146_v18 = vld [vmem:[%s344_s0 + $0x48] sm:$0xff] }
   0xa   :  { %143 = vst [vmem:[%s345_s1 + $0x18] sm:$0xff] %v142_v16  ;;  %145 = vst [vmem:[%s345_s1 + $0x88] sm:$0xff] %v144_v17  ;;  %v148_v19 = vld [vmem:[%s344_s0 + $0xb8] sm:$0xff]  ;;  %v152_v21 = vld [vmem:[%s344_s0 + $0xa8] sm:$0xff] }
   0xb   :  { %v150_v20 = vld [vmem:[%s344_s0 + $0x38] sm:$0xff]  ;;  %147 = vst [vmem:[%s345_s1 + $0x28] sm:$0xff] %v146_v18  ;;  %149 = vst [vmem:[%s345_s1 + $0x98] sm:$0xff] %v148_v19  ;;  %v154_v22 = vld [vmem:[%s344_s0 + $0x28] sm:$0xff] }
   0xc   :  { %151 = vst [vmem:[%s345_s1 + $0x38] sm:$0xff] %v150_v20  ;;  %v156_v23 = vld [vmem:[%s344_s0 + $0x98] sm:$0xff]  ;;  %153 = vst [vmem:[%s345_s1 + $0xa8] sm:$0xff] %v152_v21  ;;  %v160_v25 = vld [vmem:[%s344_s0 + $0x88] sm:$0xff] }
   0xd   :  { %155 = vst [vmem:[%s345_s1 + $0x48] sm:$0xff] %v154_v22  ;;  %157 = vst [vmem:[%s345_s1 + $0xb8] sm:$0xff] %v156_v23  ;;  %v158_v24 = vld [vmem:[%s344_s0 + $0x18] sm:$0xff]  ;;  %v162_v26 = vld [vmem:[%s344_s0 + $0x8] sm:$0xff] }
   0xe   :  { %159 = vst [vmem:[%s345_s1 + $0x58] sm:$0xff] %v158_v24  ;;  %161 = vst [vmem:[%s345_s1 + $0xc8] sm:$0xff] %v160_v25  ;;  %v164_v27 = vld [vmem:[%s344_s0 + $0x78] sm:$0xff] }
   0xf   :  { %163 = vst [vmem:[%s345_s1 + $0x68] sm:$0xff] %v162_v26  ;;  %165 = vst [vmem:[%s345_s1 + $0xd8] sm:$0xff] %v164_v27 }

// kernel: fno2d_forward.21
= control target key start
LH: loop header
LB: loop body
LE: loop exit
PB: predicated region body
PF: predicated region fallthrough
CT: control target
= control target key end

     0   :  { %s4903_s18 = smov 0   ;;  %s5732_s0 = inlined_call_operand.vmem [shape: f32[28,2,20], index: 0, kind: input, shape index: {}]   ;;  %s5733_s1 = inlined_call_operand.vmem [shape: f32[28,2,20], index: 1, kind: input, shape index: {}]   ;;  %s5734_s2 = inlined_call_operand.vmem [shape: f32[28,20,20], index: 2, kind: input, shape index: {}]   ;;  %s5735_s3 = inlined_call_operand.vmem [shape: f32[28,20,20], index: 3, kind: input, shape index: {}]   ;;  %s5736_s4 = inlined_call_operand.vmem [shape: f32[28,2,20], index: 4, kind: output, shape index: {0}]   ;;  %s5737_s5 = inlined_call_operand.vmem [shape: f32[28,2,20], index: 5, kind: output, shape index: {1}]  }
   0x1 LB: > { %s3951_s19 = sadd.s32 4294967295, %s4868_s18   ;;  %p3955_p0 = scmp.ge.s32.totalorder %s4868_s18, 1  ;;  %s4868_s18 = sphi %s4903_s18, %s16_s18  }
   0x2   : > { %p226_p1 = scmp.lt.s32.totalorder %s4868_s18, 3 }
   0x4   : > { %p227_p2 = pnand %p3955_p0, %p226_p1 }
   0x6   : > { %230 = sbr.rel (%p227_p2) target bundleno = 385 (0x181), region = 36 }
   0xd   : > { %s276_s20 = smul.u32 14, %s3951_s19  ;;  %v5740_v0 = vmov 0.0|0.0   ;;  %vm4871_vm0 = vmmov 0   ;;  %v5738_v1 = vmov 0.0   ;;  %vm326_vm1 = vcmask 1043456  }
   0xe   : > { %4724 = vmatprep.subr.bf16.mxu0 %v5740_v0  ;;  %4727 = vmatprep.subr.bf16.mxu1 %v5740_v0  ;;  %vm322_vm2 = vcmask 162816   ;;  %vm557_vm3 = vcmask 156672  }
   0xf   : > { %p277_p3 = scmp.lt.s32.totalorder %s276_s20, 27  ;;  %4352 = vmatprep.mubr.msk.f32.mxu0 %vm4871_vm0, %v5738_v1  ;;  %4361 = vmatprep.mubr.msk.f32.mxu1 %vm4871_vm0, %v5738_v1 }
  0x11   : > { %s5862_s20 = smov (!%p277_p3, %s276_s20), 27 }
  0x12   : > { %s4850_s21 = smul.u32 24, %s5862_s20  ;;  %s4917_s22 = sshll.u32 %s5862_s20, 1 }
  0x13   : > { %s4937_s6 = scalar_lea.vmem %s5732_s0, %s4917_s22  ;;  %s4943_s9 = scalar_lea.vmem %s5733_s1, %s4917_s22 }
  0x14   : > { %s4922_s25 = scalar_lea.vmem %s5734_s2, %s4850_s21  ;;  %s4927_s28 = scalar_lea.vmem %s5735_s3, %s4850_s21  ;;  %v314_v13 = vld [vmem:[%s4937_s6] sm:$0x3]  ;;  %v3968_v26 = vld [vmem:[%s4937_s6 + $0x2] sm:$0x3]  ;;  %v5011_v43 = vld [vmem:[%s4937_s6 + $0xe] sm:$0x3] }
  0x15   : > { %v316_v2 = vld [vmem:[%s4922_s25] sm:$0xff]  ;;  %v317_v3 = vld [vmem:[%s4922_s25 + $0x8] sm:$0xff]  ;;  %v318_v10 = vld [vmem:[%s4922_s25 + $0x10] sm:$0xf]  ;;  %s5665_s12 = scalar_lea.vmem %s5736_s4, %s4917_s22  ;;  %s5673_s15 = scalar_lea.vmem %s5737_s5, %s4917_s22 }
  0x16   : > { %v319_v4 = vld [vmem:[%s4927_s28] sm:$0xff]  ;;  %v4725_v5 = vpack.c.bf16 %v317_v3, %v316_v2  ;;  %v320_v6 = vld [vmem:[%s4927_s28 + $0x8] sm:$0xff]  ;;  %v3970_v11 = vld [vmem:[%s4922_s25 + $0x18] sm:$0xff] }
  0x17   : > { %v4728_v7 = vpack.c.bf16 %v320_v6, %v319_v4  ;;  %v477_v8 = vadd.f32 %v319_v4, %v316_v2  ;;  %v478_v9 = vadd.f32 %v320_v6, %v317_v3  ;;  %v3971_v12 = vld [vmem:[%s4922_s25 + $0x20] sm:$0xff]  ;;  %v321_v14 = vld [vmem:[%s4927_s28 + $0x10] sm:$0xf]  ;;  %v3973_v18 = vld [vmem:[%s4927_s28 + $0x18] sm:$0xff] }
  0x18   : > { %4726 = vmatpush3.bf16.msra.mxu0 %v4725_v5  ;;  %v315_v16 = vld [vmem:[%s4943_s9] sm:$0x3]  ;;  %v4734_v17 = vpack.c.bf16 %v3971_v12, %v3970_v11  ;;  %v479_v20 = vadd.f32 %v321_v14, %v318_v10  ;;  %v727_v21 = vadd.f32 %v3973_v18, %v3970_v11  ;;  %v3972_v24 = vld [vmem:[%s4922_s25 + $0x28] sm:$0xf]  ;;  %v3969_v29 = vld [vmem:[%s4943_s9 + $0x2] sm:$0x3] }
  0x19   : > { %4729 = vmatpush3.bf16.msra.mxu1 %v4728_v7  ;;  %4350 = vmatprep.subr.mxu0 %v5738_v1  ;;  %v4731_v15 = vpack.c.bf16 %v478_v9, %v477_v8  ;;  %v3974_v19 = vld [vmem:[%s4927_s28 + $0x20] sm:$0xff]  ;;  %v476_v23 = vadd.f32 %v315_v16, %v314_v13  ;;  %v3975_v28 = vld [vmem:[%s4927_s28 + $0x28] sm:$0xf]  ;;  %v3986_v30 = vld [vmem:[%s4922_s25 + $0x30] sm:$0xff]  ;;  %v726_v46 = vadd.f32 %v3969_v29, %v3968_v26 }
  0x1a   : > { %4359 = vmatprep.subr.mxu1 %v5738_v1  ;;  %v728_v22 = vadd.f32 %v3974_v19, %v3971_v12  ;;  %v4737_v25 = vpack.c.bf16 %v3974_v19, %v3973_v18  ;;  %v3987_v31 = vld [vmem:[%s4922_s25 + $0x38] sm:$0xff]  ;;  %v3989_v32 = vld [vmem:[%s4927_s28 + $0x30] sm:$0xff]  ;;  %v4982_v34 = vld [vmem:[%s4922_s25 + $0xa0] sm:$0xf]  ;;  %v729_v37 = vadd.f32 %v3975_v28, %v3972_v24 }
  0x1b   : > { %v3990_v33 = vld [vmem:[%s4927_s28 + $0x38] sm:$0xff]  ;;  %v4985_v35 = vld [vmem:[%s4927_s28 + $0xa0] sm:$0xf]  ;;  %v4988_v36 = vld [vmem:[%s4922_s25 + $0xa8] sm:$0xff]  ;;  %v4743_v47 = vpack.c.bf16 %v3987_v31, %v3986_v30  ;;  %v5040_v54 = vadd.f32 %v3989_v32, %v3986_v30 }
  0x1c   : > { %4351 = vmatpush3.msk.msra.mxu0 %vm326_vm1, %v318_v10  ;;  %v4740_v27 = vpack.c.bf16 %v728_v22, %v727_v21  ;;  %v4993_v38 = vadd.f32 %v4985_v35, %v4982_v34  ;;  %v4996_v39 = vld [vmem:[%s4922_s25 + $0xb0] sm:$0xff]  ;;  %v4999_v40 = vld [vmem:[%s4922_s25 + $0xb8] sm:$0xf]  ;;  %v5002_v41 = vld [vmem:[%s4927_s28 + $0xa8] sm:$0xff]  ;;  %v4746_v53 = vpack.c.bf16 %v3990_v33, %v3989_v32  ;;  %v5057_v59 = vadd.f32 %v3990_v33, %v3987_v31 }
  0x1d   : > { %4353 = vmatmul.mubr.msk.f32.vlgmr.msra.gmra.mrb[0].mxu0 %vm322_vm2, %v314_v13  ;;  %4360 = vmatpush3.msk.msra.mxu1 %vm326_vm1, %v321_v14  ;;  %v5008_v42 = vld [vmem:[%s4927_s28 + $0xb0] sm:$0xff]  ;;  %v5015_v44 = vadd.f32 %v5002_v41, %v4988_v36  ;;  %v5018_v45 = vld [vmem:[%s4927_s28 + $0xb8] sm:$0xf]  ;;  %v5031_v50 = vld [vmem:[%s4943_s9 + $0xe] sm:$0x3] }
  0x1e   : > { %4730 = vmatprep.subr.bf16.mxu0 %v5740_v0  ;;  %4362 = vmatmul.mubr.msk.f32.vlgmr.msra.gmra.mrb[0].mxu1 %vm322_vm2, %v315_v16  ;;  %v5024_v48 = vadd.f32 %v5008_v42, %v4996_v39  ;;  %v5028_v49 = vadd.f32 %v5018_v45, %v4999_v40  ;;  %v5034_v51 = vld [vmem:[%s4922_s25 + $0xc0] sm:$0xff]  ;;  %v5037_v52 = vld [vmem:[%s4922_s25 + $0xc8] sm:$0xff]  ;;  %v5044_v55 = vadd.f32 %v5031_v50, %v5011_v43  ;;  %v5053_v58 = vld [vmem:[%s4922_s25 + $0xd0] sm:$0xf] }
  0x1f   : > { %4732 = vmatpush3.bf16.msra.mxu0 %v4731_v15  ;;  %4733 = vmatprep.subr.bf16.mxu1 %v5740_v0  ;;  %v5047_v56 = vld [vmem:[%s4927_s28 + $0xc0] sm:$0xff]  ;;  %v5050_v57 = vld [vmem:[%s4927_s28 + $0xc8] sm:$0xff]  ;;  %v5062_v61 = vld [vmem:[%s4937_s6 + $0x10] sm:$0x3]  ;;  %v4749_v31 = vpack.c.bf16 %v5057_v59, %v5040_v54 }
  0x20   : > { %4735 = vmatpush3.bf16.msra.mxu1 %v4734_v17  ;;  %4368 = vmatprep.subr.mxu0 %v5738_v1  ;;  %v5065_v62 = vld [vmem:[%s4927_s28 + $0xd0] sm:$0xf]  ;;  %v5072_v2 = vadd.f32 %v5047_v56, %v5034_v51  ;;  %v3988_v3 = vld [vmem:[%s4922_s25 + $0x40] sm:$0xf]  ;;  %v5078_v4 = vld [vmem:[%s4922_s25 + $0x48] sm:$0xff]  ;;  %v5093_v8 = vadd.f32 %v5050_v57, %v5037_v52 }
  0x21   : > { %4370 = vmatprep.mubr.msk.f32.mxu0 %vm4871_vm0, %v5738_v1  ;;  %4377 = vmatprep.subr.mxu1 %v5738_v1  ;;  %v5068_v63 = vld [vmem:[%s4943_s9 + $0x10] sm:$0x3]  ;;  %v5085_v6 = vadd.f32 %v5065_v62, %v5053_v58  ;;  %v5096_v9 = vld [vmem:[%s4922_s25 + $0xd8] sm:$0xff]  ;;  %v5099_v10 = vld [vmem:[%s4922_s25 + $0xe0] sm:$0xff] }
  0x22   : > { %4379 = vmatprep.mubr.msk.f32.mxu1 %vm4871_vm0, %v5738_v1  ;;  %v5081_v5 = vld [vmem:[%s4922_s25 + $0x50] sm:$0xff]  ;;  %v5089_v7 = vadd.f32 %v5068_v63, %v5062_v61  ;;  %v5102_v11 = vld [vmem:[%s4922_s25 + $0xe8] sm:$0xf]  ;;  %v3984_v12 = vld [vmem:[%s4937_s6 + $0x4] sm:$0x3] }
  0x23   : > { %4369 = vmatpush3.msk.msra.mxu0 %vm326_vm1, %v479_v20  ;;  %v3991_v13 = vld [vmem:[%s4927_s28 + $0x40] sm:$0xf]  ;;  %v5108_v14 = vld [vmem:[%s4927_s28 + $0xd8] sm:$0xff]  ;;  %v5114_v16 = vld [vmem:[%s4937_s6 + $0x12] sm:$0x3] }
  0x24   : > { %4371 = vmatmul.mubr.msk.f32.vlgmr.msra.gmra.mrb[2].mxu0 %vm322_vm2, %v476_v23  ;;  %4378 = vmatpush3.msk.msra.mxu1 %vm326_vm1, %v3972_v24  ;;  %v5111_v15 = vld [vmem:[%s4927_s28 + $0xe0] sm:$0xff]  ;;  %v5119_v18 = vld [vmem:[%s4927_s28 + $0x48] sm:$0xff]  ;;  %v5125_v20 = vadd.f32 %v5108_v14, %v5096_v9  ;;  %v5131_v22 = vld [vmem:[%s4943_s9 + $0x12] sm:$0x3] }
  0x25   : > { %4736 = vmatprep.subr.bf16.mxu0 %v5740_v0  ;;  %4739 = vmatprep.subr.bf16.mxu1 %v5740_v0  ;;  %v3985_v17 = vld [vmem:[%s4943_s9 + $0x4] sm:$0x3]  ;;  %v5128_v21 = vld [vmem:[%s4927_s28 + $0xe8] sm:$0xf]  ;;  %v5134_v23 = vld [vmem:[%s4922_s25 + $0xf0] sm:$0xff] }
  0x26   : > { %4738 = vmatpush3.bf16.msra.mxu0 %v4737_v25  ;;  %4380 = vmatmul.mubr.msk.f32.vlgmr.msra.gmra.mrb[2].mxu1 %vm322_vm2, %v3968_v26  ;;  %v5140_v24 = vld [vmem:[%s4927_s28 + $0x50] sm:$0xff]  ;;  %v5144_v25 = vadd.f32 %v5111_v15, %v5099_v10  ;;  %v5148_v26 = vadd.f32 %v5128_v21, %v5102_v11  ;;  %v5161_v30 = vld [vmem:[%s4927_s28 + $0xf8] sm:$0xff]  ;;  %v5168_v32 = vld [vmem:[%s4922_s25 + $0x100] sm:$0xf] }
  0x27   : > { %4741 = vmatpush3.bf16.msra.mxu1 %v4740_v27  ;;  %4386 = vmatprep.subr.mxu0 %v5738_v1  ;;  %v5152_v27 = vadd.f32 %v5131_v22, %v5114_v16  ;;  %5774 = vst [vmem:[#allocation4_spill] sm:$0xff] %v5168_v32  ;;  %v5171_v33 = vld [vmem:[%s4937_s6 + $0x14] sm:$0x3]  ;;  %v5197_v60 = vld [vmem:[%s4922_s25 + $0x108] sm:$0xff] }
  0x28   : > { %4388 = vmatprep.mubr.msk.f32.mxu0 %vm4871_vm0, %v5738_v1  ;;  %4395 = vmatprep.subr.mxu1 %v5738_v1  ;;  %5772 = vst [vmem:[#allocation2_spill] sm:$0xff] %v5148_v26  ;;  %5775 = vst [vmem:[#allocation5_spill] sm:$0xff] %v5171_v33  ;;  %v5194_v19 = vld [vmem:[%s4943_s9 + $0x14] sm:$0x3]  ;;  %v5787_v26 = vmov 0.0|0.0  }
  0x29   : > { %4397 = vmatprep.mubr.msk.f32.mxu1 %vm4871_vm0, %v5738_v1  ;;  %5773 = vst [vmem:[#allocation3_spill] sm:$0xff] %v5152_v27  ;;  %5780 = vst [vmem:[#allocation10_spill] sm:$0xff] %v5194_v19  ;;  %v5206_v54 = vadd.f32 %v5194_v19, %v5171_v33  ;;  %v5217_v27 = vld [vmem:[%s4927_s28 + $0x110] sm:$0xff]  ;;  %v5253_v33 = vld [vmem:[%s4922_s25 + $0x120] sm:$0xff] }
  0x2a   : > { %4387 = vmatpush3.msk.msra.mxu0 %vm326_vm1, %v3975_v28  ;;  %v5155_v28 = vld [vmem:[%s4922_s25 + $0xf8] sm:$0xff]  ;;  %5781 = vst [vmem:[#allocation11_spill] sm:$0xff] %v5197_v60  ;;  %5786 = vst [vmem:[#allocation16_spill] sm:$0xff] %v5217_v27 }
  0x2b   : > { %4389 = vmatmul.mubr.msk.f32.vlgmr.msra.gmra.mrb[4].mxu0 %vm322_vm2, %v3969_v29  ;;  %4396 = vmatpush3.msk.msra.mxu1 %vm326_vm1, %v729_v37  ;;  %v5158_v29 = vld [vmem:[%s4927_s28 + $0xf0] sm:$0xff]  ;;  %v5174_v37 = vld [vmem:[%s4927_s28 + $0x100] sm:$0xf]  ;;  %5783 = vst [vmem:[#allocation13_spill] sm:$0xff] %v5206_v54  ;;  %5795 = vst [vmem:[#allocation24_spill] sm:$0xff] %v5253_v33 }
  0x2c   : > { %4742 = vmatprep.subr.bf16.mxu0 %v5740_v0  ;;  %4745 = vmatprep.subr.bf16.mxu1 %v5740_v0  ;;  %5776 = vst [vmem:[#allocation6_spill] sm:$0xff] %v5174_v37  ;;  %v5191_v59 = vadd.f32 %v5174_v37, %v5168_v32  ;;  %v980_v0 = vadd.f32 %v3991_v13, %v3988_v3  ;;  %v5211_v37 = vld [vmem:[%s4922_s25 + $0x118] sm:$0xf]  ;;  %v5214_v32 = vld [vmem:[%s4927_s28 + $0x108] sm:$0xff] }
  0x2d   : > { %4744 = vmatpush3.bf16.msra.mxu0 %v4743_v47  ;;  %4398 = vmatmul.mubr.msk.f32.vlgmr.msra.gmra.mrb[4].mxu1 %vm322_vm2, %v726_v46  ;;  %v5178_v46 = vadd.f32 %v5158_v29, %v5134_v23  ;;  %v5182_v47 = vadd.f32 %v5161_v30, %v5155_v28  ;;  %5784 = vst [vmem:[#allocation14_spill] sm:$0xff] %v5211_v37  ;;  %5785 = vst [vmem:[#allocation15_spill] sm:$0xff] %v5214_v32 }
  0x2e   : > { %4747 = vmatpush3.bf16.msra.mxu1 %v4746_v53  ;;  %4404 = vmatprep.subr.mxu0 %v5738_v1  ;;  %v4752_v53 = vpack.c.bf16 %v5081_v5, %v5078_v4  ;;  %5779 = vst [vmem:[#allocation9_spill] sm:$0xff] %v5191_v59  ;;  %v5228_v59 = vadd.f32 %v5214_v32, %v5197_v60  ;;  %v5797_v60 = vmov 0.0  }
  0x2f   : > { %4406 = vmatprep.mubr.msk.f32.mxu0 %vm4871_vm0, %v5738_v1  ;;  %4413 = vmatprep.subr.mxu1 %v5738_v1  ;;  %5777 = vst [vmem:[#allocation7_spill] sm:$0xff] %v5178_v46  ;;  %5778 = vst [vmem:[#allocation8_spill] sm:$0xff] %v5182_v47  ;;  %v5235_v46 = vld [vmem:[%s4927_s28 + $0x118] sm:$0xf]  ;;  %v5238_v47 = vld [vmem:[%s4943_s9 + $0x16] sm:$0x3]  ;;  %v1230_v32 = vadd.f32 %v5140_v24, %v5081_v5 }
  0x30   : > { %4415 = vmatprep.mubr.msk.f32.mxu1 %vm4871_vm0, %v5738_v1  ;;  %v5200_v1 = vld [vmem:[%s4922_s25 + $0x110] sm:$0xff]  ;;  %5789 = vst [vmem:[#allocation18_spill] sm:$0xff] %v5228_v59  ;;  %5791 = vst [vmem:[#allocation20_spill] sm:$0xff] %v5235_v46  ;;  %v5246_v19 = vadd.f32 %v5235_v46, %v5211_v37  ;;  %v5262_v46 = vld [vmem:[%s4922_s25 + $0x128] sm:$0xff] }
  0x31   : > { %4405 = vmatpush3.msk.msra.mxu0 %vm326_vm1, %v3988_v3  ;;  %5782 = vst [vmem:[#allocation12_spill] sm:$0xff] %v5200_v1  ;;  %v1229_v3 = vadd.f32 %v5119_v18, %v5078_v4  ;;  %v5232_v54 = vadd.f32 %v5217_v27, %v5200_v1  ;;  %5792 = vst [vmem:[#allocation21_spill] sm:$0xff] %v5238_v47  ;;  %v4004_v4 = vld [vmem:[%s4922_s25 + $0x58] sm:$0xf]  ;;  %v977_v1 = vadd.f32 %v3985_v17, %v3984_v12 }
  0x32   : > { %4407 = vmatmul.mubr.msk.f32.vlgmr.msra.gmra.mrb[6].mxu0 %vm322_vm2, %v3984_v12  ;;  %4414 = vmatpush3.msk.msra.mxu1 %vm326_vm1, %v3991_v13  ;;  %v5224_v13 = vld [vmem:[%s4937_s6 + $0x16] sm:$0x3]  ;;  %5793 = vst [vmem:[#allocation22_spill] sm:$0xff] %v5246_v19  ;;  %5798 = vst [vmem:[#allocation26_spill] sm:$0xff] %v5262_v46  ;;  %v5265_v19 = vld [vmem:[%s4927_s28 + $0x128] sm:$0xff] }
  0x33   : > { %4748 = vmatprep.subr.bf16.mxu0 %v5787_v26  ;;  %4416 = vmatmul.mubr.msk.f32.vlgmr.msra.gmra.mrb[6].mxu1 %vm322_vm2, %v3985_v17  ;;  %5788 = vst [vmem:[#allocation17_spill] sm:$0xff] %v5224_v13  ;;  %5790 = vst [vmem:[#allocation19_spill] sm:$0xff] %v5232_v54  ;;  %v5250_v27 = vadd.f32 %v5238_v47, %v5224_v13  ;;  %v4000_v12 = vld [vmem:[%s4937_s6 + $0x6] sm:$0x3]  ;;  %v5279_v17 = vld [vmem:[%s4937_s6 + $0x18] sm:$0x3]  ;;  %v5289_v59 = vadd.f32 %v5265_v19, %v5262_v46 }
  0x34   : > { %4750 = vmatpush3.bf16.msra.mxu0 %v4749_v31  ;;  %4751 = vmatprep.subr.bf16.mxu1 %v5787_v26  ;;  %v5256_v31 = vld [vmem:[%s4927_s28 + $0x120] sm:$0xff]  ;;  %5799 = vst [vmem:[#allocation27_spill] sm:$0xff] %v5265_v19  ;;  %v5285_v5 = vld [vmem:[%s4943_s9 + $0x18] sm:$0x3]  ;;  %v4758_v37 = vpack.c.bf16 %v1230_v32, %v1229_v3  ;;  %v5332_v32 = vld [vmem:[%s4937_s6 + $0x1a] sm:$0x3] }
  0x35   : > { %5794 = vst [vmem:[#allocation23_spill] sm:$0xff] %v5250_v27  ;;  %5796 = vst [vmem:[#allocation25_spill] sm:$0xff] %v5256_v31  ;;  %4753 = vmatpush3.bf16.msra.mxu1 %v4752_v53  ;;  %4422 = vmatprep.subr.mxu0 %v5797_v60  ;;  %v5268_v27 = vld [vmem:[%s4922_s25 + $0x130] sm:$0xf]  ;;  %v5272_v47 = vadd.f32 %v5256_v31, %v5253_v33  ;;  %v4755_v31 = vpack.c.bf16 %v5140_v24, %v5119_v18  ;;  %v5304_v13 = vld [vmem:[%s4922_s25 + $0x138] sm:$0xff] }
  0x36   : > { %4424 = vmatprep.mubr.msk.f32.mxu0 %vm4871_vm0, %v5797_v60  ;;  %4431 = vmatprep.subr.mxu1 %v5797_v60  ;;  %v5282_v53 = vld [vmem:[%s4927_s28 + $0x130] sm:$0xf]  ;;  %5802 = vst [vmem:[#allocation30_spill] sm:$0xff] %v5285_v5  ;;  %5803 = vst [vmem:[#allocation31_spill] sm:$0xff] %v5289_v59  ;;  %v5301_v54 = vadd.f32 %v5285_v5, %v5279_v17  ;;  %v5307_v19 = vld [vmem:[%s4922_s25 + $0x140] sm:$0xff] }
  0x37   : > { %5800 = vst [vmem:[#allocation28_spill] sm:$0xff] %v5272_v47  ;;  %5801 = vst [vmem:[#allocation29_spill] sm:$0xff] %v5282_v53  ;;  %4433 = vmatprep.mubr.msk.f32.mxu1 %vm4871_vm0, %v5797_v60  ;;  %v5297_v33 = vadd.f32 %v5282_v53, %v5268_v27  ;;  %v5310_v46 = vld [vmem:[%s4927_s28 + $0x138] sm:$0xff]  ;;  %v5316_v24 = vld [vmem:[%s4922_s25 + $0x148] sm:$0xf] }
  0x38   : > { %5805 = vst [vmem:[#allocation33_spill] sm:$0xff] %v5301_v54  ;;  %5806 = vst [vmem:[#allocation34_spill] sm:$0xff] %v5310_v46  ;;  %4423 = vmatpush3.msk.msra.mxu0 %vm326_vm1, %v980_v0  ;;  %v5323_v54 = vadd.f32 %v5310_v46, %v5304_v13  ;;  %v5326_v5 = vld [vmem:[%s4927_s28 + $0x148] sm:$0xf]  ;;  %v4007_v0 = vld [vmem:[%s4927_s28 + $0x58] sm:$0xf] }
  0x39   : > { %5804 = vst [vmem:[#allocation32_spill] sm:$0xff] %v5297_v33  ;;  %5807 = vst [vmem:[#allocation35_spill] sm:$0xff] %v5316_v24  ;;  %v5319_v33 = vld [vmem:[%s4927_s28 + $0x140] sm:$0xff]  ;;  %4425 = vmatmul.mubr.msk.f32.vlgmr.msra.gmra.mrb[8].mxu0 %vm322_vm2, %v977_v1  ;;  %4432 = vmatpush3.msk.msra.mxu1 %vm326_vm1, %v4004_v4  ;;  %v5340_v18 = vadd.f32 %v5326_v5, %v5316_v24  ;;  %v5343_v46 = vld [vmem:[%s4943_s9 + $0x1a] sm:$0x3] }
  0x3a   : > { %5808 = vst [vmem:[#allocation36_spill] sm:$0xff] %v5319_v33  ;;  %5809 = vst [vmem:[#allocation37_spill] sm:$0xff] %v5323_v54  ;;  %v5336_v3 = vadd.f32 %v5319_v33, %v5307_v19  ;;  %4754 = vmatprep.subr.bf16.mxu0 %v5787_v26  ;;  %4757 = vmatprep.subr.bf16.mxu1 %v5787_v26  ;;  %v5349_v1 = vadd.f32 %v5343_v46, %v5332_v32  ;;  %v4001_v33 = vld [vmem:[%s4943_s9 + $0x6] sm:$0x3]  ;;  %v4019_v59 = vld [vmem:[%s4922_s25 + $0x68] sm:$0xff] }
  0x3b   : > { %5810 = vst [vmem:[#allocation38_spill] sm:$0xff] %v5326_v5  ;;  %5811 = vst [vmem:[#allocation39_spill] sm:$0xff] %v5340_v18  ;;  %4756 = vmatpush3.bf16.msra.mxu0 %v4755_v31  ;;  %4434 = vmatmul.mubr.msk.f32.vlgmr.msra.gmra.mrb[8].mxu1 %vm322_vm2, %v4000_v12  ;;  %v4018_v47 = vld [vmem:[%s4922_s25 + $0x60] sm:$0xff]  ;;  %v1231_v18 = vadd.f32 %v4007_v0, %v4004_v4  ;;  %v4022_v53 = vld [vmem:[%s4927_s28 + $0x68] sm:$0xff]  ;;  %v1228_v31 = vadd.f32 %v4001_v33, %v4000_v12 }
  0x3c   : > { %5812 = vst [vmem:[#allocation40_spill] sm:$0xff] %v5343_v46  ;;  %5813 = vst [vmem:[#allocation41_spill] sm:$0xff] %v5349_v1  ;;  %4759 = vmatpush3.bf16.msra.mxu1 %v4758_v37  ;;  %4440 = vmatprep.subr.mxu0 %v5797_v60  ;;  %v4021_v24 = vld [vmem:[%s4927_s28 + $0x60] sm:$0xff]  ;;  %v4761_v1 = vpack.c.bf16 %v4019_v59, %v4018_v47  ;;  %v1481_v12 = vadd.f32 %v4022_v53, %v4019_v59  ;;  %v4023_v46 = vld [vmem:[%s4927_s28 + $0x70] sm:$0xf] }
  0x3d   : > { %4442 = vmatprep.mubr.msk.f32.mxu0 %vm4871_vm0, %v5797_v60  ;;  %4449 = vmatprep.subr.mxu1 %v5797_v60  ;;  %v4764_v37 = vpack.c.bf16 %v4022_v53, %v4021_v24  ;;  %v1480_v4 = vadd.f32 %v4021_v24, %v4018_v47  ;;  %v4035_v5 = vld [vmem:[%s4922_s25 + $0x80] sm:$0xff]  ;;  %v4017_v47 = vld [vmem:[%s4943_s9 + $0x8] sm:$0x3]  ;;  %v4037_v24 = vld [vmem:[%s4927_s28 + $0x78] sm:$0xff] }
  0x3e   : > { %4451 = vmatprep.mubr.msk.f32.mxu1 %vm4871_vm0, %v5797_v60  ;;  %v4036_v54 = vld [vmem:[%s4922_s25 + $0x88] sm:$0xf] }
  0x3f   : > { %4441 = vmatpush3.msk.msra.mxu0 %vm326_vm1, %v4007_v0  ;;  %v4020_v0 = vld [vmem:[%s4922_s25 + $0x70] sm:$0xf]  ;;  %v4767_v59 = vpack.c.bf16 %v1481_v12, %v1480_v4 }
  0x40   : > { %4443 = vmatmul.mubr.msk.f32.vlgmr.msra.gmra.mrb[10].mxu0 %vm322_vm2, %v4001_v33  ;;  %4450 = vmatpush3.msk.msra.mxu1 %vm326_vm1, %v1231_v18  ;;  %v4034_v33 = vld [vmem:[%s4922_s25 + $0x78] sm:$0xff]  ;;  %v4016_v18 = vld [vmem:[%s4937_s6 + $0x8] sm:$0x3] }
  0x41   : > { %4760 = vmatprep.subr.bf16.mxu0 %v5787_v26  ;;  %4763 = vmatprep.subr.bf16.mxu1 %v5787_v26  ;;  %v4770_v53 = vpack.c.bf16 %v4035_v5, %v4034_v33  ;;  %v1479_v12 = vadd.f32 %v4017_v47, %v4016_v18 }
  0x42   : > { %4762 = vmatpush3.bf16.msra.mxu0 %v4761_v1  ;;  %4452 = vmatmul.mubr.msk.f32.vlgmr.msra.gmra.mrb[10].mxu1 %vm322_vm2, %v1228_v31  ;;  %v4038_v1 = vld [vmem:[%s4927_s28 + $0x80] sm:$0xff]  ;;  %v1482_v31 = vadd.f32 %v4023_v46, %v4020_v0 }
  0x43   : > { %4765 = vmatpush3.bf16.msra.mxu1 %v4764_v37  ;;  %4458 = vmatprep.subr.mxu0 %v5797_v60  ;;  %v1731_v37 = vadd.f32 %v4037_v24, %v4034_v33  ;;  %v1732_v4 = vadd.f32 %v4038_v1, %v4035_v5  ;;  %v4032_v5 = vld [vmem:[%s4937_s6 + $0xa] sm:$0x3] }
  0x44   : > { %4460 = vmatprep.mubr.msk.f32.mxu0 %vm4871_vm0, %v5797_v60  ;;  %4467 = vmatprep.subr.mxu1 %v5797_v60  ;;  %v4039_v33 = vld [vmem:[%s4927_s28 + $0x88] sm:$0xf] }
  0x45   : > { %4469 = vmatprep.mubr.msk.f32.mxu1 %vm4871_vm0, %v5797_v60 }
  0x46   : > { %4459 = vmatpush3.msk.msra.mxu0 %vm326_vm1, %v4020_v0  ;;  %v4776_v0 = vpack.c.bf16 %v1732_v4, %v1731_v37 }
  0x47   : > { %4461 = vmatmul.mubr.msk.f32.vlgmr.msra.gmra.mrb[12].mxu0 %vm322_vm2, %v4016_v18  ;;  %4468 = vmatpush3.msk.msra.mxu1 %vm326_vm1, %v4023_v46  ;;  %v4773_v46 = vpack.c.bf16 %v4038_v1, %v4037_v24  ;;  %v4033_v18 = vld [vmem:[%s4943_s9 + $0xa] sm:$0x3]  ;;  %v4053_v24 = vld [vmem:[%s4927_s28 + $0x90] sm:$0xff]  ;;  %v4054_v1 = vld [vmem:[%s4927_s28 + $0x98] sm:$0xff] }
  0x48   : > { %4766 = vmatprep.subr.bf16.mxu0 %v5787_v26  ;;  %4470 = vmatmul.mubr.msk.f32.vlgmr.msra.gmra.mrb[12].mxu1 %vm322_vm2, %v4017_v47  ;;  %v4050_v47 = vld [vmem:[%s4922_s25 + $0x90] sm:$0xff]  ;;  %v4782_v4 = vpack.c.bf16 %v4054_v1, %v4053_v24 }
  0x49   : > { %4768 = vmatpush3.bf16.msra.mxu0 %v4767_v59  ;;  %4769 = vmatprep.subr.bf16.mxu1 %v5787_v26  ;;  %v4051_v59 = vld [vmem:[%s4922_s25 + $0x98] sm:$0xff] }
  0x4a   : > { %4771 = vmatpush3.bf16.msra.mxu1 %v4770_v53  ;;  %4476 = vmatprep.subr.mxu0 %v5797_v60  ;;  %v1733_v53 = vadd.f32 %v4039_v33, %v4036_v54  ;;  %v4779_v37 = vpack.c.bf16 %v4051_v59, %v4050_v47 }
  0x4b   : > { %4478 = vmatprep.mubr.msk.f32.mxu0 %vm4871_vm0, %v5797_v60  ;;  %4485 = vmatprep.subr.mxu1 %v5797_v60 }
  0x4c   : > { %4487 = vmatprep.mubr.msk.f32.mxu1 %vm4871_vm0, %v5797_v60 }
  0x4d   : > { %4477 = vmatpush3.msk.msra.mxu0 %vm326_vm1, %v1482_v31  ;;  %v1730_v31 = vadd.f32 %v4033_v18, %v4032_v5 }
  0x4e   : > { %4479 = vmatmul.mubr.msk.f32.vlgmr.msra.gmra.mrb[14].mxu0 %vm322_vm2, %v1479_v12  ;;  %4486 = vmatpush3.msk.msra.mxu1 %vm326_vm1, %v4036_v54  ;;  %v1982_v54 = vadd.f32 %v4053_v24, %v4050_v47  ;;  %v1983_v12 = vadd.f32 %v4054_v1, %v4051_v59  ;;  %v5844_v47 = vld [vmem:[#allocation23_spill] sm:$0xff]  ;;  %v4842_v59 = vpack.c.bf16 %v5307_v19, %v5304_v13  ;;  %v5846_v24 = vld [vmem:[#allocation30_spill] sm:$0xff] }
  0x4f   : > { %4772 = vmatprep.subr.bf16.mxu0 %v5787_v26  ;;  %4775 = vmatprep.subr.bf16.mxu1 %v5787_v26  ;;  %v5847_v1 = vld [vmem:[#allocation31_spill] sm:$0xff]  ;;  %v5850_v19 = vld [vmem:[#allocation34_spill] sm:$0xff] }
  0x50   : > { %4774 = vmatpush3.bf16.msra.mxu0 %v4773_v46  ;;  %4488 = vmatmul.mubr.msk.f32.vlgmr.msra.gmra.mrb[14].mxu1 %vm322_vm2, %v4032_v5  ;;  %v4048_v46 = vld [vmem:[%s4937_s6 + $0xc] sm:$0x3] }
  0x51   : > { %4777 = vmatpush3.bf16.msra.mxu1 %v4776_v0  ;;  %4494 = vmatprep.subr.mxu0 %v5797_v60  ;;  %v4049_v5 = vld [vmem:[%s4943_s9 + $0xc] sm:$0x3]  ;;  %v4785_v0 = vpack.c.bf16 %v1983_v12, %v1982_v54  ;;  %v5855_v12 = vld [vmem:[#allocation37_spill] sm:$0xff] }
  0x52   : > { %4496 = vmatprep.mubr.msk.f32.mxu0 %vm4871_vm0, %v5797_v60  ;;  %4503 = vmatprep.subr.mxu1 %v5797_v60  ;;  %v5854_v54 = vld [vmem:[#allocation35_spill] sm:$0xff] }
  0x53   : > { %4505 = vmatprep.mubr.msk.f32.mxu1 %vm4871_vm0, %v5797_v60 }
  0x54   : > { %4495 = vmatpush3.msk.msra.mxu0 %vm326_vm1, %v4039_v33  ;;  %v4788_v33 = vpack.c.bf16 %v4996_v39, %v4988_v36  ;;  %v4797_v36 = vpack.c.bf16 %v5037_v52, %v5034_v51  ;;  %v4806_v39 = vpack.c.bf16 %v5099_v10, %v5096_v9  ;;  %v5821_v51 = vld [vmem:[#allocation12_spill] sm:$0xff]  ;;  %v5832_v9 = vld [vmem:[#allocation14_spill] sm:$0xff]  ;;  %v5833_v10 = vld [vmem:[#allocation17_spill] sm:$0xff] }
  0x55   : > { %4497 = vmatmul.mubr.msk.f32.vlgmr.msra.gmra.mrb[16].mxu0 %vm322_vm2, %v4033_v18  ;;  %4504 = vmatpush3.msk.msra.mxu1 %vm326_vm1, %v1733_v53  ;;  %v1981_v18 = vadd.f32 %v4049_v5, %v4048_v46  ;;  %v5845_v53 = vld [vmem:[#allocation29_spill] sm:$0xff] }
  0x56   : > { %4778 = vmatprep.subr.bf16.mxu0 %v5787_v26  ;;  %4781 = vmatprep.subr.bf16.mxu1 %v5787_v26 }
  0x57   : > { %4780 = vmatpush3.bf16.msra.mxu0 %v4779_v37  ;;  %4506 = vmatmul.mubr.msk.f32.vlgmr.msra.gmra.mrb[16].mxu1 %vm322_vm2, %v1730_v31  ;;  %v5848_v31 = vld [vmem:[#allocation28_spill] sm:$0xff] }
  0x58   : > { %4783 = vmatpush3.bf16.msra.mxu1 %v4782_v4  ;;  %4512 = vmatprep.subr.mxu0 %v5797_v60  ;;  %v5849_v37 = vpack.c.bf16 %v5847_v1, %v5848_v31  ;;  %v5853_v4 = vld [vmem:[#allocation33_spill] sm:$0xff] }
  0x59   : > { %4514 = vmatprep.mubr.msk.f32.mxu0 %vm4871_vm0, %v5797_v60  ;;  %4521 = vmatprep.subr.mxu1 %v5797_v60 }
  0x5a   : > { %4523 = vmatprep.mubr.msk.f32.mxu1 %vm4871_vm0, %v5797_v60 }
  0x5b   : > { %4513 = vmatpush3.msk.msra.mxu0 %vm326_vm1, %v4982_v34  ;;  %v4791_v34 = vpack.c.bf16 %v5008_v42, %v5002_v41  ;;  %v4809_v41 = vpack.c.bf16 %v5111_v15, %v5108_v14  ;;  %v5816_v42 = vpack.c.bf16 %v5144_v25, %v5125_v20  ;;  %v5835_v14 = vld [vmem:[#allocation18_spill] sm:$0xff]  ;;  %v5841_v25 = vld [vmem:[#allocation27_spill] sm:$0xff] }
  0x5c   : > { %4515 = vmatmul.mubr.msk.f32.vlgmr.msra.gmra.mrb[18].mxu0 %vm322_vm2, %v4048_v46  ;;  %4522 = vmatpush3.msk.msra.mxu1 %vm326_vm1, %v4985_v35  ;;  %v5814_v35 = vpack.c.bf16 %v5024_v48, %v5015_v44  ;;  %v4818_v44 = vpack.c.bf16 %v5161_v30, %v5158_v29  ;;  %v5818_v48 = vld [vmem:[#allocation3_spill] sm:$0xff]  ;;  %v5838_v20 = vld [vmem:[#allocation26_spill] sm:$0xff]  ;;  %v5842_v29 = vld [vmem:[#allocation21_spill] sm:$0xff]  ;;  %v5856_v46 = vpack.c.bf16 %v5336_v3, %v5855_v12 }
  0x5d   : > { %4784 = vmatprep.subr.bf16.mxu0 %v5787_v26  ;;  %4524 = vmatmul.mubr.msk.f32.vlgmr.msra.gmra.mrb[18].mxu1 %vm322_vm2, %v4049_v5  ;;  %v5843_v30 = vld [vmem:[#allocation22_spill] sm:$0xff]  ;;  %v5860_v3 = vld [vmem:[#allocation41_spill] sm:$0xff] }
  0x5e   : > { %4786 = vmatpush3.bf16.msra.mxu0 %v4785_v0  ;;  %4787 = vmatprep.subr.bf16.mxu1 %v5787_v26  ;;  %v5857_v5 = vld [vmem:[#allocation38_spill] sm:$0xff] }
  0x5f   : > { %4789 = vmatpush3.bf16.msra.mxu1 %v4788_v33  ;;  %4530 = vmatprep.subr.mxu0 %v5797_v60 }
  0x60   : > { %4532 = vmatprep.mubr.msk.f32.mxu0 %vm4871_vm0, %v5797_v60  ;;  %4539 = vmatprep.subr.mxu1 %v5797_v60 }
  0x61   : > { %4541 = vmatprep.mubr.msk.f32.mxu1 %vm4871_vm0, %v5797_v60 }
  0x62   : > { %4531 = vmatpush3.msk.msra.mxu0 %vm326_vm1, %v4993_v38  ;;  %v4800_v38 = vpack.c.bf16 %v5050_v57, %v5047_v56  ;;  %v5823_v56 = vld [vmem:[#allocation6_spill] sm:$0xff] }
  0x63   : > { %4533 = vmatmul.mubr.msk.f32.vlgmr.msra.gmra.mrb[20].mxu0 %vm322_vm2, %v1981_v18  ;;  %4540 = vmatpush3.msk.msra.mxu1 %vm326_vm1, %v4999_v40  ;;  %v5815_v40 = vpack.c.bf16 %v5093_v8, %v5072_v2  ;;  %v5824_v57 = vld [vmem:[#allocation10_spill] sm:$0xff]  ;;  %v5829_v2 = vld [vmem:[#allocation16_spill] sm:$0xff]  ;;  %v5831_v8 = vld [vmem:[#allocation13_spill] sm:$0xff] }
  0x64   : > { %4790 = vmatprep.subr.bf16.mxu0 %v5787_v26  ;;  %4793 = vmatprep.subr.bf16.mxu1 %v5787_v26 }
  0x65   : > { %4792 = vmatpush3.bf16.msra.mxu0 %v4791_v34  ;;  %4542 = vmatmul.mubr.msk.f32.vlgmr.msra.gmra.mrb[20].mxu1 %vm322_vm2, %v5011_v43  ;;  %v4815_v43 = vpack.c.bf16 %v5155_v28, %v5134_v23  ;;  %v5840_v23 = vld [vmem:[#allocation25_spill] sm:$0xff] }
  0x66   : > { %4795 = vmatpush3.bf16.msra.mxu1 %v5814_v35  ;;  %4548 = vmatprep.subr.mxu0 %v5797_v60  ;;  %v4836_v28 = vpack.c.bf16 %v5841_v25, %v5840_v23 }
  0x67   : > { %4550 = vmatprep.mubr.msk.f32.mxu0 %vm4871_vm0, %v5797_v60  ;;  %4557 = vmatprep.subr.mxu1 %v5797_v60 }
  0x68   : > { %4559 = vmatprep.mubr.msk.f32.mxu1 %vm4871_vm0, %v5797_v60 }
  0x69   : > { %4549 = vmatpush3.msk.msra.mxu0 %vm326_vm1, %v5018_v45  ;;  %v5817_v45 = vld [vmem:[#allocation2_spill] sm:$0xff] }
  0x6a   : > { %4551 = vmatmul.mubr.msk.f32.vlgmr.msra.gmra.mrb[22].mxu0 %vm322_vm2, %v5031_v50  ;;  %4558 = vmatpush3.msk.msra.mxu1 %vm326_vm1, %v5028_v49  ;;  %v5819_v49 = vld [vmem:[#allocation4_spill] sm:$0xff]  ;;  %v5820_v50 = vld [vmem:[#allocation11_spill] sm:$0xff] }
  0x6b   : > { %4796 = vmatprep.subr.bf16.mxu0 %v5787_v26  ;;  %4799 = vmatprep.subr.bf16.mxu1 %v5787_v26  ;;  %v4824_v52 = vpack.c.bf16 %v5821_v51, %v5820_v50 }
  0x6c   : > { %4798 = vmatpush3.bf16.msra.mxu0 %v4797_v36  ;;  %4560 = vmatmul.mubr.msk.f32.vlgmr.msra.gmra.mrb[22].mxu1 %vm322_vm2, %v5044_v55  ;;  %v5822_v55 = vld [vmem:[#allocation5_spill] sm:$0xff] }
  0x6d   : > { %4801 = vmatpush3.bf16.msra.mxu1 %v4800_v38  ;;  %4566 = vmatprep.subr.mxu0 %v5797_v60 }
  0x6e   : > { %4568 = vmatprep.mubr.msk.f32.mxu0 %vm4871_vm0, %v5797_v60  ;;  %4575 = vmatprep.subr.mxu1 %v5797_v60 }
  0x6f   : > { %4577 = vmatprep.mubr.msk.f32.mxu1 %vm4871_vm0, %v5797_v60 }
  0x70   : > { %4567 = vmatpush3.msk.msra.mxu0 %vm326_vm1, %v5053_v58  ;;  %v5825_v58 = vld [vmem:[#allocation8_spill] sm:$0xff] }
  0x71   : > { %4569 = vmatmul.mubr.msk.f32.vlgmr.msra.gmra.mrb[24].mxu0 %vm322_vm2, %v5062_v61  ;;  %4576 = vmatpush3.msk.msra.mxu1 %vm326_vm1, %v5065_v62  ;;  %v5826_v61 = vld [vmem:[#allocation7_spill] sm:$0xff] }
  0x72   : > { %4802 = vmatprep.subr.bf16.mxu0 %v5787_v26  ;;  %4578 = vmatmul.mubr.msk.f32.vlgmr.msra.gmra.mrb[24].mxu1 %vm322_vm2, %v5068_v63  ;;  %v5827_v62 = vpack.c.bf16 %v5825_v58, %v5826_v61  ;;  %v5828_v63 = vld [vmem:[#allocation15_spill] sm:$0xff] }
  0x73   : > { %4804 = vmatpush3.bf16.msra.mxu0 %v5815_v40  ;;  %4805 = vmatprep.subr.bf16.mxu1 %v5787_v26 }
  0x74   : > { %4807 = vmatpush3.bf16.msra.mxu1 %v4806_v39  ;;  %4584 = vmatprep.subr.mxu0 %v5797_v60 }
  0x75   : > { %4586 = vmatprep.mubr.msk.f32.mxu0 %vm4871_vm0, %v5797_v60  ;;  %4593 = vmatprep.subr.mxu1 %v5797_v60 }
  0x76   : > { %4595 = vmatprep.mubr.msk.f32.mxu1 %vm4871_vm0, %v5797_v60 }
  0x77   : > { %4585 = vmatpush3.msk.msra.mxu0 %vm326_vm1, %v5085_v6  ;;  %v4827_v6 = vpack.c.bf16 %v5829_v2, %v5828_v63 }
  0x78   : > { %4587 = vmatmul.mubr.msk.f32.vlgmr.msra.gmra.mrb[26].mxu0 %vm322_vm2, %v5089_v7  ;;  %4594 = vmatpush3.msk.msra.mxu1 %vm326_vm1, %v5102_v11  ;;  %v5830_v7 = vld [vmem:[#allocation9_spill] sm:$0xff]  ;;  %v5834_v11 = vld [vmem:[#allocation19_spill] sm:$0xff] }
  0x79   : > { %4808 = vmatprep.subr.bf16.mxu0 %v5787_v26  ;;  %4811 = vmatprep.subr.bf16.mxu1 %v5787_v26  ;;  %v5836_v15 = vpack.c.bf16 %v5834_v11, %v5835_v14 }
  0x7a   : > { %4810 = vmatpush3.bf16.msra.mxu0 %v4809_v41  ;;  %4596 = vmatmul.mubr.msk.f32.vlgmr.msra.gmra.mrb[26].mxu1 %vm322_vm2, %v5114_v16  ;;  %v5837_v16 = vld [vmem:[#allocation24_spill] sm:$0xff] }
  0x7b   : > { %4813 = vmatpush3.bf16.msra.mxu1 %v5816_v42  ;;  %4602 = vmatprep.subr.mxu0 %v5797_v60 }
  0x7c   : > { %4604 = vmatprep.mubr.msk.f32.mxu0 %vm4871_vm0, %v5797_v60  ;;  %4611 = vmatprep.subr.mxu1 %v5797_v60 }
  0x7d   : > { %4613 = vmatprep.mubr.msk.f32.mxu1 %vm4871_vm0, %v5797_v60 }
  0x7e   : > { %4603 = vmatpush3.msk.msra.mxu0 %vm326_vm1, %v5128_v21  ;;  %v4833_v21 = vpack.c.bf16 %v5838_v20, %v5837_v16 }
  0x7f   : > { %4605 = vmatmul.mubr.msk.f32.vlgmr.msra.gmra.mrb[28].mxu0 %vm322_vm2, %v5131_v22  ;;  %4612 = vmatpush3.msk.msra.mxu1 %vm326_vm1, %v5817_v45  ;;  %v5839_v22 = vld [vmem:[#allocation20_spill] sm:$0xff] }
  0x80   : > { %4814 = vmatprep.subr.bf16.mxu0 %v5787_v26  ;;  %4817 = vmatprep.subr.bf16.mxu1 %v5787_v26 }
  0x81   : > { %4816 = vmatpush3.bf16.msra.mxu0 %v4815_v43  ;;  %4614 = vmatmul.mubr.msk.f32.vlgmr.msra.gmra.mrb[28].mxu1 %vm322_vm2, %v5818_v48 }
  0x82   : > { %4819 = vmatpush3.bf16.msra.mxu1 %v4818_v44  ;;  %4620 = vmatprep.subr.mxu0 %v5797_v60 }
  0x83   : > { %4622 = vmatprep.mubr.msk.f32.mxu0 %vm4871_vm0, %v5797_v60  ;;  %4629 = vmatprep.subr.mxu1 %v5797_v60 }
  0x84   : > { %4631 = vmatprep.mubr.msk.f32.mxu1 %vm4871_vm0, %v5797_v60 }
  0x85   : > { %4621 = vmatpush3.msk.msra.mxu0 %vm326_vm1, %v5819_v49 }
  0x86   : > { %4623 = vmatmul.mubr.msk.f32.vlgmr.msra.gmra.mrb[30].mxu0 %vm322_vm2, %v5822_v55  ;;  %4630 = vmatpush3.msk.msra.mxu1 %vm326_vm1, %v5823_v56 }
  0x87   : > { %4820 = vmatprep.subr.bf16.mxu0 %v5787_v26  ;;  %4632 = vmatmul.mubr.msk.f32.vlgmr.msra.gmra.mrb[30].mxu1 %vm322_vm2, %v5824_v57 }
  0x88   : > { %4822 = vmatpush3.bf16.msra.mxu0 %v5827_v62  ;;  %4823 = vmatprep.subr.bf16.mxu1 %v5787_v26 }
  0x89   : > { %4825 = vmatpush3.bf16.msra.mxu1 %v4824_v52  ;;  %4638 = vmatprep.subr.mxu0 %v5797_v60 }
  0x8a   : > { %4640 = vmatprep.mubr.msk.f32.mxu0 %vm4871_vm0, %v5797_v60  ;;  %4647 = vmatprep.subr.mxu1 %v5797_v60 }
  0x8b   : > { %4649 = vmatprep.mubr.msk.f32.mxu1 %vm4871_vm0, %v5797_v60 }
  0x8c   : > { %4639 = vmatpush3.msk.msra.mxu0 %vm326_vm1, %v5830_v7 }
  0x8d   : > { %4641 = vmatmul.mubr.msk.f32.vlgmr.msra.gmra.mrb[32].mxu0 %vm322_vm2, %v5831_v8  ;;  %4648 = vmatpush3.msk.msra.mxu1 %vm326_vm1, %v5832_v9 }
  0x8e   : > { %4826 = vmatprep.subr.bf16.mxu0 %v5787_v26  ;;  %4829 = vmatprep.subr.bf16.mxu1 %v5787_v26 }
  0x8f   : > { %4828 = vmatpush3.bf16.msra.mxu0 %v4827_v6  ;;  %4650 = vmatmul.mubr.msk.f32.vlgmr.msra.gmra.mrb[32].mxu1 %vm322_vm2, %v5833_v10 }
  0x90   : > { %4831 = vmatpush3.bf16.msra.mxu1 %v5836_v15  ;;  %4656 = vmatprep.subr.mxu0 %v5797_v60 }
  0x91   : > { %4658 = vmatprep.mubr.msk.f32.mxu0 %vm4871_vm0, %v5797_v60  ;;  %4665 = vmatprep.subr.mxu1 %v5797_v60 }
  0x92   : > { %4667 = vmatprep.mubr.msk.f32.mxu1 %vm4871_vm0, %v5797_v60 }
  0x93   : > { %4657 = vmatpush3.msk.msra.mxu0 %vm326_vm1, %v5839_v22 }
  0x94   : > { %4659 = vmatmul.mubr.msk.f32.vlgmr.msra.gmra.mrb[34].mxu0 %vm322_vm2, %v5842_v29  ;;  %4666 = vmatpush3.msk.msra.mxu1 %vm326_vm1, %v5843_v30 }
  0x95   : > { %4832 = vmatprep.subr.bf16.mxu0 %v5787_v26  ;;  %4835 = vmatprep.subr.bf16.mxu1 %v5787_v26 }
  0x96   : > { %4834 = vmatpush3.bf16.msra.mxu0 %v4833_v21  ;;  %4668 = vmatmul.mubr.msk.f32.vlgmr.msra.gmra.mrb[34].mxu1 %vm322_vm2, %v5844_v47 }
  0x97   : > { %4837 = vmatpush3.bf16.msra.mxu1 %v4836_v28  ;;  %4674 = vmatprep.subr.mxu0 %v5797_v60 }
  0x98   : > { %4676 = vmatprep.mubr.msk.f32.mxu0 %vm4871_vm0, %v5797_v60  ;;  %4683 = vmatprep.subr.mxu1 %v5797_v60 }
  0x99   : > { %4685 = vmatprep.mubr.msk.f32.mxu1 %vm4871_vm0, %v5797_v60 }
  0x9a   : > { %4675 = vmatpush3.msk.msra.mxu0 %vm326_vm1, %v5268_v27  ;;  %v5851_v27 = vld [vmem:[#allocation36_spill] sm:$0xff] }
  0x9b   : > { %4677 = vmatmul.mubr.msk.f32.vlgmr.msra.gmra.mrb[36].mxu0 %vm322_vm2, %v5279_v17  ;;  %4684 = vmatpush3.msk.msra.mxu1 %vm326_vm1, %v5845_v53  ;;  %v4845_v13 = vpack.c.bf16 %v5851_v27, %v5850_v19  ;;  %v5852_v17 = vld [vmem:[#allocation32_spill] sm:$0xff] }
  0x9c   : > { %4838 = vmatprep.subr.bf16.mxu0 %v5787_v26  ;;  %4686 = vmatmul.mubr.msk.f32.vlgmr.msra.gmra.mrb[36].mxu1 %vm322_vm2, %v5846_v24 }
  0x9d   : > { %4840 = vmatpush3.bf16.msra.mxu0 %v5849_v37  ;;  %4841 = vmatprep.subr.bf16.mxu1 %v5787_v26 }
  0x9e   : > { %4843 = vmatpush3.bf16.msra.mxu1 %v4842_v59  ;;  %4692 = vmatprep.subr.mxu0 %v5797_v60 }
  0x9f   : > { %4694 = vmatprep.mubr.msk.f32.mxu0 %vm4871_vm0, %v5797_v60  ;;  %4701 = vmatprep.subr.mxu1 %v5797_v60 }
  0xa0   : > { %4703 = vmatprep.mubr.msk.f32.mxu1 %vm4871_vm0, %v5797_v60 }
  0xa1   : > { %4693 = vmatpush3.msk.msra.mxu0 %vm326_vm1, %v5852_v17 }
  0xa2   : > { %4695 = vmatmul.mubr.msk.f32.vlgmr.msra.gmra.mrb[38].mxu0 %vm322_vm2, %v5853_v4  ;;  %4844 = vmatprep.subr.bf16.mxu0 %v5787_v26 }
  0xa3   : > { %4702 = vmatpush3.msk.msra.mxu1 %vm326_vm1, %v5854_v54  ;;  %4846 = vmatpush3.bf16.msra.mxu0 %v4845_v13 }
  0xa4   : > { %4704 = vmatmul.mubr.msk.f32.vlgmr.msra.gmra.mrb[38].mxu1 %vm322_vm2, %v5332_v32  ;;  %4847 = vmatprep.subr.bf16.mxu1 %v5787_v26  ;;  %v5858_v32 = vld [vmem:[#allocation40_spill] sm:$0xff]  ;;  %v5859_v26 = vld [vmem:[#allocation39_spill] sm:$0xff] }
  0xa5   : > { %4849 = vmatpush3.bf16.msra.mxu1 %v5856_v46  ;;  %4710 = vmatprep.subr.mxu0 %v5797_v60 }
  0xa6   : > { %4712 = vmatprep.mubr.msk.f32.mxu0 %vm4871_vm0, %v5797_v60  ;;  %4719 = vmatprep.subr.mxu1 %v5797_v60 }
  0xa7   : > { %4711 = vmatpush3.msk.msra.mxu0 %vm326_vm1, %v5857_v5  ;;  %4721 = vmatprep.mubr.msk.f32.mxu1 %vm4871_vm0, %v5797_v60 }
  0xa8   : > { %4713 = vmatmul.mubr.msk.f32.vlgmr.msra.gmra.mrb[40].mxu0 %vm322_vm2, %v5858_v32 }
  0xa9   : > { %4720 = vmatpush3.msk.msra.mxu1 %vm326_vm1, %v5859_v26 }
  0xaa   : > { %4722 = vmatmul.mubr.msk.f32.vlgmr.msra.gmra.mrb[40].mxu1 %vm322_vm2, %v5860_v3 }
  0xf0   : > { %v396_v0 = vpop.f32.mrb[0].mxu0 }
  0xf1   : > { %v4354_v33 = vpop.f32.mrb[1].mxu0  ;;  %v472_v18 = vpop.f32.mrb[0].mxu1 }
  0xf2   : > { %v556_v60 = vsub.f32 %v396_v0, %v472_v18  ;;  %v559_v34 = vadd.f32 %v472_v18, %v396_v0  ;;  %v4363_v35 = vpop.f32.mrb[1].mxu1 }
  0xf4   : > { %558 = vst.msk [vmem:[%s5665_s12] sm:$0x3] %vm557_vm3, %v556_v60 }
  0xf7   : > { %v552_v36 = vpop.f32.mrb[2].mxu0 }
  0xf8   : > { %v560_v38 = vsub.f32 %v552_v36, %v559_v34  ;;  %v4372_v39 = vpop.f32.mrb[3].mxu0 }
  0xf9   : > { %v646_v40 = vpop.f32.mrb[2].mxu1 }
  0xfa   : > { %561 = vst.msk [vmem:[%s5673_s15] sm:$0x3] %vm557_vm3, %v560_v38  ;;  %v4381_v41 = vpop.f32.mrb[3].mxu1 }
  0xfe   : > { %v722_v42 = vpop.f32.mrb[4].mxu0 }
  0xff   : > { %v806_v43 = vsub.f32 %v646_v40, %v722_v42  ;;  %v809_v44 = vadd.f32 %v722_v42, %v646_v40  ;;  %v4390_v45 = vpop.f32.mrb[5].mxu0 }
 0x100   : > { %v802_v48 = vpop.f32.mrb[4].mxu1 }
 0x101   : > { %3982 = vst.msk [vmem:[%s5665_s12 + $0x2] sm:$0x3] %vm557_vm3, %v806_v43  ;;  %v810_v49 = vsub.f32 %v802_v48, %v809_v44  ;;  %v4399_v50 = vpop.f32.mrb[5].mxu1 }
 0x103   : > { %3983 = vst.msk [vmem:[%s5673_s15 + $0x2] sm:$0x3] %vm557_vm3, %v810_v49 }
 0x105   : > { %v897_v51 = vpop.f32.mrb[6].mxu0 }
 0x106   : > { %v4408_v52 = vpop.f32.mrb[7].mxu0  ;;  %v973_v55 = vpop.f32.mrb[6].mxu1 }
 0x107   : > { %v1057_v56 = vsub.f32 %v897_v51, %v973_v55  ;;  %v1060_v57 = vadd.f32 %v973_v55, %v897_v51  ;;  %v4417_v58 = vpop.f32.mrb[7].mxu1 }
 0x109   : > { %3998 = vst.msk [vmem:[%s5665_s12 + $0x4] sm:$0x3] %vm557_vm3, %v1057_v56 }
 0x10c   : > { %v1053_v61 = vpop.f32.mrb[8].mxu0 }
 0x10d   : > { %v1061_v62 = vsub.f32 %v1053_v61, %v1060_v57  ;;  %v4426_v63 = vpop.f32.mrb[9].mxu0 }
 0x10e   : > { %v1148_v2 = vpop.f32.mrb[8].mxu1 }
 0x10f   : > { %3999 = vst.msk [vmem:[%s5673_s15 + $0x4] sm:$0x3] %vm557_vm3, %v1061_v62  ;;  %v4435_v6 = vpop.f32.mrb[9].mxu1 }
 0x113   : > { %v1224_v7 = vpop.f32.mrb[10].mxu0 }
 0x114   : > { %v1308_v8 = vsub.f32 %v1148_v2, %v1224_v7  ;;  %v1311_v9 = vadd.f32 %v1224_v7, %v1148_v2  ;;  %v4444_v10 = vpop.f32.mrb[11].mxu0 }
 0x115   : > { %v1304_v11 = vpop.f32.mrb[10].mxu1 }
 0x116   : > { %4014 = vst.msk [vmem:[%s5665_s12 + $0x6] sm:$0x3] %vm557_vm3, %v1308_v8  ;;  %v1312_v14 = vsub.f32 %v1304_v11, %v1311_v9  ;;  %v4453_v15 = vpop.f32.mrb[11].mxu1 }
 0x118   : > { %4015 = vst.msk [vmem:[%s5673_s15 + $0x6] sm:$0x3] %vm557_vm3, %v1312_v14 }
 0x11a   : > { %v1399_v16 = vpop.f32.mrb[12].mxu0 }
 0x11b   : > { %v4462_v20 = vpop.f32.mrb[13].mxu0  ;;  %v1475_v21 = vpop.f32.mrb[12].mxu1 }
 0x11c   : > { %v1559_v22 = vsub.f32 %v1399_v16, %v1475_v21  ;;  %v1562_v23 = vadd.f32 %v1475_v21, %v1399_v16  ;;  %v4471_v25 = vpop.f32.mrb[13].mxu1 }
 0x11e   : > { %4030 = vst.msk [vmem:[%s5665_s12 + $0x8] sm:$0x3] %vm557_vm3, %v1559_v22 }
 0x121   : > { %v1555_v28 = vpop.f32.mrb[14].mxu0 }
 0x122   : > { %v1563_v29 = vsub.f32 %v1555_v28, %v1562_v23  ;;  %v4480_v30 = vpop.f32.mrb[15].mxu0 }
 0x123   : > { %v1650_v47 = vpop.f32.mrb[14].mxu1 }
 0x124   : > { %4031 = vst.msk [vmem:[%s5673_s15 + $0x8] sm:$0x3] %vm557_vm3, %v1563_v29  ;;  %v4489_v59 = vpop.f32.mrb[15].mxu1 }
 0x128   : > { %v1726_v53 = vpop.f32.mrb[16].mxu0 }
 0x129   : > { %v1810_v24 = vsub.f32 %v1650_v47, %v1726_v53  ;;  %v1813_v1 = vadd.f32 %v1726_v53, %v1650_v47  ;;  %v4498_v31 = vpop.f32.mrb[17].mxu0 }
 0x12a   : > { %v1806_v37 = vpop.f32.mrb[16].mxu1 }
 0x12b   : > { %4046 = vst.msk [vmem:[%s5665_s12 + $0xa] sm:$0x3] %vm557_vm3, %v1810_v24  ;;  %v1814_v19 = vsub.f32 %v1806_v37, %v1813_v1  ;;  %v4507_v27 = vpop.f32.mrb[17].mxu1 }
 0x12d   : > { %4047 = vst.msk [vmem:[%s5673_s15 + $0xa] sm:$0x3] %vm557_vm3, %v1814_v19 }
 0x12f   : > { %v1901_v13 = vpop.f32.mrb[18].mxu0 }
 0x130   : > { %v4516_v17 = vpop.f32.mrb[19].mxu0  ;;  %v1977_v4 = vpop.f32.mrb[18].mxu1 }
 0x131   : > { %v2061_v54 = vsub.f32 %v1901_v13, %v1977_v4  ;;  %v2064_v12 = vadd.f32 %v1977_v4, %v1901_v13  ;;  %v4525_v46 = vpop.f32.mrb[19].mxu1 }
 0x133   : > { %4062 = vst.msk [vmem:[%s5665_s12 + $0xc] sm:$0x3] %vm557_vm3, %v2061_v54 }
 0x136   : > { %v2057_v5 = vpop.f32.mrb[20].mxu0 }
 0x137   : > { %v2065_v32 = vsub.f32 %v2057_v5, %v2064_v12  ;;  %v4534_v26 = vpop.f32.mrb[21].mxu0 }
 0x138   : > { %v2152_v3 = vpop.f32.mrb[20].mxu1 }
 0x139   : > { %4063 = vst.msk [vmem:[%s5673_s15 + $0xc] sm:$0x3] %vm557_vm3, %v2065_v32  ;;  %v4543_v0 = vpop.f32.mrb[21].mxu1 }
 0x13d   : > { %v2228_v33 = vpop.f32.mrb[22].mxu0 }
 0x13e   : > { %v2312_v18 = vsub.f32 %v2152_v3, %v2228_v33  ;;  %v2315_v60 = vadd.f32 %v2228_v33, %v2152_v3  ;;  %v4552_v34 = vpop.f32.mrb[23].mxu0 }
 0x13f   : > { %v2308_v35 = vpop.f32.mrb[22].mxu1 }
 0x140   : > { %4078 = vst.msk [vmem:[%s5665_s12 + $0xe] sm:$0x3] %vm557_vm3, %v2312_v18  ;;  %v2316_v36 = vsub.f32 %v2308_v35, %v2315_v60  ;;  %v4561_v38 = vpop.f32.mrb[23].mxu1 }
 0x142   : > { %4079 = vst.msk [vmem:[%s5673_s15 + $0xe] sm:$0x3] %vm557_vm3, %v2316_v36 }
 0x144   : > { %v2403_v39 = vpop.f32.mrb[24].mxu0 }
 0x145   : > { %v4570_v40 = vpop.f32.mrb[25].mxu0  ;;  %v2479_v41 = vpop.f32.mrb[24].mxu1 }
 0x146   : > { %v2563_v42 = vsub.f32 %v2403_v39, %v2479_v41  ;;  %v2566_v43 = vadd.f32 %v2479_v41, %v2403_v39  ;;  %v4579_v44 = vpop.f32.mrb[25].mxu1 }
 0x148   : > { %4094 = vst.msk [vmem:[%s5665_s12 + $0x10] sm:$0x3] %vm557_vm3, %v2563_v42 }
 0x14b   : > { %v2559_v45 = vpop.f32.mrb[26].mxu0 }
 0x14c   : > { %v2567_v48 = vsub.f32 %v2559_v45, %v2566_v43  ;;  %v4588_v49 = vpop.f32.mrb[27].mxu0 }
 0x14d   : > { %v2654_v50 = vpop.f32.mrb[26].mxu1 }
 0x14e   : > { %4095 = vst.msk [vmem:[%s5673_s15 + $0x10] sm:$0x3] %vm557_vm3, %v2567_v48  ;;  %v4597_v51 = vpop.f32.mrb[27].mxu1 }
 0x152   : > { %v2730_v52 = vpop.f32.mrb[28].mxu0 }
 0x153   : > { %v2814_v55 = vsub.f32 %v2654_v50, %v2730_v52  ;;  %v2817_v56 = vadd.f32 %v2730_v52, %v2654_v50  ;;  %v4606_v57 = vpop.f32.mrb[29].mxu0 }
 0x154   : > { %v2810_v58 = vpop.f32.mrb[28].mxu1 }
 0x155   : > { %4110 = vst.msk [vmem:[%s5665_s12 + $0x12] sm:$0x3] %vm557_vm3, %v2814_v55  ;;  %v2818_v61 = vsub.f32 %v2810_v58, %v2817_v56  ;;  %v4615_v62 = vpop.f32.mrb[29].mxu1 }
 0x157   : > { %4111 = vst.msk [vmem:[%s5673_s15 + $0x12] sm:$0x3] %vm557_vm3, %v2818_v61 }
 0x159   : > { %v2905_v63 = vpop.f32.mrb[30].mxu0 }
 0x15a   : > { %v4624_v2 = vpop.f32.mrb[31].mxu0  ;;  %v2981_v6 = vpop.f32.mrb[30].mxu1 }
 0x15b   : > { %v3065_v7 = vsub.f32 %v2905_v63, %v2981_v6  ;;  %v3068_v8 = vadd.f32 %v2981_v6, %v2905_v63  ;;  %v4633_v9 = vpop.f32.mrb[31].mxu1 }
 0x15d   : > { %4126 = vst.msk [vmem:[%s5665_s12 + $0x14] sm:$0x3] %vm557_vm3, %v3065_v7 }
 0x160   : > { %v3061_v10 = vpop.f32.mrb[32].mxu0 }
 0x161   : > { %v3069_v11 = vsub.f32 %v3061_v10, %v3068_v8  ;;  %v4642_v14 = vpop.f32.mrb[33].mxu0 }
 0x162   : > { %v3156_v15 = vpop.f32.mrb[32].mxu1 }
 0x163   : > { %4127 = vst.msk [vmem:[%s5673_s15 + $0x14] sm:$0x3] %vm557_vm3, %v3069_v11  ;;  %v4651_v16 = vpop.f32.mrb[33].mxu1 }
 0x167   : > { %v3232_v20 = vpop.f32.mrb[34].mxu0 }
 0x168   : > { %v3316_v21 = vsub.f32 %v3156_v15, %v3232_v20  ;;  %v3319_v22 = vadd.f32 %v3232_v20, %v3156_v15  ;;  %v4660_v23 = vpop.f32.mrb[35].mxu0 }
 0x169   : > { %v3312_v25 = vpop.f32.mrb[34].mxu1 }
 0x16a   : > { %4142 = vst.msk [vmem:[%s5665_s12 + $0x16] sm:$0x3] %vm557_vm3, %v3316_v21  ;;  %v3320_v28 = vsub.f32 %v3312_v25, %v3319_v22  ;;  %v4669_v29 = vpop.f32.mrb[35].mxu1 }
 0x16c   : > { %4143 = vst.msk [vmem:[%s5673_s15 + $0x16] sm:$0x3] %vm557_vm3, %v3320_v28 }
 0x16e   : > { %v3407_v30 = vpop.f32.mrb[36].mxu0 }
 0x16f   : > { %v4678_v47 = vpop.f32.mrb[37].mxu0  ;;  %v3483_v59 = vpop.f32.mrb[36].mxu1 }
 0x170   : > { %v3567_v53 = vsub.f32 %v3407_v30, %v3483_v59  ;;  %v3570_v24 = vadd.f32 %v3483_v59, %v3407_v30  ;;  %v4687_v1 = vpop.f32.mrb[37].mxu1 }
 0x172   : > { %4158 = vst.msk [vmem:[%s5665_s12 + $0x18] sm:$0x3] %vm557_vm3, %v3567_v53 }
 0x175   : > { %v3563_v31 = vpop.f32.mrb[38].mxu0 }
 0x176   : > { %v3571_v37 = vsub.f32 %v3563_v31, %v3570_v24  ;;  %v4696_v19 = vpop.f32.mrb[39].mxu0 }
 0x177   : > { %v3658_v27 = vpop.f32.mrb[38].mxu1 }
 0x178   : > { %4159 = vst.msk [vmem:[%s5673_s15 + $0x18] sm:$0x3] %vm557_vm3, %v3571_v37  ;;  %v4705_v13 = vpop.f32.mrb[39].mxu1 }
 0x17b   : > { %v3734_v17 = vpop.f32.mrb[40].mxu0 }
 0x17c   : > { %v3818_v4 = vsub.f32 %v3658_v27, %v3734_v17  ;;  %v3821_v54 = vadd.f32 %v3734_v17, %v3658_v27  ;;  %v4714_v12 = vpop.f32.mrb[41].mxu0 }
 0x17d   : > { %v3814_v46 = vpop.f32.mrb[40].mxu1 }
 0x17e   : > { %4174 = vst.msk [vmem:[%s5665_s12 + $0x1a] sm:$0x3] %vm557_vm3, %v3818_v4  ;;  %v3822_v5 = vsub.f32 %v3814_v46, %v3821_v54  ;;  %v4723_v32 = vpop.f32.mrb[41].mxu1 }
 0x180   : > { %4175 = vst.msk [vmem:[%s5673_s15 + $0x1a] sm:$0x3] %vm557_vm3, %v3822_v5 }
 0x181 PF: > { %s16_s18 = sadd.s32 1, %s4868_s18  }
 0x182   : > { %p13_p4 = scmp.ge.s32.totalorder %s16_s18, 4  }
 0x184   :  { %15 = sbr.rel (!%p13_p4) target bundleno = 1 (0x1), region = 165 }

// kernel: fno2d_forward.23
= control target key start
LH: loop header
LB: loop body
LE: loop exit
PB: predicated region body
PF: predicated region fallthrough
CT: control target
= control target key end

     0   :  { %s1406_s27 = smov 0   ;;  %s1408_s28 = smov 0   ;;  %s1744_s0 = inlined_call_operand.vmem [shape: f32[20,512], index: 0, kind: input, shape index: {}]   ;;  %s1745_s1 = inlined_call_operand.vmem [shape: f32[20,512], index: 1, kind: input, shape index: {}]   ;;  %s1746_s2 = inlined_call_operand.vmem [shape: f32[20,20], index: 2, kind: input, shape index: {}]   ;;  %s1747_s3 = inlined_call_operand.vmem [shape: f32[20,1], index: 3, kind: input, shape index: {}]   ;;  %s1748_s4 = inlined_call_operand.vmem [shape: f32[20,20], index: 4, kind: input, shape index: {}]   ;;  %s1749_s5 = inlined_call_operand.vmem [shape: f32[20,1], index: 5, kind: input, shape index: {}]   ;;  %s1750_s6 = inlined_call_operand.vmem [shape: f32[20,20], index: 6, kind: input, shape index: {}]   ;;  %s1751_s7 = inlined_call_operand.vmem [shape: f32[20,1], index: 7, kind: input, shape index: {}]   ;;  %s1752_s8 = inlined_call_operand.vmem [shape: f32[20,512], index: 8, kind: output, shape index: {}]  }
   0x1   :  { %s1410_s29 = smov 0  }
   0x2 LB: > { %s1189_s30 = sadd.s32 4294967295, %s1356_s29   ;;  %s1423_s9 = sadd.s32 1, %s1356_s29   ;;  %s1356_s29 = sphi %s1410_s29, %s1757_s29   ;;  %s1352_s28 = sphi %s1408_s28, %s1756_s28   ;;  %s1348_s27 = sphi %s1406_s27, %s1755_s27  }
   0x3   : > { %s22_s10 = ssub.s32 %s1356_s29, %s1423_s9  ;;  %s25_s11 = sadd.s32 1, %s1352_s28 }
   0x4   : > { %p23_p0 = scmp.eq.s32.totalorder %s22_s10, 0  ;;  %p32_p1 = scmp.ne.s32.totalorder %s1352_s28, %s1348_s27 }
   0x5   : > { %p33_p2 = scmp.eq.s32.totalorder %s1356_s29, 0  ;;  %p214_p3 = scmp.eq.s32.totalorder %s1189_s30, 1 }
   0x6   : > { %s1434_s12 = scalar_select %p23_p0, %s1352_s28, %s25_s11  }
   0x7   : > { %p1436_p4 = por %p33_p2, %p32_p1  ;;  %p1440_p5 = por %p214_p3, %p32_p1 }
   0x8   : > { %p1192_p6 = scmp.ge.s32.totalorder %s1356_s29, 2 }
   0xa   : > { %254 = sbr.rel (%p1192_p6) target bundleno = 31 (0x1f), region = 40 }
  0x11   : > { %257 = sbr.rel (!%p1436_p4) target bundleno = 24 (0x18), region = 44  ;;  %s259_s15 = sand.u32 (%p1436_p4), 1, %s1352_s28  }
  0x12   : > { %s1217_s16 = sshll.u32 (%p1436_p4), %s1356_s29, 4  ;;  %s1254_s17 = smul.u32 (%p1436_p4), 48, %s259_s15 }
  0x13   : > { %s264_s20 = scalar_lea.vmem (%p1436_p4), %s1744_s0, %s1217_s16 }
  0x14   : > { %v277_v0 = vld [vmem:[%s264_s20] sm:$0xff] (%p1436_p4)  ;;  %v279_v1 = vld [vmem:[%s264_s20 + $0x8] sm:$0xff] (%p1436_p4)  ;;  %s261_s21 = scalar_lea.vmem (%p1436_p4), [#allocation2], %s1254_s17 }
  0x15   : > { %v281_v2 = vld [vmem:[%s264_s20 + $0x20] sm:$0xff] (%p1436_p4)  ;;  %v283_v3 = vld [vmem:[%s264_s20 + $0x28] sm:$0xff] (%p1436_p4)  ;;  %278 = vst [vmem:[%s261_s21] sm:$0xff] (%p1436_p4), %v277_v0  ;;  %280 = vst [vmem:[%s261_s21 + $0x8] sm:$0xff] (%p1436_p4), %v279_v1 }
  0x16   : > { %v285_v4 = vld [vmem:[%s264_s20 + $0x40] sm:$0xff] (%p1436_p4)  ;;  %v287_v5 = vld [vmem:[%s264_s20 + $0x48] sm:$0xff] (%p1436_p4)  ;;  %282 = vst [vmem:[%s261_s21 + $0x10] sm:$0xff] (%p1436_p4), %v281_v2  ;;  %284 = vst [vmem:[%s261_s21 + $0x18] sm:$0xff] (%p1436_p4), %v283_v3 }
  0x17   : > { %286 = vst [vmem:[%s261_s21 + $0x20] sm:$0xff] (%p1436_p4), %v285_v4  ;;  %288 = vst [vmem:[%s261_s21 + $0x28] sm:$0xff] (%p1436_p4), %v287_v5 }
  0x18 PF: > { %294 = sbr.rel (!%p1436_p4) target bundleno = 31 (0x1f), region = 67  ;;  %s296_s22 = sand.u32 (%p1436_p4), 1, %s1352_s28  }
  0x19   : > { %s1218_s23 = sshll.u32 (%p1436_p4), %s1356_s29, 4  ;;  %s1255_s24 = smul.u32 (%p1436_p4), 48, %s296_s22 }
  0x1a   : > { %s301_s10 = scalar_lea.vmem (%p1436_p4), %s1745_s1, %s1218_s23 }
  0x1b   : > { %v314_v6 = vld [vmem:[%s301_s10] sm:$0xff] (%p1436_p4)  ;;  %v316_v7 = vld [vmem:[%s301_s10 + $0x8] sm:$0xff] (%p1436_p4)  ;;  %s298_s11 = scalar_lea.vmem (%p1436_p4), [#allocation3], %s1255_s24 }
  0x1c   : > { %v318_v8 = vld [vmem:[%s301_s10 + $0x20] sm:$0xff] (%p1436_p4)  ;;  %v320_v9 = vld [vmem:[%s301_s10 + $0x28] sm:$0xff] (%p1436_p4)  ;;  %315 = vst [vmem:[%s298_s11] sm:$0xff] (%p1436_p4), %v314_v6  ;;  %317 = vst [vmem:[%s298_s11 + $0x8] sm:$0xff] (%p1436_p4), %v316_v7 }
  0x1d   : > { %v322_v10 = vld [vmem:[%s301_s10 + $0x40] sm:$0xff] (%p1436_p4)  ;;  %v324_v11 = vld [vmem:[%s301_s10 + $0x48] sm:$0xff] (%p1436_p4)  ;;  %319 = vst [vmem:[%s298_s11 + $0x10] sm:$0xff] (%p1436_p4), %v318_v8  ;;  %321 = vst [vmem:[%s298_s11 + $0x18] sm:$0xff] (%p1436_p4), %v320_v9 }
  0x1e   : > { %323 = vst [vmem:[%s298_s11 + $0x20] sm:$0xff] (%p1436_p4), %v322_v10  ;;  %325 = vst [vmem:[%s298_s11 + $0x28] sm:$0xff] (%p1436_p4), %v324_v11 }
  0x1f PF: > { %p1197_p7 = scmp.ge.s32.totalorder %s1356_s29, 1  ;;  %p330_p8 = scmp.lt.s32.totalorder %s1356_s29, 3 }
  0x21   : > { %p331_p9 = pnand %p1197_p7, %p330_p8 }
  0x22   : > { %s337_s13 = sand.u32 (!%p331_p9), 1, %s1348_s27   ;;  %v1358_v12 = vmov (!%p331_p9), 0.0   ;;  %v392_v13 = vld [vmem:[%s1747_s3] sm:$0xff] (!%p331_p9)  ;;  %v1359_v14 = vmov (!%p331_p9), 0   ;;  %v394_v15 = vld [vmem:[%s1747_s3 + $0x10] sm:$0xf] (!%p331_p9) }
  0x23   : > { %334 = sbr.rel (%p331_p9) target bundleno = 610 (0x262), region = 90  ;;  %491 = vmatprep.mubr.f32.mxu0 (!%p331_p9), %v1358_v12  ;;  %772 = vmatprep.mubr.f32.mxu1 (!%p331_p9), %v1358_v12  ;;  %v393_v16 = vld [vmem:[%s1747_s3 + $0x8] sm:$0xff] (!%p331_p9)  ;;  %v669_v22 = vld [vmem:[%s1749_s5] sm:$0xff] (!%p331_p9)  ;;  %vm420_vm0 = vcmask (!%p331_p9), 1043456   ;;  %v671_v27 = vld [vmem:[%s1749_s5 + $0x10] sm:$0xf] (!%p331_p9) }
  0x24   : > { %s1462_s15 = smul.u32 (!%p331_p9), 48, %s337_s13  ;;  %1284 = vset.pattern.permute.xlu0 (!%p331_p9), %v1359_v14  ;;  %1285 = vset.pattern.permute.xlu1 (!%p331_p9), %v1359_v14  ;;  %v670_v25 = vld [vmem:[%s1749_s5 + $0x8] sm:$0xff] (!%p331_p9)  ;;  %v383_v28 = vld [vmem:[%s1746_s2] sm:$0xff] (!%p331_p9)  ;;  %vm410_vm1 = vcmask (!%p331_p9), 162816   ;;  %v796_v32 = vld [vmem:[%s1751_s7 + $0x10] sm:$0xf] (!%p331_p9) }
  0x25   : > { %397 = vperm.xlu0 (!%p331_p9), %1284, %v392_v13   ;;  %407 = vperm.xlu1 (!%p331_p9), %1285, %v394_v15   ;;  %v794_v29 = vld [vmem:[%s1751_s7] sm:$0xff] (!%p331_p9)  ;;  %v795_v30 = vld [vmem:[%s1751_s7 + $0x8] sm:$0xff] (!%p331_p9)  ;;  %v385_v33 = vld [vmem:[%s1746_s2 + $0x10] sm:$0xf] (!%p331_p9) }
  0x26   : > { %s339_s21 = scalar_lea.vmem (!%p331_p9), [#allocation2], %s1462_s15  ;;  %v384_v31 = vld [vmem:[%s1746_s2 + $0x8] sm:$0xff] (!%p331_p9)  ;;  %s346_s25 = scalar_lea.vmem (!%p331_p9), [#allocation3], %s1462_s15 }
  0x27   : > { %v387_v17 = vld [vmem:[%s339_s21 + $0x8] sm:$0xff] (!%p331_p9)  ;;  %v389_v18 = vld [vmem:[%s339_s21 + $0x18] sm:$0xff] (!%p331_p9)  ;;  %v386_v19 = vld [vmem:[%s339_s21] sm:$0xff] (!%p331_p9)  ;;  %s1702_s23 = scalar_lea.vmem (!%p331_p9), [#allocation4], %s1462_s15 }
  0x28   : > { %v1220_v20 = vpack.c.bf16 (!%p331_p9), %v389_v18, %v387_v17  ;;  %v388_v21 = vld [vmem:[%s339_s21 + $0x10] sm:$0xff] (!%p331_p9)  ;;  %v391_v24 = vld [vmem:[%s339_s21 + $0x28] sm:$0xf] (!%p331_p9)  ;;  %v390_v26 = vld [vmem:[%s339_s21 + $0x20] sm:$0xf] (!%p331_p9) }
  0x29   : > { %v1222_v23 = vpack.c.bf16 (!%p331_p9), %v388_v21, %v386_v19  ;;  %402 = vperm.xlu0 (!%p331_p9), %1284, %v393_v16   ;;  %674 = vperm.xlu1 (!%p331_p9), %1285, %v669_v22  }
  0x2a   : > { %1221 = vmatprep.subr.bf16.mxu0 %v1220_v20  ;;  %s1219_s15 = sshll.u32 (%p1440_p5), %s1189_s30, 4 }
  0x2b   : > { %1223 = vmatpush1.bf16.msra.mxu0 %v1222_v23  ;;  %s1087_s26 = scalar_lea.vmem (%p1440_p5), %s1752_s8, %s1219_s15 }
  0x2c   : > { %1198 = vmatprep.subr.msk.mxu0 %vm420_vm0, %v391_v24 }
  0x2d   : > { %679 = vperm.xlu0 %1284, %v670_v25   ;;  %684 = vperm.xlu1 %1285, %v671_v27  }
  0x2f   : > { %1199 = vmatpush1.msk.msra.mxu0 %vm420_vm0, %v390_v26 }
  0x30   : > { %1200 = vmatmul.mubr.msk.f32.vlgmr.msra.gmra.mrb[0].mxu0 %vm410_vm1, %v383_v28 }
  0x31   : > { %497 = vmatprep.mubr.f32.mxu0 %v1358_v12  ;;  %799 = vperm.xlu0 %1284, %v794_v29  }
  0x32   : > { %804 = vperm.xlu1 %1285, %v795_v30  }
  0x34   : > { %1201 = vmatmul.mubr.msk.f32.gmra.mrb[2].mxu0 %vm410_vm1, %v384_v31 }
  0x35   : > { %503 = vmatprep.mubr.f32.mxu0 %v1358_v12  ;;  %809 = vperm.xlu0 %1284, %v796_v32  }
  0x38   : > { %1202 = vmatmul.mubr.msk.f32.gmra.mrb[4].mxu0 %vm410_vm1, %v385_v33 }
  0x39   : > { %766 = vmatprep.mubr.f32.mxu0 %v1358_v12 }
  0xa4   : > { %v398_v34 = vpop.permute.xlu0 %397  ;;  %v408_v57 = vpop.permute.xlu1 %407 }
  0xa8   : > { %v403_v40 = vpop.permute.xlu0 %402 }
 0x103   : > { %v493_v35 = vpop.f32.mrb[0].mxu0 }
 0x104   : > { %v1511_v36 = vadd.f32 %v493_v35, %v398_v34  ;;  %v495_v37 = vpop.f32.mrb[1].mxu0 }
 0x105   : > { %v1513_v38 = vadd.f32 %v495_v37, %v398_v34 }
 0x106   : > { %v1516_v39 = vmul.f32 0.70710677, %v1511_v36 }
 0x107   : > { %v1519_v41 = vmul.f32 0.70710677, %v1513_v38  ;;  %v499_v42 = vpop.f32.mrb[2].mxu0 }
 0x108   : > { %v534_v43 = vand.u32 2147483647, %v1516_v39  ;;  %v1522_v44 = vadd.f32 %v499_v42, %v403_v40  ;;  %v501_v45 = vpop.f32.mrb[3].mxu0  ;;  %vm522_vm2 = vcmp.ge.f32.partialorder %v1516_v39, 0.0 }
 0x109   : > { %v535_v46 = vand.u32 2147483647, %v1519_v41  ;;  %v1525_v47 = vadd.f32 %v501_v45, %v403_v40  ;;  %vm523_vm3 = vcmp.ge.f32.partialorder %v1519_v41, 0.0 }
 0x10a   : > { %v540_v48 = vmul.f32 0.3275911, %v534_v43  ;;  %v1528_v50 = vmul.f32 0.70710677, %v1522_v44  ;;  %v612_v1 = vsub.f32 0.0, %v534_v43 }
 0x10b   : > { %v541_v49 = vmul.f32 0.3275911, %v535_v46  ;;  %v1531_v52 = vmul.f32 0.70710677, %v1525_v47  ;;  %v505_v53 = vpop.f32.mrb[4].mxu0  ;;  %v613_v5 = vsub.f32 0.0, %v535_v46 }
 0x10c   : > { %v546_v51 = vadd.f32 1.0, %v540_v48  ;;  %v536_v55 = vand.u32 2147483647, %v1528_v50  ;;  %v507_v56 = vpop.f32.mrb[5].mxu0  ;;  %v1535_v60 = vadd.f32 %v505_v53, %v408_v57  ;;  %v618_v8 = vmul.f32 %v612_v1, %v534_v43 }
 0x10d   : > { %v547_v54 = vadd.f32 1.0, %v541_v49  ;;  %v537_v59 = vand.u32 2147483647, %v1531_v52  ;;  %v1537_v62 = vadd.f32 %v507_v56, %v408_v57  ;;  %v619_v16 = vmul.f32 %v613_v5, %v535_v46 }
 0x10e   : > { %1286 = vrcp.f32 %v546_v51  ;;  %v542_v58 = vmul.f32 0.3275911, %v536_v55  ;;  %v1540_v0 = vmul.f32 0.70710677, %v1535_v60  ;;  %v614_v11 = vsub.f32 0.0, %v536_v55 }
 0x10f   : > { %1288 = vrcp.f32 %v547_v54  ;;  %v543_v63 = vmul.f32 0.3275911, %v537_v59  ;;  %v1543_v2 = vmul.f32 0.70710677, %v1537_v62  ;;  %v624_v20 = vmul.f32 1.442695, %v618_v8 }
 0x110   : > { %v548_v61 = vadd.f32 1.0, %v542_v58  ;;  %v538_v4 = vand.u32 2147483647, %v1540_v0  ;;  %v620_v22 = vmul.f32 %v614_v11, %v536_v55  ;;  %v615_v23 = vsub.f32 0.0, %v537_v59 }
 0x111   : > { %v549_v3 = vadd.f32 1.0, %v543_v63  ;;  %v539_v6 = vand.u32 2147483647, %v1543_v2  ;;  %v626_v26 = vmul.f32 1.442695, %v619_v16  ;;  %vm524_vm4 = vcmp.ge.f32.partialorder %v1528_v50, 0.0 }
 0x112   : > { %1290 = vrcp.f32 %v548_v61  ;;  %v544_v7 = vmul.f32 0.3275911, %v538_v4  ;;  %v616_v29 = vsub.f32 0.0, %v538_v4  ;;  %v628_v34 = vmul.f32 1.442695, %v620_v22 }
 0x113   : > { %1292 = vrcp.f32 %v549_v3  ;;  %v545_v9 = vmul.f32 0.3275911, %v539_v6  ;;  %v621_v35 = vmul.f32 %v615_v23, %v537_v59  ;;  %v617_v42 = vsub.f32 0.0, %v539_v6 }
 0x114   : > { %v550_v13 = vadd.f32 1.0, %v544_v7  ;;  %v622_v46 = vmul.f32 %v616_v29, %v538_v4  ;;  %vm525_vm5 = vcmp.ge.f32.partialorder %v1531_v52, 0.0  ;;  %vm526_vm6 = vcmp.ge.f32.partialorder %v1540_v0, 0.0 }
 0x115   : > { %v551_v17 = vadd.f32 1.0, %v545_v9  ;;  %v630_v55 = vmul.f32 1.442695, %v621_v35  ;;  %v623_v61 = vmul.f32 %v617_v42, %v539_v6  ;;  %vm527_vm7 = vcmp.ge.f32.partialorder %v1543_v2, 0.0 }
 0x116   : > { %1294 = vrcp.f32 %v550_v13  ;;  %v632_v3 = vmul.f32 1.442695, %v622_v46 }
 0x117   : > { %1296 = vrcp.f32 %v551_v17  ;;  %v634_v6 = vmul.f32 1.442695, %v623_v61 }
 0x118   : > { %v1287_v10 = vpop.eup %1286  ;;  %1298 = vpow2.f32 %v624_v20 }
 0x119   : > { %v1289_v14 = vpop.eup %1288  ;;  %v558_v15 = vmul.f32 1.0614054, %v1287_v10  ;;  %1300 = vpow2.f32 %v626_v26 }
 0x11a   : > { %v559_v18 = vmul.f32 1.0614054, %v1289_v14  ;;  %1302 = vpow2.f32 %v628_v34 }
 0x11b   : > { %v564_v19 = vadd.f32 -1.4531521, %v558_v15  ;;  %1304 = vpow2.f32 %v630_v55 }
 0x11c   : > { %v565_v21 = vadd.f32 -1.4531521, %v559_v18  ;;  %v1547_v24 = vpop.eup %1290  ;;  %1306 = vpow2.f32 %v632_v3 }
 0x11d   : > { %v570_v25 = vmul.f32 %v1287_v10, %v564_v19  ;;  %v560_v28 = vmul.f32 1.0614054, %v1547_v24  ;;  %v1550_v31 = vpop.eup %1292  ;;  %1308 = vpow2.f32 %v634_v6 }
 0x11e   : > { %v571_v27 = vmul.f32 %v1289_v14, %v565_v21  ;;  %v561_v40 = vmul.f32 1.0614054, %v1550_v31 }
 0x11f   : > { %v576_v30 = vadd.f32 1.4214138, %v570_v25  ;;  %v566_v33 = vadd.f32 -1.4531521, %v560_v28 }
 0x120   : > { %v577_v32 = vadd.f32 1.4214138, %v571_v27  ;;  %v567_v49 = vadd.f32 -1.4531521, %v561_v40  ;;  %v1554_v51 = vpop.eup %1294 }
 0x121   : > { %v582_v37 = vmul.f32 %v1287_v10, %v576_v30  ;;  %v572_v45 = vmul.f32 %v1547_v24, %v566_v33  ;;  %v1556_v56 = vpop.eup %1296  ;;  %v562_v59 = vmul.f32 1.0614054, %v1554_v51  ;;  %v1360_v33 = vmov -1.0  }
 0x122   : > { %v583_v43 = vmul.f32 %v1289_v14, %v577_v32  ;;  %v573_v58 = vmul.f32 %v1550_v31, %v567_v49  ;;  %v563_v4 = vmul.f32 1.0614054, %v1556_v56  ;;  %v1299_v15 = vpop.eup %1298  ;;  %v528_v34 = vsel %vm522_vm2, 1.0, %v1360_v33 }
 0x123   : > { %v588_v48 = vadd.f32 -0.28449672, %v582_v37  ;;  %v578_v54 = vadd.f32 1.4214138, %v572_v45  ;;  %v568_v8 = vadd.f32 -1.4531521, %v562_v59  ;;  %v1301_v22 = vpop.eup %1300 }
 0x124   : > { %v589_v53 = vadd.f32 -0.28449672, %v583_v43  ;;  %v579_v7 = vadd.f32 1.4214138, %v573_v58  ;;  %v569_v13 = vadd.f32 -1.4531521, %v563_v4 }
 0x125   : > { %v594_v57 = vmul.f32 %v1287_v10, %v588_v48  ;;  %v584_v1 = vmul.f32 %v1547_v24, %v578_v54  ;;  %v574_v18 = vmul.f32 %v1554_v51, %v568_v8  ;;  %v529_v54 = vsel %vm523_vm3, 1.0, %v1360_v33 }
 0x126   : > { %v595_v63 = vmul.f32 %v1289_v14, %v589_v53  ;;  %v585_v17 = vmul.f32 %v1550_v31, %v579_v7  ;;  %v575_v21 = vmul.f32 %v1556_v56, %v569_v13  ;;  %v530_v41 = vsel %vm524_vm4, 1.0, %v1360_v33 }
 0x127   : > { %v600_v5 = vadd.f32 0.2548296, %v594_v57  ;;  %v590_v11 = vadd.f32 -0.28449672, %v584_v1  ;;  %v580_v26 = vadd.f32 1.4214138, %v574_v18 }
 0x128   : > { %v601_v9 = vadd.f32 0.2548296, %v595_v63  ;;  %v591_v25 = vadd.f32 -0.28449672, %v585_v17  ;;  %v531_v8 = vsel %vm525_vm5, 1.0, %v1360_v33 }
 0x129   : > { %v606_v16 = vmul.f32 %v1287_v10, %v600_v5  ;;  %v596_v20 = vmul.f32 %v1547_v24, %v590_v11  ;;  %v581_v10 = vadd.f32 1.4214138, %v575_v21  ;;  %v586_v32 = vmul.f32 %v1554_v51, %v580_v26 }
 0x12a   : > { %v607_v19 = vmul.f32 %v1289_v14, %v601_v9  ;;  %v597_v30 = vmul.f32 %v1550_v31, %v591_v25  ;;  %v1303_v14 = vpop.eup %1302  ;;  %v512_v5 = vmul.f32 0.5, %v1522_v44  ;;  %v513_v44 = vmul.f32 0.5, %v1525_v47  ;;  %v789_v47 = vld [vmem:[%s346_s25 + $0x8] sm:$0xff] }
 0x12b   : > { %v636_v23 = vmul.f32 %v1299_v15, %v606_v16  ;;  %v602_v28 = vadd.f32 0.2548296, %v596_v20  ;;  %v587_v35 = vmul.f32 %v1556_v56, %v581_v10  ;;  %v592_v42 = vadd.f32 -0.28449672, %v586_v32  ;;  %v1305_v53 = vpop.eup %1304  ;;  %v790_v32 = vld [vmem:[%s346_s25 + $0x10] sm:$0xff] }
 0x12c   : > { %v637_v27 = vmul.f32 %v1301_v22, %v607_v19  ;;  %v603_v40 = vadd.f32 0.2548296, %v597_v30  ;;  %v1307_v4 = vpop.eup %1306  ;;  %v514_v10 = vmul.f32 0.5, %v1535_v60  ;;  %v788_v30 = vld [vmem:[%s346_s25] sm:$0xff] }
 0x12d   : > { %v642_v29 = vsub.f32 1.0, %v636_v23  ;;  %v608_v39 = vmul.f32 %v1547_v24, %v602_v28  ;;  %v593_v46 = vadd.f32 -0.28449672, %v587_v35  ;;  %v598_v49 = vmul.f32 %v1554_v51, %v592_v42  ;;  %v1309_v11 = vpop.eup %1308  ;;  %v791_v28 = vld [vmem:[%s346_s25 + $0x18] sm:$0xff]  ;;  %v793_v35 = vld [vmem:[%s346_s25 + $0x28] sm:$0xf] }
 0x12e   : > { %v643_v37 = vsub.f32 1.0, %v637_v27  ;;  %v609_v48 = vmul.f32 %v1550_v31, %v603_v40  ;;  %v510_v31 = vmul.f32 0.5, %v1511_v36  ;;  %v533_v23 = vsel %vm527_vm7, 1.0, %v1360_v33  ;;  %v792_v40 = vld [vmem:[%s346_s25 + $0x20] sm:$0xf] }
 0x12f   : > { %v648_v43 = vmul.f32 %v642_v29, %v528_v34  ;;  %v638_v45 = vmul.f32 %v1303_v14, %v608_v39  ;;  %v599_v55 = vmul.f32 %v1556_v56, %v593_v46  ;;  %v604_v58 = vadd.f32 0.2548296, %v598_v49  ;;  %v667_v34 = vld [vmem:[%s1748_s4 + $0x8] sm:$0xff]  ;;  %v785_v42 = vld [vmem:[%s1750_s6] sm:$0xff]  ;;  %v675_v46 = vpop.permute.xlu1 %674 }
 0x130   : > { %v649_v57 = vmul.f32 %v643_v37, %v529_v54  ;;  %v639_v50 = vmul.f32 %v1305_v53, %v609_v48  ;;  %v515_v27 = vmul.f32 0.5, %v1537_v62  ;;  %v666_v62 = vld [vmem:[%s1748_s4] sm:$0xff]  ;;  %v1228_v39 = vpack.c.bf16 %v791_v28, %v789_v47  ;;  %v668_v37 = vld [vmem:[%s1748_s4 + $0x10] sm:$0xf]  ;;  %v680_v48 = vpop.permute.xlu0 %679 }
 0x131   : > { %v644_v24 = vsub.f32 1.0, %v638_v45  ;;  %v654_v59 = vadd.f32 1.0, %v648_v43  ;;  %v605_v63 = vadd.f32 0.2548296, %v599_v55  ;;  %v610_v3 = vmul.f32 %v1554_v51, %v604_v58  ;;  %v786_v43 = vld [vmem:[%s1750_s6 + $0x8] sm:$0xff] }
 0x132   : > { %v645_v1 = vsub.f32 1.0, %v639_v50  ;;  %v655_v52 = vadd.f32 1.0, %v649_v57  ;;  %v511_v51 = vmul.f32 0.5, %v1513_v38  ;;  %v1230_v60 = vpack.c.bf16 %v790_v32, %v788_v30  ;;  %v787_v45 = vld [vmem:[%s1750_s6 + $0x10] sm:$0xf] }
 0x133   : > { %v650_v61 = vmul.f32 %v644_v24, %v530_v41  ;;  %v611_v9 = vmul.f32 %v1556_v56, %v605_v63  ;;  %v640_v15 = vmul.f32 %v1307_v4, %v610_v3  ;;  %v660_v16 = vmul.f32 %v654_v59, %v510_v31  ;;  %v685_v54 = vpop.permute.xlu1 %684 }
 0x134   : > { %v651_v13 = vmul.f32 %v645_v1, %v531_v8  ;;  %v532_v56 = vsel %vm526_vm6, 1.0, %v1360_v33  ;;  %v661_v21 = vmul.f32 %v655_v52, %v511_v51  ;;  %v800_v55 = vpop.permute.xlu0 %799 }
 0x135   : > { %v656_v7 = vadd.f32 1.0, %v650_v61  ;;  %v641_v36 = vmul.f32 %v1309_v11, %v611_v9  ;;  %v646_v6 = vsub.f32 1.0, %v640_v15 }
 0x136   : > { %v657_v18 = vadd.f32 1.0, %v651_v13 }
 0x137   : > { %v662_v17 = vmul.f32 %v656_v7, %v512_v5  ;;  %v647_v20 = vsub.f32 1.0, %v641_v36  ;;  %v652_v0 = vmul.f32 %v646_v6, %v532_v56  ;;  %v805_v50 = vpop.permute.xlu1 %804 }
 0x138   : > { %v663_v22 = vmul.f32 %v657_v18, %v513_v44  ;;  %v1242_v31 = vadd.f32 %v805_v50, %v680_v48  ;;  %v810_v13 = vpop.permute.xlu0 %809 }
 0x139   : > { %v1226_v19 = vpack.c.bf16 %v662_v17, %v660_v16  ;;  %v653_v25 = vmul.f32 %v647_v20, %v533_v23  ;;  %v658_v2 = vadd.f32 1.0, %v652_v0 }
 0x13a   : > { %v1224_v26 = vpack.c.bf16 %v663_v22, %v661_v21 }
 0x13b   : > { %v659_v38 = vadd.f32 1.0, %v653_v25  ;;  %v664_v14 = vmul.f32 %v658_v2, %v514_v10 }
 0x13c   : > { %1225 = vmatprep.subr.bf16.mxu0 %v1224_v26  ;;  %1232 = vmatprep.subr.bf16.mxu1 %v1224_v26 }
 0x13d   : > { %v665_v29 = vmul.f32 %v659_v38, %v515_v27  ;;  %1227 = vmatpush1.bf16.msra.mxu0 %v1226_v19  ;;  %1234 = vmatpush1.bf16.msra.mxu1 %v1226_v19  ;;  %v1246_v19 = vadd.f32 %v810_v13, %v685_v54 }
 0x13f   : > { %1203 = vmatprep.subr.msk.mxu0 %vm420_vm0, %v665_v29  ;;  %1233 = vmatprep.subr.msk.mxu1 %vm420_vm0, %v665_v29 }
 0x141   : > { %1204 = vmatpush1.msk.msra.mxu0 %vm420_vm0, %v664_v14  ;;  %1235 = vmatpush1.msk.msra.mxu1 %vm420_vm0, %v664_v14 }
 0x142   : > { %1205 = vmatmul.mubr.msk.f32.vlgmr.msra.gmra.mrb[6].mxu0 %vm410_vm1, %v666_v62  ;;  %1206 = vmatmul.mubr.msk.f32.vlgmr.msra.gmra.mrb[0].mxu1 %vm410_vm1, %v667_v34 }
 0x143   : > { %1229 = vmatprep.subr.bf16.mxu1 %v1228_v39  ;;  %778 = vmatprep.mubr.f32.mxu1 %v1358_v12 }
 0x144   : > { %1231 = vmatpush1.bf16.msra.mxu1 %v1230_v60 }
 0x145   : > { %1208 = vmatprep.subr.msk.mxu1 %vm420_vm0, %v793_v35 }
 0x146   : > { %1207 = vmatmul.mubr.msk.f32.gmra.mrb[2].mxu1 %vm410_vm1, %v668_v37 }
 0x147   : > { %891 = vmatprep.mubr.f32.mxu1 %v1358_v12 }
 0x148   : > { %1209 = vmatpush1.msk.msra.mxu1 %vm420_vm0, %v792_v40 }
 0x14a   : > { %1210 = vmatmul.mubr.msk.f32.vlgmr.msra.gmra.mrb[4].mxu1 %vm410_vm1, %v785_v42 }
 0x14b   : > { %897 = vmatprep.mubr.f32.mxu1 %v1358_v12 }
 0x14e   : > { %1211 = vmatmul.mubr.msk.f32.gmra.mrb[0].mxu1 %vm410_vm1, %v786_v43 }
 0x14f   : > { %903 = vmatprep.mubr.f32.mxu1 %v1358_v12 }
 0x152   : > { %1212 = vmatmul.mubr.msk.f32.gmra.mrb[2].mxu1 %vm410_vm1, %v787_v45 }
 0x215   : > { %v768_v49 = vpop.f32.mrb[6].mxu0 }
 0x216   : > { %v770_v53 = vpop.f32.mrb[7].mxu0  ;;  %v769_v41 = vadd.f32 %v768_v49, %v675_v46 }
 0x217   : > { %v771_v24 = vadd.f32 %v770_v53, %v675_v46 }
 0x218   : > { %v1237_v57 = vadd.f32 %v800_v55, %v769_v41 }
 0x219   : > { %v1240_v59 = vadd.f32 %v800_v55, %v771_v24 }
 0x21d   : > { %v893_v58 = vpop.f32.mrb[4].mxu1 }
 0x21e   : > { %v1628_v61 = vadd.f32 %v1237_v57, %v893_v58  ;;  %v895_v12 = vpop.f32.mrb[5].mxu1 }
 0x21f   : > { %v1630_v63 = vadd.f32 %v1240_v59, %v895_v12 }
 0x220   : > { %v1633_v1 = vmul.f32 0.70710677, %v1628_v61 }
 0x221   : > { %v1636_v3 = vmul.f32 0.70710677, %v1630_v63  ;;  %v899_v4 = vpop.f32.mrb[0].mxu1 }
 0x222   : > { %v940_v5 = vand.u32 2147483647, %v1633_v1  ;;  %v1639_v7 = vadd.f32 %v1242_v31, %v899_v4  ;;  %v901_v8 = vpop.f32.mrb[1].mxu1  ;;  %vm928_vm8 = vcmp.ge.f32.partialorder %v1633_v1, 0.0 }
 0x223   : > { %v941_v9 = vand.u32 2147483647, %v1636_v3  ;;  %v1642_v11 = vadd.f32 %v1242_v31, %v901_v8  ;;  %vm929_vm9 = vcmp.ge.f32.partialorder %v1636_v3, 0.0 }
 0x224   : > { %v946_v52 = vmul.f32 0.3275911, %v940_v5  ;;  %v1645_v16 = vmul.f32 0.70710677, %v1639_v7  ;;  %v1018_v26 = vsub.f32 0.0, %v940_v5 }
 0x225   : > { %v947_v15 = vmul.f32 0.3275911, %v941_v9  ;;  %v1648_v36 = vmul.f32 0.70710677, %v1642_v11  ;;  %v905_v51 = vpop.f32.mrb[2].mxu1  ;;  %v1019_v47 = vsub.f32 0.0, %v941_v9 }
 0x226   : > { %v952_v17 = vadd.f32 1.0, %v946_v52  ;;  %v942_v18 = vand.u32 2147483647, %v1645_v16  ;;  %v907_v6 = vpop.f32.mrb[3].mxu1  ;;  %v1652_v21 = vadd.f32 %v1246_v19, %v905_v51  ;;  %v1024_v29 = vmul.f32 %v1018_v26, %v940_v5 }
 0x227   : > { %v953_v44 = vadd.f32 1.0, %v947_v15  ;;  %v943_v20 = vand.u32 2147483647, %v1648_v36  ;;  %v1654_v0 = vadd.f32 %v1246_v19, %v907_v6  ;;  %v1025_v60 = vmul.f32 %v1019_v47, %v941_v9 }
 0x228   : > { %1310 = vrcp.f32 %v952_v17  ;;  %v948_v56 = vmul.f32 0.3275911, %v942_v18  ;;  %v1657_v25 = vmul.f32 0.70710677, %v1652_v21  ;;  %v1020_v14 = vsub.f32 0.0, %v942_v18 }
 0x229   : > { %1312 = vrcp.f32 %v953_v44  ;;  %v949_v23 = vmul.f32 0.3275911, %v943_v20  ;;  %v1660_v2 = vmul.f32 0.70710677, %v1654_v0  ;;  %v1030_v42 = vmul.f32 1.442695, %v1024_v29 }
 0x22a   : > { %v954_v22 = vadd.f32 1.0, %v948_v56  ;;  %v944_v38 = vand.u32 2147483647, %v1657_v25  ;;  %v1026_v45 = vmul.f32 %v1020_v14, %v942_v18  ;;  %v1021_v46 = vsub.f32 0.0, %v943_v20 }
 0x22b   : > { %v955_v27 = vadd.f32 1.0, %v949_v23  ;;  %v945_v28 = vand.u32 2147483647, %v1660_v2  ;;  %v1032_v53 = vmul.f32 1.442695, %v1025_v60  ;;  %vm930_vm10 = vcmp.ge.f32.partialorder %v1645_v16, 0.0 }
 0x22c   : > { %1314 = vrcp.f32 %v954_v22  ;;  %v950_v10 = vmul.f32 0.3275911, %v944_v38  ;;  %v1022_v24 = vsub.f32 0.0, %v944_v38  ;;  %v1034_v59 = vmul.f32 1.442695, %v1026_v45 }
 0x22d   : > { %1316 = vrcp.f32 %v955_v27  ;;  %v951_v30 = vmul.f32 0.3275911, %v945_v28  ;;  %v1027_v12 = vmul.f32 %v1021_v46, %v943_v20  ;;  %v1023_v5 = vsub.f32 0.0, %v945_v28 }
 0x22e   : > { %v956_v62 = vadd.f32 1.0, %v950_v10  ;;  %v1028_v52 = vmul.f32 %v1022_v24, %v944_v38  ;;  %vm931_vm11 = vcmp.ge.f32.partialorder %v1648_v36, 0.0  ;;  %vm932_vm12 = vcmp.ge.f32.partialorder %v1657_v25, 0.0 }
 0x22f   : > { %v957_v35 = vadd.f32 1.0, %v951_v30  ;;  %v1036_v18 = vmul.f32 1.442695, %v1027_v12  ;;  %v1029_v22 = vmul.f32 %v1023_v5, %v945_v28  ;;  %v937_v36 = vsel %vm931_vm11, 1.0, %v1360_v33 }
 0x230   : > { %1318 = vrcp.f32 %v956_v62  ;;  %v1038_v27 = vmul.f32 1.442695, %v1028_v52  ;;  %vm933_vm13 = vcmp.ge.f32.partialorder %v1660_v2, 0.0 }
 0x231   : > { %1320 = vrcp.f32 %v957_v35  ;;  %v1040_v28 = vmul.f32 1.442695, %v1029_v22 }
 0x232   : > { %v1311_v32 = vpop.eup %1310  ;;  %1322 = vpow2.f32 %v1030_v42 }
 0x233   : > { %v1313_v34 = vpop.eup %1312  ;;  %v964_v39 = vmul.f32 1.0614054, %v1311_v32  ;;  %1324 = vpow2.f32 %v1032_v53 }
 0x234   : > { %v965_v37 = vmul.f32 1.0614054, %v1313_v34  ;;  %1326 = vpow2.f32 %v1034_v59 }
 0x235   : > { %v970_v40 = vadd.f32 -1.4531521, %v964_v39  ;;  %1328 = vpow2.f32 %v1036_v18 }
 0x236   : > { %v971_v43 = vadd.f32 -1.4531521, %v965_v37  ;;  %v1664_v48 = vpop.eup %1314  ;;  %1330 = vpow2.f32 %v1038_v27 }
 0x237   : > { %v976_v49 = vmul.f32 %v1311_v32, %v970_v40  ;;  %v966_v41 = vmul.f32 1.0614054, %v1664_v48  ;;  %v1667_v57 = vpop.eup %1316  ;;  %v934_v40 = vsel %vm928_vm8, 1.0, %v1360_v33  ;;  %1332 = vpow2.f32 %v1040_v28 }
 0x238   : > { %v977_v54 = vmul.f32 %v1313_v34, %v971_v43  ;;  %v967_v4 = vmul.f32 1.0614054, %v1667_v57  ;;  %v938_v28 = vsel %vm932_vm12, 1.0, %v1360_v33 }
 0x239   : > { %v982_v55 = vadd.f32 1.4214138, %v976_v49  ;;  %v972_v58 = vadd.f32 -1.4531521, %v966_v41 }
 0x23a   : > { %v983_v50 = vadd.f32 1.4214138, %v977_v54  ;;  %v973_v15 = vadd.f32 -1.4531521, %v967_v4  ;;  %v1672_v17 = vpop.eup %1318 }
 0x23b   : > { %v988_v31 = vmul.f32 %v1311_v32, %v982_v55  ;;  %v978_v9 = vmul.f32 %v1664_v48, %v972_v58  ;;  %v1674_v6 = vpop.eup %1320  ;;  %v968_v20 = vmul.f32 1.0614054, %v1672_v17  ;;  %v935_v58 = vsel %vm929_vm9, 1.0, %v1360_v33 }
 0x23c   : > { %v989_v8 = vmul.f32 %v1313_v34, %v983_v50  ;;  %v979_v56 = vmul.f32 %v1667_v57, %v973_v15  ;;  %v969_v38 = vmul.f32 1.0614054, %v1674_v6  ;;  %v1323_v39 = vpop.eup %1322 }
 0x23d   : > { %v994_v13 = vadd.f32 -0.28449672, %v988_v31  ;;  %v984_v44 = vadd.f32 1.4214138, %v978_v9  ;;  %v974_v29 = vadd.f32 -1.4531521, %v968_v20  ;;  %v1325_v46 = vpop.eup %1324 }
 0x23e   : > { %v995_v51 = vadd.f32 -0.28449672, %v989_v8  ;;  %v985_v10 = vadd.f32 1.4214138, %v979_v56  ;;  %v975_v62 = vadd.f32 -1.4531521, %v969_v38 }
 0x23f   : > { %v1000_v19 = vmul.f32 %v1311_v32, %v994_v13  ;;  %v990_v26 = vmul.f32 %v1664_v48, %v984_v44  ;;  %v980_v37 = vmul.f32 %v1672_v17, %v974_v29  ;;  %v916_v8 = vmul.f32 0.5, %v1628_v61 }
 0x240   : > { %v1001_v23 = vmul.f32 %v1313_v34, %v995_v51  ;;  %v991_v35 = vmul.f32 %v1667_v57, %v985_v10  ;;  %v981_v45 = vmul.f32 %v1674_v6, %v975_v62  ;;  %v917_v51 = vmul.f32 0.5, %v1630_v63 }
 0x241   : > { %v1006_v47 = vadd.f32 0.2548296, %v1000_v19  ;;  %v996_v14 = vadd.f32 -0.28449672, %v990_v26  ;;  %v936_v56 = vsel %vm930_vm10, 1.0, %v1360_v33  ;;  %v918_v10 = vmul.f32 0.5, %v1639_v7 }
 0x242   : > { %v1007_v30 = vadd.f32 0.2548296, %v1001_v23  ;;  %v997_v53 = vadd.f32 -0.28449672, %v991_v35  ;;  %v987_v24 = vadd.f32 1.4214138, %v981_v45 }
 0x243   : > { %v1012_v60 = vmul.f32 %v1311_v32, %v1006_v47  ;;  %v1002_v43 = vmul.f32 %v1664_v48, %v996_v14  ;;  %v986_v32 = vadd.f32 1.4214138, %v980_v37  ;;  %v919_v35 = vmul.f32 0.5, %v1642_v11 }
 0x244   : > { %v1013_v42 = vmul.f32 %v1313_v34, %v1007_v30  ;;  %v1003_v50 = vmul.f32 %v1667_v57, %v997_v53  ;;  %v1327_v34 = vpop.eup %1326  ;;  %v993_v3 = vmul.f32 %v1674_v6, %v987_v24  ;;  %v920_v45 = vmul.f32 0.5, %v1652_v21 }
 0x245   : > { %v1042_v49 = vmul.f32 %v1323_v39, %v1012_v60  ;;  %v1008_v41 = vadd.f32 0.2548296, %v1002_v43  ;;  %v992_v1 = vmul.f32 %v1672_v17, %v986_v32  ;;  %v1329_v18 = vpop.eup %1328  ;;  %v939_v43 = vsel %vm933_vm13, 1.0, %v1360_v33 }
 0x246   : > { %v1043_v54 = vmul.f32 %v1325_v46, %v1013_v42  ;;  %v1009_v4 = vadd.f32 0.2548296, %v1003_v50  ;;  %v999_v13 = vadd.f32 -0.28449672, %v993_v3  ;;  %v1331_v47 = vpop.eup %1330  ;;  %v921_v46 = vmul.f32 0.5, %v1654_v0 }
 0x247   : > { %v1048_v55 = vsub.f32 1.0, %v1042_v49  ;;  %v1014_v12 = vmul.f32 %v1664_v48, %v1008_v41  ;;  %v998_v5 = vadd.f32 -0.28449672, %v992_v1  ;;  %v1333_v14 = vpop.eup %1332 }
 0x248   : > { %v1049_v59 = vsub.f32 1.0, %v1043_v54  ;;  %v1015_v44 = vmul.f32 %v1667_v57, %v1009_v4  ;;  %v1005_v20 = vmul.f32 %v1674_v6, %v999_v13 }
 0x249   : > { %v1054_v31 = vmul.f32 %v1048_v55, %v934_v40  ;;  %v1044_v52 = vmul.f32 %v1327_v34, %v1014_v12  ;;  %v1004_v48 = vmul.f32 %v1672_v17, %v998_v5 }
 0x24a   : > { %v1055_v9 = vmul.f32 %v1049_v59, %v935_v58  ;;  %v1045_v61 = vmul.f32 %v1329_v18, %v1015_v44  ;;  %v1011_v38 = vadd.f32 0.2548296, %v1005_v20 }
 0x24b   : > { %v1060_v15 = vadd.f32 1.0, %v1054_v31  ;;  %v1050_v16 = vsub.f32 1.0, %v1044_v52  ;;  %v1010_v23 = vadd.f32 0.2548296, %v1004_v48 }
 0x24c   : > { %v1061_v19 = vadd.f32 1.0, %v1055_v9  ;;  %v1051_v63 = vsub.f32 1.0, %v1045_v61  ;;  %v1017_v30 = vmul.f32 %v1674_v6, %v1011_v38 }
 0x24d   : > { %v1066_v22 = vmul.f32 %v1060_v15, %v916_v8  ;;  %v1056_v27 = vmul.f32 %v1050_v16, %v936_v56  ;;  %v1016_v57 = vmul.f32 %v1672_v17, %v1010_v23 }
 0x24e   : > { %v1067_v26 = vmul.f32 %v1061_v19, %v917_v51  ;;  %v1057_v62 = vmul.f32 %v1051_v63, %v937_v36  ;;  %v1047_v17 = vmul.f32 %v1333_v14, %v1017_v30 }
 0x24f   : > { %1072 = vst [vmem:[%s1702_s23] sm:$0xff] %v1066_v22  ;;  %v1062_v29 = vadd.f32 1.0, %v1056_v27  ;;  %v1046_v39 = vmul.f32 %v1331_v47, %v1016_v57 }
 0x250   : > { %1073 = vst [vmem:[%s1702_s23 + $0x8] sm:$0xff] %v1067_v26  ;;  %v1063_v37 = vadd.f32 1.0, %v1057_v62  ;;  %v1053_v6 = vsub.f32 1.0, %v1047_v17 }
 0x251   : > { %v1068_v60 = vmul.f32 %v1062_v29, %v918_v10  ;;  %v1052_v7 = vsub.f32 1.0, %v1046_v39 }
 0x252   : > { %v1069_v40 = vmul.f32 %v1063_v37, %v919_v35  ;;  %v1059_v25 = vmul.f32 %v1053_v6, %v939_v43 }
 0x253   : > { %1074 = vst [vmem:[%s1702_s23 + $0x10] sm:$0xff] %v1068_v60  ;;  %v1058_v42 = vmul.f32 %v1052_v7, %v938_v28  ;;  %1084 = sbr.rel (!%p1440_p5) target bundleno = 610 (0x262), region = 102 }
 0x254   : > { %1075 = vst [vmem:[%s1702_s23 + $0x18] sm:$0xff] %v1069_v40  ;;  %v1065_v11 = vadd.f32 1.0, %v1059_v25 }
 0x255   : > { %v1064_v2 = vadd.f32 1.0, %v1058_v42 }
 0x256   : > { %v1071_v53 = vmul.f32 %v1065_v11, %v921_v46  ;;  %v1100_v33 = vld [vmem:[%s1702_s23] sm:$0xff] (%p1440_p5) }
 0x257   : > { %v1070_v49 = vmul.f32 %v1064_v2, %v920_v45  ;;  %v1102_v21 = vld [vmem:[%s1702_s23 + $0x8] sm:$0xff] (%p1440_p5)  ;;  %1101 = vst [vmem:[%s1087_s26] sm:$0xff] (%p1440_p5), %v1100_v33 }
 0x258   : > { %1077 = vst [vmem:[%s1702_s23 + $0x28] sm:$0xf] %v1071_v53  ;;  %1103 = vst [vmem:[%s1087_s26 + $0x8] sm:$0xff] (%p1440_p5), %v1102_v21 }
 0x259   : > { %1076 = vst [vmem:[%s1702_s23 + $0x20] sm:$0xf] %v1070_v49 }
 0x25a   : > { %v1104_v0 = vld [vmem:[%s1702_s23 + $0x10] sm:$0xff] }
 0x25b   : > { %v1106_v32 = vld [vmem:[%s1702_s23 + $0x18] sm:$0xff]  ;;  %1105 = vst [vmem:[%s1087_s26 + $0x20] sm:$0xff] %v1104_v0 }
 0x25c   : > { %1107 = vst [vmem:[%s1087_s26 + $0x28] sm:$0xff] %v1106_v32 }
 0x25f   : > { %v1110_v41 = vld [vmem:[%s1702_s23 + $0x28] sm:$0xff] }
 0x260   : > { %v1108_v54 = vld [vmem:[%s1702_s23 + $0x20] sm:$0xff]  ;;  %1111 = vst [vmem:[%s1087_s26 + $0x48] sm:$0xff] %v1110_v41 }
 0x261   : > { %1109 = vst [vmem:[%s1087_s26 + $0x40] sm:$0xff] %v1108_v54 }
 0x262 PF: > { %p15_p10 = scmp.ge.s32.totalorder %s1423_s9, 4   ;;  %s1755_s27 = smov %s1352_s28 }
 0x263   : > { %s1756_s28 = smov %s1434_s12  ;;  %s1757_s29 = smov %s1423_s9 }
 0x264   :  { %17 = sbr.rel (!%p15_p10) target bundleno = 2 (0x2), region = 164 }

// kernel: custom-call
= control target key start
LH: loop header
LB: loop body
LE: loop exit
PB: predicated region body
PF: predicated region fallthrough
CT: control target
= control target key end

     0   :  { %2 = vsyncpa [#allocation0], 0  ;;  %s61_s0 = inlined_call_operand.hbm [shape: c64[20,7,7], index: 0, kind: input, shape index: {}]   ;;  %s62_s1 = inlined_call_operand.vmem [shape: f32[20,7,7], index: 1, kind: output, shape index: {}]  }
   0x1   :  { %s3_s8 = sshll.u32 %s62_s1, 4  ;;  %s9_s11 = scalar_lea.hbm %s61_s0, 896  ;;  %s4_s8 = int_to_ptr.vmem [resolvable:$true] %s3_s8 }
   0x2   :  { %p10_p0 = scmp.ne.s32.totalorder %s61_s0, %s9_s11  ;;  %s11_s16 = scalar_lea.hbm %s61_s0, 1792 }
   0x3   :  { %p12_p1 = scmp.lt.u32.totalorder %s11_s16, %s9_s11  ;;  %p13_p2 = scmp.lt.u32.totalorder %s9_s11, %s61_s0 }
   0x5   :  { %p14_p3 = por %p13_p2, %p12_p1 }
   0x7   :  { %p15_p4 = pnand %p14_p3, %p10_p0 }
   0x9   :  { %18 = shalt.err (!%p15_p4)  }
   0xa   :  { %s19_s1 = scalar_lea.vmem %s4_s8, 896  ;;  %p24_p6 = scmp.lt.s32.totalorder %s4_s8, %s4_s8 }
   0xb   :  { %p20_p5 = scmp.ne.s32.totalorder %s4_s8, %s19_s1  ;;  %p25_p7 = scmp.lt.s32.totalorder %s19_s1, %s19_s1 }
   0xd   :  { %p26_p8 = por %p25_p7, %p24_p6 }
   0xf   :  { %p27_p9 = pnand %p26_p8, %p20_p5 }
  0x11   :  { %30 = shalt.err (!%p27_p9)  }
  0x12   :  { %6 = dma.hbm_to_vmem [thread:$0]  %s61_s0, 896, %s4_s8, [#allocation0] }
  0x13   :  { %31 = dma.done.wait [#allocation0], 896  }
  0x14   :  { %32 = vsyncadd [#allocation0], 4294966400 }
  0x15   :  { %8 = vsyncpa [#allocation0], 1 }

// kernel: custom-call.1
= control target key start
LH: loop header
LB: loop body
LE: loop exit
PB: predicated region body
PF: predicated region fallthrough
CT: control target
= control target key end

     0   :  { %s59_s0 = inlined_call_operand.hbm [shape: c64[20,7,7], index: 0, kind: input, shape index: {}]   ;;  %s60_s1 = inlined_call_operand.vmem [shape: f32[20,7,7], index: 1, kind: output, shape index: {}]  }
   0x1   :  { %s2_s8 = scalar_lea.hbm %s59_s0, 896 }
   0x2   :  { %3 = vsyncpa [#allocation0], 0  ;;  %s4_s11 = sshll.u32 %s60_s1, 4  ;;  %s34_s14 = scalar_lea.hbm %s59_s0, 1792  ;;  %s5_s11 = int_to_ptr.vmem [resolvable:$true] %s4_s11 }
   0x3   :  { %p11_p0 = scmp.ne.s32.totalorder %s2_s8, %s34_s14  ;;  %p13_p1 = scmp.lt.u32.totalorder %s2_s8, %s59_s0 }
   0x4   :  { %p14_p2 = scmp.lt.u32.totalorder %s34_s14, %s34_s14  ;;  %p16_p4 = scmp.lt.u32.totalorder %s34_s14, %s2_s8 }
   0x6   :  { %p15_p3 = por %p14_p2, %p13_p1 }
   0x8   :  { %p17_p5 = por %p16_p4, %p15_p3 }
   0xa   :  { %p18_p6 = pnand %p17_p5, %p11_p0 }
   0xc   :  { %21 = shalt.err (!%p18_p6)  }
   0xd   :  { %s22_s17 = scalar_lea.vmem %s5_s11, 896  ;;  %p27_p8 = scmp.lt.s32.totalorder %s5_s11, %s5_s11 }
   0xe   :  { %p23_p7 = scmp.ne.s32.totalorder %s5_s11, %s22_s17  ;;  %p28_p9 = scmp.lt.s32.totalorder %s22_s17, %s22_s17 }
  0x10   :  { %p29_p10 = por %p28_p9, %p27_p8 }
  0x12   :  { %p30_p11 = pnand %p29_p10, %p23_p7 }
  0x14   :  { %33 = shalt.err (!%p30_p11)  }
  0x15   :  { %7 = dma.hbm_to_vmem [thread:$0]  %s2_s8, 896, %s5_s11, [#allocation0] }
  0x16   :  { %35 = dma.done.wait [#allocation0], 896  }
  0x17   :  { %36 = vsyncadd [#allocation0], 4294966400 }
  0x18   :  { %9 = vsyncpa [#allocation0], 1 }

// kernel: custom-call.2
= control target key start
LH: loop header
LB: loop body
LE: loop exit
PB: predicated region body
PF: predicated region fallthrough
CT: control target
= control target key end

     0   :  { %2 = vsyncpa [#allocation0], 0  ;;  %s61_s0 = inlined_call_operand.hbm [shape: c64[20,4,4], index: 0, kind: input, shape index: {}]   ;;  %s62_s1 = inlined_call_operand.vmem [shape: f32[20,4,4], index: 1, kind: output, shape index: {}]  }
   0x1   :  { %s3_s8 = sshll.u32 %s62_s1, 4  ;;  %s9_s11 = scalar_lea.hbm %s61_s0, 256  ;;  %s4_s8 = int_to_ptr.vmem [resolvable:$true] %s3_s8 }
   0x2   :  { %p10_p0 = scmp.ne.s32.totalorder %s61_s0, %s9_s11  ;;  %s11_s16 = scalar_lea.hbm %s61_s0, 512 }
   0x3   :  { %p12_p1 = scmp.lt.u32.totalorder %s11_s16, %s9_s11  ;;  %p13_p2 = scmp.lt.u32.totalorder %s9_s11, %s61_s0 }
   0x5   :  { %p14_p3 = por %p13_p2, %p12_p1 }
   0x7   :  { %p15_p4 = pnand %p14_p3, %p10_p0 }
   0x9   :  { %18 = shalt.err (!%p15_p4)  }
   0xa   :  { %s19_s1 = scalar_lea.vmem %s4_s8, 256  ;;  %p24_p6 = scmp.lt.s32.totalorder %s4_s8, %s4_s8 }
   0xb   :  { %p20_p5 = scmp.ne.s32.totalorder %s4_s8, %s19_s1  ;;  %p25_p7 = scmp.lt.s32.totalorder %s19_s1, %s19_s1 }
   0xd   :  { %p26_p8 = por %p25_p7, %p24_p6 }
   0xf   :  { %p27_p9 = pnand %p26_p8, %p20_p5 }
  0x11   :  { %30 = shalt.err (!%p27_p9)  }
  0x12   :  { %6 = dma.hbm_to_vmem [thread:$0]  %s61_s0, 256, %s4_s8, [#allocation0] }
  0x13   :  { %31 = dma.done.wait [#allocation0], 256  }
  0x14   :  { %32 = vsyncadd [#allocation0], 4294967040 }
  0x15   :  { %8 = vsyncpa [#allocation0], 1 }

// kernel: custom-call.3
= control target key start
LH: loop header
LB: loop body
LE: loop exit
PB: predicated region body
PF: predicated region fallthrough
CT: control target
= control target key end

     0   :  { %s59_s0 = inlined_call_operand.hbm [shape: c64[20,4,4], index: 0, kind: input, shape index: {}]   ;;  %s60_s1 = inlined_call_operand.vmem [shape: f32[20,4,4], index: 1, kind: output, shape index: {}]  }
   0x1   :  { %s2_s8 = scalar_lea.hbm %s59_s0, 256 }
   0x2   :  { %3 = vsyncpa [#allocation0], 0  ;;  %s4_s11 = sshll.u32 %s60_s1, 4  ;;  %s34_s14 = scalar_lea.hbm %s59_s0, 512  ;;  %s5_s11 = int_to_ptr.vmem [resolvable:$true] %s4_s11 }
   0x3   :  { %p11_p0 = scmp.ne.s32.totalorder %s2_s8, %s34_s14  ;;  %p13_p1 = scmp.lt.u32.totalorder %s2_s8, %s59_s0 }
   0x4   :  { %p14_p2 = scmp.lt.u32.totalorder %s34_s14, %s34_s14  ;;  %p16_p4 = scmp.lt.u32.totalorder %s34_s14, %s2_s8 }
   0x6   :  { %p15_p3 = por %p14_p2, %p13_p1 }
   0x8   :  { %p17_p5 = por %p16_p4, %p15_p3 }
   0xa   :  { %p18_p6 = pnand %p17_p5, %p11_p0 }
   0xc   :  { %21 = shalt.err (!%p18_p6)  }
   0xd   :  { %s22_s17 = scalar_lea.vmem %s5_s11, 256  ;;  %p27_p8 = scmp.lt.s32.totalorder %s5_s11, %s5_s11 }
   0xe   :  { %p23_p7 = scmp.ne.s32.totalorder %s5_s11, %s22_s17  ;;  %p28_p9 = scmp.lt.s32.totalorder %s22_s17, %s22_s17 }
  0x10   :  { %p29_p10 = por %p28_p9, %p27_p8 }
  0x12   :  { %p30_p11 = pnand %p29_p10, %p23_p7 }
  0x14   :  { %33 = shalt.err (!%p30_p11)  }
  0x15   :  { %7 = dma.hbm_to_vmem [thread:$0]  %s2_s8, 256, %s5_s11, [#allocation0] }
  0x16   :  { %35 = dma.done.wait [#allocation0], 256  }
  0x17   :  { %36 = vsyncadd [#allocation0], 4294967040 }
  0x18   :  { %9 = vsyncpa [#allocation0], 1 }

// kernel: fno2d_forward.37
= control target key start
LH: loop header
LB: loop body
LE: loop exit
PB: predicated region body
PF: predicated region fallthrough
CT: control target
= control target key end

     0   :  { %s1946_s0 = inlined_call_operand.vmem [shape: f32[20,512], index: 0, kind: input, shape index: {}]   ;;  %s1947_s1 = inlined_call_operand.vmem [shape: f32[80,20], index: 1, kind: input, shape index: {}]   ;;  %s1948_s2 = inlined_call_operand.vmem [shape: f32[80,1], index: 2, kind: input, shape index: {}]   ;;  %s1949_s3 = inlined_call_operand.vmem [shape: f32[1,80], index: 3, kind: input, shape index: {}]   ;;  %s1950_s4 = inlined_call_operand.<no memory space> [shape: f32[1,1], index: 4, kind: input, shape index: {}]   ;;  %s1951_s5 = inlined_call_operand.vmem [shape: f32[1,512], index: 5, kind: output, shape index: {}]  }
   0x1   :  { %v10_v0 = vstv %s1950_s4 }
   0x2   :  { %11 = vst [vmem:[#allocation2] sm:$0x1] %v10_v0 }
   0x3   :  { %s1402_s20 = smov 0   ;;  %s1404_s21 = smov 0  }
   0x4   :  { %s1406_s22 = smov 0  }
   0x5 LB: > { %s1181_s4 = sadd.s32 4294967295, %s1363_s22   ;;  %s1419_s23 = sadd.s32 1, %s1363_s22   ;;  %s1363_s22 = sphi %s1406_s22, %s1984_s22   ;;  %s1359_s21 = sphi %s1404_s21, %s1983_s21   ;;  %s1355_s20 = sphi %s1402_s20, %s1982_s20  }
   0x6   : > { %s21_s24 = ssub.s32 %s1363_s22, %s1419_s23  ;;  %s24_s25 = sadd.s32 1, %s1359_s21 }
   0x7   : > { %p22_p0 = scmp.eq.s32.totalorder %s21_s24, 0  ;;  %p31_p1 = scmp.ne.s32.totalorder %s1359_s21, %s1355_s20 }
   0x8   : > { %p32_p2 = scmp.eq.s32.totalorder %s1363_s22, 0  ;;  %p1184_p4 = scmp.ge.s32.totalorder %s1363_s22, 2 }
   0x9   : > { %s1428_s26 = scalar_select %p22_p0, %s1359_s21, %s24_s25  }
   0xa   : > { %p33_p3 = por %p32_p2, %p31_p1  ;;  %179 = sbr.rel (%p1184_p4) target bundleno = 24 (0x18), region = 32 }
  0x11   : > { %182 = sbr.rel (!%p33_p3) target bundleno = 24 (0x18), region = 36  ;;  %s184_s27 = sand.u32 (%p33_p3), 1, %s1359_s21  }
  0x12   : > { %s1204_s28 = sshll.u32 (%p33_p3), %s1363_s22, 4  ;;  %s1229_s29 = smul.u32 (%p33_p3), 48, %s184_s27 }
  0x13   : > { %s189_s7 = scalar_lea.vmem (%p33_p3), %s1946_s0, %s1204_s28 }
  0x14   : > { %v202_v1 = vld [vmem:[%s189_s7] sm:$0xff] (%p33_p3)  ;;  %v204_v2 = vld [vmem:[%s189_s7 + $0x8] sm:$0xff] (%p33_p3)  ;;  %s186_s8 = scalar_lea.vmem (%p33_p3), [#allocation3], %s1229_s29 }
  0x15   : > { %v206_v3 = vld [vmem:[%s189_s7 + $0x20] sm:$0xff] (%p33_p3)  ;;  %v208_v4 = vld [vmem:[%s189_s7 + $0x28] sm:$0xff] (%p33_p3)  ;;  %203 = vst [vmem:[%s186_s8] sm:$0xff] (%p33_p3), %v202_v1  ;;  %205 = vst [vmem:[%s186_s8 + $0x8] sm:$0xff] (%p33_p3), %v204_v2 }
  0x16   : > { %v210_v5 = vld [vmem:[%s189_s7 + $0x40] sm:$0xff] (%p33_p3)  ;;  %v212_v6 = vld [vmem:[%s189_s7 + $0x48] sm:$0xff] (%p33_p3)  ;;  %207 = vst [vmem:[%s186_s8 + $0x10] sm:$0xff] (%p33_p3), %v206_v3  ;;  %209 = vst [vmem:[%s186_s8 + $0x18] sm:$0xff] (%p33_p3), %v208_v4 }
  0x17   : > { %211 = vst [vmem:[%s186_s8 + $0x20] sm:$0xff] (%p33_p3), %v210_v5  ;;  %213 = vst [vmem:[%s186_s8 + $0x28] sm:$0xff] (%p33_p3), %v212_v6 }
  0x18 PF: > { %p1187_p5 = scmp.ge.s32.totalorder %s1363_s22, 1  ;;  %p218_p6 = scmp.lt.s32.totalorder %s1363_s22, 3 }
  0x1a   : > { %p219_p7 = pnand %p1187_p5, %p218_p6 }
  0x1c   : > { %222 = sbr.rel (%p219_p7) target bundleno = 651 (0x28b), region = 59 }
  0x23   : > { %s225_s9 = sand.u32 1, %s1355_s20   ;;  %v1365_v7 = vmov 0.0   ;;  %v1366_v8 = vmov 0   ;;  %v273_v9 = vld [vmem:[%s1948_s2] sm:$0xff]  ;;  %vm364_vm0 = vcmask 1043456   ;;  %v274_v17 = vld [vmem:[%s1948_s2 + $0x8] sm:$0xff] }
  0x24   : > { %s1230_s10 = smul.u32 48, %s225_s9  ;;  %435 = vmatprep.mubr.f32.mxu0 %v1365_v7  ;;  %1095 = vmatprep.mubr.f32.mxu1 %v1365_v7  ;;  %v275_v18 = vld [vmem:[%s1948_s2 + $0x10] sm:$0xff]  ;;  %v276_v19 = vld [vmem:[%s1948_s2 + $0x18] sm:$0xff]  ;;  %v277_v21 = vld [vmem:[%s1948_s2 + $0x20] sm:$0xff]  ;;  %vm333_vm1 = vcmask 162816   ;;  %s1188_s12 = sshll.u32 %s1181_s4, 1 }
  0x25   : > { %1259 = vset.pattern.permute.xlu0 %v1366_v8  ;;  %1260 = vset.pattern.permute.xlu1 %v1366_v8  ;;  %v257_v22 = vld [vmem:[%s1947_s1] sm:$0xff]  ;;  %v278_v23 = vld [vmem:[%s1948_s2 + $0x28] sm:$0xff]  ;;  %v279_v24 = vld [vmem:[%s1948_s2 + $0x30] sm:$0xff]  ;;  %p253_p8 = scmp.lt.s32.totalorder %s1188_s12, 3 }
  0x26   : > { %s227_s13 = scalar_lea.vmem [#allocation3], %s1230_s10  ;;  %285 = vperm.xlu0 %1259, %v273_v9   ;;  %295 = vperm.xlu1 %1260, %v275_v18   ;;  %v258_v25 = vld [vmem:[%s1947_s1 + $0x8] sm:$0xff]  ;;  %v280_v26 = vld [vmem:[%s1948_s2 + $0x38] sm:$0xff]  ;;  %v281_v27 = vld [vmem:[%s1948_s2 + $0x40] sm:$0xff] }
  0x27   : > { %v268_v10 = vld [vmem:[%s227_s13 + $0x8] sm:$0xff]  ;;  %v270_v11 = vld [vmem:[%s227_s13 + $0x18] sm:$0xff]  ;;  %v267_v12 = vld [vmem:[%s227_s13] sm:$0xff]  ;;  %s1986_s12 = smov (!%p253_p8, %s1188_s12), 3 }
  0x28   : > { %v1205_v13 = vpack.c.bf16 %v270_v11, %v268_v10  ;;  %v269_v14 = vld [vmem:[%s227_s13 + $0x10] sm:$0xff]  ;;  %v272_v16 = vld [vmem:[%s227_s13 + $0x28] sm:$0xf]  ;;  %v271_v20 = vld [vmem:[%s227_s13 + $0x20] sm:$0xf]  ;;  %s255_s15 = scalar_lea.vmem %s1951_s5, %s1986_s12 }
  0x29   : > { %v1207_v15 = vpack.c.bf16 %v269_v14, %v267_v12  ;;  %v259_v28 = vld [vmem:[%s1947_s1 + $0x10] sm:$0xff]  ;;  %v282_v29 = vld [vmem:[%s1948_s2 + $0x48] sm:$0xff]  ;;  %v1017_v30 = vld [vmem:[#allocation2] sm:$0x1] }
  0x2a   : > { %1206 = vmatprep.subr.bf16.mxu0 %v1205_v13  ;;  %290 = vperm.xlu0 %1259, %v274_v17   ;;  %v260_v31 = vld [vmem:[%s1947_s1 + $0x18] sm:$0xff]  ;;  %v261_v32 = vld [vmem:[%s1947_s1 + $0x20] sm:$0xff]  ;;  %v262_v33 = vld [vmem:[%s1947_s1 + $0x28] sm:$0xff] }
  0x2b   : > { %1208 = vmatpush1.bf16.msra.mxu0 %v1207_v15  ;;  %300 = vperm.xlu1 %1260, %v276_v19   ;;  %v263_v34 = vld [vmem:[%s1947_s1 + $0x30] sm:$0xff]  ;;  %v264_v35 = vld [vmem:[%s1947_s1 + $0x38] sm:$0xff]  ;;  %v265_v36 = vld [vmem:[%s1947_s1 + $0x40] sm:$0xff] }
  0x2c   : > { %1189 = vmatprep.subr.msk.mxu0 %vm364_vm0, %v272_v16  ;;  %v266_v37 = vld [vmem:[%s1947_s1 + $0x48] sm:$0xff] }
  0x2e   : > { %305 = vperm.xlu0 %1259, %v277_v21  }
  0x2f   : > { %1190 = vmatpush1.msk.msra.mxu0 %vm364_vm0, %v271_v20  ;;  %310 = vperm.xlu1 %1260, %v278_v23  }
  0x30   : > { %1191 = vmatmul.mubr.msk.f32.vlgmr.msra.gmra.mrb[0].mxu0 %vm333_vm1, %v257_v22 }
  0x31   : > { %441 = vmatprep.mubr.f32.mxu0 %v1365_v7 }
  0x32   : > { %315 = vperm.xlu0 %1259, %v279_v24  }
  0x33   : > { %320 = vperm.xlu1 %1260, %v280_v26  }
  0x34   : > { %1192 = vmatmul.mubr.msk.f32.gmra.mrb[2].mxu0 %vm333_vm1, %v258_v25 }
  0x35   : > { %447 = vmatprep.mubr.f32.mxu0 %v1365_v7 }
  0x36   : > { %325 = vperm.xlu0 %1259, %v281_v27  }
  0x37   : > { %330 = vperm.xlu1 %1260, %v282_v29  }
  0x38   : > { %1193 = vmatmul.mubr.msk.f32.gmra.mrb[4].mxu0 %vm333_vm1, %v259_v28 }
  0x39   : > { %453 = vmatprep.mubr.f32.mxu0 %v1365_v7 }
  0x3a   : > { %1020 = vperm.xlu0 %1259, %v1017_v30  }
  0x3c   : > { %1194 = vmatmul.mubr.msk.f32.gmra.mrb[6].mxu0 %vm333_vm1, %v260_v31 }
  0x3d   : > { %459 = vmatprep.mubr.f32.mxu0 %v1365_v7 }
  0x40   : > { %1195 = vmatmul.mubr.msk.f32.gmra.mrb[8].mxu0 %vm333_vm1, %v261_v32 }
  0x41   : > { %465 = vmatprep.mubr.f32.mxu0 %v1365_v7 }
  0x44   : > { %1196 = vmatmul.mubr.msk.f32.gmra.mrb[10].mxu0 %vm333_vm1, %v262_v33 }
  0x45   : > { %471 = vmatprep.mubr.f32.mxu0 %v1365_v7 }
  0x48   : > { %1197 = vmatmul.mubr.msk.f32.gmra.mrb[12].mxu0 %vm333_vm1, %v263_v34 }
  0x49   : > { %477 = vmatprep.mubr.f32.mxu0 %v1365_v7 }
  0x4c   : > { %1198 = vmatmul.mubr.msk.f32.gmra.mrb[14].mxu0 %vm333_vm1, %v264_v35 }
  0x4d   : > { %483 = vmatprep.mubr.f32.mxu0 %v1365_v7 }
  0x50   : > { %1199 = vmatmul.mubr.msk.f32.gmra.mrb[16].mxu0 %vm333_vm1, %v265_v36 }
  0x51   : > { %489 = vmatprep.mubr.f32.mxu0 %v1365_v7 }
  0x54   : > { %1200 = vmatmul.mubr.msk.f32.gmra.mrb[18].mxu0 %vm333_vm1, %v266_v37 }
  0xa5   : > { %v286_v38 = vpop.permute.xlu0 %285  ;;  %v296_v61 = vpop.permute.xlu1 %295 }
  0xa9   : > { %v291_v44 = vpop.permute.xlu0 %290 }
  0xaa   : > { %v301_v16 = vpop.permute.xlu1 %300 }
 0x103   : > { %v437_v39 = vpop.f32.mrb[0].mxu0 }
 0x104   : > { %v1520_v40 = vadd.f32 %v437_v39, %v286_v38  ;;  %v439_v41 = vpop.f32.mrb[1].mxu0 }
 0x105   : > { %v440_v42 = vadd.f32 %v439_v41, %v286_v38  ;;  %v306_v41 = vpop.permute.xlu0 %305 }
 0x106   : > { %1959 = vst [vmem:[#allocation4_spill] sm:$0xff] %v1520_v40  ;;  %v1523_v43 = vmul.f32 0.70710677, %v1520_v40 }
 0x107   : > { %v1525_v45 = vmul.f32 0.70710677, %v440_v42  ;;  %v443_v46 = vpop.f32.mrb[2].mxu0  ;;  %v1538_v22 = vmul.f32 0.5, %v440_v42 }
 0x108   : > { %1960 = vst [vmem:[#allocation5_spill] sm:$0xff] %v1523_v43  ;;  %v576_v47 = vand.u32 2147483647, %v1523_v43  ;;  %v1528_v48 = vadd.f32 %v443_v46, %v291_v44  ;;  %v445_v49 = vpop.f32.mrb[3].mxu0 }
 0x109   : > { %v577_v50 = vand.u32 2147483647, %v1525_v45  ;;  %v446_v51 = vadd.f32 %v445_v49, %v291_v44  ;;  %1963 = vst [vmem:[#allocation8_spill] sm:$0xff] %v1538_v22  ;;  %v1954_v49 = vmov -1.0   ;;  %vm537_vm0 = vcmp.ge.f32.partialorder %v1525_v45, 0.0 }
 0x10a   : > { %1961 = vst [vmem:[#allocation6_spill] sm:$0xff] %v1528_v48  ;;  %v596_v52 = vmul.f32 0.3275911, %v576_v47  ;;  %v836_v53 = vsub.f32 0.0, %v576_v47  ;;  %v1532_v54 = vmul.f32 0.70710677, %v1528_v48 }
 0x10b   : > { %v597_v55 = vmul.f32 0.3275911, %v577_v50  ;;  %v837_v56 = vsub.f32 0.0, %v577_v50  ;;  %v1534_v57 = vmul.f32 0.70710677, %v446_v51  ;;  %v449_v62 = vpop.f32.mrb[4].mxu0 }
 0x10c   : > { %1962 = vst [vmem:[#allocation7_spill] sm:$0xff] %v1532_v54  ;;  %v616_v58 = vadd.f32 1.0, %v596_v52  ;;  %v856_v59 = vmul.f32 %v836_v53, %v576_v47  ;;  %v578_v60 = vand.u32 2147483647, %v1532_v54  ;;  %v451_v1 = vpop.f32.mrb[5].mxu0  ;;  %v450_v6 = vadd.f32 %v449_v62, %v296_v61 }
 0x10d   : > { %v617_v63 = vadd.f32 1.0, %v597_v55  ;;  %v857_v0 = vmul.f32 %v837_v56, %v577_v50  ;;  %v579_v5 = vand.u32 2147483647, %v1534_v57  ;;  %v452_v10 = vadd.f32 %v451_v1, %v296_v61 }
 0x10e   : > { %v876_v2 = vmul.f32 1.442695, %v856_v59  ;;  %v598_v3 = vmul.f32 0.3275911, %v578_v60  ;;  %v838_v4 = vsub.f32 0.0, %v578_v60  ;;  %1261 = vrcp.f32 %v616_v58 }
 0x10f   : > { %v455_v7 = vpop.f32.mrb[6].mxu0  ;;  %v878_v8 = vmul.f32 1.442695, %v857_v0  ;;  %1263 = vrcp.f32 %v617_v63  ;;  %v599_v13 = vmul.f32 0.3275911, %v579_v5  ;;  %v839_v14 = vsub.f32 0.0, %v579_v5 }
 0x110   : > { %v858_v9 = vmul.f32 %v838_v4, %v578_v60  ;;  %v457_v11 = vpop.f32.mrb[7].mxu0  ;;  %v618_v12 = vadd.f32 1.0, %v598_v3  ;;  %1265 = vpow2.f32 %v876_v2  ;;  %v520_v15 = vmul.f32 0.70710677, %v450_v6 }
 0x111   : > { %v859_v18 = vmul.f32 %v839_v14, %v579_v5  ;;  %v521_v19 = vmul.f32 0.70710677, %v452_v10  ;;  %v456_v20 = vadd.f32 %v455_v7, %v301_v16  ;;  %1267 = vpow2.f32 %v878_v8  ;;  %v311_v5 = vpop.permute.xlu1 %310 }
 0x112   : > { %v880_v17 = vmul.f32 1.442695, %v858_v9  ;;  %v1540_v23 = vmul.f32 0.5, %v446_v51  ;;  %v580_v24 = vand.u32 2147483647, %v520_v15  ;;  %1269 = vrcp.f32 %v618_v12 }
 0x113   : > { %v461_v21 = vpop.f32.mrb[8].mxu0  ;;  %v619_v26 = vadd.f32 1.0, %v599_v13  ;;  %v1542_v27 = vmul.f32 0.5, %v450_v6  ;;  %v458_v28 = vadd.f32 %v457_v11, %v301_v16  ;;  %v1544_v31 = vmul.f32 0.5, %v452_v10 }
 0x114   : > { %1964 = vst [vmem:[#allocation9_spill] sm:$0xff] %v1540_v23  ;;  %v463_v25 = vpop.f32.mrb[9].mxu0  ;;  %v600_v29 = vmul.f32 0.3275911, %v580_v24  ;;  %v840_v30 = vsub.f32 0.0, %v580_v24  ;;  %1271 = vpow2.f32 %v880_v17  ;;  %vm540_vm2 = vcmp.ge.f32.partialorder %v520_v15, 0.0 }
 0x115   : > { %v581_v32 = vand.u32 2147483647, %v521_v19  ;;  %v882_v33 = vmul.f32 1.442695, %v859_v18  ;;  %v522_v34 = vmul.f32 0.70710677, %v456_v20  ;;  %1273 = vrcp.f32 %v619_v26 }
 0x116   : > { %v620_v36 = vadd.f32 1.0, %v600_v29  ;;  %vm541_vm3 = vcmp.ge.f32.partialorder %v521_v19, 0.0  ;;  %v860_v42 = vmul.f32 %v840_v30, %v580_v24  ;;  %v523_v46 = vmul.f32 0.70710677, %v458_v28 }
 0x117   : > { %v467_v35 = vpop.f32.mrb[10].mxu0  ;;  %v601_v37 = vmul.f32 0.3275911, %v581_v32  ;;  %v841_v38 = vsub.f32 0.0, %v581_v32  ;;  %v582_v44 = vand.u32 2147483647, %v522_v34  ;;  %v462_v52 = vadd.f32 %v461_v21, %v306_v41 }
 0x118   : > { %v1546_v39 = vpop.f32.mrb[11].mxu0  ;;  %v1548_v47 = vpop.eup %1261  ;;  %v1551_v50 = vsel %vm540_vm2, 1.0, %v1954_v49  ;;  %1275 = vrcp.f32 %v620_v36  ;;  %v1557_v55 = vsel %vm541_vm3, 1.0, %v1954_v49  ;;  %v1563_v61 = vmul.f32 0.5, %v456_v20 }
 0x119   : > { %v621_v51 = vadd.f32 1.0, %v601_v37  ;;  %v1553_v53 = vpop.eup %1263  ;;  %1277 = vpow2.f32 %v882_v33  ;;  %v861_v56 = vmul.f32 %v841_v38, %v581_v32  ;;  %v602_v58 = vmul.f32 0.3275911, %v582_v44 }
 0x11a   : > { %v1561_v60 = vpop.eup %1265  ;;  %v842_v62 = vsub.f32 0.0, %v582_v44  ;;  %v1565_v63 = vmul.f32 0.5, %v458_v28  ;;  %v583_v0 = vand.u32 2147483647, %v523_v46  ;;  %v884_v2 = vmul.f32 1.442695, %v860_v42 }
 0x11b   : > { %v1559_v59 = vpop.f32.mrb[12].mxu0  ;;  %1965 = vst [vmem:[#allocation10_spill] sm:$0xff] %v1561_v60  ;;  %1279 = vrcp.f32 %v621_v51  ;;  %vm542_vm4 = vcmp.ge.f32.partialorder %v522_v34, 0.0  ;;  %v622_v3 = vadd.f32 1.0, %v602_v58  ;;  %v1569_v4 = vpop.eup %1267  ;;  %vm543_vm5 = vcmp.ge.f32.partialorder %v523_v46, 0.0 }
 0x11c   : > { %v1567_v1 = vpop.f32.mrb[13].mxu0  ;;  %1966 = vst [vmem:[#allocation11_spill] sm:$0xff] %v1569_v4  ;;  %v603_v6 = vmul.f32 0.3275911, %v583_v0  ;;  %v843_v7 = vsub.f32 0.0, %v583_v0  ;;  %v1571_v9 = vpop.eup %1269  ;;  %v464_v11 = vadd.f32 %v463_v25, %v306_v41  ;;  %v468_v12 = vadd.f32 %v467_v35, %v311_v5 }
 0x11d   : > { %v524_v8 = vmul.f32 0.70710677, %v462_v52  ;;  %1967 = vst [vmem:[#allocation12_spill] sm:$0xff] %v1571_v9  ;;  %v886_v10 = vmul.f32 1.442695, %v861_v56  ;;  %1281 = vrcp.f32 %v622_v3  ;;  %v1576_v14 = vsel %vm542_vm4, 1.0, %v1954_v49 }
 0x11e   : > { %v862_v15 = vmul.f32 %v842_v62, %v582_v44  ;;  %v623_v16 = vadd.f32 1.0, %v603_v6  ;;  %v1580_v19 = vpop.eup %1271  ;;  %1283 = vpow2.f32 %v884_v2  ;;  %v1584_v20 = vsel %vm543_vm5, 1.0, %v1954_v49 }
 0x11f   : > { %v1573_v13 = vpop.f32.mrb[14].mxu0  ;;  %v584_v17 = vand.u32 2147483647, %v524_v8  ;;  %1968 = vst [vmem:[#allocation13_spill] sm:$0xff] %v1580_v19  ;;  %vm544_vm6 = vcmp.ge.f32.partialorder %v524_v8, 0.0  ;;  %v863_v24 = vmul.f32 %v843_v7, %v583_v0  ;;  %v1586_v28 = vpop.eup %1273  ;;  %v1588_v29 = vmul.f32 0.5, %v462_v52 }
 0x120   : > { %v1578_v18 = vpop.f32.mrb[15].mxu0  ;;  %v525_v21 = vmul.f32 0.70710677, %v464_v11  ;;  %1285 = vrcp.f32 %v623_v16  ;;  %v526_v32 = vmul.f32 0.70710677, %v468_v12  ;;  %v1593_v35 = vsel %vm544_vm6, 1.0, %v1954_v49 }
 0x121   : > { %v604_v25 = vmul.f32 0.3275911, %v584_v17  ;;  %v844_v26 = vsub.f32 0.0, %v584_v17  ;;  %1287 = vpow2.f32 %v886_v10  ;;  %v888_v34 = vmul.f32 1.442695, %v862_v15 }
 0x122   : > { %v585_v30 = vand.u32 2147483647, %v525_v21  ;;  %v1590_v33 = vpop.eup %1275  ;;  %v1595_v37 = vmul.f32 0.5, %v464_v11  ;;  %v890_v52 = vmul.f32 1.442695, %v863_v24  ;;  %vm545_vm7 = vcmp.ge.f32.partialorder %v525_v21, 0.0 }
 0x123   : > { %v624_v36 = vadd.f32 1.0, %v604_v25  ;;  %v1597_v38 = vpop.f32.mrb[16].mxu0  ;;  %v1599_v41 = vpop.eup %1277  ;;  %v660_v42 = vmul.f32 1.0614054, %v1590_v33  ;;  %v864_v44 = vmul.f32 %v844_v26, %v584_v17  ;;  %v586_v56 = vand.u32 2147483647, %v526_v32 }
 0x124   : > { %1969 = vst [vmem:[#allocation14_spill] sm:$0xff] %v1599_v41  ;;  %v605_v46 = vmul.f32 0.3275911, %v585_v30  ;;  %v845_v51 = vsub.f32 0.0, %v585_v30  ;;  %v1602_v58 = vpop.f32.mrb[17].mxu0  ;;  %v470_v6 = vadd.f32 %v1546_v39, %v311_v5  ;;  %v1615_v25 = vmul.f32 0.5, %v468_v12 }
 0x125   : > { %1289 = vrcp.f32 %v624_v36  ;;  %v1604_v62 = vpop.eup %1279  ;;  %v680_v0 = vadd.f32 -1.4531521, %v660_v42  ;;  %v606_v10 = vmul.f32 0.3275911, %v586_v56  ;;  %v846_v11 = vsub.f32 0.0, %v586_v56 }
 0x126   : > { %v625_v2 = vadd.f32 1.0, %v605_v46  ;;  %v865_v3 = vmul.f32 %v845_v51, %v585_v30  ;;  %v661_v8 = vmul.f32 1.0614054, %v1604_v62  ;;  %1291 = vpow2.f32 %v888_v34 }
 0x127   : > { %v1607_v7 = vpop.f32.mrb[18].mxu0  ;;  %v1612_v16 = vpop.eup %1281  ;;  %v700_v17 = vmul.f32 %v1590_v33, %v680_v0  ;;  %v892_v24 = vmul.f32 1.442695, %v864_v44  ;;  %vm546_vm8 = vcmp.ge.f32.partialorder %v526_v32, 0.0  ;;  %v626_v5 = vadd.f32 1.0, %v606_v10 }
 0x128   : > { %v1610_v15 = vpop.f32.mrb[19].mxu0  ;;  %1293 = vrcp.f32 %v625_v2  ;;  %v681_v26 = vadd.f32 -1.4531521, %v661_v8  ;;  %v662_v39 = vmul.f32 1.0614054, %v1612_v16  ;;  %v1284_v30 = vpop.eup %1283  ;;  %v866_v44 = vmul.f32 %v846_v11, %v586_v56 }
 0x129   : > { %v720_v36 = vadd.f32 1.4214138, %v700_v17  ;;  %1295 = vpow2.f32 %v890_v52  ;;  %v894_v34 = vmul.f32 1.442695, %v865_v3  ;;  %v1618_v42 = vmul.f32 0.70710677, %v470_v6 }
 0x12a   : > { %v1620_v46 = vpop.eup %1285  ;;  %v701_v51 = vmul.f32 %v1604_v62, %v681_v26  ;;  %v682_v0 = vadd.f32 -1.4531521, %v662_v39  ;;  %1297 = vrcp.f32 %v626_v5  ;;  %v1627_v10 = vsel %vm545_vm7, 1.0, %v1954_v49 }
 0x12b   : > { %v1288_v12 = vpop.eup %1287  ;;  %v740_v2 = vmul.f32 %v1590_v33, %v720_v36  ;;  %v663_v8 = vmul.f32 1.0614054, %v1620_v46  ;;  %v587_v52 = vand.u32 2147483647, %v1618_v42  ;;  %v1633_v26 = vsel %vm546_vm8, 1.0, %v1954_v49 }
 0x12c   : > { %v721_v3 = vadd.f32 1.4214138, %v701_v51  ;;  %v702_v17 = vmul.f32 %v1612_v16, %v682_v0  ;;  %v1635_v39 = vmul.f32 0.5, %v470_v6  ;;  %1299 = vpow2.f32 %v892_v24  ;;  %v316_v0 = vpop.permute.xlu0 %315 }
 0x12d   : > { %v760_v56 = vadd.f32 -0.28449672, %v740_v2  ;;  %v683_v11 = vadd.f32 -1.4531521, %v663_v8  ;;  %v607_v5 = vmul.f32 0.3275911, %v587_v52  ;;  %1301 = vpow2.f32 %v894_v34 }
 0x12e   : > { %v741_v21 = vmul.f32 %v1604_v62, %v721_v3  ;;  %v722_v48 = vadd.f32 1.4214138, %v702_v17  ;;  %v896_v40 = vmul.f32 1.442695, %v866_v44  ;;  %vm547_vm9 = vcmp.ge.f32.partialorder %v1618_v42, 0.0 }
 0x12f   : > { %v1637_v36 = vpop.eup %1289  ;;  %v780_v51 = vmul.f32 %v1590_v33, %v760_v56  ;;  %v703_v32 = vmul.f32 %v1620_v46, %v683_v11  ;;  %v627_v6 = vadd.f32 1.0, %v607_v5  ;;  %v1646_v8 = vadd.f32 %v1559_v59, %v316_v0 }
 0x130   : > { %v664_v49 = vmul.f32 1.0614054, %v1637_v36  ;;  %v1292_v19 = vpop.eup %1291  ;;  %v761_v2 = vadd.f32 -0.28449672, %v741_v21  ;;  %v742_v24 = vmul.f32 %v1612_v16, %v722_v48  ;;  %v847_v60 = vsub.f32 0.0, %v587_v52 }
 0x131   : > { %v800_v34 = vadd.f32 0.2548296, %v780_v51  ;;  %v723_v44 = vadd.f32 1.4214138, %v703_v32  ;;  %1303 = vrcp.f32 %v627_v6  ;;  %v1659_v6 = vmul.f32 0.70710677, %v1646_v8 }
 0x132   : > { %v1648_v3 = vpop.eup %1293  ;;  %v684_v17 = vadd.f32 -1.4531521, %v664_v49  ;;  %v781_v56 = vmul.f32 %v1604_v62, %v761_v2  ;;  %v762_v11 = vadd.f32 -0.28449672, %v742_v24  ;;  %1305 = vpow2.f32 %v896_v40 }
 0x133   : > { %v665_v5 = vmul.f32 1.0614054, %v1648_v3  ;;  %v1296_v21 = vpop.eup %1295  ;;  %v820_v48 = vmul.f32 %v1590_v33, %v800_v34  ;;  %v743_v54 = vmul.f32 %v1620_v46, %v723_v44  ;;  %v867_v40 = vmul.f32 %v847_v60, %v587_v52 }
 0x134   : > { %v704_v59 = vmul.f32 %v1637_v36, %v684_v17  ;;  %v1655_v43 = vpop.eup %1297  ;;  %v801_v51 = vadd.f32 0.2548296, %v781_v56  ;;  %v782_v49 = vmul.f32 %v1612_v16, %v762_v11  ;;  %v1970_v41 = vmov -1.0  }
 0x135   : > { %v685_v32 = vadd.f32 -1.4531521, %v665_v5  ;;  %v920_v2 = vmul.f32 %v1284_v30, %v820_v48  ;;  %v763_v24 = vadd.f32 -0.28449672, %v743_v54  ;;  %v666_v22 = vmul.f32 1.0614054, %v1655_v43 }
 0x136   : > { %v724_v23 = vadd.f32 1.4214138, %v704_v59  ;;  %v821_v33 = vmul.f32 %v1604_v62, %v801_v51  ;;  %v802_v34 = vadd.f32 0.2548296, %v782_v49  ;;  %v1300_v17 = vpop.eup %1299  ;;  %v1669_v30 = vsel %vm547_vm9, 1.0, %v1970_v41 }
 0x137   : > { %v705_v44 = vmul.f32 %v1648_v3, %v685_v32  ;;  %v783_v56 = vmul.f32 %v1620_v46, %v763_v24  ;;  %v686_v5 = vadd.f32 -1.4531521, %v666_v22  ;;  %v1302_v54 = vpop.eup %1301  ;;  %v588_v51 = vand.u32 2147483647, %v1659_v6 }
 0x138   : > { %v744_v11 = vmul.f32 %v1637_v36, %v724_v23  ;;  %v921_v48 = vmul.f32 %v1288_v12, %v821_v33  ;;  %v822_v59 = vmul.f32 %v1612_v16, %v802_v34  ;;  %v940_v49 = vsub.f32 1.0, %v920_v2 }
 0x139   : > { %v725_v62 = vadd.f32 1.4214138, %v705_v44  ;;  %v803_v60 = vadd.f32 0.2548296, %v783_v56  ;;  %v706_v32 = vmul.f32 %v1655_v43, %v686_v5  ;;  %v898_v4 = vmul.f32 1.442695, %v867_v40 }
 0x13a   : > { %v764_v52 = vadd.f32 -0.28449672, %v744_v11  ;;  %v941_v24 = vsub.f32 1.0, %v921_v48  ;;  %v922_v23 = vmul.f32 %v1292_v19, %v822_v59  ;;  %v608_v33 = vmul.f32 0.3275911, %v588_v51 }
 0x13b   : > { %v745_v22 = vmul.f32 %v1648_v3, %v725_v62  ;;  %v1675_v42 = vpop.eup %1303  ;;  %v823_v9 = vmul.f32 %v1620_v46, %v803_v60  ;;  %v726_v16 = vadd.f32 1.4214138, %v706_v32  ;;  %v476_v56 = vadd.f32 %v1567_v1, %v316_v0 }
 0x13c   : > { %v784_v12 = vmul.f32 %v1637_v36, %v764_v52  ;;  %v942_v34 = vsub.f32 1.0, %v922_v23  ;;  %v667_v2 = vmul.f32 1.0614054, %v1675_v42  ;;  %v1306_v11 = vpop.eup %1305  ;;  %v960_v19 = vmul.f32 %v940_v49, %v1551_v50 }
 0x13d   : > { %v765_v44 = vadd.f32 -0.28449672, %v745_v22  ;;  %v923_v5 = vmul.f32 %v1296_v21, %v823_v9  ;;  %v746_v40 = vmul.f32 %v1655_v43, %v726_v16  ;;  %v961_v59 = vmul.f32 %v941_v24, %v1557_v55 }
 0x13e   : > { %v804_v48 = vadd.f32 0.2548296, %v784_v12  ;;  %v962_v46 = vmul.f32 %v942_v34, %v1576_v14  ;;  %v687_v60 = vadd.f32 -1.4531521, %v667_v2  ;;  %v628_v22 = vadd.f32 1.0, %v608_v33 }
 0x13f   : > { %v785_v62 = vmul.f32 %v1648_v3, %v765_v44  ;;  %v943_v52 = vsub.f32 1.0, %v923_v5  ;;  %v766_v23 = vadd.f32 -0.28449672, %v746_v40  ;;  %1307 = vpow2.f32 %v898_v4 }
 0x140   : > { %v824_v32 = vmul.f32 %v1637_v36, %v804_v48  ;;  %v707_v0 = vmul.f32 %v1675_v42, %v687_v60  ;;  %vm548_vm10 = vcmp.ge.f32.partialorder %v1659_v6, 0.0  ;;  %v980_v50 = vadd.f32 1.0, %v960_v19  ;;  %v321_v19 = vpop.permute.xlu1 %320 }
 0x141   : > { %v805_v1 = vadd.f32 0.2548296, %v785_v62  ;;  %v786_v55 = vmul.f32 %v1655_v43, %v766_v23  ;;  %1309 = vrcp.f32 %v628_v22  ;;  %v963_v14 = vmul.f32 %v943_v52, %v1584_v20 }
 0x142   : > { %v924_v9 = vmul.f32 %v1300_v17, %v824_v32  ;;  %v727_v49 = vadd.f32 1.4214138, %v707_v0  ;;  %v848_v24 = vsub.f32 0.0, %v588_v51  ;;  %v981_v36 = vadd.f32 1.0, %v961_v59 }
 0x143   : > { %v825_v21 = vmul.f32 %v1648_v3, %v805_v1  ;;  %v982_v12 = vadd.f32 1.0, %v962_v46  ;;  %v806_v33 = vadd.f32 0.2548296, %v786_v55  ;;  %v529_v2 = vmul.f32 0.70710677, %v476_v56 }
 0x144   : > { %v944_v16 = vsub.f32 1.0, %v924_v9  ;;  %v747_v4 = vmul.f32 %v1675_v42, %v727_v49  ;;  %v868_v44 = vmul.f32 %v848_v24, %v588_v51  ;;  %v1694_v17 = vmul.f32 %v980_v50, %v1542_v27 }
 0x145   : > { %v925_v34 = vmul.f32 %v1302_v54, %v825_v21  ;;  %v826_v5 = vmul.f32 %v1655_v43, %v806_v33  ;;  %v1698_v20 = vmul.f32 0.5, %v1646_v8  ;;  %v1703_v3 = vsel %vm548_vm10, 1.0, %v1970_v41 }
 0x146   : > { %v983_v48 = vadd.f32 1.0, %v963_v14  ;;  %v767_v40 = vadd.f32 -0.28449672, %v747_v4  ;;  %v480_v51 = vadd.f32 %v1573_v13, %v321_v19  ;;  %v1707_v59 = vmul.f32 %v981_v36, %v1544_v31 }
 0x147   : > { %v945_v54 = vsub.f32 1.0, %v925_v34  ;;  %v964_v27 = vmul.f32 %v944_v16, %v1593_v35  ;;  %v926_v46 = vmul.f32 %v1306_v11, %v826_v5  ;;  %v589_v43 = vand.u32 2147483647, %v529_v2 }
 0x148   : > { %v1711_v8 = vmul.f32 %v982_v12, %v1563_v61  ;;  %v787_v62 = vmul.f32 %v1675_v42, %v767_v40  ;;  %v900_v6 = vmul.f32 1.442695, %v868_v44  ;;  %vm549_vm11 = vcmp.ge.f32.partialorder %v529_v2, 0.0 }
 0x149   : > { %v965_v60 = vmul.f32 %v945_v54, %v1627_v10  ;;  %v946_v52 = vsub.f32 1.0, %v926_v46  ;;  %v609_v32 = vmul.f32 0.3275911, %v589_v43  ;;  %v849_v23 = vsub.f32 0.0, %v589_v43  ;;  %v1308_v13 = vpop.eup %1307  ;;  %v326_v10 = vpop.permute.xlu0 %325 }
 0x14a   : > { %v1716_v31 = vmul.f32 %v983_v48, %v1565_v63  ;;  %v807_v22 = vadd.f32 0.2548296, %v787_v62  ;;  %v1718_v35 = vmul.f32 0.5, %v476_v56  ;;  %v530_v11 = vmul.f32 0.70710677, %v480_v51 }
 0x14b   : > { %v1720_v1 = vpop.eup %1309  ;;  %v984_v61 = vadd.f32 1.0, %v964_v27  ;;  %v966_v0 = vmul.f32 %v946_v52, %v1633_v26  ;;  %v629_v50 = vadd.f32 1.0, %v609_v32  ;;  %v482_v9 = vadd.f32 %v1578_v18, %v321_v19 }
 0x14c   : > { %v827_v55 = vmul.f32 %v1675_v42, %v807_v22  ;;  %v668_v14 = vmul.f32 1.0614054, %v1720_v1  ;;  %1311 = vpow2.f32 %v900_v6  ;;  %v1728_v63 = vsel %vm549_vm11, 1.0, %v1970_v41 }
 0x14d   : > { %v985_v56 = vadd.f32 1.0, %v965_v60  ;;  %1313 = vrcp.f32 %v629_v50  ;;  %v869_v21 = vmul.f32 %v849_v23, %v589_v43  ;;  %v486_v49 = vadd.f32 %v1597_v38, %v326_v10 }
 0x14e   : > { %v927_v24 = vmul.f32 %v1308_v13, %v827_v55  ;;  %v688_v26 = vadd.f32 -1.4531521, %v668_v14  ;;  %v1731_v36 = vmul.f32 0.5, %v480_v51  ;;  %v590_v18 = vand.u32 2147483647, %v530_v11 }
 0x14f   : > { %v1734_v12 = vmul.f32 %v984_v61, %v1588_v29  ;;  %v986_v42 = vadd.f32 1.0, %v966_v0  ;;  %vm550_vm12 = vcmp.ge.f32.partialorder %v530_v11, 0.0  ;;  %v531_v16 = vmul.f32 0.70710677, %v482_v9  ;;  %v331_v61 = vpop.permute.xlu1 %330 }
 0x150   : > { %v947_v33 = vsub.f32 1.0, %v927_v24  ;;  %v708_v34 = vmul.f32 %v1720_v1, %v688_v26  ;;  %v610_v4 = vmul.f32 0.3275911, %v590_v18  ;;  %v850_v44 = vsub.f32 0.0, %v590_v18 }
 0x151   : > { %v1738_v2 = vmul.f32 %v985_v56, %v1595_v37  ;;  %v902_v38 = vmul.f32 1.442695, %v869_v21  ;;  %v591_v19 = vand.u32 2147483647, %v531_v16  ;;  %v532_v5 = vmul.f32 0.70710677, %v486_v49 }
 0x152   : > { %v967_v48 = vmul.f32 %v947_v33, %v1669_v30  ;;  %v728_v54 = vadd.f32 1.4214138, %v708_v34  ;;  %v630_v40 = vadd.f32 1.0, %v610_v4  ;;  %v870_v29 = vmul.f32 %v850_v44, %v590_v18 }
 0x153   : > { %v1742_v51 = vsel %vm550_vm12, 1.0, %v1970_v41  ;;  %v1744_v27 = vmul.f32 0.5, %v482_v9  ;;  %v611_v46 = vmul.f32 0.3275911, %v591_v19  ;;  %v851_v43 = vsub.f32 0.0, %v591_v19 }
 0x154   : > { %v1747_v62 = vmul.f32 %v986_v42, %v1615_v25  ;;  %v748_v37 = vmul.f32 %v1720_v1, %v728_v54  ;;  %1315 = vrcp.f32 %v630_v40  ;;  %v1751_v6 = vadd.f32 %v1602_v58, %v326_v10 }
 0x155   : > { %vm551_vm13 = vcmp.ge.f32.partialorder %v531_v16, 0.0  ;;  %v631_v30 = vadd.f32 1.0, %v611_v46  ;;  %v871_v60 = vmul.f32 %v851_v43, %v591_v19  ;;  %v592_v52 = vand.u32 2147483647, %v532_v5 }
 0x156   : > { %v1312_v32 = vpop.eup %1311  ;;  %v987_v23 = vadd.f32 1.0, %v967_v48  ;;  %v768_v13 = vadd.f32 -0.28449672, %v748_v37  ;;  %v904_v22 = vmul.f32 1.442695, %v870_v29  ;;  %vm552_vm14 = vcmp.ge.f32.partialorder %v532_v5, 0.0 }
 0x157   : > { %v1753_v11 = vpop.eup %1313  ;;  %1317 = vrcp.f32 %v631_v30  ;;  %v906_v25 = vmul.f32 1.442695, %v871_v60  ;;  %v612_v0 = vmul.f32 0.3275911, %v592_v52  ;;  %v852_v50 = vsub.f32 0.0, %v592_v52 }
 0x158   : > { %v788_v9 = vmul.f32 %v1720_v1, %v768_v13  ;;  %v669_v58 = vmul.f32 1.0614054, %v1753_v11  ;;  %v533_v10 = vmul.f32 0.70710677, %v1751_v6  ;;  %v492_v55 = vadd.f32 %v1607_v7, %v331_v61 }
 0x159   : > { %1319 = vpow2.f32 %v902_v38  ;;  %v1761_v14 = vsel %vm551_vm13, 1.0, %v1970_v41  ;;  %v1763_v56 = vmul.f32 0.5, %v486_v49  ;;  %v632_v21 = vadd.f32 1.0, %v612_v0 }
 0x15a   : > { %v808_v24 = vadd.f32 0.2548296, %v788_v9  ;;  %v689_v26 = vadd.f32 -1.4531521, %v669_v58  ;;  %1321 = vpow2.f32 %v904_v22  ;;  %v1767_v18 = vsel %vm552_vm14, 1.0, %v1970_v41 }
 0x15b   : > { %v1770_v42 = vmul.f32 %v987_v23, %v1635_v39  ;;  %1323 = vrcp.f32 %v632_v21  ;;  %v872_v7 = vmul.f32 %v852_v50, %v592_v52  ;;  %v593_v33 = vand.u32 2147483647, %v533_v10 }
 0x15c   : > { %v828_v16 = vmul.f32 %v1720_v1, %v808_v24  ;;  %v709_v34 = vmul.f32 %v1753_v11, %v689_v26  ;;  %1325 = vpow2.f32 %v906_v25  ;;  %v534_v49 = vmul.f32 0.70710677, %v492_v55 }
 0x15d   : > { %vm553_vm15 = vcmp.ge.f32.partialorder %v533_v10, 0.0  ;;  %v613_v4 = vmul.f32 0.3275911, %v593_v33  ;;  %v853_v44 = vsub.f32 0.0, %v593_v33  ;;  %v1775_v38 = vadd.f32 %v1610_v15, %v331_v61 }
 0x15e   : > { %v1777_v19 = vpop.eup %1315  ;;  %v928_v5 = vmul.f32 %v1312_v32, %v828_v16  ;;  %v729_v39 = vadd.f32 1.4214138, %v709_v34  ;;  %v1779_v48 = vmul.f32 0.5, %v492_v55  ;;  %v594_v54 = vand.u32 2147483647, %v534_v49 }
 0x15f   : > { %v670_v40 = vmul.f32 1.0614054, %v1777_v19  ;;  %v908_v1 = vmul.f32 1.442695, %v872_v7  ;;  %v633_v29 = vadd.f32 1.0, %v613_v4  ;;  %v873_v46 = vmul.f32 %v853_v44, %v593_v33 }
 0x160   : > { %v948_v43 = vsub.f32 1.0, %v928_v5  ;;  %v749_v37 = vmul.f32 %v1753_v11, %v729_v39  ;;  %v614_v30 = vmul.f32 0.3275911, %v594_v54  ;;  %v854_v15 = vsub.f32 0.0, %v594_v54 }
 0x161   : > { %v1784_v60 = vpop.eup %1317  ;;  %v690_v52 = vadd.f32 -1.4531521, %v670_v40  ;;  %v1788_v32 = vsel %vm553_vm15, 1.0, %v1970_v41  ;;  %1327 = vrcp.f32 %v633_v29  ;;  %v1791_v23 = vmul.f32 0.70710677, %v1775_v38 }
 0x162   : > { %v968_v13 = vmul.f32 %v948_v43, %v1703_v3  ;;  %v769_v22 = vadd.f32 -0.28449672, %v749_v37  ;;  %v671_v61 = vmul.f32 1.0614054, %v1784_v60  ;;  %v634_v25 = vadd.f32 1.0, %v614_v30 }
 0x163   : > { %v1320_v0 = vpop.eup %1319  ;;  %vm539_vm1 = vcmp.ge.f32.partialorder %v1534_v57, 0.0  ;;  %v710_v50 = vmul.f32 %v1777_v19, %v690_v52  ;;  %v910_v9 = vmul.f32 1.442695, %v873_v46  ;;  %vm554_vm2 = vcmp.ge.f32.partialorder %v534_v49, 0.0 }
 0x164   : > { %v874_v58 = vmul.f32 %v854_v15, %v594_v54  ;;  %v1322_v10 = vpop.eup %1321  ;;  %v988_v55 = vadd.f32 1.0, %v968_v13  ;;  %v789_v21 = vmul.f32 %v1753_v11, %v769_v22  ;;  %v691_v24 = vadd.f32 -1.4531521, %v671_v61 }
 0x165   : > { %1329 = vrcp.f32 %v634_v25  ;;  %v1798_v26 = vpop.eup %1323  ;;  %v730_v3 = vadd.f32 1.4214138, %v710_v50  ;;  %v595_v33 = vand.u32 2147483647, %v1791_v23  ;;  %v1213_v16 = vpack.c.bf16 %v1716_v31, %v1707_v59 }
 0x166   : > { %v912_v7 = vmul.f32 1.442695, %v874_v58  ;;  %v1803_v34 = vpop.eup %1325  ;;  %v809_v4 = vadd.f32 0.2548296, %v789_v21  ;;  %v711_v44 = vmul.f32 %v1784_v60, %v691_v24  ;;  %v672_v5 = vmul.f32 1.0614054, %v1798_v26 }
 0x167   : > { %1331 = vpow2.f32 %v908_v1  ;;  %v750_v39 = vmul.f32 %v1777_v19, %v730_v3  ;;  %v1810_v54 = vsel %vm554_vm2, 1.0, %v1970_v41  ;;  %v615_v40 = vmul.f32 0.3275911, %v595_v33 }
 0x168   : > { %1333 = vpow2.f32 %v910_v9  ;;  %v1813_v29 = vmul.f32 %v988_v55, %v1698_v20  ;;  %v829_v46 = vmul.f32 %v1753_v11, %v809_v4  ;;  %v731_v43 = vadd.f32 1.4214138, %v711_v44 }
 0x169   : > { %v692_v37 = vadd.f32 -1.4531521, %v672_v5  ;;  %v770_v30 = vadd.f32 -0.28449672, %v750_v39  ;;  %1335 = vpow2.f32 %v912_v7  ;;  %v635_v15 = vadd.f32 1.0, %v615_v40 }
 0x16a   : > { %v855_v52 = vsub.f32 0.0, %v595_v33  ;;  %v929_v1 = vmul.f32 %v1320_v0, %v829_v46  ;;  %v751_v13 = vmul.f32 %v1784_v60, %v731_v43  ;;  %v657_v49 = vmul.f32 1.0614054, %v1553_v53 }
 0x16b   : > { %v712_v22 = vmul.f32 %v1798_v26, %v692_v37  ;;  %v1819_v61 = vpop.eup %1327  ;;  %v790_v20 = vmul.f32 %v1777_v19, %v770_v30  ;;  %1337 = vrcp.f32 %v635_v15  ;;  %v1825_v11 = vsel %vm537_vm0, 1.0, %v1970_v41 }
 0x16c   : > { %v659_v25 = vmul.f32 1.0614054, %v1586_v28  ;;  %v949_v50 = vsub.f32 1.0, %v929_v1  ;;  %v771_v0 = vadd.f32 -0.28449672, %v751_v13  ;;  %v1215_v58 = vpack.c.bf16 %v1711_v8, %v1694_v17  ;;  %v1021_v17 = vpop.permute.xlu0 %1020 }
 0x16d   : > { %v732_v9 = vadd.f32 1.4214138, %v712_v22  ;;  %v810_v55 = vadd.f32 0.2548296, %v790_v20  ;;  %v673_v21 = vmul.f32 1.0614054, %v1819_v61  ;;  %v875_v24 = vmul.f32 %v855_v52, %v595_v33 }
 0x16e   : > { %v677_v3 = vadd.f32 -1.4531521, %v657_v49  ;;  %v791_v4 = vmul.f32 %v1784_v60, %v771_v0  ;;  %v1838_v44 = vsel %vm539_vm1, 1.0, %v1970_v41  ;;  %v679_v5 = vadd.f32 -1.4531521, %v659_v25 }
 0x16f   : > { %v1831_v7 = vpop.eup %1329  ;;  %v752_v45 = vmul.f32 %v1798_v26, %v732_v9  ;;  %v830_v39 = vmul.f32 %v1777_v19, %v810_v55  ;;  %v693_v40 = vadd.f32 -1.4531521, %v673_v21  ;;  %v969_v37 = vmul.f32 %v949_v50, %v1728_v63 }
 0x170   : > { %v674_v46 = vmul.f32 1.0614054, %v1831_v7  ;;  %v697_v33 = vmul.f32 %v1553_v53, %v677_v3  ;;  %v811_v30 = vadd.f32 0.2548296, %v791_v4  ;;  %v699_v52 = vmul.f32 %v1586_v28, %v679_v5 }
 0x171   : > { %v1332_v43 = vpop.eup %1331  ;;  %v772_v15 = vadd.f32 -0.28449672, %v752_v45  ;;  %v930_v13 = vmul.f32 %v1322_v10, %v830_v39  ;;  %v713_v57 = vmul.f32 %v1819_v61, %v693_v40  ;;  %v914_v25 = vmul.f32 1.442695, %v875_v24 }
 0x172   : > { %v1334_v1 = vpop.eup %1333  ;;  %v694_v22 = vadd.f32 -1.4531521, %v674_v46  ;;  %v717_v49 = vadd.f32 1.4214138, %v697_v33  ;;  %v831_v19 = vmul.f32 %v1784_v60, %v811_v30  ;;  %v719_v0 = vadd.f32 1.4214138, %v699_v52 }
 0x173   : > { %v792_v20 = vmul.f32 %v1798_v26, %v772_v15  ;;  %v1336_v9 = vpop.eup %1335  ;;  %v950_v55 = vsub.f32 1.0, %v930_v13  ;;  %v733_v21 = vadd.f32 1.4214138, %v713_v57  ;;  %v989_v3 = vadd.f32 1.0, %v969_v37 }
 0x174   : > { %v714_v63 = vmul.f32 %v1831_v7, %v694_v22  ;;  %v737_v50 = vmul.f32 %v1553_v53, %v717_v49  ;;  %v931_v10 = vmul.f32 %v1803_v34, %v831_v19  ;;  %v739_v45 = vmul.f32 %v1586_v28, %v719_v0 }
 0x175   : > { %v812_v4 = vadd.f32 0.2548296, %v792_v20  ;;  %v1852_v5 = vpop.eup %1337  ;;  %v970_v60 = vmul.f32 %v950_v55, %v1742_v51  ;;  %v753_v24 = vmul.f32 %v1819_v61, %v733_v21  ;;  %1339 = vpow2.f32 %v914_v25 }
 0x176   : > { %v734_v39 = vadd.f32 1.4214138, %v714_v63  ;;  %v757_v40 = vadd.f32 -0.28449672, %v737_v50  ;;  %v951_v46 = vsub.f32 1.0, %v931_v10  ;;  %v1865_v0 = vmul.f32 %v989_v3, %v1718_v35  ;;  %v1971_v50 = vld [vmem:[#allocation12_spill] sm:$0xff] }
 0x177   : > { %v832_v33 = vmul.f32 %v1798_v26, %v812_v4  ;;  %v675_v30 = vmul.f32 1.0614054, %v1852_v5  ;;  %v759_v15 = vadd.f32 -0.28449672, %v739_v45  ;;  %v773_v37 = vadd.f32 -0.28449672, %v753_v24 }
 0x178   : > { %v754_v34 = vmul.f32 %v1831_v7, %v734_v39  ;;  %v777_v52 = vmul.f32 %v1553_v53, %v757_v40  ;;  %v971_v13 = vmul.f32 %v951_v46, %v1761_v14  ;;  %v656_v26 = vmul.f32 1.0614054, %v1548_v47  ;;  %v1972_v3 = vld [vmem:[#allocation11_spill] sm:$0xff] }
 0x179   : > { %v932_v57 = vmul.f32 %v1332_v43, %v832_v33  ;;  %v695_v51 = vadd.f32 -1.4531521, %v675_v30  ;;  %v779_v22 = vmul.f32 %v1586_v28, %v759_v15  ;;  %v793_v49 = vmul.f32 %v1819_v61, %v773_v37  ;;  %v1973_v15 = vld [vmem:[#allocation14_spill] sm:$0xff] }
 0x17a   : > { %v774_v19 = vadd.f32 -0.28449672, %v754_v34  ;;  %v797_v20 = vadd.f32 0.2548296, %v777_v52  ;;  %v990_v55 = vadd.f32 1.0, %v970_v60  ;;  %v991_v4 = vadd.f32 1.0, %v971_v13 }
 0x17b   : > { %v715_v25 = vmul.f32 %v1852_v5, %v695_v51  ;;  %v799_v21 = vadd.f32 0.2548296, %v779_v22  ;;  %v813_v63 = vadd.f32 0.2548296, %v793_v49  ;;  %v658_v10 = vmul.f32 1.0614054, %v1971_v50 }
 0x17c   : > { %v794_v14 = vmul.f32 %v1831_v7, %v774_v19  ;;  %v817_v43 = vmul.f32 %v1553_v53, %v797_v20  ;;  %v952_v45 = vsub.f32 1.0, %v932_v57  ;;  %v676_v46 = vadd.f32 -1.4531521, %v656_v26 }
 0x17d   : > { %v735_v24 = vadd.f32 1.4214138, %v715_v25  ;;  %v819_v39 = vmul.f32 %v1586_v28, %v799_v21  ;;  %v833_v40 = vmul.f32 %v1819_v61, %v813_v63  ;;  %v1875_v33 = vmul.f32 %v990_v55, %v1731_v36 }
 0x17e   : > { %v814_v35 = vadd.f32 0.2548296, %v794_v14  ;;  %v917_v60 = vmul.f32 %v1972_v3, %v817_v43  ;;  %v678_v37 = vadd.f32 -1.4531521, %v658_v10  ;;  %v696_v28 = vmul.f32 %v1548_v47, %v676_v46 }
 0x17f   : > { %v755_v30 = vmul.f32 %v1852_v5, %v735_v24  ;;  %v919_v53 = vmul.f32 %v1973_v15, %v819_v39  ;;  %v933_v34 = vmul.f32 %v1334_v1, %v833_v40  ;;  %v1882_v61 = vmul.f32 %v991_v4, %v1744_v27  ;;  %v1340_v36 = vpop.eup %1339 }
 0x180   : > { %v834_v52 = vmul.f32 %v1831_v7, %v814_v35  ;;  %v937_v13 = vsub.f32 1.0, %v917_v60  ;;  %v698_v22 = vmul.f32 %v1971_v50, %v678_v37  ;;  %v972_v49 = vmul.f32 %v952_v45, %v1767_v18 }
 0x181   : > { %v775_v57 = vadd.f32 -0.28449672, %v755_v30  ;;  %v939_v51 = vsub.f32 1.0, %v919_v53  ;;  %v716_v26 = vadd.f32 1.4214138, %v696_v28  ;;  %v1217_v27 = vpack.c.bf16 %v1770_v42, %v1738_v2  ;;  %v1975_v42 = vld [vmem:[#allocation9_spill] sm:$0xff] }
 0x182   : > { %v934_v19 = vmul.f32 %v1336_v9, %v834_v52  ;;  %v957_v20 = vmul.f32 %v937_v13, %v1825_v11  ;;  %v718_v55 = vadd.f32 1.4214138, %v698_v22  ;;  %v953_v25 = vsub.f32 1.0, %v933_v34  ;;  %v1976_v13 = vld [vmem:[#allocation5_spill] sm:$0xff]  ;;  %v1977_v28 = vld [vmem:[#allocation7_spill] sm:$0xff] }
 0x183   : > { %v795_v1 = vmul.f32 %v1852_v5, %v775_v57  ;;  %v959_v7 = vmul.f32 %v939_v51, %v1838_v44  ;;  %v736_v14 = vmul.f32 %v1548_v47, %v716_v26  ;;  %v1219_v11 = vpack.c.bf16 %v1747_v62, %v1734_v12  ;;  %v1974_v44 = vld [vmem:[#allocation8_spill] sm:$0xff]  ;;  %v1979_v22 = vld [vmem:[#allocation13_spill] sm:$0xff] }
 0x184   : > { %v954_v21 = vsub.f32 1.0, %v934_v19  ;;  %v977_v63 = vadd.f32 1.0, %v957_v20  ;;  %v738_v18 = vmul.f32 %v1971_v50, %v718_v55  ;;  %v992_v9 = vadd.f32 1.0, %v972_v49 }
 0x185   : > { %v815_v43 = vadd.f32 0.2548296, %v795_v1  ;;  %v979_v10 = vadd.f32 1.0, %v959_v7  ;;  %v756_v24 = vadd.f32 -0.28449672, %v736_v14  ;;  %v1221_v35 = vpack.c.bf16 %v1882_v61, %v1865_v0 }
 0x186   : > { %v974_v4 = vmul.f32 %v954_v21, %v1810_v54  ;;  %v997_v45 = vmul.f32 %v977_v63, %v1974_v44  ;;  %v758_v40 = vadd.f32 -0.28449672, %v738_v18  ;;  %vm555_vm3 = vcmp.ge.f32.partialorder %v1791_v23, 0.0  ;;  %v1980_v21 = vld [vmem:[#allocation4_spill] sm:$0xff] }
 0x187   : > { %v835_v2 = vmul.f32 %v1852_v5, %v815_v43  ;;  %v999_v39 = vmul.f32 %v979_v10, %v1975_v42  ;;  %v776_v60 = vmul.f32 %v1548_v47, %v756_v24  ;;  %v1223_v12 = vpack.c.bf16 %v1875_v33, %v1813_v29 }
 0x188   : > { %v994_v3 = vadd.f32 1.0, %v974_v4  ;;  %v973_v62 = vmul.f32 %v953_v25, %v1788_v32  ;;  %v778_v5 = vmul.f32 %v1971_v50, %v758_v40  ;;  %v1012_v30 = vmul.f32 %v992_v9, %v1763_v56  ;;  %v1978_v56 = vld [vmem:[#allocation10_spill] sm:$0xff] }
 0x189   : > { %v935_v54 = vmul.f32 %v1340_v36, %v835_v2  ;;  %v1209_v46 = vpack.c.bf16 %v999_v39, %v997_v45  ;;  %v796_v53 = vadd.f32 0.2548296, %v776_v60  ;;  %v575_v23 = vsel %vm555_vm3, 1.0, %v1970_v41 }
 0x18a   : > { %v1014_v15 = vmul.f32 %v994_v3, %v1779_v48  ;;  %v798_v37 = vadd.f32 0.2548296, %v778_v5  ;;  %v993_v29 = vadd.f32 1.0, %v973_v62  ;;  %vm536_vm4 = vcmp.ge.f32.partialorder %v1976_v13, 0.0 }
 0x18b   : > { %v955_v0 = vsub.f32 1.0, %v935_v54  ;;  %1210 = vmatprep.subr.bf16.mxu1 %v1209_v46  ;;  %v816_v34 = vmul.f32 %v1548_v47, %v796_v53  ;;  %vm538_vm5 = vcmp.ge.f32.partialorder %v1977_v28, 0.0  ;;  %v513_v48 = vmul.f32 0.5, %v1751_v6  ;;  %v1981_v6 = vld [vmem:[#allocation6_spill] sm:$0xff] }
 0x18c   : > { %v1227_v52 = vpack.c.bf16 %v1014_v15, %v1012_v30  ;;  %v818_v32 = vmul.f32 %v1971_v50, %v798_v37  ;;  %v515_v57 = vmul.f32 0.5, %v1775_v38  ;;  %v556_v47 = vsel %vm536_vm4, 1.0, %v1970_v41 }
 0x18d   : > { %v975_v33 = vmul.f32 %v955_v0, %v575_v23  ;;  %v916_v61 = vmul.f32 %v1978_v56, %v816_v34  ;;  %v1013_v19 = vmul.f32 %v993_v29, %v513_v48  ;;  %v558_v50 = vsel %vm538_vm5, 1.0, %v1970_v41  ;;  %v1016_v41 = vld [vmem:[%s1949_s3] sm:$0x1] }
 0x18e   : > { %v918_v36 = vmul.f32 %v1979_v22, %v818_v32  ;;  %v496_v63 = vmul.f32 0.5, %v1980_v21  ;;  %v498_v14 = vmul.f32 0.5, %v1981_v6  ;;  %vm1027_vm6 = vcmask 654336  }
 0x18f   : > { %v995_v51 = vadd.f32 1.0, %v975_v33  ;;  %v936_v49 = vsub.f32 1.0, %v916_v61  ;;  %v1023_v9 = vlaneseq  ;;  %v1368_v31 = vmov 1966171168  }
 0x190   : > { %v938_v26 = vsub.f32 1.0, %v918_v36 }
 0x191   : > { %v1015_v20 = vmul.f32 %v995_v51, %v515_v57  ;;  %v956_v1 = vmul.f32 %v936_v49, %v556_v47  ;;  %v1024_v59 = vshrl.u32 %v1023_v9, 7  ;;  %vm1122_vm7 = vcmp.lt.s32.totalorder %v1023_v9, 256 }
 0x192   : > { %v958_v7 = vmul.f32 %v938_v26, %v558_v50 }
 0x193   : > { %v1225_v55 = vpack.c.bf16 %v1015_v20, %v1013_v19  ;;  %v976_v25 = vadd.f32 1.0, %v956_v1  ;;  %v1025_v4 = vsub.s32 0, %v1024_v59 }
 0x194   : > { %v978_v38 = vadd.f32 1.0, %v958_v7 }
 0x195   : > { %v996_v43 = vmul.f32 %v976_v25, %v496_v63 }
 0x196   : > { %v998_v10 = vmul.f32 %v978_v38, %v498_v14 }
 0x198   : > { %v1211_v18 = vpack.c.bf16 %v998_v10, %v996_v43 }
 0x19a   : > { %1212 = vmatpush1.bf16.msra.mxu1 %v1211_v18 }
 0x19b   : > { %1214 = vmatprep.subr.bf16.mxu1 %v1213_v16  ;;  %v1106_v16 = vunpack.c.l.s4 %v1368_v31 }
 0x19d   : > { %v1107_v8 = vunpack.c.0.s8 %v1106_v16 }
 0x19e   : > { %1216 = vmatpush1.bf16.msra.mxu1 %v1215_v58  ;;  %v1026_v58 = vrot.slane %v1021_v17, %v1025_v4 }
 0x19f   : > { %1218 = vmatprep.subr.bf16.mxu1 %v1217_v27  ;;  %v1110_v24 = vsub.s32 %v1107_v8, %v1024_v59 }
 0x1a2   : > { %1220 = vmatpush1.bf16.msra.mxu1 %v1219_v11 }
 0x1a3   : > { %1222 = vmatprep.subr.bf16.mxu1 %v1221_v35 }
 0x1a6   : > { %1224 = vmatpush1.bf16.msra.mxu1 %v1223_v12 }
 0x1a7   : > { %1226 = vmatprep.subr.bf16.mxu1 %v1225_v55 }
 0x1aa   : > { %1228 = vmatpush1.bf16.msra.mxu1 %v1227_v52 }
 0x1ad   : > { %1201 = vmatmul.mubr.msk.f32.vlgmr.msra.gmra.mrb[0].mxu1 %vm1027_vm6, %v1016_v41 }
 0x280   : > { %v1097_v27 = vpop.f32.mrb[0].mxu1 }
 0x281   : > { %v1098_v11 = vadd.f32 %v1097_v27, %v1026_v58  ;;  %v1099_v44 = vpop.f32.mrb[1].mxu1 }
 0x282   : > { %v1100_v45 = vadd.f32 %v1099_v44, %v1026_v58 }
 0x284   : > { %v1104_v2 = vcombine.low %v1098_v11, %v1100_v45 }
 0x286   : > { %v1111_v42 = vrot.slane %v1104_v2, %v1110_v24 }
 0x288   : > { %v1118_v39 = vrot.slane %v1111_v42, %v1110_v24 }
 0x28a   : > { %1124 = vst.msk [vmem:[%s255_s15] sm:$0x3] %vm1122_vm7, %v1118_v39 }
 0x28b PF: > { %p14_p9 = scmp.ge.s32.totalorder %s1419_s23, 4   ;;  %s1982_s20 = smov %s1359_s21 }
 0x28c   : > { %s1983_s21 = smov %s1428_s26  ;;  %s1984_s22 = smov %s1419_s23 }
 0x28d   :  { %16 = sbr.rel (!%p14_p9) target bundleno = 5 (0x5), region = 98 }

// kernel: fno2d_forward.36
= control target key start
LH: loop header
LB: loop body
LE: loop exit
PB: predicated region body
PF: predicated region fallthrough
CT: control target
= control target key end

     0   :  { %s1226_s27 = smov 0   ;;  %s1228_s28 = smov 0   ;;  %s1460_s0 = inlined_call_operand.vmem [shape: f32[20,512], index: 0, kind: input, shape index: {}]   ;;  %s1461_s1 = inlined_call_operand.vmem [shape: f32[20,512], index: 1, kind: input, shape index: {}]   ;;  %s1462_s2 = inlined_call_operand.vmem [shape: f32[20,20], index: 2, kind: input, shape index: {}]   ;;  %s1463_s3 = inlined_call_operand.vmem [shape: f32[20,1], index: 3, kind: input, shape index: {}]   ;;  %s1464_s4 = inlined_call_operand.vmem [shape: f32[20,20], index: 4, kind: input, shape index: {}]   ;;  %s1465_s5 = inlined_call_operand.vmem [shape: f32[20,1], index: 5, kind: input, shape index: {}]   ;;  %s1466_s6 = inlined_call_operand.vmem [shape: f32[20,20], index: 6, kind: input, shape index: {}]   ;;  %s1467_s7 = inlined_call_operand.vmem [shape: f32[20,1], index: 7, kind: input, shape index: {}]   ;;  %s1468_s8 = inlined_call_operand.vmem [shape: f32[20,512], index: 8, kind: output, shape index: {}]  }
   0x1   :  { %s1230_s29 = smov 0  }
   0x2 LB: > { %s1033_s30 = sadd.s32 4294967295, %s1176_s29   ;;  %s1243_s9 = sadd.s32 1, %s1176_s29   ;;  %s1176_s29 = sphi %s1230_s29, %s1473_s29   ;;  %s1172_s28 = sphi %s1228_s28, %s1472_s28   ;;  %s1168_s27 = sphi %s1226_s27, %s1471_s27  }
   0x3   : > { %s22_s10 = ssub.s32 %s1176_s29, %s1243_s9  ;;  %s25_s11 = sadd.s32 1, %s1172_s28 }
   0x4   : > { %p23_p0 = scmp.eq.s32.totalorder %s22_s10, 0  ;;  %p32_p1 = scmp.ne.s32.totalorder %s1172_s28, %s1168_s27 }
   0x5   : > { %p33_p2 = scmp.eq.s32.totalorder %s1176_s29, 0  ;;  %p214_p3 = scmp.eq.s32.totalorder %s1033_s30, 1 }
   0x6   : > { %s1254_s12 = scalar_select %p23_p0, %s1172_s28, %s25_s11  }
   0x7   : > { %p1256_p4 = por %p33_p2, %p32_p1  ;;  %p1260_p5 = por %p214_p3, %p32_p1 }
   0x8   : > { %p1036_p6 = scmp.ge.s32.totalorder %s1176_s29, 2 }
   0xa   : > { %254 = sbr.rel (%p1036_p6) target bundleno = 31 (0x1f), region = 40 }
  0x11   : > { %257 = sbr.rel (!%p1256_p4) target bundleno = 24 (0x18), region = 44  ;;  %s259_s15 = sand.u32 (%p1256_p4), 1, %s1172_s28  }
  0x12   : > { %s1061_s16 = sshll.u32 (%p1256_p4), %s1176_s29, 4  ;;  %s1098_s17 = smul.u32 (%p1256_p4), 48, %s259_s15 }
  0x13   : > { %s264_s20 = scalar_lea.vmem (%p1256_p4), %s1460_s0, %s1061_s16 }
  0x14   : > { %v277_v0 = vld [vmem:[%s264_s20] sm:$0xff] (%p1256_p4)  ;;  %v279_v1 = vld [vmem:[%s264_s20 + $0x8] sm:$0xff] (%p1256_p4)  ;;  %s261_s21 = scalar_lea.vmem (%p1256_p4), [#allocation2], %s1098_s17 }
  0x15   : > { %v281_v2 = vld [vmem:[%s264_s20 + $0x20] sm:$0xff] (%p1256_p4)  ;;  %v283_v3 = vld [vmem:[%s264_s20 + $0x28] sm:$0xff] (%p1256_p4)  ;;  %278 = vst [vmem:[%s261_s21] sm:$0xff] (%p1256_p4), %v277_v0  ;;  %280 = vst [vmem:[%s261_s21 + $0x8] sm:$0xff] (%p1256_p4), %v279_v1 }
  0x16   : > { %v285_v4 = vld [vmem:[%s264_s20 + $0x40] sm:$0xff] (%p1256_p4)  ;;  %v287_v5 = vld [vmem:[%s264_s20 + $0x48] sm:$0xff] (%p1256_p4)  ;;  %282 = vst [vmem:[%s261_s21 + $0x10] sm:$0xff] (%p1256_p4), %v281_v2  ;;  %284 = vst [vmem:[%s261_s21 + $0x18] sm:$0xff] (%p1256_p4), %v283_v3 }
  0x17   : > { %286 = vst [vmem:[%s261_s21 + $0x20] sm:$0xff] (%p1256_p4), %v285_v4  ;;  %288 = vst [vmem:[%s261_s21 + $0x28] sm:$0xff] (%p1256_p4), %v287_v5 }
  0x18 PF: > { %294 = sbr.rel (!%p1256_p4) target bundleno = 31 (0x1f), region = 67  ;;  %s296_s22 = sand.u32 (%p1256_p4), 1, %s1172_s28  }
  0x19   : > { %s1062_s23 = sshll.u32 (%p1256_p4), %s1176_s29, 4  ;;  %s1099_s24 = smul.u32 (%p1256_p4), 48, %s296_s22 }
  0x1a   : > { %s301_s10 = scalar_lea.vmem (%p1256_p4), %s1461_s1, %s1062_s23 }
  0x1b   : > { %v314_v6 = vld [vmem:[%s301_s10] sm:$0xff] (%p1256_p4)  ;;  %v316_v7 = vld [vmem:[%s301_s10 + $0x8] sm:$0xff] (%p1256_p4)  ;;  %s298_s11 = scalar_lea.vmem (%p1256_p4), [#allocation3], %s1099_s24 }
  0x1c   : > { %v318_v8 = vld [vmem:[%s301_s10 + $0x20] sm:$0xff] (%p1256_p4)  ;;  %v320_v9 = vld [vmem:[%s301_s10 + $0x28] sm:$0xff] (%p1256_p4)  ;;  %315 = vst [vmem:[%s298_s11] sm:$0xff] (%p1256_p4), %v314_v6  ;;  %317 = vst [vmem:[%s298_s11 + $0x8] sm:$0xff] (%p1256_p4), %v316_v7 }
  0x1d   : > { %v322_v10 = vld [vmem:[%s301_s10 + $0x40] sm:$0xff] (%p1256_p4)  ;;  %v324_v11 = vld [vmem:[%s301_s10 + $0x48] sm:$0xff] (%p1256_p4)  ;;  %319 = vst [vmem:[%s298_s11 + $0x10] sm:$0xff] (%p1256_p4), %v318_v8  ;;  %321 = vst [vmem:[%s298_s11 + $0x18] sm:$0xff] (%p1256_p4), %v320_v9 }
  0x1e   : > { %323 = vst [vmem:[%s298_s11 + $0x20] sm:$0xff] (%p1256_p4), %v322_v10  ;;  %325 = vst [vmem:[%s298_s11 + $0x28] sm:$0xff] (%p1256_p4), %v324_v11 }
  0x1f PF: > { %p1041_p7 = scmp.ge.s32.totalorder %s1176_s29, 1  ;;  %p330_p8 = scmp.lt.s32.totalorder %s1176_s29, 3 }
  0x21   : > { %p331_p9 = pnand %p1041_p7, %p330_p8 }
  0x22   : > { %s337_s13 = sand.u32 (!%p331_p9), 1, %s1168_s27   ;;  %v1178_v12 = vmov (!%p331_p9), 0.0   ;;  %v392_v13 = vld [vmem:[%s1463_s3] sm:$0xff] (!%p331_p9)  ;;  %v1179_v14 = vmov (!%p331_p9), 0   ;;  %v394_v15 = vld [vmem:[%s1463_s3 + $0x10] sm:$0xf] (!%p331_p9) }
  0x23   : > { %334 = sbr.rel (%p331_p9) target bundleno = 562 (0x232), region = 90  ;;  %491 = vmatprep.mubr.f32.mxu0 (!%p331_p9), %v1178_v12  ;;  %772 = vmatprep.mubr.f32.mxu1 (!%p331_p9), %v1178_v12  ;;  %v393_v16 = vld [vmem:[%s1463_s3 + $0x8] sm:$0xff] (!%p331_p9)  ;;  %v669_v22 = vld [vmem:[%s1465_s5] sm:$0xff] (!%p331_p9)  ;;  %vm420_vm0 = vcmask (!%p331_p9), 1043456   ;;  %v671_v27 = vld [vmem:[%s1465_s5 + $0x10] sm:$0xf] (!%p331_p9) }
  0x24   : > { %s1282_s15 = smul.u32 (!%p331_p9), 48, %s337_s13  ;;  %1128 = vset.pattern.permute.xlu0 (!%p331_p9), %v1179_v14  ;;  %1129 = vset.pattern.permute.xlu1 (!%p331_p9), %v1179_v14  ;;  %v670_v25 = vld [vmem:[%s1465_s5 + $0x8] sm:$0xff] (!%p331_p9)  ;;  %v383_v28 = vld [vmem:[%s1462_s2] sm:$0xff] (!%p331_p9)  ;;  %vm410_vm1 = vcmask (!%p331_p9), 162816   ;;  %v796_v32 = vld [vmem:[%s1467_s7 + $0x10] sm:$0xf] (!%p331_p9) }
  0x25   : > { %397 = vperm.xlu0 (!%p331_p9), %1128, %v392_v13   ;;  %407 = vperm.xlu1 (!%p331_p9), %1129, %v394_v15   ;;  %v794_v29 = vld [vmem:[%s1467_s7] sm:$0xff] (!%p331_p9)  ;;  %v795_v30 = vld [vmem:[%s1467_s7 + $0x8] sm:$0xff] (!%p331_p9)  ;;  %v385_v33 = vld [vmem:[%s1462_s2 + $0x10] sm:$0xf] (!%p331_p9) }
  0x26   : > { %s339_s21 = scalar_lea.vmem (!%p331_p9), [#allocation2], %s1282_s15  ;;  %v384_v31 = vld [vmem:[%s1462_s2 + $0x8] sm:$0xff] (!%p331_p9)  ;;  %s346_s25 = scalar_lea.vmem (!%p331_p9), [#allocation3], %s1282_s15 }
  0x27   : > { %v387_v17 = vld [vmem:[%s339_s21 + $0x8] sm:$0xff] (!%p331_p9)  ;;  %v389_v18 = vld [vmem:[%s339_s21 + $0x18] sm:$0xff] (!%p331_p9)  ;;  %v386_v19 = vld [vmem:[%s339_s21] sm:$0xff] (!%p331_p9)  ;;  %s379_s23 = scalar_lea.vmem (!%p331_p9), [#allocation4], %s1282_s15 }
  0x28   : > { %v1064_v20 = vpack.c.bf16 (!%p331_p9), %v389_v18, %v387_v17  ;;  %v388_v21 = vld [vmem:[%s339_s21 + $0x10] sm:$0xff] (!%p331_p9)  ;;  %v391_v24 = vld [vmem:[%s339_s21 + $0x28] sm:$0xf] (!%p331_p9)  ;;  %v390_v26 = vld [vmem:[%s339_s21 + $0x20] sm:$0xf] (!%p331_p9) }
  0x29   : > { %v1066_v23 = vpack.c.bf16 (!%p331_p9), %v388_v21, %v386_v19  ;;  %402 = vperm.xlu0 (!%p331_p9), %1128, %v393_v16   ;;  %674 = vperm.xlu1 (!%p331_p9), %1129, %v669_v22  }
  0x2a   : > { %1065 = vmatprep.subr.bf16.mxu0 %v1064_v20  ;;  %s1063_s15 = sshll.u32 (%p1260_p5), %s1033_s30, 4 }
  0x2b   : > { %1067 = vmatpush1.bf16.msra.mxu0 %v1066_v23  ;;  %s931_s26 = scalar_lea.vmem (%p1260_p5), %s1468_s8, %s1063_s15 }
  0x2c   : > { %1042 = vmatprep.subr.msk.mxu0 %vm420_vm0, %v391_v24 }
  0x2d   : > { %679 = vperm.xlu0 %1128, %v670_v25   ;;  %684 = vperm.xlu1 %1129, %v671_v27  }
  0x2f   : > { %1043 = vmatpush1.msk.msra.mxu0 %vm420_vm0, %v390_v26 }
  0x30   : > { %1044 = vmatmul.mubr.msk.f32.vlgmr.msra.gmra.mrb[0].mxu0 %vm410_vm1, %v383_v28 }
  0x31   : > { %497 = vmatprep.mubr.f32.mxu0 %v1178_v12  ;;  %799 = vperm.xlu0 %1128, %v794_v29  }
  0x32   : > { %804 = vperm.xlu1 %1129, %v795_v30  }
  0x34   : > { %1045 = vmatmul.mubr.msk.f32.gmra.mrb[2].mxu0 %vm410_vm1, %v384_v31 }
  0x35   : > { %503 = vmatprep.mubr.f32.mxu0 %v1178_v12  ;;  %809 = vperm.xlu0 %1128, %v796_v32  }
  0x38   : > { %1046 = vmatmul.mubr.msk.f32.gmra.mrb[4].mxu0 %vm410_vm1, %v385_v33 }
  0x39   : > { %766 = vmatprep.mubr.f32.mxu0 %v1178_v12 }
  0xa4   : > { %v398_v34 = vpop.permute.xlu0 %397  ;;  %v408_v57 = vpop.permute.xlu1 %407 }
  0xa8   : > { %v403_v40 = vpop.permute.xlu0 %402 }
 0x103   : > { %v493_v35 = vpop.f32.mrb[0].mxu0 }
 0x104   : > { %v1331_v36 = vadd.f32 %v493_v35, %v398_v34  ;;  %v495_v37 = vpop.f32.mrb[1].mxu0 }
 0x105   : > { %v1333_v38 = vadd.f32 %v495_v37, %v398_v34 }
 0x106   : > { %v1336_v39 = vmul.f32 0.70710677, %v1331_v36 }
 0x107   : > { %v1339_v41 = vmul.f32 0.70710677, %v1333_v38  ;;  %v499_v42 = vpop.f32.mrb[2].mxu0 }
 0x108   : > { %v534_v43 = vand.u32 2147483647, %v1336_v39  ;;  %v1342_v44 = vadd.f32 %v499_v42, %v403_v40  ;;  %v501_v45 = vpop.f32.mrb[3].mxu0  ;;  %vm522_vm2 = vcmp.ge.f32.partialorder %v1336_v39, 0.0 }
 0x109   : > { %v535_v46 = vand.u32 2147483647, %v1339_v41  ;;  %v1345_v47 = vadd.f32 %v501_v45, %v403_v40  ;;  %vm523_vm3 = vcmp.ge.f32.partialorder %v1339_v41, 0.0 }
 0x10a   : > { %v540_v48 = vmul.f32 0.3275911, %v534_v43  ;;  %v1348_v50 = vmul.f32 0.70710677, %v1342_v44  ;;  %v612_v1 = vsub.f32 0.0, %v534_v43 }
 0x10b   : > { %v541_v49 = vmul.f32 0.3275911, %v535_v46  ;;  %v1351_v52 = vmul.f32 0.70710677, %v1345_v47  ;;  %v505_v53 = vpop.f32.mrb[4].mxu0  ;;  %v613_v5 = vsub.f32 0.0, %v535_v46 }
 0x10c   : > { %v546_v51 = vadd.f32 1.0, %v540_v48  ;;  %v536_v55 = vand.u32 2147483647, %v1348_v50  ;;  %v507_v56 = vpop.f32.mrb[5].mxu0  ;;  %v1355_v60 = vadd.f32 %v505_v53, %v408_v57  ;;  %v618_v8 = vmul.f32 %v612_v1, %v534_v43 }
 0x10d   : > { %v547_v54 = vadd.f32 1.0, %v541_v49  ;;  %v537_v59 = vand.u32 2147483647, %v1351_v52  ;;  %v1357_v62 = vadd.f32 %v507_v56, %v408_v57  ;;  %v619_v16 = vmul.f32 %v613_v5, %v535_v46 }
 0x10e   : > { %1130 = vrcp.f32 %v546_v51  ;;  %v542_v58 = vmul.f32 0.3275911, %v536_v55  ;;  %v1360_v0 = vmul.f32 0.70710677, %v1355_v60  ;;  %v614_v11 = vsub.f32 0.0, %v536_v55 }
 0x10f   : > { %1132 = vrcp.f32 %v547_v54  ;;  %v543_v63 = vmul.f32 0.3275911, %v537_v59  ;;  %v1363_v2 = vmul.f32 0.70710677, %v1357_v62  ;;  %v624_v20 = vmul.f32 1.442695, %v618_v8 }
 0x110   : > { %v548_v61 = vadd.f32 1.0, %v542_v58  ;;  %v538_v4 = vand.u32 2147483647, %v1360_v0  ;;  %v620_v22 = vmul.f32 %v614_v11, %v536_v55  ;;  %v615_v23 = vsub.f32 0.0, %v537_v59 }
 0x111   : > { %v549_v3 = vadd.f32 1.0, %v543_v63  ;;  %v539_v6 = vand.u32 2147483647, %v1363_v2  ;;  %v626_v26 = vmul.f32 1.442695, %v619_v16  ;;  %vm524_vm4 = vcmp.ge.f32.partialorder %v1348_v50, 0.0 }
 0x112   : > { %1134 = vrcp.f32 %v548_v61  ;;  %v544_v7 = vmul.f32 0.3275911, %v538_v4  ;;  %v616_v29 = vsub.f32 0.0, %v538_v4  ;;  %v628_v34 = vmul.f32 1.442695, %v620_v22 }
 0x113   : > { %1136 = vrcp.f32 %v549_v3  ;;  %v545_v9 = vmul.f32 0.3275911, %v539_v6  ;;  %v621_v35 = vmul.f32 %v615_v23, %v537_v59  ;;  %v617_v42 = vsub.f32 0.0, %v539_v6 }
 0x114   : > { %v550_v13 = vadd.f32 1.0, %v544_v7  ;;  %v622_v46 = vmul.f32 %v616_v29, %v538_v4  ;;  %vm525_vm5 = vcmp.ge.f32.partialorder %v1351_v52, 0.0  ;;  %vm526_vm6 = vcmp.ge.f32.partialorder %v1360_v0, 0.0 }
 0x115   : > { %v551_v17 = vadd.f32 1.0, %v545_v9  ;;  %v630_v55 = vmul.f32 1.442695, %v621_v35  ;;  %v623_v61 = vmul.f32 %v617_v42, %v539_v6  ;;  %vm527_vm7 = vcmp.ge.f32.partialorder %v1363_v2, 0.0 }
 0x116   : > { %1138 = vrcp.f32 %v550_v13  ;;  %v632_v3 = vmul.f32 1.442695, %v622_v46  ;;  %v515_v2 = vmul.f32 0.5, %v1357_v62  ;;  %v666_v62 = vld [vmem:[%s1464_s4] sm:$0xff] }
 0x117   : > { %1140 = vrcp.f32 %v551_v17  ;;  %v634_v6 = vmul.f32 1.442695, %v623_v61 }
 0x118   : > { %v1131_v10 = vpop.eup %1130  ;;  %1142 = vpow2.f32 %v624_v20 }
 0x119   : > { %v1133_v14 = vpop.eup %1132  ;;  %v558_v15 = vmul.f32 1.0614054, %v1131_v10  ;;  %1144 = vpow2.f32 %v626_v26 }
 0x11a   : > { %v559_v18 = vmul.f32 1.0614054, %v1133_v14  ;;  %1146 = vpow2.f32 %v628_v34 }
 0x11b   : > { %v564_v19 = vadd.f32 -1.4531521, %v558_v15  ;;  %1148 = vpow2.f32 %v630_v55 }
 0x11c   : > { %v565_v21 = vadd.f32 -1.4531521, %v559_v18  ;;  %v1367_v24 = vpop.eup %1134  ;;  %1150 = vpow2.f32 %v632_v3 }
 0x11d   : > { %v570_v25 = vmul.f32 %v1131_v10, %v564_v19  ;;  %v560_v28 = vmul.f32 1.0614054, %v1367_v24  ;;  %v1370_v31 = vpop.eup %1136  ;;  %1152 = vpow2.f32 %v634_v6 }
 0x11e   : > { %v571_v27 = vmul.f32 %v1133_v14, %v565_v21  ;;  %v561_v40 = vmul.f32 1.0614054, %v1370_v31 }
 0x11f   : > { %v576_v30 = vadd.f32 1.4214138, %v570_v25  ;;  %v566_v33 = vadd.f32 -1.4531521, %v560_v28 }
 0x120   : > { %v577_v32 = vadd.f32 1.4214138, %v571_v27  ;;  %v567_v49 = vadd.f32 -1.4531521, %v561_v40  ;;  %v1374_v51 = vpop.eup %1138 }
 0x121   : > { %v582_v37 = vmul.f32 %v1131_v10, %v576_v30  ;;  %v572_v45 = vmul.f32 %v1367_v24, %v566_v33  ;;  %v1376_v56 = vpop.eup %1140  ;;  %v562_v59 = vmul.f32 1.0614054, %v1374_v51  ;;  %v1180_v33 = vmov -1.0  }
 0x122   : > { %v583_v43 = vmul.f32 %v1133_v14, %v577_v32  ;;  %v573_v58 = vmul.f32 %v1370_v31, %v567_v49  ;;  %v563_v4 = vmul.f32 1.0614054, %v1376_v56  ;;  %v1143_v15 = vpop.eup %1142  ;;  %v528_v34 = vsel %vm522_vm2, 1.0, %v1180_v33 }
 0x123   : > { %v588_v48 = vadd.f32 -0.28449672, %v582_v37  ;;  %v578_v54 = vadd.f32 1.4214138, %v572_v45  ;;  %v568_v8 = vadd.f32 -1.4531521, %v562_v59  ;;  %v1145_v22 = vpop.eup %1144 }
 0x124   : > { %v589_v53 = vadd.f32 -0.28449672, %v583_v43  ;;  %v579_v7 = vadd.f32 1.4214138, %v573_v58  ;;  %v569_v13 = vadd.f32 -1.4531521, %v563_v4 }
 0x125   : > { %v594_v57 = vmul.f32 %v1131_v10, %v588_v48  ;;  %v584_v1 = vmul.f32 %v1367_v24, %v578_v54  ;;  %v574_v18 = vmul.f32 %v1374_v51, %v568_v8  ;;  %v529_v54 = vsel %vm523_vm3, 1.0, %v1180_v33 }
 0x126   : > { %v595_v63 = vmul.f32 %v1133_v14, %v589_v53  ;;  %v585_v17 = vmul.f32 %v1370_v31, %v579_v7  ;;  %v575_v21 = vmul.f32 %v1376_v56, %v569_v13  ;;  %v530_v55 = vsel %vm524_vm4, 1.0, %v1180_v33 }
 0x127   : > { %v600_v5 = vadd.f32 0.2548296, %v594_v57  ;;  %v590_v11 = vadd.f32 -0.28449672, %v584_v1  ;;  %v580_v26 = vadd.f32 1.4214138, %v574_v18 }
 0x128   : > { %v601_v9 = vadd.f32 0.2548296, %v595_v63  ;;  %v591_v25 = vadd.f32 -0.28449672, %v585_v17  ;;  %v510_v1 = vmul.f32 0.5, %v1331_v36  ;;  %v531_v8 = vsel %vm525_vm5, 1.0, %v1180_v33 }
 0x129   : > { %v606_v16 = vmul.f32 %v1131_v10, %v600_v5  ;;  %v596_v20 = vmul.f32 %v1367_v24, %v590_v11  ;;  %v581_v10 = vadd.f32 1.4214138, %v575_v21  ;;  %v586_v32 = vmul.f32 %v1374_v51, %v580_v26 }
 0x12a   : > { %v607_v19 = vmul.f32 %v1133_v14, %v601_v9  ;;  %v597_v30 = vmul.f32 %v1370_v31, %v591_v25  ;;  %v1147_v14 = vpop.eup %1146  ;;  %v512_v5 = vmul.f32 0.5, %v1342_v44  ;;  %v513_v18 = vmul.f32 0.5, %v1345_v47  ;;  %v791_v47 = vld [vmem:[%s346_s25 + $0x18] sm:$0xff] }
 0x12b   : > { %v636_v23 = vmul.f32 %v1143_v15, %v606_v16  ;;  %v602_v28 = vadd.f32 0.2548296, %v596_v20  ;;  %v587_v35 = vmul.f32 %v1376_v56, %v581_v10  ;;  %v592_v42 = vadd.f32 -0.28449672, %v586_v32  ;;  %v1149_v53 = vpop.eup %1148  ;;  %v790_v32 = vld [vmem:[%s346_s25 + $0x10] sm:$0xff] }
 0x12c   : > { %v637_v27 = vmul.f32 %v1145_v22, %v607_v19  ;;  %v603_v40 = vadd.f32 0.2548296, %v597_v30  ;;  %v1151_v4 = vpop.eup %1150  ;;  %v533_v0 = vsel %vm527_vm7, 1.0, %v1180_v33  ;;  %v514_v10 = vmul.f32 0.5, %v1355_v60  ;;  %v788_v30 = vld [vmem:[%s346_s25] sm:$0xff] }
 0x12d   : > { %v642_v29 = vsub.f32 1.0, %v636_v23  ;;  %v608_v39 = vmul.f32 %v1367_v24, %v602_v28  ;;  %v593_v46 = vadd.f32 -0.28449672, %v587_v35  ;;  %v598_v49 = vmul.f32 %v1374_v51, %v592_v42  ;;  %v1153_v11 = vpop.eup %1152  ;;  %v668_v35 = vld [vmem:[%s1464_s4 + $0x10] sm:$0xf]  ;;  %v786_v42 = vld [vmem:[%s1466_s6 + $0x8] sm:$0xff] }
 0x12e   : > { %v643_v37 = vsub.f32 1.0, %v637_v27  ;;  %v609_v48 = vmul.f32 %v1370_v31, %v603_v40  ;;  %v1074_v60 = vpack.c.bf16 %v790_v32, %v788_v30  ;;  %v785_v40 = vld [vmem:[%s1466_s6] sm:$0xff] }
 0x12f   : > { %v648_v43 = vmul.f32 %v642_v29, %v528_v34  ;;  %v638_v45 = vmul.f32 %v1147_v14, %v608_v39  ;;  %v599_v24 = vmul.f32 %v1376_v56, %v593_v46  ;;  %v604_v50 = vadd.f32 0.2548296, %v598_v49  ;;  %v793_v39 = vld [vmem:[%s346_s25 + $0x28] sm:$0xf]  ;;  %v680_v46 = vpop.permute.xlu0 %679 }
 0x130   : > { %v649_v57 = vmul.f32 %v643_v37, %v529_v54  ;;  %v639_v58 = vmul.f32 %v1149_v53, %v609_v48  ;;  %v792_v37 = vld [vmem:[%s346_s25 + $0x20] sm:$0xf] }
 0x131   : > { %v644_v41 = vsub.f32 1.0, %v638_v45  ;;  %v654_v59 = vadd.f32 1.0, %v648_v43  ;;  %v605_v63 = vadd.f32 0.2548296, %v599_v24  ;;  %v610_v31 = vmul.f32 %v1374_v51, %v604_v50  ;;  %v787_v43 = vld [vmem:[%s1466_s6 + $0x10] sm:$0xf]  ;;  %v675_v45 = vpop.permute.xlu1 %674 }
 0x132   : > { %v645_v3 = vsub.f32 1.0, %v639_v58  ;;  %v655_v13 = vadd.f32 1.0, %v649_v57  ;;  %v511_v51 = vmul.f32 0.5, %v1333_v38  ;;  %v789_v38 = vld [vmem:[%s346_s25 + $0x8] sm:$0xff] }
 0x133   : > { %v650_v61 = vmul.f32 %v644_v41, %v530_v55  ;;  %v611_v9 = vmul.f32 %v1376_v56, %v605_v63  ;;  %v640_v15 = vmul.f32 %v1151_v4, %v610_v31  ;;  %v660_v16 = vmul.f32 %v654_v59, %v510_v1  ;;  %v800_v41 = vpop.permute.xlu0 %799 }
 0x134   : > { %v651_v52 = vmul.f32 %v645_v3, %v531_v8  ;;  %v532_v56 = vsel %vm526_vm6, 1.0, %v1180_v33  ;;  %v661_v21 = vmul.f32 %v655_v13, %v511_v51  ;;  %v667_v33 = vld [vmem:[%s1464_s4 + $0x8] sm:$0xff]  ;;  %v1072_v34 = vpack.c.bf16 %v791_v47, %v789_v38 }
 0x135   : > { %v656_v7 = vadd.f32 1.0, %v650_v61  ;;  %v641_v36 = vmul.f32 %v1153_v11, %v611_v9  ;;  %v646_v6 = vsub.f32 1.0, %v640_v15  ;;  %v685_v53 = vpop.permute.xlu1 %684 }
 0x136   : > { %v657_v44 = vadd.f32 1.0, %v651_v52 }
 0x137   : > { %v662_v17 = vmul.f32 %v656_v7, %v512_v5  ;;  %v647_v20 = vsub.f32 1.0, %v641_v36  ;;  %v652_v23 = vmul.f32 %v646_v6, %v532_v56  ;;  %v810_v1 = vpop.permute.xlu0 %809 }
 0x138   : > { %v663_v22 = vmul.f32 %v657_v44, %v513_v18  ;;  %v1090_v7 = vadd.f32 %v810_v1, %v685_v53 }
 0x139   : > { %v1070_v19 = vpack.c.bf16 %v662_v17, %v660_v16  ;;  %v653_v25 = vmul.f32 %v647_v20, %v533_v0  ;;  %v658_v27 = vadd.f32 1.0, %v652_v23  ;;  %v805_v57 = vpop.permute.xlu1 %804 }
 0x13a   : > { %v1068_v26 = vpack.c.bf16 %v663_v22, %v661_v21  ;;  %v1086_v63 = vadd.f32 %v805_v57, %v680_v46 }
 0x13b   : > { %v659_v28 = vadd.f32 1.0, %v653_v25  ;;  %v664_v14 = vmul.f32 %v658_v27, %v514_v10 }
 0x13c   : > { %1069 = vmatprep.subr.bf16.mxu0 %v1068_v26  ;;  %1076 = vmatprep.subr.bf16.mxu1 %v1068_v26 }
 0x13d   : > { %v665_v29 = vmul.f32 %v659_v28, %v515_v2  ;;  %1071 = vmatpush1.bf16.msra.mxu0 %v1070_v19  ;;  %1078 = vmatpush1.bf16.msra.mxu1 %v1070_v19 }
 0x13f   : > { %1047 = vmatprep.subr.msk.mxu0 %vm420_vm0, %v665_v29  ;;  %1077 = vmatprep.subr.msk.mxu1 %vm420_vm0, %v665_v29 }
 0x141   : > { %1048 = vmatpush1.msk.msra.mxu0 %vm420_vm0, %v664_v14  ;;  %1079 = vmatpush1.msk.msra.mxu1 %vm420_vm0, %v664_v14 }
 0x142   : > { %1049 = vmatmul.mubr.msk.f32.vlgmr.msra.gmra.mrb[6].mxu0 %vm410_vm1, %v666_v62  ;;  %1050 = vmatmul.mubr.msk.f32.vlgmr.msra.gmra.mrb[0].mxu1 %vm410_vm1, %v667_v33 }
 0x143   : > { %1073 = vmatprep.subr.bf16.mxu1 %v1072_v34  ;;  %778 = vmatprep.mubr.f32.mxu1 %v1178_v12 }
 0x144   : > { %1075 = vmatpush1.bf16.msra.mxu1 %v1074_v60 }
 0x145   : > { %1052 = vmatprep.subr.msk.mxu1 %vm420_vm0, %v793_v39 }
 0x146   : > { %1051 = vmatmul.mubr.msk.f32.gmra.mrb[2].mxu1 %vm410_vm1, %v668_v35 }
 0x147   : > { %891 = vmatprep.mubr.f32.mxu1 %v1178_v12 }
 0x148   : > { %1053 = vmatpush1.msk.msra.mxu1 %vm420_vm0, %v792_v37 }
 0x14a   : > { %1054 = vmatmul.mubr.msk.f32.vlgmr.msra.gmra.mrb[4].mxu1 %vm410_vm1, %v785_v40 }
 0x14b   : > { %897 = vmatprep.mubr.f32.mxu1 %v1178_v12 }
 0x14e   : > { %1055 = vmatmul.mubr.msk.f32.gmra.mrb[0].mxu1 %vm410_vm1, %v786_v42 }
 0x14f   : > { %903 = vmatprep.mubr.f32.mxu1 %v1178_v12 }
 0x152   : > { %1056 = vmatmul.mubr.msk.f32.gmra.mrb[2].mxu1 %vm410_vm1, %v787_v43 }
 0x215   : > { %v768_v48 = vpop.f32.mrb[6].mxu0 }
 0x216   : > { %v770_v49 = vpop.f32.mrb[7].mxu0  ;;  %v769_v54 = vadd.f32 %v768_v48, %v675_v45 }
 0x217   : > { %v771_v55 = vadd.f32 %v770_v49, %v675_v45 }
 0x218   : > { %v1081_v24 = vadd.f32 %v800_v41, %v769_v54 }
 0x219   : > { %v1084_v50 = vadd.f32 %v800_v41, %v771_v55 }
 0x21d   : > { %v893_v58 = vpop.f32.mrb[4].mxu1 }
 0x21e   : > { %v1082_v12 = vadd.f32 %v1081_v24, %v893_v58  ;;  %v895_v59 = vpop.f32.mrb[5].mxu1 }
 0x21f   : > { %v1085_v61 = vadd.f32 %v1084_v50, %v895_v59 }
 0x220   : > { %916 = vst [vmem:[%s379_s23] sm:$0xff] %v1082_v12 }
 0x221   : > { %917 = vst [vmem:[%s379_s23 + $0x8] sm:$0xff] %v1085_v61  ;;  %v899_v3 = vpop.f32.mrb[0].mxu1 }
 0x222   : > { %v1087_v31 = vadd.f32 %v1086_v63, %v899_v3  ;;  %v901_v4 = vpop.f32.mrb[1].mxu1 }
 0x223   : > { %v1089_v5 = vadd.f32 %v1086_v63, %v901_v4  ;;  %928 = sbr.rel (!%p1260_p5) target bundleno = 562 (0x232), region = 102 }
 0x224   : > { %918 = vst [vmem:[%s379_s23 + $0x10] sm:$0xff] %v1087_v31 }
 0x225   : > { %919 = vst [vmem:[%s379_s23 + $0x18] sm:$0xff] %v1089_v5  ;;  %v905_v8 = vpop.f32.mrb[2].mxu1 }
 0x226   : > { %v1091_v9 = vadd.f32 %v1090_v7, %v905_v8  ;;  %v907_v11 = vpop.f32.mrb[3].mxu1 }
 0x227   : > { %v1093_v13 = vadd.f32 %v1090_v7, %v907_v11  ;;  %v944_v52 = vld [vmem:[%s379_s23] sm:$0xff] (%p1260_p5) }
 0x228   : > { %920 = vst [vmem:[%s379_s23 + $0x20] sm:$0xf] %v1091_v9  ;;  %v946_v15 = vld [vmem:[%s379_s23 + $0x8] sm:$0xff] (%p1260_p5)  ;;  %945 = vst [vmem:[%s931_s26] sm:$0xff] (%p1260_p5), %v944_v52 }
 0x229   : > { %921 = vst [vmem:[%s379_s23 + $0x28] sm:$0xf] %v1093_v13  ;;  %947 = vst [vmem:[%s931_s26 + $0x8] sm:$0xff] (%p1260_p5), %v946_v15 }
 0x22b   : > { %v948_v16 = vld [vmem:[%s379_s23 + $0x10] sm:$0xff] }
 0x22c   : > { %v950_v17 = vld [vmem:[%s379_s23 + $0x18] sm:$0xff]  ;;  %949 = vst [vmem:[%s931_s26 + $0x20] sm:$0xff] %v948_v16 }
 0x22d   : > { %951 = vst [vmem:[%s931_s26 + $0x28] sm:$0xff] %v950_v17 }
 0x22f   : > { %v952_v36 = vld [vmem:[%s379_s23 + $0x20] sm:$0xff] }
 0x230   : > { %v954_v51 = vld [vmem:[%s379_s23 + $0x28] sm:$0xff]  ;;  %953 = vst [vmem:[%s931_s26 + $0x40] sm:$0xff] %v952_v36 }
 0x231   : > { %955 = vst [vmem:[%s931_s26 + $0x48] sm:$0xff] %v954_v51 }
 0x232 PF: > { %p15_p10 = scmp.ge.s32.totalorder %s1243_s9, 4   ;;  %s1471_s27 = smov %s1172_s28 }
 0x233   : > { %s1472_s28 = smov %s1254_s12  ;;  %s1473_s29 = smov %s1243_s9 }
 0x234   :  { %17 = sbr.rel (!%p15_p10) target bundleno = 2 (0x2), region = 164 }

</bundles_post_ra>
